<compile_context>
chip_gen: v7x
topology: tpu7x:2x2x1
jax: 0.10.0
libtpu: 0.0.40
codegen_flags: <defaults>
</compile_context>

<pallas_src>
import functools

import jax
import jax.numpy as jnp
import numpy as np
from jax.experimental import pallas as pl
from jax.experimental.pallas import tpu as pltpu

IMAGE_SPACE = 3 * 64 * 64        # 12288
HIDDEN = 512
LATENT_SPACE = 128
HEAD_OUT = 2 * LATENT_SPACE      # fused mean|logvar head width (lane-dense 256)


def _encoder_kernel(x_ref, w1_ref, b1_ref, w2_ref, b2_ref, out_ref, h_acc):
    # Grid = (batch_blocks, k_blocks); K (reduction) is the last grid axis.
    k = pl.program_id(1)

    @pl.when(k == 0)
    def _():
        h_acc[...] = jnp.zeros_like(h_acc)

    # Partial fc1 contraction over this K tile.  Both MXU operands are already
    # bf16 (native MXU input type); accumulation stays f32 in VMEM scratch.
    h_acc[...] += jnp.dot(x_ref[...], w1_ref[...],
                          preferred_element_type=jnp.float32)

    @pl.when(k == pl.num_programs(1) - 1)
    def _():
        # Finish fc1: bias + ReLU in f32.
        h = jnp.maximum(h_acc[...] + b1_ref[...], 0.0)
        # Fused heads: one (HIDDEN, 256) bf16 matmul with f32 accumulation,
        # single lane-dense output store.
        out = jnp.dot(h.astype(jnp.bfloat16), w2_ref[...],
                      preferred_element_type=jnp.float32) + b2_ref[...]
        out_ref[...] = out.astype(out_ref.dtype)


def prepare_encoder_params(w1, b1, w2m, b2m, w2l, b2l):
    """One-time parameter prep (kept out of the per-call jitted path):
    bf16 fc1 weight, fused bf16 head weight, reshaped f32 biases."""
    w1_bf = jnp.asarray(w1).astype(jnp.bfloat16)
    b1_r = jnp.asarray(b1, jnp.float32).reshape(1, HIDDEN)
    w2_bf = jnp.concatenate(
        [jnp.asarray(w2m, jnp.float32), jnp.asarray(w2l, jnp.float32)],
        axis=1).astype(jnp.bfloat16)
    b2_r = jnp.concatenate(
        [jnp.asarray(b2m, jnp.float32), jnp.asarray(b2l, jnp.float32)]
    ).reshape(1, HEAD_OUT)
    return w1_bf, b1_r, w2_bf, b2_r


@functools.partial(jax.jit, static_argnames=("tk", "tb"))
def encoder_forward(x, w1_bf, b1_r, w2_bf, b2_r, *, tk=6144, tb=128):
    """x: (B, C, H, W) -> (mean, logvar), each (B, LATENT_SPACE) float32.

    fc1 and the fused head run with bf16 MXU operands + f32 accumulation; this
    intentionally deviates from pure-f32 PyTorch at the ~1e-3 level.
    """
    B = x.shape[0]
    x_flat = x.reshape(B, -1)                       # (B, D), D = IMAGE_SPACE
    D = x_flat.shape[1]
    assert D % tk == 0, "K tile must divide the flattened image size"

    # Batch padding / tiling: pad to a multiple of 16 (bf16 sublane packing);
    # tile at <= tb rows so VMEM stays bounded and the batch axis can shard
    # across TensorCores ("parallel") once B grows.
    b16 = -(-B // 16) * 16
    TB = b16 if b16 <= tb else tb
    B_pad = -(-b16 // TB) * TB
    if B_pad != B:
        x_flat = jnp.pad(x_flat, ((0, B_pad - B), (0, 0)))
    x_bf = x_flat.astype(jnp.bfloat16)              # tiny stream, cast is cheap

    n_bblk = B_pad // TB
    grid = (n_bblk, D // tk)

    cost = pl.CostEstimate(
        flops=2 * B_pad * D * HIDDEN + 2 * B_pad * HIDDEN * HEAD_OUT,
        transcendentals=0,
        bytes_accessed=(n_bblk * D * HIDDEN * 2    # bf16 W1 stream (per batch block)
                        + B_pad * D * 2            # bf16 x stream
                        + HIDDEN * HEAD_OUT * 2    # bf16 fused head weights
                        + HIDDEN * 4 + HEAD_OUT * 4
                        + B_pad * HEAD_OUT * 4),   # f32 output
    )

    out = pl.pallas_call(
        _encoder_kernel,
        out_shape=jax.ShapeDtypeStruct((B_pad, HEAD_OUT), jnp.float32),
        grid_spec=pltpu.PrefetchScalarGridSpec(
            num_scalar_prefetch=0,
            grid=grid,
            in_specs=[
                pl.BlockSpec((TB, tk), lambda bi, k: (bi, k)),           # x tile (bf16)
                pl.BlockSpec((tk, HIDDEN), lambda bi, k: (k, 0)),        # W1 tile (bf16)
                pl.BlockSpec((1, HIDDEN), lambda bi, k: (0, 0)),         # b1 (resident)
                pl.BlockSpec((HIDDEN, HEAD_OUT), lambda bi, k: (0, 0)),  # fused head W (bf16)
                pl.BlockSpec((1, HEAD_OUT), lambda bi, k: (0, 0)),       # fused head b
            ],
            out_specs=pl.BlockSpec((TB, HEAD_OUT), lambda bi, k: (bi, 0)),
            scratch_shapes=[pltpu.VMEM((TB, HIDDEN), jnp.float32)],      # fc1 accum
        ),
        compiler_params=pltpu.CompilerParams(
            dimension_semantics=("parallel", "arbitrary"),  # batch ||, K reduction
            vmem_limit_bytes=32 * 1024 * 1024,              # safe on v5e/v6e/v7x
        ),
        cost_estimate=cost,
    )(x_bf, w1_bf, b1_r, w2_bf, b2_r)

    out = out[:B]
    return out[:, :LATENT_SPACE], out[:, LATENT_SPACE:]


def _init_linear(key, fan_in, fan_out):
    """PyTorch nn.Linear default init: U(-1/sqrt(fan_in), 1/sqrt(fan_in)).
    Weight stored as (in, out) so the kernel computes x @ W."""
    kw, kb = jax.random.split(key)
    bound = 1.0 / np.sqrt(fan_in)
    w = jax.random.uniform(kw, (fan_in, fan_out), jnp.float32, -bound, bound)
    b = jax.random.uniform(kb, (fan_out,), jnp.float32, -bound, bound)
    return w, b


if __name__ == "__main__":
    root = jax.random.PRNGKey(0)
    k_x, k1, k2, k3 = jax.random.split(root, 4)

    # Deterministic synthetic parameters (shapes from Encoder.__init__).
    w1, b1 = _init_linear(k1, IMAGE_SPACE, HIDDEN)          # fc1
    w2m, b2m = _init_linear(k2, HIDDEN, LATENT_SPACE)       # fc2_mean
    w2l, b2l = _init_linear(k3, HIDDEN, LATENT_SPACE)       # fc2_logvar

    # One-time prep: bf16 fc1 weight, fused bf16 head weight, reshaped biases.
    w1_bf, b1_r, w2_bf, b2_r = prepare_encoder_params(w1, b1, w2m, b2m, w2l, b2l)

    # Small batch of NCHW images consistent with IMAGE_SPACE = 3*64*64.
    x = jax.random.normal(k_x, (2, 3, 64, 64), jnp.float32)

    mean, logvar = encoder_forward(x, w1_bf, b1_r, w2_bf, b2_r)
    jax.block_until_ready((mean, logvar))

    # Pure-JAX reference with the same bf16 quantization of x / W1 / head W.
    xf = x.reshape(x.shape[0], -1)
    xq = xf.astype(jnp.bfloat16).astype(jnp.float32)
    w1q = w1_bf.astype(jnp.float32)
    h_ref = jnp.maximum(xq @ w1q + b1, 0.0)
    hq = h_ref.astype(jnp.bfloat16).astype(jnp.float32)
    mean_ref = hq @ w2m.astype(jnp.bfloat16).astype(jnp.float32) + b2m
    logvar_ref = hq @ w2l.astype(jnp.bfloat16).astype(jnp.float32) + b2l
    np.testing.assert_allclose(np.asarray(mean), np.asarray(mean_ref),
                               rtol=1e-2, atol=1e-2)
    np.testing.assert_allclose(np.asarray(logvar), np.asarray(logvar_ref),
                               rtol=1e-2, atol=1e-2)

    print("KERNEL_OK")
</pallas_src>

<mosaic_0001>
module attributes {stable_mosaic.version = 11 : i64} {
  func.func @_encoder_kernel(%arg0: i32, %arg1: i32, %arg2: memref<16x6144xbf16, #tpu.memory_space<vmem>>, %arg3: memref<6144x512xbf16, #tpu.memory_space<vmem>>, %arg4: memref<1x512xf32, #tpu.memory_space<vmem>>, %arg5: memref<512x256xbf16, #tpu.memory_space<vmem>>, %arg6: memref<1x256xf32, #tpu.memory_space<vmem>>, %arg7: memref<16x256xf32, #tpu.memory_space<vmem>>, %arg8: memref<16x512xf32, #tpu.memory_space<vmem>>) attributes {dimension_semantics = [#tpu.dimension_semantics<parallel>, #tpu.dimension_semantics<arbitrary>], iteration_bounds = array<i64: 1, 2>, scalar_prefetch = 0 : i64, scratch_operands = 1 : i64, tpu.core_type = #tpu.core_type<tc>, window_params = [{transform_indices = @transform_0, window_bounds = array<i64: 16, 6144>}, {transform_indices = @transform_1, window_bounds = array<i64: 6144, 512>}, {pipeline_mode = #tpu.pipeline_mode<synchronous>, transform_indices = @transform_2, window_bounds = array<i64: 1, 512>}, {pipeline_mode = #tpu.pipeline_mode<synchronous>, transform_indices = @transform_3, window_bounds = array<i64: 512, 256>}, {pipeline_mode = #tpu.pipeline_mode<synchronous>, transform_indices = @transform_4, window_bounds = array<i64: 1, 256>}, {transform_indices = @transform_5, window_bounds = array<i64: 16, 256>}]} {
    %c0_i32 = arith.constant 0 : i32
    %0 = arith.cmpi eq, %arg1, %c0_i32 : i32
    %1 = arith.extui %0 : i1 to i32
    %c0_i32_0 = arith.constant 0 : i32
    %2 = arith.cmpi ne, %1, %c0_i32_0 : i32
    scf.if %2 {
      %cst_9 = arith.constant 0.000000e+00 : f32
      %12 = vector.broadcast %cst_9 : f32 to vector<16x512xf32>
      %c0_10 = arith.constant 0 : index
      %c0_11 = arith.constant 0 : index
      %13 = vector.load %arg8[%c0_10, %c0_11] : memref<16x512xf32, #tpu.memory_space<vmem>>, vector<16x512xf32>
      tpu.vector_store %arg8[%c0_10, %c0_11], %12 {strides = array<i32>} : memref<16x512xf32, #tpu.memory_space<vmem>>, vector<16x512xf32>,
    } else {
    }
    %c0 = arith.constant 0 : index
    %c0_1 = arith.constant 0 : index
    %3 = vector.load %arg8[%c0, %c0_1] : memref<16x512xf32, #tpu.memory_space<vmem>>, vector<16x512xf32>
    %c0_2 = arith.constant 0 : index
    %c0_3 = arith.constant 0 : index
    %4 = vector.load %arg2[%c0_2, %c0_3] : memref<16x6144xbf16, #tpu.memory_space<vmem>>, vector<16x6144xbf16>
    %c0_4 = arith.constant 0 : index
    %c0_5 = arith.constant 0 : index
    %5 = vector.load %arg3[%c0_4, %c0_5] : memref<6144x512xbf16, #tpu.memory_space<vmem>>, vector<6144x512xbf16>
    %cst = arith.constant dense<0.000000e+00> : vector<16x512xf32>
    %6 = tpu.matmul %4, %5, %cst {dimension_numbers = #tpu.dot_dimension_numbers<[1], [0], [0], [1], [0, 0, 1, 1], [], []>} : vector<16x6144xbf16>, vector<6144x512xbf16>, vector<16x512xf32> -> vector<16x512xf32>
    %7 = arith.addf %3, %6 : vector<16x512xf32>
    %c0_6 = arith.constant 0 : index
    %c0_7 = arith.constant 0 : index
    %8 = vector.load %arg8[%c0_6, %c0_7] : memref<16x512xf32, #tpu.memory_space<vmem>>, vector<16x512xf32>
    tpu.vector_store %arg8[%c0_6, %c0_7], %7 {strides = array<i32>} : memref<16x512xf32, #tpu.memory_space<vmem>>, vector<16x512xf32>,
    %c1_i32 = arith.constant 1 : i32
    %9 = arith.cmpi eq, %arg1, %c1_i32 : i32
    %10 = arith.extui %9 : i1 to i32
    %c0_i32_8 = arith.constant 0 : i32
    %11 = arith.cmpi ne, %10, %c0_i32_8 : i32
    scf.if %11 {
      %c0_9 = arith.constant 0 : index
      %c0_10 = arith.constant 0 : index
      %12 = vector.load %arg8[%c0_9, %c0_10] : memref<16x512xf32, #tpu.memory_space<vmem>>, vector<16x512xf32>
      %c0_11 = arith.constant 0 : index
      %c0_12 = arith.constant 0 : index
      %13 = vector.load %arg4[%c0_11, %c0_12] : memref<1x512xf32, #tpu.memory_space<vmem>>, vector<1x512xf32>
      %14 = vector.broadcast %13 : vector<1x512xf32> to vector<16x512xf32>
      %15 = arith.addf %12, %14 : vector<16x512xf32>
      %cst_13 = arith.constant 0.000000e+00 : f32
      %16 = vector.broadcast %cst_13 : f32 to vector<16x512xf32>
      %17 = arith.maximumf %15, %16 : vector<16x512xf32>
      %18 = arith.truncf %17 : vector<16x512xf32> to vector<16x512xbf16>
      %c0_14 = arith.constant 0 : index
      %c0_15 = arith.constant 0 : index
      %19 = vector.load %arg5[%c0_14, %c0_15] : memref<512x256xbf16, #tpu.memory_space<vmem>>, vector<512x256xbf16>
      %cst_16 = arith.constant dense<0.000000e+00> : vector<16x256xf32>
      %20 = tpu.matmul %18, %19, %cst_16 {dimension_numbers = #tpu.dot_dimension_numbers<[1], [0], [0], [1], [0, 0, 1, 1], [], []>} : vector<16x512xbf16>, vector<512x256xbf16>, vector<16x256xf32> -> vector<16x256xf32>
      %c0_17 = arith.constant 0 : index
      %c0_18 = arith.constant 0 : index
      %21 = vector.load %arg6[%c0_17, %c0_18] : memref<1x256xf32, #tpu.memory_space<vmem>>, vector<1x256xf32>
      %22 = vector.broadcast %21 : vector<1x256xf32> to vector<16x256xf32>
      %23 = arith.addf %20, %22 : vector<16x256xf32>
      %c0_19 = arith.constant 0 : index
      %c0_20 = arith.constant 0 : index
      %24 = vector.load %arg7[%c0_19, %c0_20] : memref<16x256xf32, #tpu.memory_space<vmem>>, vector<16x256xf32>
      tpu.vector_store %arg7[%c0_19, %c0_20], %23 {strides = array<i32>} : memref<16x256xf32, #tpu.memory_space<vmem>>, vector<16x256xf32>,
    } else {
    }
    return
  }
  func.func @transform_0(%arg0: i32, %arg1: i32) -> (i32, i32) {
    %c0_i32 = arith.constant 0 : i32
    return %arg0, %arg1 : i32, i32
  }
  func.func @transform_1(%arg0: i32, %arg1: i32) -> (i32, i32) {
    %c0_i32 = arith.constant 0 : i32
    %c0_i32_0 = arith.constant 0 : i32
    return %arg1, %c0_i32 : i32, i32
  }
  func.func @transform_2(%arg0: i32, %arg1: i32) -> (i32, i32) {
    %c0_i32 = arith.constant 0 : i32
    %c0_i32_0 = arith.constant 0 : i32
    %c0_i32_1 = arith.constant 0 : i32
    return %c0_i32, %c0_i32_0 : i32, i32
  }
  func.func @transform_3(%arg0: i32, %arg1: i32) -> (i32, i32) {
    %c0_i32 = arith.constant 0 : i32
    %c0_i32_0 = arith.constant 0 : i32
    %c0_i32_1 = arith.constant 0 : i32
    return %c0_i32, %c0_i32_0 : i32, i32
  }
  func.func @transform_4(%arg0: i32, %arg1: i32) -> (i32, i32) {
    %c0_i32 = arith.constant 0 : i32
    %c0_i32_0 = arith.constant 0 : i32
    %c0_i32_1 = arith.constant 0 : i32
    return %c0_i32, %c0_i32_0 : i32, i32
  }
  func.func @transform_5(%arg0: i32, %arg1: i32) -> (i32, i32) {
    %c0_i32 = arith.constant 0 : i32
    %c0_i32_0 = arith.constant 0 : i32
    return %arg0, %c0_i32 : i32, i32
  }
}

</mosaic_0001>

<bundles_post_ra>
// kernel: encoder_forward.1
= control target key start
LH: loop header
LB: loop body
LE: loop exit
PB: predicated region body
PF: predicated region fallthrough
CT: control target
= control target key end

     0   :  { %s19383_s0 = inlined_call_operand.vmem [shape: bf16[16,12288], index: 0, kind: input, shape index: {}]   ;;  %s19384_s1 = inlined_call_operand.hbm [shape: bf16[12288,512], index: 1, kind: input, shape index: {}]   ;;  %s19385_s2 = inlined_call_operand.hbm [shape: f32[1,512], index: 2, kind: input, shape index: {}]   ;;  %s19386_s3 = inlined_call_operand.hbm [shape: bf16[512,256], index: 3, kind: input, shape index: {}]   ;;  %s19387_s4 = inlined_call_operand.hbm [shape: f32[1,256], index: 4, kind: input, shape index: {}]   ;;  %s19388_s5 = inlined_call_operand.vmem [shape: f32[16,256], index: 5, kind: output, shape index: {}]  }
   0x1   :  { %19395 = sst [smem:[#allocation15_spill]] %s19385_s2 }
   0x2   :  { %10 = vsyncpa [#allocation5], 0 }
   0x3   :  { %12 = vsyncpa [#allocation5 + $0x1], 0 }
   0x4   :  { %13 = vsyncpa [#allocation7], 0 }
   0x5   :  { %14 = vsyncpa [#allocation10], 0  ;;  %s17276_s18 = smov 0   ;;  %s17278_s19 = smov 0  }
   0x6   :  { %s17280_s20 = smov 0   ;;  %s17282_s21 = smov 0  }
   0x7   :  { %s17284_s22 = smov 0   ;;  %s17286_s23 = smov 0  }
   0x8 LB: > { %s12712_s24 = sadd.s32 4294967295, %s17235_s23   ;;  %s29_s25 = sadd.s32 1, %s17231_s22  ;;  %s17235_s23 = sphi %s17286_s23, %s20_s23   ;;  %s17231_s22 = sphi %s17284_s22, %s19414_s22   ;;  %s17227_s21 = sphi %s17282_s21, %s19413_s21   ;;  %s17223_s20 = sphi %s17280_s20, %s19412_s20   ;;  %s17219_s19 = sphi %s17278_s19, %s19411_s19   ;;  %s17215_s18 = sphi %s17276_s18, %s19410_s18  }
   0x9   : > { %p30_p0 = scmp.ge.s32.totalorder %s29_s25, 2  ;;  %s41_s26 = sadd.s32 1, %s17223_s20 }
   0xa   : > { %p48_p1 = scmp.ne.s32.totalorder %s17223_s20, %s17219_s19  ;;  %p49_p2 = scmp.eq.s32.totalorder %s17235_s23, 0 }
   0xb   : > { %s19416_s25 = smov (%p30_p0, %s29_s25), 0  ;;  %p80_p4 = scmp.ne.s32.totalorder %s17219_s19, %s17215_s18 }
   0xc   : > { %19396 = sst [smem:[#allocation14_spill]] %s19416_s25  ;;  %p17312_p3 = por %p49_p2, %p48_p1 }
   0xd   : > { %s37_s28 = ssub.s32 %s17231_s22, %s19416_s25  ;;  %p17319_p5 = scmp.eq.s32.totalorder %s12712_s24, 0 }
   0xe   : > { %s19397_s27 = scalar_select %p17312_p3, 1, 0 }
   0xf   : > { %s19398_s29 = scalar_select %p17319_p5, 1, 0 }
  0x10   : > { %p39_p6 = scmp.eq.s32.totalorder %s37_s28, 0  ;;  %p12713_p7 = scmp.ge.s32.totalorder %s17235_s23, 1 }
  0x11   : > { %p17326_p8 = por %p17319_p5, %p80_p4  ;;  %p180_p9 = scmp.lt.s32.totalorder %s17235_s23, 3 }
  0x12   : > { %s17332_s6 = scalar_select %p39_p6, %s17223_s20, %s41_s26  }
  0x13   : > { %s19399_s30 = scalar_select %p17326_p8, 1, 0 }
  0x14   : > { %p17334_p10 = pnand %p12713_p7, %p180_p9  ;;  %s17237_s8 = smov [#allocation6]  }
  0x15   : > { %s193_s9 = sshll.u32 %s17237_s8, 4  ;;  %s17238_s10 = smov [#allocation8]   ;;  %s194_s9 = int_to_ptr.vmem [resolvable:$true] %s193_s9 }
  0x16   : > { %s19400_s7 = scalar_select %p17334_p10, 1, 0 }
  0x17   : > { %p14593_p11 = pneg %p17334_p10  ;;  %s203_s11 = sshll.u32 %s17238_s10, 4  ;;  %s17346_s11 = int_to_ptr.vmem [resolvable:$true] %s203_s11 }
  0x18   : > { %s19402_s2 = sld [smem:[#allocation15_spill]] }
  0x19   : > { %p17342_p12 = pnand %p14593_p11, %p17319_p5 }
  0x1b   : > { %p17356_p0 = pneg %p17342_p12 }
  0x1e   : > { %s17065_s15 = scalar_lea.hbm %s19402_s2, 64 }
  0x1f   : > { %p17066_p13 = scmp.ne.s32.totalorder %s19402_s2, %s17065_s15  ;;  %p17072_p4 = scmp.lt.u32.totalorder %s17065_s15, %s19402_s2 }
  0x21   : > { %p17068_p1 = pnand %p17356_p0, %p17066_p13 }
  0x23   : > { %p17069_p2 = pneg %p17068_p1 }
  0x25   : > { %p17074_p6 = pnand %p17072_p4, %p17069_p2 }
  0x27   : > { %17077 = shalt.err (!%p17074_p6)
}
  0x28   : > { %s17078_s28 = scalar_lea.vmem %s194_s9, 64  ;;  %p17086_p5 = scmp.lt.s32.totalorder %s194_s9, %s194_s9 }
  0x29   : > { %p17079_p7 = scmp.ne.s32.totalorder %s194_s9, %s17078_s28  ;;  %p17087_p8 = scmp.lt.s32.totalorder %s17078_s28, %s17078_s28 }
  0x2b   : > { %p17081_p9 = pnand %p17079_p7, %p17356_p0  ;;  %p17088_p10 = por %p17087_p8, %p17086_p5 }
  0x2d   : > { %p17082_p11 = pneg %p17081_p9 }
  0x2f   : > { %p17089_p3 = pnand %p17088_p10, %p17082_p11 }
  0x31   : > { %17092 = shalt.err (!%p17089_p3)
}
  0x32   : > { %14596 = dma.hbm_to_vmem [thread:$0]  (!%p17342_p12), %s19402_s2, 64, %s194_s9, [#allocation7]  }
  0x33   : > { %s17093_s15 = scalar_lea.hbm %s19386_s3, 8192 }
  0x34   : > { %p17094_p13 = scmp.ne.s32.totalorder %s19386_s3, %s17093_s15  ;;  %p17100_p3 = scmp.lt.u32.totalorder %s17093_s15, %s19386_s3 }
  0x36   : > { %p17096_p1 = pnand %p17094_p13, %p17356_p0 }
  0x38   : > { %p17097_p5 = pneg %p17096_p1 }
  0x3a   : > { %p17102_p8 = pnand %p17100_p3, %p17097_p5 }
  0x3c   : > { %17105 = shalt.err (!%p17102_p8)
}
  0x3d   : > { %s17106_s9 = scalar_lea.vmem %s17346_s11, 8192  ;;  %p17114_p6 = scmp.lt.s32.totalorder %s17346_s11, %s17346_s11 }
  0x3e   : > { %p17107_p10 = scmp.ne.s32.totalorder %s17346_s11, %s17106_s9  ;;  %p17115_p7 = scmp.lt.s32.totalorder %s17106_s9, %s17106_s9 }
  0x40   : > { %p17109_p2 = pnand %p17107_p10, %p17356_p0  ;;  %p17116_p9 = por %p17115_p7, %p17114_p6 }
  0x42   : > { %p17110_p4 = pneg %p17109_p2 }
  0x44   : > { %p17117_p11 = pnand %p17116_p9, %p17110_p4 }
  0x46   : > { %17120 = shalt.err (!%p17117_p11)
}
  0x47   : > { %s17239_s28 = smov 128   ;;  %s17240_s8 = smov 8  }
  0x48   : > { %14599 = dma.hbm_to_vmem [thread:$0]  (!%p17342_p12), %s19386_s3, 8192, %s17346_s11, [#allocation7], %s17239_s28, %s17239_s28, %s17240_s8  }
  0x49   : > { %s17241_s14 = smov [#allocation9]   ;;  %s17121_s24 = scalar_lea.hbm %s19387_s4, 32 }
  0x4a   : > { %s217_s15 = sshll.u32 %s17241_s14, 4  ;;  %p17122_p13 = scmp.ne.s32.totalorder %s19387_s4, %s17121_s24  ;;  %s218_s15 = int_to_ptr.vmem [resolvable:$true] %s217_s15 }
  0x4b   : > { %p17128_p3 = scmp.lt.u32.totalorder %s17121_s24, %s19387_s4 }
  0x4c   : > { %p17124_p1 = pnand %p17122_p13, %p17356_p0 }
  0x4e   : > { %p17125_p5 = pneg %p17124_p1 }
  0x50   : > { %p17130_p8 = pnand %p17128_p3, %p17125_p5 }
  0x52   : > { %17133 = shalt.err (!%p17130_p8)
}
  0x53   : > { %s17134_s11 = scalar_lea.vmem %s218_s15, 32  ;;  %p17142_p6 = scmp.lt.s32.totalorder %s218_s15, %s218_s15 }
  0x54   : > { %p17135_p10 = scmp.ne.s32.totalorder %s218_s15, %s17134_s11  ;;  %p17143_p7 = scmp.lt.s32.totalorder %s17134_s11, %s17134_s11 }
  0x56   : > { %p17137_p2 = pnand %p17135_p10, %p17356_p0  ;;  %p17144_p9 = por %p17143_p7, %p17142_p6 }
  0x58   : > { %p17138_p4 = pneg %p17137_p2 }
  0x5a   : > { %p17145_p11 = pnand %p17144_p9, %p17138_p4 }
  0x5c   : > { %17148 = shalt.err (!%p17145_p11)
}
  0x5d   : > { %14602 = dma.hbm_to_vmem [thread:$0]  (!%p17342_p12), %s19387_s4, 32, %s218_s15, [#allocation10]  }
  0x5e   : > { %p12717_p13 = scmp.ge.s32.totalorder %s17235_s23, 2 }
  0x5f   : > { %p19404_p1 = scmp.ne.s32.totalorder (!%p12717_p13), %s19397_s27, 0 }
  0x60   : > { %224 = sbr.rel (%p12717_p13) target bundleno = 159 (0x9f), region = 28 }
  0x67   : > { %227 = sbr.rel (!%p19404_p1) target bundleno = 132 (0x84), region = 32  ;;  %s229_s2 = sand.u32 (%p19404_p1), 1, %s17223_s20  }
  0x68   : > { %s14379_s25 = smul.u32 (%p19404_p1), 192, %s17231_s22 }
  0x69   : > { %s14575_s18 = smul.u32 (%p19404_p1), 384, %s229_s2 }
  0x6a   : > { %s17421_s14 = scalar_lea.vmem (%p19404_p1), %s19383_s0, %s14379_s25 }
  0x6b   : > { %v250_v0 = vld [vmem:[%s17421_s14] sm:$0xff] (%p19404_p1)  ;;  %v252_v1 = vld [vmem:[%s17421_s14 + $0x8] sm:$0xff] (%p19404_p1)  ;;  %v254_v2 = vld [vmem:[%s17421_s14 + $0x10] sm:$0xff] (%p19404_p1)  ;;  %s17426_s12 = scalar_lea.vmem (%p19404_p1), [#allocation3], %s14575_s18 }
  0x6c   : > { %251 = vst [vmem:[%s17426_s12] sm:$0xff] (%p19404_p1), %v250_v0  ;;  %253 = vst [vmem:[%s17426_s12 + $0x8] sm:$0xff] (%p19404_p1), %v252_v1  ;;  %v256_v3 = vld [vmem:[%s17421_s14 + $0x18] sm:$0xff] (%p19404_p1)  ;;  %v258_v4 = vld [vmem:[%s17421_s14 + $0x20] sm:$0xff] (%p19404_p1) }
  0x6d   : > { %255 = vst [vmem:[%s17426_s12 + $0x10] sm:$0xff] (%p19404_p1), %v254_v2  ;;  %v260_v5 = vld [vmem:[%s17421_s14 + $0x28] sm:$0xff] (%p19404_p1)  ;;  %257 = vst [vmem:[%s17426_s12 + $0x18] sm:$0xff] (%p19404_p1), %v256_v3  ;;  %v262_v6 = vld [vmem:[%s17421_s14 + $0x30] sm:$0xff] (%p19404_p1) }
  0x6e   : > { %259 = vst [vmem:[%s17426_s12 + $0x20] sm:$0xff] %v258_v4  ;;  %261 = vst [vmem:[%s17426_s12 + $0x28] sm:$0xff] %v260_v5  ;;  %v264_v7 = vld [vmem:[%s17421_s14 + $0x38] sm:$0xff]  ;;  %v266_v8 = vld [vmem:[%s17421_s14 + $0x40] sm:$0xff] }
  0x6f   : > { %263 = vst [vmem:[%s17426_s12 + $0x30] sm:$0xff] %v262_v6  ;;  %265 = vst [vmem:[%s17426_s12 + $0x38] sm:$0xff] %v264_v7  ;;  %v268_v9 = vld [vmem:[%s17421_s14 + $0x48] sm:$0xff]  ;;  %v270_v10 = vld [vmem:[%s17421_s14 + $0x50] sm:$0xff] }
  0x70   : > { %267 = vst [vmem:[%s17426_s12 + $0x40] sm:$0xff] %v266_v8  ;;  %v272_v11 = vld [vmem:[%s17421_s14 + $0x58] sm:$0xff]  ;;  %269 = vst [vmem:[%s17426_s12 + $0x48] sm:$0xff] %v268_v9  ;;  %v274_v12 = vld [vmem:[%s17421_s14 + $0x60] sm:$0xff] }
  0x71   : > { %271 = vst [vmem:[%s17426_s12 + $0x50] sm:$0xff] %v270_v10  ;;  %273 = vst [vmem:[%s17426_s12 + $0x58] sm:$0xff] %v272_v11  ;;  %v276_v13 = vld [vmem:[%s17421_s14 + $0x68] sm:$0xff]  ;;  %v278_v14 = vld [vmem:[%s17421_s14 + $0x70] sm:$0xff] }
  0x72   : > { %275 = vst [vmem:[%s17426_s12 + $0x60] sm:$0xff] %v274_v12  ;;  %277 = vst [vmem:[%s17426_s12 + $0x68] sm:$0xff] %v276_v13  ;;  %v280_v15 = vld [vmem:[%s17421_s14 + $0x78] sm:$0xff]  ;;  %v282_v16 = vld [vmem:[%s17421_s14 + $0x80] sm:$0xff] }
  0x73   : > { %279 = vst [vmem:[%s17426_s12 + $0x70] sm:$0xff] %v278_v14  ;;  %v284_v17 = vld [vmem:[%s17421_s14 + $0x88] sm:$0xff]  ;;  %281 = vst [vmem:[%s17426_s12 + $0x78] sm:$0xff] %v280_v15  ;;  %v286_v18 = vld [vmem:[%s17421_s14 + $0x90] sm:$0xff] }
  0x74   : > { %283 = vst [vmem:[%s17426_s12 + $0x80] sm:$0xff] %v282_v16  ;;  %285 = vst [vmem:[%s17426_s12 + $0x88] sm:$0xff] %v284_v17  ;;  %v288_v19 = vld [vmem:[%s17421_s14 + $0x98] sm:$0xff]  ;;  %v290_v20 = vld [vmem:[%s17421_s14 + $0xa0] sm:$0xff] }
  0x75   : > { %287 = vst [vmem:[%s17426_s12 + $0x90] sm:$0xff] %v286_v18  ;;  %289 = vst [vmem:[%s17426_s12 + $0x98] sm:$0xff] %v288_v19  ;;  %v292_v21 = vld [vmem:[%s17421_s14 + $0xa8] sm:$0xff]  ;;  %v294_v22 = vld [vmem:[%s17421_s14 + $0xb0] sm:$0xff] }
  0x76   : > { %291 = vst [vmem:[%s17426_s12 + $0xa0] sm:$0xff] %v290_v20  ;;  %v296_v23 = vld [vmem:[%s17421_s14 + $0xb8] sm:$0xff]  ;;  %293 = vst [vmem:[%s17426_s12 + $0xa8] sm:$0xff] %v292_v21  ;;  %v298_v24 = vld [vmem:[%s17421_s14 + $0x180] sm:$0xff] }
  0x77   : > { %295 = vst [vmem:[%s17426_s12 + $0xb0] sm:$0xff] %v294_v22  ;;  %297 = vst [vmem:[%s17426_s12 + $0xb8] sm:$0xff] %v296_v23  ;;  %v300_v25 = vld [vmem:[%s17421_s14 + $0x188] sm:$0xff]  ;;  %v302_v26 = vld [vmem:[%s17421_s14 + $0x190] sm:$0xff] }
  0x78   : > { %299 = vst [vmem:[%s17426_s12 + $0xc0] sm:$0xff] %v298_v24  ;;  %301 = vst [vmem:[%s17426_s12 + $0xc8] sm:$0xff] %v300_v25  ;;  %v304_v27 = vld [vmem:[%s17421_s14 + $0x198] sm:$0xff]  ;;  %v306_v28 = vld [vmem:[%s17421_s14 + $0x1a0] sm:$0xff] }
  0x79   : > { %303 = vst [vmem:[%s17426_s12 + $0xd0] sm:$0xff] %v302_v26  ;;  %v308_v29 = vld [vmem:[%s17421_s14 + $0x1a8] sm:$0xff]  ;;  %305 = vst [vmem:[%s17426_s12 + $0xd8] sm:$0xff] %v304_v27  ;;  %v310_v30 = vld [vmem:[%s17421_s14 + $0x1b0] sm:$0xff] }
  0x7a   : > { %307 = vst [vmem:[%s17426_s12 + $0xe0] sm:$0xff] %v306_v28  ;;  %309 = vst [vmem:[%s17426_s12 + $0xe8] sm:$0xff] %v308_v29  ;;  %v312_v31 = vld [vmem:[%s17421_s14 + $0x1b8] sm:$0xff]  ;;  %v314_v32 = vld [vmem:[%s17421_s14 + $0x1c0] sm:$0xff] }
  0x7b   : > { %311 = vst [vmem:[%s17426_s12 + $0xf0] sm:$0xff] %v310_v30  ;;  %313 = vst [vmem:[%s17426_s12 + $0xf8] sm:$0xff] %v312_v31  ;;  %v316_v33 = vld [vmem:[%s17421_s14 + $0x1c8] sm:$0xff]  ;;  %v318_v34 = vld [vmem:[%s17421_s14 + $0x1d0] sm:$0xff] }
  0x7c   : > { %315 = vst [vmem:[%s17426_s12 + $0x100] sm:$0xff] %v314_v32  ;;  %v320_v35 = vld [vmem:[%s17421_s14 + $0x1d8] sm:$0xff]  ;;  %317 = vst [vmem:[%s17426_s12 + $0x108] sm:$0xff] %v316_v33  ;;  %v322_v36 = vld [vmem:[%s17421_s14 + $0x1e0] sm:$0xff] }
  0x7d   : > { %319 = vst [vmem:[%s17426_s12 + $0x110] sm:$0xff] %v318_v34  ;;  %321 = vst [vmem:[%s17426_s12 + $0x118] sm:$0xff] %v320_v35  ;;  %v324_v37 = vld [vmem:[%s17421_s14 + $0x1e8] sm:$0xff]  ;;  %v326_v38 = vld [vmem:[%s17421_s14 + $0x1f0] sm:$0xff] }
  0x7e   : > { %323 = vst [vmem:[%s17426_s12 + $0x120] sm:$0xff] %v322_v36  ;;  %325 = vst [vmem:[%s17426_s12 + $0x128] sm:$0xff] %v324_v37  ;;  %v328_v39 = vld [vmem:[%s17421_s14 + $0x1f8] sm:$0xff]  ;;  %v330_v40 = vld [vmem:[%s17421_s14 + $0x200] sm:$0xff] }
  0x7f   : > { %327 = vst [vmem:[%s17426_s12 + $0x130] sm:$0xff] %v326_v38  ;;  %v332_v41 = vld [vmem:[%s17421_s14 + $0x208] sm:$0xff]  ;;  %329 = vst [vmem:[%s17426_s12 + $0x138] sm:$0xff] %v328_v39  ;;  %v334_v42 = vld [vmem:[%s17421_s14 + $0x210] sm:$0xff] }
  0x80   : > { %331 = vst [vmem:[%s17426_s12 + $0x140] sm:$0xff] %v330_v40  ;;  %333 = vst [vmem:[%s17426_s12 + $0x148] sm:$0xff] %v332_v41  ;;  %v336_v43 = vld [vmem:[%s17421_s14 + $0x218] sm:$0xff]  ;;  %v338_v44 = vld [vmem:[%s17421_s14 + $0x220] sm:$0xff] }
  0x81   : > { %335 = vst [vmem:[%s17426_s12 + $0x150] sm:$0xff] %v334_v42  ;;  %337 = vst [vmem:[%s17426_s12 + $0x158] sm:$0xff] %v336_v43  ;;  %v340_v45 = vld [vmem:[%s17421_s14 + $0x228] sm:$0xff]  ;;  %v342_v46 = vld [vmem:[%s17421_s14 + $0x230] sm:$0xff] }
  0x82   : > { %339 = vst [vmem:[%s17426_s12 + $0x160] sm:$0xff] %v338_v44  ;;  %v344_v47 = vld [vmem:[%s17421_s14 + $0x238] sm:$0xff]  ;;  %341 = vst [vmem:[%s17426_s12 + $0x168] sm:$0xff] %v340_v45 }
  0x83   : > { %343 = vst [vmem:[%s17426_s12 + $0x170] sm:$0xff] %v342_v46  ;;  %345 = vst [vmem:[%s17426_s12 + $0x178] sm:$0xff] %v344_v47 }
  0x84 PF: > { %s352_s15 = sand.u32 1, %s17223_s20   ;;  %s14382_s16 = smul.u32 196608, %s17231_s22 }
  0x85   : > { %s14576_s17 = smul.u32 12288, %s352_s15  ;;  %s17530_s8 = scalar_lea.sflag [#allocation5], %s352_s15 }
  0x86   : > { %s17526_s9 = scalar_lea.hbm %s19384_s1, %s14382_s16  ;;  %p19405_p0 = scmp.ne.s32.totalorder %s19397_s27, 0 }
  0x87   : > { %s356_s11 = scalar_lea.vmem [#allocation4], %s14576_s17  ;;  %s17149_s2 = scalar_lea.hbm %s17526_s9, 196608 }
  0x88   : > { %s364_s28 = sshll.u32 %s356_s11, 4  ;;  %p17150_p12 = scmp.ne.s32.totalorder %s17526_s9, %s17149_s2  ;;  %s17528_s28 = int_to_ptr.vmem [resolvable:$true] %s364_s28 }
  0x89   : > { %s17153_s10 = scalar_lea.hbm %s19384_s1, 393216  ;;  %p17154_p8 = scmp.lt.u32.totalorder %s17526_s9, %s19384_s1 }
  0x8a   : > { %p17151_p5 = pnand %p17150_p12, %p19405_p0  ;;  %p17155_p10 = scmp.lt.u32.totalorder %s17153_s10, %s17149_s2 }
  0x8b   : > { %p17157_p4 = scmp.lt.u32.totalorder %s17149_s2, %s17526_s9 }
  0x8c   : > { %p17152_p3 = pneg %p17151_p5  ;;  %p17156_p2 = por %p17155_p10, %p17154_p8 }
  0x8e   : > { %p17158_p6 = por %p17157_p4, %p17156_p2 }
  0x90   : > { %p17159_p7 = pnand %p17158_p6, %p17152_p3 }
  0x92   : > { %17162 = shalt.err (!%p17159_p7)
}
  0x93   : > { %s17163_s12 = scalar_lea.vmem %s17528_s28, 196608  ;;  %s17242_s15 = smov [#allocation4]  }
  0x94   : > { %p17164_p9 = scmp.ne.s32.totalorder %s17528_s28, %s17163_s12  ;;  %s17167_s16 = sshll.u32 %s17242_s15, 4  ;;  %s17168_s16 = int_to_ptr.vmem [resolvable:$false] %s17167_s16 }
  0x95   : > { %s17169_s17 = scalar_lea.vmem %s17168_s16, 393216  ;;  %p17170_p1 = scmp.lt.s32.totalorder %s17528_s28, %s17168_s16 }
  0x96   : > { %p17165_p11 = pnand %p17164_p9, %p19405_p0  ;;  %p17171_p12 = scmp.lt.s32.totalorder %s17169_s17, %s17163_s12 }
  0x98   : > { %p17166_p13 = pneg %p17165_p11  ;;  %p17172_p5 = por %p17171_p12, %p17170_p1 }
  0x9a   : > { %p17173_p8 = pnand %p17172_p5, %p17166_p13 }
  0x9c   : > { %17176 = shalt.err (!%p17173_p8)
}
  0x9d   : > { %s17243_s24 = smov 256   ;;  %s17244_s26 = smov 16  }
  0x9e   : > { %14585 = dma.hbm_to_vmem [thread:$0]  (%p19405_p0), %s17526_s9, 196608, %s17528_s28, %s17530_s8, %s17243_s24, %s17243_s24, %s17244_s26  }
  0x9f PF: > { %p19406_p3 = scmp.ne.s32.totalorder %s19400_s7, 0 }
  0xa0   : > { %s379_s11 = sand.u32 (!%p19406_p3), 1, %s17219_s19   ;;  %p19407_p10 = scmp.ne.s32.totalorder (!%p19406_p3), %s19399_s30, 0 }
  0xa1   : > { %376 = sbr.rel (%p19406_p3) target bundleno = 2179 (0x883), region = 59  ;;  %s386_s10 = scalar_lea.sflag (!%p19406_p3), [#allocation5], %s379_s11 }
  0xa2   : > { %s14577_s2 = smul.u32 (!%p19406_p3), 384, %s379_s11 }
  0xa3   : > { %s14578_s25 = smul.u32 (!%p19406_p3), 12288, %s379_s11 }
  0xa4   : > { %s17557_s18 = scalar_lea.vmem (!%p19406_p3), [#allocation3], %s14577_s2 }
  0xa5   : > { %s17559_s13 = scalar_lea.vmem (!%p19406_p3), [#allocation4], %s14578_s25 }
  0xa8   : > { %17202 = dma.done.wait (%p19407_p10), %s386_s10, 196608  }
  0xa9   : > { %17204 = vsyncadd (%p19407_p10), %s386_s10, 4294770688  ;;  %p19408_p0 = scmp.ne.s32.totalorder %s19398_s29, 0 }
  0xab   : > { %17206 = dma.done.wait (%p19408_p0), [#allocation7], 8256  }
  0xac   : > { %17208 = vsyncadd (%p19408_p0), [#allocation7], 4294959040 }
  0xad   : > { %17210 = dma.done.wait (%p19408_p0), [#allocation10], 32  }
  0xae   : > { %17212 = vsyncadd (%p19408_p0), [#allocation10], 4294967264  ;;  %p12725_p2 = scmp.ne.s32.totalorder %s17227_s21, 0 }
  0xaf   : > { %v17245_v48 = vmov (!%p12725_p2), 0.0  }
  0xb0   : > { %446 = sbr.rel (%p12725_p2) target bundleno = 183 (0xb7), region = 83  ;;  %447 = vst [vmem:[#allocation2] sm:$0xff] (!%p12725_p2), %v17245_v48  ;;  %448 = vst [vmem:[#allocation2 + $0x8] sm:$0xff] (!%p12725_p2), %v17245_v48 }
  0xb1   : > { %449 = vst [vmem:[#allocation2 + $0x10] sm:$0xff] (!%p12725_p2), %v17245_v48  ;;  %450 = vst [vmem:[#allocation2 + $0x18] sm:$0xff] (!%p12725_p2), %v17245_v48 }
  0xb2   : > { %451 = vst [vmem:[#allocation2 + $0x20] sm:$0xff] (!%p12725_p2), %v17245_v48  ;;  %452 = vst [vmem:[#allocation2 + $0x28] sm:$0xff] (!%p12725_p2), %v17245_v48 }
  0xb3   : > { %453 = vst [vmem:[#allocation2 + $0x30] sm:$0xff] (!%p12725_p2), %v17245_v48  ;;  %454 = vst [vmem:[#allocation2 + $0x38] sm:$0xff] (!%p12725_p2), %v17245_v48 }
  0xb7 PF: > { %v14665_v49 = vld [vmem:[%s17559_s13 + $0x4] ss:$16 sps:$4 sm:$0xff]   ;;  %v14667_v50 = vld [vmem:[%s17559_s13 + $0xc] ss:$16 sps:$4 sm:$0xff]   ;;  %v14669_v51 = vld [vmem:[%s17559_s13] ss:$16 sps:$4 sm:$0xff]  }
  0xb8   : > { %9967 = vmatprep.subr.bf16.mxu0 %v14665_v49  ;;  %v14670_v52 = vld [vmem:[%s17559_s13 + $0x8] ss:$16 sps:$4 sm:$0xff]   ;;  %10999 = vmatprep.subr.bf16.mxu1 %v14667_v50  ;;  %v14671_v53 = vld [vmem:[%s17559_s13 + $0x24] ss:$16 sps:$4 sm:$0xff]   ;;  %v14673_v54 = vld [vmem:[%s17559_s13 + $0x2c] ss:$16 sps:$4 sm:$0xff]  }
  0xb9   : > { %9968 = vmatpush1.bf16.msra.mxu0 %v14669_v51  ;;  %11000 = vmatpush1.bf16.msra.mxu1 %v14670_v52  ;;  %v14675_v55 = vld [vmem:[%s17559_s13 + $0x20] ss:$16 sps:$4 sm:$0xff]   ;;  %v14676_v56 = vld [vmem:[%s17559_s13 + $0x28] ss:$16 sps:$4 sm:$0xff]   ;;  %v14677_v57 = vld [vmem:[%s17559_s13 + $0x44] ss:$16 sps:$4 sm:$0xff]  }
  0xba   : > { %9969 = vmatprep.subr.bf16.mxu0 %v14671_v53  ;;  %11001 = vmatprep.subr.bf16.mxu1 %v14673_v54  ;;  %v14679_v58 = vld [vmem:[%s17559_s13 + $0x4c] ss:$16 sps:$4 sm:$0xff]   ;;  %v14681_v59 = vld [vmem:[%s17559_s13 + $0x40] ss:$16 sps:$4 sm:$0xff]   ;;  %v14682_v60 = vld [vmem:[%s17559_s13 + $0x48] ss:$16 sps:$4 sm:$0xff]  }
  0xbb   : > { %v14683_v61 = vld [vmem:[%s17559_s13 + $0x64] ss:$16 sps:$4 sm:$0xff]   ;;  %v14685_v62 = vld [vmem:[%s17559_s13 + $0x6c] ss:$16 sps:$4 sm:$0xff]   ;;  %v14687_v63 = vld [vmem:[%s17559_s13 + $0x60] ss:$16 sps:$4 sm:$0xff]  }
  0xbc   : > { %v14688_v0 = vld [vmem:[%s17559_s13 + $0x68] ss:$16 sps:$4 sm:$0xff]   ;;  %v14689_v1 = vld [vmem:[%s17559_s13 + $0x84] ss:$16 sps:$4 sm:$0xff]   ;;  %v14691_v2 = vld [vmem:[%s17559_s13 + $0x8c] ss:$16 sps:$4 sm:$0xff]  }
  0xbd   : > { %9970 = vmatpush1.bf16.msra.mxu0 %v14675_v55  ;;  %11002 = vmatpush1.bf16.msra.mxu1 %v14676_v56  ;;  %v14693_v3 = vld [vmem:[%s17559_s13 + $0x80] ss:$16 sps:$4 sm:$0xff]   ;;  %v14694_v4 = vld [vmem:[%s17559_s13 + $0x88] ss:$16 sps:$4 sm:$0xff]   ;;  %v14695_v5 = vld [vmem:[%s17559_s13 + $0xa4] ss:$16 sps:$4 sm:$0xff]  }
  0xbe   : > { %9971 = vmatprep.subr.bf16.mxu0 %v14677_v57  ;;  %11003 = vmatprep.subr.bf16.mxu1 %v14679_v58  ;;  %v14697_v6 = vld [vmem:[%s17559_s13 + $0xac] ss:$16 sps:$4 sm:$0xff]   ;;  %v14699_v7 = vld [vmem:[%s17559_s13 + $0xa0] ss:$16 sps:$4 sm:$0xff]   ;;  %v14700_v8 = vld [vmem:[%s17559_s13 + $0xa8] ss:$16 sps:$4 sm:$0xff]  }
  0xbf   : > { %v14701_v9 = vld [vmem:[%s17559_s13 + $0xc4] ss:$16 sps:$4 sm:$0xff]   ;;  %v14703_v10 = vld [vmem:[%s17559_s13 + $0xcc] ss:$16 sps:$4 sm:$0xff]   ;;  %v14705_v11 = vld [vmem:[%s17559_s13 + $0xc0] ss:$16 sps:$4 sm:$0xff]  }
  0xc0   : > { %v14706_v12 = vld [vmem:[%s17559_s13 + $0xc8] ss:$16 sps:$4 sm:$0xff]   ;;  %v14707_v13 = vld [vmem:[%s17559_s13 + $0xe4] ss:$16 sps:$4 sm:$0xff]   ;;  %v14709_v14 = vld [vmem:[%s17559_s13 + $0xec] ss:$16 sps:$4 sm:$0xff]  }
  0xc1   : > { %9972 = vmatpush1.bf16.msra.mxu0 %v14681_v59  ;;  %11004 = vmatpush1.bf16.msra.mxu1 %v14682_v60  ;;  %v14711_v15 = vld [vmem:[%s17559_s13 + $0xe0] ss:$16 sps:$4 sm:$0xff]   ;;  %v14712_v16 = vld [vmem:[%s17559_s13 + $0xe8] ss:$16 sps:$4 sm:$0xff]   ;;  %v14713_v17 = vld [vmem:[%s17559_s13 + $0x104] ss:$16 sps:$4 sm:$0xff]  }
  0xc2   : > { %9973 = vmatprep.subr.bf16.mxu0 %v14683_v61  ;;  %11005 = vmatprep.subr.bf16.mxu1 %v14685_v62  ;;  %v14715_v18 = vld [vmem:[%s17559_s13 + $0x10c] ss:$16 sps:$4 sm:$0xff]   ;;  %v14717_v19 = vld [vmem:[%s17559_s13 + $0x100] ss:$16 sps:$4 sm:$0xff]   ;;  %v14718_v20 = vld [vmem:[%s17559_s13 + $0x108] ss:$16 sps:$4 sm:$0xff]  }
  0xc3   : > { %v14719_v21 = vld [vmem:[%s17559_s13 + $0x124] ss:$16 sps:$4 sm:$0xff]   ;;  %v14721_v22 = vld [vmem:[%s17559_s13 + $0x12c] ss:$16 sps:$4 sm:$0xff]   ;;  %v14723_v23 = vld [vmem:[%s17559_s13 + $0x120] ss:$16 sps:$4 sm:$0xff]  }
  0xc4   : > { %v14724_v24 = vld [vmem:[%s17559_s13 + $0x128] ss:$16 sps:$4 sm:$0xff]   ;;  %v14725_v25 = vld [vmem:[%s17559_s13 + $0x144] ss:$16 sps:$4 sm:$0xff]   ;;  %v14727_v26 = vld [vmem:[%s17559_s13 + $0x14c] ss:$16 sps:$4 sm:$0xff]  }
  0xc5   : > { %9974 = vmatpush1.bf16.msra.mxu0 %v14687_v63  ;;  %11006 = vmatpush1.bf16.msra.mxu1 %v14688_v0  ;;  %v14729_v27 = vld [vmem:[%s17559_s13 + $0x140] ss:$16 sps:$4 sm:$0xff]   ;;  %v14730_v28 = vld [vmem:[%s17559_s13 + $0x148] ss:$16 sps:$4 sm:$0xff]   ;;  %v14731_v29 = vld [vmem:[%s17559_s13 + $0x164] ss:$16 sps:$4 sm:$0xff]  }
  0xc6   : > { %9975 = vmatprep.subr.bf16.mxu0 %v14689_v1  ;;  %11007 = vmatprep.subr.bf16.mxu1 %v14691_v2  ;;  %v14733_v30 = vld [vmem:[%s17559_s13 + $0x16c] ss:$16 sps:$4 sm:$0xff]   ;;  %v463_v31 = vld [vmem:[%s17557_s18] sm:$0xff]  ;;  %v14736_v34 = vld [vmem:[%s17559_s13 + $0x168] ss:$16 sps:$4 sm:$0xff]   ;;  %p14310_p4 = scmp.ne.s32.totalorder %s17227_s21, 1 }
  0xc7   : > { %v487_v32 = vld [vmem:[%s17557_s18 + $0xc0] sm:$0xff]  ;;  %v14739_v37 = vld [vmem:[%s17559_s13 + $0x18c] ss:$16 sps:$4 sm:$0xff]   ;;  %v14742_v39 = vld [vmem:[%s17559_s13 + $0x188] ss:$16 sps:$4 sm:$0xff]  }
  0xc8   : > { %v14735_v33 = vld [vmem:[%s17559_s13 + $0x160] ss:$16 sps:$4 sm:$0xff]   ;;  %v12727_v35 = vcombine.high %v463_v31, %v487_v32  ;;  %v14737_v36 = vld [vmem:[%s17559_s13 + $0x184] ss:$16 sps:$4 sm:$0xff]   ;;  %v14745_v41 = vld [vmem:[%s17559_s13 + $0x1ac] ss:$16 sps:$4 sm:$0xff]   ;;  %v12726_v54 = vcombine.low %v463_v31, %v487_v32 }
  0xc9   : > { %9976 = vmatpush1.bf16.msra.mxu0 %v14693_v3  ;;  %11008 = vmatpush1.bf16.msra.mxu1 %v14694_v4  ;;  %v14741_v38 = vld [vmem:[%s17559_s13 + $0x180] ss:$16 sps:$4 sm:$0xff]   ;;  %v14743_v40 = vld [vmem:[%s17559_s13 + $0x1a4] ss:$16 sps:$4 sm:$0xff]   ;;  %v14748_v43 = vld [vmem:[%s17559_s13 + $0x1a8] ss:$16 sps:$4 sm:$0xff]  }
  0xca   : > { %9977 = vmatprep.subr.bf16.mxu0 %v14695_v5  ;;  %11009 = vmatprep.subr.bf16.mxu1 %v14697_v6  ;;  %v14747_v42 = vld [vmem:[%s17559_s13 + $0x1a0] ss:$16 sps:$4 sm:$0xff]   ;;  %v14749_v44 = vld [vmem:[%s17559_s13 + $0x1c4] ss:$16 sps:$4 sm:$0xff]   ;;  %v14751_v45 = vld [vmem:[%s17559_s13 + $0x1cc] ss:$16 sps:$4 sm:$0xff]  }
  0xcb   : > { %9999 = vmatprep.mubr.bf16.mxu0 %v12727_v35  ;;  %11031 = vmatprep.mubr.bf16.mxu1 %v12727_v35  ;;  %v14753_v46 = vld [vmem:[%s17559_s13 + $0x1c0] ss:$16 sps:$4 sm:$0xff]   ;;  %v14754_v47 = vld [vmem:[%s17559_s13 + $0x1c8] ss:$16 sps:$4 sm:$0xff]   ;;  %v14755_v48 = vld [vmem:[%s17559_s13 + $0x1e4] ss:$16 sps:$4 sm:$0xff]  }
  0xcc   : > { %v14757_v49 = vld [vmem:[%s17559_s13 + $0x1ec] ss:$16 sps:$4 sm:$0xff]   ;;  %v14759_v50 = vld [vmem:[%s17559_s13 + $0x1e0] ss:$16 sps:$4 sm:$0xff]   ;;  %v14760_v51 = vld [vmem:[%s17559_s13 + $0x1e8] ss:$16 sps:$4 sm:$0xff]  }
  0xcd   : > { %9978 = vmatpush1.bf16.msra.mxu0 %v14699_v7  ;;  %11010 = vmatpush1.bf16.msra.mxu1 %v14700_v8  ;;  %v14763_v52 = vld [vmem:[%s17559_s13 + $0x204] ss:$16 sps:$4 sm:$0xff]   ;;  %v14766_v53 = vld [vmem:[%s17559_s13 + $0x20c] ss:$16 sps:$4 sm:$0xff]   ;;  %v14761_v55 = vld [vmem:[%s17559_s13 + $0x200] ss:$16 sps:$4 sm:$0xff]  }
  0xce   : > { %9979 = vmatprep.subr.bf16.mxu0 %v14701_v9  ;;  %11011 = vmatprep.subr.bf16.mxu1 %v14703_v10  ;;  %v14764_v56 = vld [vmem:[%s17559_s13 + $0x208] ss:$16 sps:$4 sm:$0xff]   ;;  %v14769_v57 = vld [vmem:[%s17559_s13 + $0x224] ss:$16 sps:$4 sm:$0xff]   ;;  %v14772_v58 = vld [vmem:[%s17559_s13 + $0x22c] ss:$16 sps:$4 sm:$0xff]  }
  0xcf   : > { %v14767_v59 = vld [vmem:[%s17559_s13 + $0x220] ss:$16 sps:$4 sm:$0xff]   ;;  %v14770_v60 = vld [vmem:[%s17559_s13 + $0x228] ss:$16 sps:$4 sm:$0xff]   ;;  %v14775_v61 = vld [vmem:[%s17559_s13 + $0x244] ss:$16 sps:$4 sm:$0xff]  }
  0xd0   : > { %v14778_v62 = vld [vmem:[%s17559_s13 + $0x24c] ss:$16 sps:$4 sm:$0xff]   ;;  %v14773_v63 = vld [vmem:[%s17559_s13 + $0x240] ss:$16 sps:$4 sm:$0xff]   ;;  %v14776_v0 = vld [vmem:[%s17559_s13 + $0x248] ss:$16 sps:$4 sm:$0xff]  }
  0xd1   : > { %9980 = vmatpush1.bf16.msra.mxu0 %v14705_v11  ;;  %11012 = vmatpush1.bf16.msra.mxu1 %v14706_v12  ;;  %v14781_v1 = vld [vmem:[%s17559_s13 + $0x264] ss:$16 sps:$4 sm:$0xff]   ;;  %v14784_v2 = vld [vmem:[%s17559_s13 + $0x26c] ss:$16 sps:$4 sm:$0xff]   ;;  %v14779_v3 = vld [vmem:[%s17559_s13 + $0x260] ss:$16 sps:$4 sm:$0xff]  }
  0xd2   : > { %9981 = vmatprep.subr.bf16.mxu0 %v14707_v13  ;;  %11013 = vmatprep.subr.bf16.mxu1 %v14709_v14  ;;  %v14782_v4 = vld [vmem:[%s17559_s13 + $0x268] ss:$16 sps:$4 sm:$0xff]   ;;  %v14787_v5 = vld [vmem:[%s17559_s13 + $0x284] ss:$16 sps:$4 sm:$0xff]   ;;  %v14790_v6 = vld [vmem:[%s17559_s13 + $0x28c] ss:$16 sps:$4 sm:$0xff]  }
  0xd3   : > { %v14785_v7 = vld [vmem:[%s17559_s13 + $0x280] ss:$16 sps:$4 sm:$0xff]   ;;  %v14788_v8 = vld [vmem:[%s17559_s13 + $0x288] ss:$16 sps:$4 sm:$0xff]   ;;  %v14793_v9 = vld [vmem:[%s17559_s13 + $0x2a4] ss:$16 sps:$4 sm:$0xff]  }
  0xd4   : > { %v14796_v10 = vld [vmem:[%s17559_s13 + $0x2ac] ss:$16 sps:$4 sm:$0xff]   ;;  %v14791_v11 = vld [vmem:[%s17559_s13 + $0x2a0] ss:$16 sps:$4 sm:$0xff]   ;;  %v14794_v12 = vld [vmem:[%s17559_s13 + $0x2a8] ss:$16 sps:$4 sm:$0xff]  }
  0xd5   : > { %9982 = vmatpush1.bf16.msra.mxu0 %v14711_v15  ;;  %11014 = vmatpush1.bf16.msra.mxu1 %v14712_v16  ;;  %v14799_v13 = vld [vmem:[%s17559_s13 + $0x2c4] ss:$16 sps:$4 sm:$0xff]   ;;  %v14802_v14 = vld [vmem:[%s17559_s13 + $0x2cc] ss:$16 sps:$4 sm:$0xff]   ;;  %v14818_v31 = vld [vmem:[%s17559_s13 + $0x328] ss:$16 sps:$4 sm:$0xff]  }
  0xd6   : > { %9983 = vmatprep.subr.bf16.mxu0 %v14713_v17  ;;  %11015 = vmatprep.subr.bf16.mxu1 %v14715_v18  ;;  %v17667_v15 = vld [vmem:[%s17557_s18 + $0x8] sm:$0xff]  ;;  %v14797_v17 = vld [vmem:[%s17559_s13 + $0x2c0] ss:$16 sps:$4 sm:$0xff]   ;;  %v14823_v32 = vld [vmem:[%s17559_s13 + $0x344] ss:$16 sps:$4 sm:$0xff]  }
  0xd7   : > { %v17670_v16 = vld [vmem:[%s17557_s18 + $0xc8] sm:$0xff] }
  0xd8   : > { %v14800_v18 = vld [vmem:[%s17559_s13 + $0x2c8] ss:$16 sps:$4 sm:$0xff]  }
  0xd9   : > { %9984 = vmatpush1.bf16.msra.mxu0 %v14717_v19  ;;  %11016 = vmatpush1.bf16.msra.mxu1 %v14718_v20  ;;  %v12729_v19 = vcombine.high %v17667_v15, %v17670_v16  ;;  %v14805_v20 = vld [vmem:[%s17559_s13 + $0x2e4] ss:$16 sps:$4 sm:$0xff]   ;;  %v14824_v35 = vld [vmem:[%s17559_s13 + $0x348] ss:$16 sps:$4 sm:$0xff]  }
  0xda   : > { %9985 = vmatprep.subr.bf16.mxu0 %v14719_v21  ;;  %11017 = vmatprep.subr.bf16.mxu1 %v14721_v22  ;;  %v14808_v21 = vld [vmem:[%s17559_s13 + $0x2ec] ss:$16 sps:$4 sm:$0xff]   ;;  %v14803_v22 = vld [vmem:[%s17559_s13 + $0x2e0] ss:$16 sps:$4 sm:$0xff]  }
  0xdd   : > { %9986 = vmatpush1.bf16.msra.mxu0 %v14723_v23  ;;  %11018 = vmatpush1.bf16.msra.mxu1 %v14724_v24  ;;  %v14806_v23 = vld [vmem:[%s17559_s13 + $0x2e8] ss:$16 sps:$4 sm:$0xff]   ;;  %v14811_v24 = vld [vmem:[%s17559_s13 + $0x304] ss:$16 sps:$4 sm:$0xff]  }
  0xde   : > { %9987 = vmatprep.subr.bf16.mxu0 %v14725_v25  ;;  %11019 = vmatprep.subr.bf16.mxu1 %v14727_v26  ;;  %v14814_v25 = vld [vmem:[%s17559_s13 + $0x30c] ss:$16 sps:$4 sm:$0xff]   ;;  %v14809_v26 = vld [vmem:[%s17559_s13 + $0x300] ss:$16 sps:$4 sm:$0xff]  }
  0xe1   : > { %9988 = vmatpush1.bf16.msra.mxu0 %v14729_v27  ;;  %11020 = vmatpush1.bf16.msra.mxu1 %v14730_v28  ;;  %v14812_v27 = vld [vmem:[%s17559_s13 + $0x308] ss:$16 sps:$4 sm:$0xff]   ;;  %v14817_v28 = vld [vmem:[%s17559_s13 + $0x324] ss:$16 sps:$4 sm:$0xff]  }
  0xe2   : > { %9989 = vmatprep.subr.bf16.mxu0 %v14731_v29  ;;  %11021 = vmatprep.subr.bf16.mxu1 %v14733_v30  ;;  %v14820_v29 = vld [vmem:[%s17559_s13 + $0x32c] ss:$16 sps:$4 sm:$0xff]   ;;  %v14815_v30 = vld [vmem:[%s17559_s13 + $0x320] ss:$16 sps:$4 sm:$0xff]  }
  0xe5   : > { %9990 = vmatpush1.bf16.msra.mxu0 %v14735_v33  ;;  %11022 = vmatpush1.bf16.msra.mxu1 %v14736_v34  ;;  %v14826_v33 = vld [vmem:[%s17559_s13 + $0x34c] ss:$16 sps:$4 sm:$0xff]   ;;  %v14821_v34 = vld [vmem:[%s17559_s13 + $0x340] ss:$16 sps:$4 sm:$0xff]  }
  0xe6   : > { %9991 = vmatprep.subr.bf16.mxu0 %v14737_v36  ;;  %11023 = vmatprep.subr.bf16.mxu1 %v14739_v37  ;;  %v14829_v36 = vld [vmem:[%s17559_s13 + $0x364] ss:$16 sps:$4 sm:$0xff]   ;;  %v14832_v37 = vld [vmem:[%s17559_s13 + $0x36c] ss:$16 sps:$4 sm:$0xff]  }
  0xe9   : > { %9992 = vmatpush1.bf16.msra.mxu0 %v14741_v38  ;;  %11024 = vmatpush1.bf16.msra.mxu1 %v14742_v39  ;;  %v14827_v38 = vld [vmem:[%s17559_s13 + $0x360] ss:$16 sps:$4 sm:$0xff]   ;;  %v14830_v39 = vld [vmem:[%s17559_s13 + $0x368] ss:$16 sps:$4 sm:$0xff]  }
  0xea   : > { %9993 = vmatprep.subr.bf16.mxu0 %v14743_v40  ;;  %11025 = vmatprep.subr.bf16.mxu1 %v14745_v41  ;;  %v14835_v40 = vld [vmem:[%s17559_s13 + $0x384] ss:$16 sps:$4 sm:$0xff]   ;;  %v14838_v41 = vld [vmem:[%s17559_s13 + $0x38c] ss:$16 sps:$4 sm:$0xff]  }
  0xed   : > { %9994 = vmatpush1.bf16.msra.mxu0 %v14747_v42  ;;  %11026 = vmatpush1.bf16.msra.mxu1 %v14748_v43  ;;  %v14833_v42 = vld [vmem:[%s17559_s13 + $0x380] ss:$16 sps:$4 sm:$0xff]   ;;  %v14836_v43 = vld [vmem:[%s17559_s13 + $0x388] ss:$16 sps:$4 sm:$0xff]  }
  0xee   : > { %9995 = vmatprep.subr.bf16.mxu0 %v14749_v44  ;;  %11027 = vmatprep.subr.bf16.mxu1 %v14751_v45  ;;  %v14841_v44 = vld [vmem:[%s17559_s13 + $0x3a4] ss:$16 sps:$4 sm:$0xff]   ;;  %v14844_v45 = vld [vmem:[%s17559_s13 + $0x3ac] ss:$16 sps:$4 sm:$0xff]  }
  0xf1   : > { %9996 = vmatpush1.bf16.msra.mxu0 %v14753_v46  ;;  %11028 = vmatpush1.bf16.msra.mxu1 %v14754_v47  ;;  %v14839_v46 = vld [vmem:[%s17559_s13 + $0x3a0] ss:$16 sps:$4 sm:$0xff]   ;;  %v14842_v47 = vld [vmem:[%s17559_s13 + $0x3a8] ss:$16 sps:$4 sm:$0xff]  }
  0xf2   : > { %9997 = vmatprep.subr.bf16.mxu0 %v14755_v48  ;;  %11029 = vmatprep.subr.bf16.mxu1 %v14757_v49  ;;  %v14847_v48 = vld [vmem:[%s17559_s13 + $0x3c4] ss:$16 sps:$4 sm:$0xff]   ;;  %v14850_v49 = vld [vmem:[%s17559_s13 + $0x3cc] ss:$16 sps:$4 sm:$0xff]  }
  0xf5   : > { %9998 = vmatpush1.bf16.msra.mxu0 %v14759_v50  ;;  %11030 = vmatpush1.bf16.msra.mxu1 %v14760_v51  ;;  %v14845_v50 = vld [vmem:[%s17559_s13 + $0x3c0] ss:$16 sps:$4 sm:$0xff]   ;;  %v14848_v51 = vld [vmem:[%s17559_s13 + $0x3c8] ss:$16 sps:$4 sm:$0xff]  }
  0xf6   : > { %10010 = vmatprep.subr.bf16.mxu0 %v14763_v52  ;;  %11042 = vmatprep.subr.bf16.mxu1 %v14766_v53  ;;  %v14853_v52 = vld [vmem:[%s17559_s13 + $0x3e4] ss:$16 sps:$4 sm:$0xff]   ;;  %v14856_v53 = vld [vmem:[%s17559_s13 + $0x3ec] ss:$16 sps:$4 sm:$0xff]  }
  0xf8   : > { %10000 = vmatmul.mubr.bf16.vlgmr.msra.gmra.mrb[0].mxu0 %v12726_v54  ;;  %11032 = vmatmul.mubr.bf16.vlgmr.msra.gmra.mrb[0].mxu1 %v12726_v54  ;;  %v14851_v54 = vld [vmem:[%s17559_s13 + $0x3e0] ss:$16 sps:$4 sm:$0xff]  }
  0xf9   : > { %10011 = vmatpush1.bf16.msra.mxu0 %v14761_v55  ;;  %11043 = vmatpush1.bf16.msra.mxu1 %v14764_v56  ;;  %v14854_v55 = vld [vmem:[%s17559_s13 + $0x3e8] ss:$16 sps:$4 sm:$0xff]   ;;  %v14859_v56 = vld [vmem:[%s17559_s13 + $0x404] ss:$16 sps:$4 sm:$0xff]  }
  0xfa   : > { %10012 = vmatprep.subr.bf16.mxu0 %v14769_v57  ;;  %11044 = vmatprep.subr.bf16.mxu1 %v14772_v58  ;;  %v14862_v57 = vld [vmem:[%s17559_s13 + $0x40c] ss:$16 sps:$4 sm:$0xff]   ;;  %v12728_v58 = vcombine.low %v17667_v15, %v17670_v16  ;;  %v14884_v15 = vld [vmem:[%s17559_s13 + $0x488] ss:$16 sps:$4 sm:$0xff]   ;;  %v14889_v16 = vld [vmem:[%s17559_s13 + $0x4a4] ss:$16 sps:$4 sm:$0xff]  }
  0xfb   : > { %10042 = vmatprep.mubr.bf16.mxu0 %v12729_v19  ;;  %11074 = vmatprep.mubr.bf16.mxu1 %v12729_v19  ;;  %v14890_v19 = vld [vmem:[%s17559_s13 + $0x4a8] ss:$16 sps:$4 sm:$0xff]  }
  0xfd   : > { %10013 = vmatpush1.bf16.msra.mxu0 %v14767_v59  ;;  %11045 = vmatpush1.bf16.msra.mxu1 %v14770_v60  ;;  %v14857_v59 = vld [vmem:[%s17559_s13 + $0x400] ss:$16 sps:$4 sm:$0xff]   ;;  %v14860_v60 = vld [vmem:[%s17559_s13 + $0x408] ss:$16 sps:$4 sm:$0xff]  }
  0xfe   : > { %10014 = vmatprep.subr.bf16.mxu0 %v14775_v61  ;;  %11046 = vmatprep.subr.bf16.mxu1 %v14778_v62  ;;  %v14865_v61 = vld [vmem:[%s17559_s13 + $0x424] ss:$16 sps:$4 sm:$0xff]   ;;  %v14868_v62 = vld [vmem:[%s17559_s13 + $0x42c] ss:$16 sps:$4 sm:$0xff]  }
 0x101   : > { %10015 = vmatpush1.bf16.msra.mxu0 %v14773_v63  ;;  %11047 = vmatpush1.bf16.msra.mxu1 %v14776_v0  ;;  %v17721_v63 = vld [vmem:[%s17557_s18 + $0x10] sm:$0xff] }
 0x102   : > { %10016 = vmatprep.subr.bf16.mxu0 %v14781_v1  ;;  %11048 = vmatprep.subr.bf16.mxu1 %v14784_v2  ;;  %v17724_v0 = vld [vmem:[%s17557_s18 + $0xd0] sm:$0xff] }
 0x103   : > { %v12731_v1 = vcombine.high %v17721_v63, %v17724_v0  ;;  %v14863_v2 = vld [vmem:[%s17559_s13 + $0x420] ss:$16 sps:$4 sm:$0xff]  }
 0x105   : > { %10017 = vmatpush1.bf16.msra.mxu0 %v14779_v3  ;;  %11049 = vmatpush1.bf16.msra.mxu1 %v14782_v4  ;;  %v14866_v3 = vld [vmem:[%s17559_s13 + $0x428] ss:$16 sps:$4 sm:$0xff]   ;;  %v14871_v4 = vld [vmem:[%s17559_s13 + $0x444] ss:$16 sps:$4 sm:$0xff]  }
 0x106   : > { %10018 = vmatprep.subr.bf16.mxu0 %v14787_v5  ;;  %11050 = vmatprep.subr.bf16.mxu1 %v14790_v6  ;;  %v14874_v5 = vld [vmem:[%s17559_s13 + $0x44c] ss:$16 sps:$4 sm:$0xff]   ;;  %v14869_v6 = vld [vmem:[%s17559_s13 + $0x440] ss:$16 sps:$4 sm:$0xff]  }
 0x109   : > { %10019 = vmatpush1.bf16.msra.mxu0 %v14785_v7  ;;  %11051 = vmatpush1.bf16.msra.mxu1 %v14788_v8  ;;  %v14872_v7 = vld [vmem:[%s17559_s13 + $0x448] ss:$16 sps:$4 sm:$0xff]   ;;  %v14877_v8 = vld [vmem:[%s17559_s13 + $0x464] ss:$16 sps:$4 sm:$0xff]  }
 0x10a   : > { %10020 = vmatprep.subr.bf16.mxu0 %v14793_v9  ;;  %11052 = vmatprep.subr.bf16.mxu1 %v14796_v10  ;;  %v14880_v9 = vld [vmem:[%s17559_s13 + $0x46c] ss:$16 sps:$4 sm:$0xff]   ;;  %v14875_v10 = vld [vmem:[%s17559_s13 + $0x460] ss:$16 sps:$4 sm:$0xff]  }
 0x10d   : > { %10021 = vmatpush1.bf16.msra.mxu0 %v14791_v11  ;;  %11053 = vmatpush1.bf16.msra.mxu1 %v14794_v12  ;;  %v14878_v11 = vld [vmem:[%s17559_s13 + $0x468] ss:$16 sps:$4 sm:$0xff]   ;;  %v14883_v12 = vld [vmem:[%s17559_s13 + $0x484] ss:$16 sps:$4 sm:$0xff]  }
 0x10e   : > { %10022 = vmatprep.subr.bf16.mxu0 %v14799_v13  ;;  %11054 = vmatprep.subr.bf16.mxu1 %v14802_v14  ;;  %v14886_v13 = vld [vmem:[%s17559_s13 + $0x48c] ss:$16 sps:$4 sm:$0xff]   ;;  %v14881_v14 = vld [vmem:[%s17559_s13 + $0x480] ss:$16 sps:$4 sm:$0xff]  }
 0x111   : > { %10023 = vmatpush1.bf16.msra.mxu0 %v14797_v17  ;;  %11055 = vmatpush1.bf16.msra.mxu1 %v14800_v18  ;;  %v14892_v17 = vld [vmem:[%s17559_s13 + $0x4ac] ss:$16 sps:$4 sm:$0xff]   ;;  %v14887_v18 = vld [vmem:[%s17559_s13 + $0x4a0] ss:$16 sps:$4 sm:$0xff]  }
 0x112   : > { %10024 = vmatprep.subr.bf16.mxu0 %v14805_v20  ;;  %11056 = vmatprep.subr.bf16.mxu1 %v14808_v21  ;;  %v14895_v20 = vld [vmem:[%s17559_s13 + $0x4c4] ss:$16 sps:$4 sm:$0xff]   ;;  %v14898_v21 = vld [vmem:[%s17559_s13 + $0x4cc] ss:$16 sps:$4 sm:$0xff]  }
 0x115   : > { %10025 = vmatpush1.bf16.msra.mxu0 %v14803_v22  ;;  %11057 = vmatpush1.bf16.msra.mxu1 %v14806_v23  ;;  %v14893_v22 = vld [vmem:[%s17559_s13 + $0x4c0] ss:$16 sps:$4 sm:$0xff]   ;;  %v14896_v23 = vld [vmem:[%s17559_s13 + $0x4c8] ss:$16 sps:$4 sm:$0xff]  }
 0x116   : > { %10026 = vmatprep.subr.bf16.mxu0 %v14811_v24  ;;  %11058 = vmatprep.subr.bf16.mxu1 %v14814_v25  ;;  %v14901_v24 = vld [vmem:[%s17559_s13 + $0x4e4] ss:$16 sps:$4 sm:$0xff]   ;;  %v14904_v25 = vld [vmem:[%s17559_s13 + $0x4ec] ss:$16 sps:$4 sm:$0xff]  }
 0x119   : > { %10027 = vmatpush1.bf16.msra.mxu0 %v14809_v26  ;;  %11059 = vmatpush1.bf16.msra.mxu1 %v14812_v27  ;;  %v14899_v26 = vld [vmem:[%s17559_s13 + $0x4e0] ss:$16 sps:$4 sm:$0xff]   ;;  %v14902_v27 = vld [vmem:[%s17559_s13 + $0x4e8] ss:$16 sps:$4 sm:$0xff]  }
 0x11a   : > { %10028 = vmatprep.subr.bf16.mxu0 %v14817_v28  ;;  %11060 = vmatprep.subr.bf16.mxu1 %v14820_v29  ;;  %v14907_v28 = vld [vmem:[%s17559_s13 + $0x504] ss:$16 sps:$4 sm:$0xff]   ;;  %v14910_v29 = vld [vmem:[%s17559_s13 + $0x50c] ss:$16 sps:$4 sm:$0xff]  }
 0x11d   : > { %10029 = vmatpush1.bf16.msra.mxu0 %v14815_v30  ;;  %11061 = vmatpush1.bf16.msra.mxu1 %v14818_v31  ;;  %v14905_v30 = vld [vmem:[%s17559_s13 + $0x500] ss:$16 sps:$4 sm:$0xff]   ;;  %v14908_v31 = vld [vmem:[%s17559_s13 + $0x508] ss:$16 sps:$4 sm:$0xff]  }
 0x11e   : > { %10030 = vmatprep.subr.bf16.mxu0 %v14823_v32  ;;  %11062 = vmatprep.subr.bf16.mxu1 %v14826_v33  ;;  %v14913_v32 = vld [vmem:[%s17559_s13 + $0x524] ss:$16 sps:$4 sm:$0xff]   ;;  %v14916_v33 = vld [vmem:[%s17559_s13 + $0x52c] ss:$16 sps:$4 sm:$0xff]  }
 0x121   : > { %10031 = vmatpush1.bf16.msra.mxu0 %v14821_v34  ;;  %11063 = vmatpush1.bf16.msra.mxu1 %v14824_v35  ;;  %v14911_v34 = vld [vmem:[%s17559_s13 + $0x520] ss:$16 sps:$4 sm:$0xff]   ;;  %v14914_v35 = vld [vmem:[%s17559_s13 + $0x528] ss:$16 sps:$4 sm:$0xff]  }
 0x122   : > { %10032 = vmatprep.subr.bf16.mxu0 %v14829_v36  ;;  %11064 = vmatprep.subr.bf16.mxu1 %v14832_v37  ;;  %v14919_v36 = vld [vmem:[%s17559_s13 + $0x544] ss:$16 sps:$4 sm:$0xff]   ;;  %v14922_v37 = vld [vmem:[%s17559_s13 + $0x54c] ss:$16 sps:$4 sm:$0xff]  }
 0x125   : > { %10033 = vmatpush1.bf16.msra.mxu0 %v14827_v38  ;;  %11065 = vmatpush1.bf16.msra.mxu1 %v14830_v39  ;;  %v14917_v38 = vld [vmem:[%s17559_s13 + $0x540] ss:$16 sps:$4 sm:$0xff]   ;;  %v14920_v39 = vld [vmem:[%s17559_s13 + $0x548] ss:$16 sps:$4 sm:$0xff]  }
 0x126   : > { %10034 = vmatprep.subr.bf16.mxu0 %v14835_v40  ;;  %11066 = vmatprep.subr.bf16.mxu1 %v14838_v41  ;;  %v14925_v40 = vld [vmem:[%s17559_s13 + $0x564] ss:$16 sps:$4 sm:$0xff]   ;;  %v14928_v41 = vld [vmem:[%s17559_s13 + $0x56c] ss:$16 sps:$4 sm:$0xff]  }
 0x129   : > { %10035 = vmatpush1.bf16.msra.mxu0 %v14833_v42  ;;  %11067 = vmatpush1.bf16.msra.mxu1 %v14836_v43  ;;  %v14923_v42 = vld [vmem:[%s17559_s13 + $0x560] ss:$16 sps:$4 sm:$0xff]   ;;  %v14926_v43 = vld [vmem:[%s17559_s13 + $0x568] ss:$16 sps:$4 sm:$0xff]  }
 0x12a   : > { %10036 = vmatprep.subr.bf16.mxu0 %v14841_v44  ;;  %11068 = vmatprep.subr.bf16.mxu1 %v14844_v45  ;;  %v14931_v44 = vld [vmem:[%s17559_s13 + $0x584] ss:$16 sps:$4 sm:$0xff]   ;;  %v14934_v45 = vld [vmem:[%s17559_s13 + $0x58c] ss:$16 sps:$4 sm:$0xff]  }
 0x12d   : > { %10037 = vmatpush1.bf16.msra.mxu0 %v14839_v46  ;;  %11069 = vmatpush1.bf16.msra.mxu1 %v14842_v47  ;;  %v14929_v46 = vld [vmem:[%s17559_s13 + $0x580] ss:$16 sps:$4 sm:$0xff]   ;;  %v14932_v47 = vld [vmem:[%s17559_s13 + $0x588] ss:$16 sps:$4 sm:$0xff]  }
 0x12e   : > { %10038 = vmatprep.subr.bf16.mxu0 %v14847_v48  ;;  %11070 = vmatprep.subr.bf16.mxu1 %v14850_v49  ;;  %v14937_v48 = vld [vmem:[%s17559_s13 + $0x5a4] ss:$16 sps:$4 sm:$0xff]   ;;  %v14940_v49 = vld [vmem:[%s17559_s13 + $0x5ac] ss:$16 sps:$4 sm:$0xff]  }
 0x131   : > { %10039 = vmatpush1.bf16.msra.mxu0 %v14845_v50  ;;  %11071 = vmatpush1.bf16.msra.mxu1 %v14848_v51  ;;  %v14935_v50 = vld [vmem:[%s17559_s13 + $0x5a0] ss:$16 sps:$4 sm:$0xff]   ;;  %v14938_v51 = vld [vmem:[%s17559_s13 + $0x5a8] ss:$16 sps:$4 sm:$0xff]  }
 0x132   : > { %10040 = vmatprep.subr.bf16.mxu0 %v14853_v52  ;;  %11072 = vmatprep.subr.bf16.mxu1 %v14856_v53  ;;  %v14943_v52 = vld [vmem:[%s17559_s13 + $0x5c4] ss:$16 sps:$4 sm:$0xff]   ;;  %v14946_v53 = vld [vmem:[%s17559_s13 + $0x5cc] ss:$16 sps:$4 sm:$0xff]  }
 0x135   : > { %10041 = vmatpush1.bf16.msra.mxu0 %v14851_v54  ;;  %11073 = vmatpush1.bf16.msra.mxu1 %v14854_v55  ;;  %v14941_v54 = vld [vmem:[%s17559_s13 + $0x5c0] ss:$16 sps:$4 sm:$0xff]   ;;  %v14944_v55 = vld [vmem:[%s17559_s13 + $0x5c8] ss:$16 sps:$4 sm:$0xff]  }
 0x136   : > { %10053 = vmatprep.subr.bf16.mxu0 %v14859_v56  ;;  %11085 = vmatprep.subr.bf16.mxu1 %v14862_v57  ;;  %v14949_v56 = vld [vmem:[%s17559_s13 + $0x5e4] ss:$16 sps:$4 sm:$0xff]   ;;  %v14952_v57 = vld [vmem:[%s17559_s13 + $0x5ec] ss:$16 sps:$4 sm:$0xff]  }
 0x138   : > { %10043 = vmatmul.mubr.bf16.vlgmr.msra.gmra.mrb[0].mxu0 %v12728_v58  ;;  %11075 = vmatmul.mubr.bf16.vlgmr.msra.gmra.mrb[0].mxu1 %v12728_v58  ;;  %v14947_v58 = vld [vmem:[%s17559_s13 + $0x5e0] ss:$16 sps:$4 sm:$0xff]  }
 0x139   : > { %10054 = vmatpush1.bf16.msra.mxu0 %v14857_v59  ;;  %11086 = vmatpush1.bf16.msra.mxu1 %v14860_v60  ;;  %v14950_v59 = vld [vmem:[%s17559_s13 + $0x5e8] ss:$16 sps:$4 sm:$0xff]   ;;  %v14955_v60 = vld [vmem:[%s17559_s13 + $0x604] ss:$16 sps:$4 sm:$0xff]  }
 0x13a   : > { %10055 = vmatprep.subr.bf16.mxu0 %v14865_v61  ;;  %11087 = vmatprep.subr.bf16.mxu1 %v14868_v62  ;;  %v14958_v61 = vld [vmem:[%s17559_s13 + $0x60c] ss:$16 sps:$4 sm:$0xff]   ;;  %v14953_v62 = vld [vmem:[%s17559_s13 + $0x600] ss:$16 sps:$4 sm:$0xff]  }
 0x13b   : > { %10085 = vmatprep.mubr.bf16.mxu0 %v12731_v1  ;;  %11117 = vmatprep.mubr.bf16.mxu1 %v12731_v1  ;;  %v14956_v1 = vld [vmem:[%s17559_s13 + $0x608] ss:$16 sps:$4 sm:$0xff]  }
 0x13d   : > { %10056 = vmatpush1.bf16.msra.mxu0 %v14863_v2  ;;  %11088 = vmatpush1.bf16.msra.mxu1 %v14866_v3  ;;  %v12730_v2 = vcombine.low %v17721_v63, %v17724_v0  ;;  %v17793_v3 = vld [vmem:[%s17557_s18 + $0x18] sm:$0xff]  ;;  %v14959_v63 = vld [vmem:[%s17559_s13 + $0x620] ss:$16 sps:$4 sm:$0xff]  }
 0x13e   : > { %10057 = vmatprep.subr.bf16.mxu0 %v14871_v4  ;;  %11089 = vmatprep.subr.bf16.mxu1 %v14874_v5  ;;  %v17796_v4 = vld [vmem:[%s17557_s18 + $0xd8] sm:$0xff]  ;;  %v14961_v5 = vld [vmem:[%s17559_s13 + $0x624] ss:$16 sps:$4 sm:$0xff]  }
 0x13f   : > { %v14962_v0 = vld [vmem:[%s17559_s13 + $0x628] ss:$16 sps:$4 sm:$0xff]  }
 0x141   : > { %10058 = vmatpush1.bf16.msra.mxu0 %v14869_v6  ;;  %11090 = vmatpush1.bf16.msra.mxu1 %v14872_v7  ;;  %v14964_v6 = vld [vmem:[%s17559_s13 + $0x62c] ss:$16 sps:$4 sm:$0xff]   ;;  %v12733_v7 = vcombine.high %v17793_v3, %v17796_v4 }
 0x142   : > { %10059 = vmatprep.subr.bf16.mxu0 %v14877_v8  ;;  %11091 = vmatprep.subr.bf16.mxu1 %v14880_v9  ;;  %v14967_v8 = vld [vmem:[%s17559_s13 + $0x644] ss:$16 sps:$4 sm:$0xff]   ;;  %v14970_v9 = vld [vmem:[%s17559_s13 + $0x64c] ss:$16 sps:$4 sm:$0xff]  }
 0x145   : > { %10060 = vmatpush1.bf16.msra.mxu0 %v14875_v10  ;;  %11092 = vmatpush1.bf16.msra.mxu1 %v14878_v11  ;;  %v14965_v10 = vld [vmem:[%s17559_s13 + $0x640] ss:$16 sps:$4 sm:$0xff]   ;;  %v14968_v11 = vld [vmem:[%s17559_s13 + $0x648] ss:$16 sps:$4 sm:$0xff]  }
 0x146   : > { %10061 = vmatprep.subr.bf16.mxu0 %v14883_v12  ;;  %11093 = vmatprep.subr.bf16.mxu1 %v14886_v13  ;;  %v14973_v12 = vld [vmem:[%s17559_s13 + $0x664] ss:$16 sps:$4 sm:$0xff]   ;;  %v14976_v13 = vld [vmem:[%s17559_s13 + $0x66c] ss:$16 sps:$4 sm:$0xff]  }
 0x149   : > { %10062 = vmatpush1.bf16.msra.mxu0 %v14881_v14  ;;  %11094 = vmatpush1.bf16.msra.mxu1 %v14884_v15  ;;  %v14971_v14 = vld [vmem:[%s17559_s13 + $0x660] ss:$16 sps:$4 sm:$0xff]   ;;  %v14974_v15 = vld [vmem:[%s17559_s13 + $0x668] ss:$16 sps:$4 sm:$0xff]  }
 0x14a   : > { %10063 = vmatprep.subr.bf16.mxu0 %v14889_v16  ;;  %11095 = vmatprep.subr.bf16.mxu1 %v14892_v17  ;;  %v14979_v16 = vld [vmem:[%s17559_s13 + $0x684] ss:$16 sps:$4 sm:$0xff]   ;;  %v14982_v17 = vld [vmem:[%s17559_s13 + $0x68c] ss:$16 sps:$4 sm:$0xff]  }
 0x14d   : > { %10064 = vmatpush1.bf16.msra.mxu0 %v14887_v18  ;;  %11096 = vmatpush1.bf16.msra.mxu1 %v14890_v19  ;;  %v14977_v18 = vld [vmem:[%s17559_s13 + $0x680] ss:$16 sps:$4 sm:$0xff]   ;;  %v14980_v19 = vld [vmem:[%s17559_s13 + $0x688] ss:$16 sps:$4 sm:$0xff]  }
 0x14e   : > { %10065 = vmatprep.subr.bf16.mxu0 %v14895_v20  ;;  %11097 = vmatprep.subr.bf16.mxu1 %v14898_v21  ;;  %v14985_v20 = vld [vmem:[%s17559_s13 + $0x6a4] ss:$16 sps:$4 sm:$0xff]   ;;  %v14988_v21 = vld [vmem:[%s17559_s13 + $0x6ac] ss:$16 sps:$4 sm:$0xff]  }
 0x151   : > { %10066 = vmatpush1.bf16.msra.mxu0 %v14893_v22  ;;  %11098 = vmatpush1.bf16.msra.mxu1 %v14896_v23  ;;  %v14983_v22 = vld [vmem:[%s17559_s13 + $0x6a0] ss:$16 sps:$4 sm:$0xff]   ;;  %v14986_v23 = vld [vmem:[%s17559_s13 + $0x6a8] ss:$16 sps:$4 sm:$0xff]  }
 0x152   : > { %10067 = vmatprep.subr.bf16.mxu0 %v14901_v24  ;;  %11099 = vmatprep.subr.bf16.mxu1 %v14904_v25  ;;  %v14991_v24 = vld [vmem:[%s17559_s13 + $0x6c4] ss:$16 sps:$4 sm:$0xff]   ;;  %v14994_v25 = vld [vmem:[%s17559_s13 + $0x6cc] ss:$16 sps:$4 sm:$0xff]  }
 0x155   : > { %10068 = vmatpush1.bf16.msra.mxu0 %v14899_v26  ;;  %11100 = vmatpush1.bf16.msra.mxu1 %v14902_v27  ;;  %v14989_v26 = vld [vmem:[%s17559_s13 + $0x6c0] ss:$16 sps:$4 sm:$0xff]   ;;  %v14992_v27 = vld [vmem:[%s17559_s13 + $0x6c8] ss:$16 sps:$4 sm:$0xff]  }
 0x156   : > { %10069 = vmatprep.subr.bf16.mxu0 %v14907_v28  ;;  %11101 = vmatprep.subr.bf16.mxu1 %v14910_v29  ;;  %v14997_v28 = vld [vmem:[%s17559_s13 + $0x6e4] ss:$16 sps:$4 sm:$0xff]   ;;  %v15000_v29 = vld [vmem:[%s17559_s13 + $0x6ec] ss:$16 sps:$4 sm:$0xff]  }
 0x159   : > { %10070 = vmatpush1.bf16.msra.mxu0 %v14905_v30  ;;  %11102 = vmatpush1.bf16.msra.mxu1 %v14908_v31  ;;  %v14995_v30 = vld [vmem:[%s17559_s13 + $0x6e0] ss:$16 sps:$4 sm:$0xff]   ;;  %v14998_v31 = vld [vmem:[%s17559_s13 + $0x6e8] ss:$16 sps:$4 sm:$0xff]  }
 0x15a   : > { %10071 = vmatprep.subr.bf16.mxu0 %v14913_v32  ;;  %11103 = vmatprep.subr.bf16.mxu1 %v14916_v33  ;;  %v15003_v32 = vld [vmem:[%s17559_s13 + $0x704] ss:$16 sps:$4 sm:$0xff]   ;;  %v15006_v33 = vld [vmem:[%s17559_s13 + $0x70c] ss:$16 sps:$4 sm:$0xff]  }
 0x15d   : > { %10072 = vmatpush1.bf16.msra.mxu0 %v14911_v34  ;;  %11104 = vmatpush1.bf16.msra.mxu1 %v14914_v35  ;;  %v15001_v34 = vld [vmem:[%s17559_s13 + $0x700] ss:$16 sps:$4 sm:$0xff]   ;;  %v15004_v35 = vld [vmem:[%s17559_s13 + $0x708] ss:$16 sps:$4 sm:$0xff]  }
 0x15e   : > { %10073 = vmatprep.subr.bf16.mxu0 %v14919_v36  ;;  %11105 = vmatprep.subr.bf16.mxu1 %v14922_v37  ;;  %v15009_v36 = vld [vmem:[%s17559_s13 + $0x724] ss:$16 sps:$4 sm:$0xff]   ;;  %v15012_v37 = vld [vmem:[%s17559_s13 + $0x72c] ss:$16 sps:$4 sm:$0xff]  }
 0x161   : > { %10074 = vmatpush1.bf16.msra.mxu0 %v14917_v38  ;;  %11106 = vmatpush1.bf16.msra.mxu1 %v14920_v39  ;;  %v15007_v38 = vld [vmem:[%s17559_s13 + $0x720] ss:$16 sps:$4 sm:$0xff]   ;;  %v15010_v39 = vld [vmem:[%s17559_s13 + $0x728] ss:$16 sps:$4 sm:$0xff]  }
 0x162   : > { %10075 = vmatprep.subr.bf16.mxu0 %v14925_v40  ;;  %11107 = vmatprep.subr.bf16.mxu1 %v14928_v41  ;;  %v15015_v40 = vld [vmem:[%s17559_s13 + $0x744] ss:$16 sps:$4 sm:$0xff]   ;;  %v15018_v41 = vld [vmem:[%s17559_s13 + $0x74c] ss:$16 sps:$4 sm:$0xff]  }
 0x165   : > { %10076 = vmatpush1.bf16.msra.mxu0 %v14923_v42  ;;  %11108 = vmatpush1.bf16.msra.mxu1 %v14926_v43  ;;  %v15013_v42 = vld [vmem:[%s17559_s13 + $0x740] ss:$16 sps:$4 sm:$0xff]   ;;  %v15016_v43 = vld [vmem:[%s17559_s13 + $0x748] ss:$16 sps:$4 sm:$0xff]  }
 0x166   : > { %10077 = vmatprep.subr.bf16.mxu0 %v14931_v44  ;;  %11109 = vmatprep.subr.bf16.mxu1 %v14934_v45  ;;  %v15021_v44 = vld [vmem:[%s17559_s13 + $0x764] ss:$16 sps:$4 sm:$0xff]   ;;  %v15024_v45 = vld [vmem:[%s17559_s13 + $0x76c] ss:$16 sps:$4 sm:$0xff]  }
 0x169   : > { %10078 = vmatpush1.bf16.msra.mxu0 %v14929_v46  ;;  %11110 = vmatpush1.bf16.msra.mxu1 %v14932_v47  ;;  %v15019_v46 = vld [vmem:[%s17559_s13 + $0x760] ss:$16 sps:$4 sm:$0xff]   ;;  %v15022_v47 = vld [vmem:[%s17559_s13 + $0x768] ss:$16 sps:$4 sm:$0xff]  }
 0x16a   : > { %10079 = vmatprep.subr.bf16.mxu0 %v14937_v48  ;;  %11111 = vmatprep.subr.bf16.mxu1 %v14940_v49  ;;  %v15027_v48 = vld [vmem:[%s17559_s13 + $0x784] ss:$16 sps:$4 sm:$0xff]   ;;  %v15030_v49 = vld [vmem:[%s17559_s13 + $0x78c] ss:$16 sps:$4 sm:$0xff]  }
 0x16d   : > { %10080 = vmatpush1.bf16.msra.mxu0 %v14935_v50  ;;  %11112 = vmatpush1.bf16.msra.mxu1 %v14938_v51  ;;  %v15025_v50 = vld [vmem:[%s17559_s13 + $0x780] ss:$16 sps:$4 sm:$0xff]   ;;  %v15028_v51 = vld [vmem:[%s17559_s13 + $0x788] ss:$16 sps:$4 sm:$0xff]  }
 0x16e   : > { %10081 = vmatprep.subr.bf16.mxu0 %v14943_v52  ;;  %11113 = vmatprep.subr.bf16.mxu1 %v14946_v53  ;;  %v15033_v52 = vld [vmem:[%s17559_s13 + $0x7a4] ss:$16 sps:$4 sm:$0xff]   ;;  %v15036_v53 = vld [vmem:[%s17559_s13 + $0x7ac] ss:$16 sps:$4 sm:$0xff]  }
 0x171   : > { %10082 = vmatpush1.bf16.msra.mxu0 %v14941_v54  ;;  %11114 = vmatpush1.bf16.msra.mxu1 %v14944_v55  ;;  %v15031_v54 = vld [vmem:[%s17559_s13 + $0x7a0] ss:$16 sps:$4 sm:$0xff]   ;;  %v15034_v55 = vld [vmem:[%s17559_s13 + $0x7a8] ss:$16 sps:$4 sm:$0xff]  }
 0x172   : > { %10083 = vmatprep.subr.bf16.mxu0 %v14949_v56  ;;  %11115 = vmatprep.subr.bf16.mxu1 %v14952_v57  ;;  %v15039_v56 = vld [vmem:[%s17559_s13 + $0x7c4] ss:$16 sps:$4 sm:$0xff]   ;;  %v15042_v57 = vld [vmem:[%s17559_s13 + $0x7cc] ss:$16 sps:$4 sm:$0xff]  }
 0x175   : > { %10084 = vmatpush1.bf16.msra.mxu0 %v14947_v58  ;;  %11116 = vmatpush1.bf16.msra.mxu1 %v14950_v59  ;;  %v15037_v58 = vld [vmem:[%s17559_s13 + $0x7c0] ss:$16 sps:$4 sm:$0xff]   ;;  %v15040_v59 = vld [vmem:[%s17559_s13 + $0x7c8] ss:$16 sps:$4 sm:$0xff]  }
 0x176   : > { %10096 = vmatprep.subr.bf16.mxu0 %v14955_v60  ;;  %11128 = vmatprep.subr.bf16.mxu1 %v14958_v61  ;;  %v15045_v60 = vld [vmem:[%s17559_s13 + $0x7e4] ss:$16 sps:$4 sm:$0xff]   ;;  %v15048_v61 = vld [vmem:[%s17559_s13 + $0x7ec] ss:$16 sps:$4 sm:$0xff]  }
 0x178   : > { %10086 = vmatmul.mubr.bf16.vlgmr.msra.gmra.mrb[0].mxu0 %v12730_v2  ;;  %11118 = vmatmul.mubr.bf16.vlgmr.msra.gmra.mrb[0].mxu1 %v12730_v2  ;;  %v15051_v2 = vld [vmem:[%s17559_s13 + $0x804] ss:$16 sps:$4 sm:$0xff]  }
 0x179   : > { %10097 = vmatpush1.bf16.msra.mxu0 %v14953_v62  ;;  %11129 = vmatpush1.bf16.msra.mxu1 %v14956_v1  ;;  %v15043_v62 = vld [vmem:[%s17559_s13 + $0x7e0] ss:$16 sps:$4 sm:$0xff]   ;;  %v15046_v1 = vld [vmem:[%s17559_s13 + $0x7e8] ss:$16 sps:$4 sm:$0xff]  }
 0x17a   : > { %10098 = vmatprep.subr.bf16.mxu0 %v14961_v5  ;;  %11130 = vmatprep.subr.bf16.mxu1 %v14964_v6  ;;  %v15054_v5 = vld [vmem:[%s17559_s13 + $0x80c] ss:$16 sps:$4 sm:$0xff]   ;;  %v17863_v6 = vld [vmem:[%s17557_s18 + $0x20] sm:$0xff] }
 0x17b   : > { %10128 = vmatprep.mubr.bf16.mxu0 %v12733_v7  ;;  %11160 = vmatprep.mubr.bf16.mxu1 %v12733_v7  ;;  %v12732_v7 = vcombine.low %v17793_v3, %v17796_v4  ;;  %v15055_v3 = vld [vmem:[%s17559_s13 + $0x820] ss:$16 sps:$4 sm:$0xff]   ;;  %v15058_v4 = vld [vmem:[%s17559_s13 + $0x828] ss:$16 sps:$4 sm:$0xff]  }
 0x17d   : > { %10099 = vmatpush1.bf16.msra.mxu0 %v14959_v63  ;;  %11131 = vmatpush1.bf16.msra.mxu1 %v14962_v0  ;;  %v17868_v63 = vld [vmem:[%s17557_s18 + $0xe0] sm:$0xff] }
 0x17e   : > { %10100 = vmatprep.subr.bf16.mxu0 %v14967_v8  ;;  %11132 = vmatprep.subr.bf16.mxu1 %v14970_v9  ;;  %v15049_v0 = vld [vmem:[%s17559_s13 + $0x800] ss:$16 sps:$4 sm:$0xff]   ;;  %v15052_v8 = vld [vmem:[%s17559_s13 + $0x808] ss:$16 sps:$4 sm:$0xff]   ;;  %v15057_v9 = vld [vmem:[%s17559_s13 + $0x824] ss:$16 sps:$4 sm:$0xff]  }
 0x181   : > { %10101 = vmatpush1.bf16.msra.mxu0 %v14965_v10  ;;  %11133 = vmatpush1.bf16.msra.mxu1 %v14968_v11  ;;  %v15060_v10 = vld [vmem:[%s17559_s13 + $0x82c] ss:$16 sps:$4 sm:$0xff]   ;;  %v12735_v11 = vcombine.high %v17863_v6, %v17868_v63 }
 0x182   : > { %10102 = vmatprep.subr.bf16.mxu0 %v14973_v12  ;;  %11134 = vmatprep.subr.bf16.mxu1 %v14976_v13  ;;  %v15063_v12 = vld [vmem:[%s17559_s13 + $0x844] ss:$16 sps:$4 sm:$0xff]   ;;  %v15066_v13 = vld [vmem:[%s17559_s13 + $0x84c] ss:$16 sps:$4 sm:$0xff]  }
 0x185   : > { %10103 = vmatpush1.bf16.msra.mxu0 %v14971_v14  ;;  %11135 = vmatpush1.bf16.msra.mxu1 %v14974_v15  ;;  %v15061_v14 = vld [vmem:[%s17559_s13 + $0x840] ss:$16 sps:$4 sm:$0xff]   ;;  %v15064_v15 = vld [vmem:[%s17559_s13 + $0x848] ss:$16 sps:$4 sm:$0xff]  }
 0x186   : > { %10104 = vmatprep.subr.bf16.mxu0 %v14979_v16  ;;  %11136 = vmatprep.subr.bf16.mxu1 %v14982_v17  ;;  %v15069_v16 = vld [vmem:[%s17559_s13 + $0x864] ss:$16 sps:$4 sm:$0xff]   ;;  %v15072_v17 = vld [vmem:[%s17559_s13 + $0x86c] ss:$16 sps:$4 sm:$0xff]  }
 0x189   : > { %10105 = vmatpush1.bf16.msra.mxu0 %v14977_v18  ;;  %11137 = vmatpush1.bf16.msra.mxu1 %v14980_v19  ;;  %v15067_v18 = vld [vmem:[%s17559_s13 + $0x860] ss:$16 sps:$4 sm:$0xff]   ;;  %v15070_v19 = vld [vmem:[%s17559_s13 + $0x868] ss:$16 sps:$4 sm:$0xff]  }
 0x18a   : > { %10106 = vmatprep.subr.bf16.mxu0 %v14985_v20  ;;  %11138 = vmatprep.subr.bf16.mxu1 %v14988_v21  ;;  %v15075_v20 = vld [vmem:[%s17559_s13 + $0x884] ss:$16 sps:$4 sm:$0xff]   ;;  %v15078_v21 = vld [vmem:[%s17559_s13 + $0x88c] ss:$16 sps:$4 sm:$0xff]  }
 0x18d   : > { %10107 = vmatpush1.bf16.msra.mxu0 %v14983_v22  ;;  %11139 = vmatpush1.bf16.msra.mxu1 %v14986_v23  ;;  %v15073_v22 = vld [vmem:[%s17559_s13 + $0x880] ss:$16 sps:$4 sm:$0xff]   ;;  %v15076_v23 = vld [vmem:[%s17559_s13 + $0x888] ss:$16 sps:$4 sm:$0xff]  }
 0x18e   : > { %10108 = vmatprep.subr.bf16.mxu0 %v14991_v24  ;;  %11140 = vmatprep.subr.bf16.mxu1 %v14994_v25  ;;  %v15081_v24 = vld [vmem:[%s17559_s13 + $0x8a4] ss:$16 sps:$4 sm:$0xff]   ;;  %v15084_v25 = vld [vmem:[%s17559_s13 + $0x8ac] ss:$16 sps:$4 sm:$0xff]  }
 0x191   : > { %10109 = vmatpush1.bf16.msra.mxu0 %v14989_v26  ;;  %11141 = vmatpush1.bf16.msra.mxu1 %v14992_v27  ;;  %v15079_v26 = vld [vmem:[%s17559_s13 + $0x8a0] ss:$16 sps:$4 sm:$0xff]   ;;  %v15082_v27 = vld [vmem:[%s17559_s13 + $0x8a8] ss:$16 sps:$4 sm:$0xff]  }
 0x192   : > { %10110 = vmatprep.subr.bf16.mxu0 %v14997_v28  ;;  %11142 = vmatprep.subr.bf16.mxu1 %v15000_v29  ;;  %v15087_v28 = vld [vmem:[%s17559_s13 + $0x8c4] ss:$16 sps:$4 sm:$0xff]   ;;  %v15090_v29 = vld [vmem:[%s17559_s13 + $0x8cc] ss:$16 sps:$4 sm:$0xff]  }
 0x195   : > { %10111 = vmatpush1.bf16.msra.mxu0 %v14995_v30  ;;  %11143 = vmatpush1.bf16.msra.mxu1 %v14998_v31  ;;  %v15085_v30 = vld [vmem:[%s17559_s13 + $0x8c0] ss:$16 sps:$4 sm:$0xff]   ;;  %v15088_v31 = vld [vmem:[%s17559_s13 + $0x8c8] ss:$16 sps:$4 sm:$0xff]  }
 0x196   : > { %10112 = vmatprep.subr.bf16.mxu0 %v15003_v32  ;;  %11144 = vmatprep.subr.bf16.mxu1 %v15006_v33  ;;  %v15093_v32 = vld [vmem:[%s17559_s13 + $0x8e4] ss:$16 sps:$4 sm:$0xff]   ;;  %v15096_v33 = vld [vmem:[%s17559_s13 + $0x8ec] ss:$16 sps:$4 sm:$0xff]  }
 0x199   : > { %10113 = vmatpush1.bf16.msra.mxu0 %v15001_v34  ;;  %11145 = vmatpush1.bf16.msra.mxu1 %v15004_v35  ;;  %v15091_v34 = vld [vmem:[%s17559_s13 + $0x8e0] ss:$16 sps:$4 sm:$0xff]   ;;  %v15094_v35 = vld [vmem:[%s17559_s13 + $0x8e8] ss:$16 sps:$4 sm:$0xff]  }
 0x19a   : > { %10114 = vmatprep.subr.bf16.mxu0 %v15009_v36  ;;  %11146 = vmatprep.subr.bf16.mxu1 %v15012_v37  ;;  %v15099_v36 = vld [vmem:[%s17559_s13 + $0x904] ss:$16 sps:$4 sm:$0xff]   ;;  %v15102_v37 = vld [vmem:[%s17559_s13 + $0x90c] ss:$16 sps:$4 sm:$0xff]  }
 0x19d   : > { %10115 = vmatpush1.bf16.msra.mxu0 %v15007_v38  ;;  %11147 = vmatpush1.bf16.msra.mxu1 %v15010_v39  ;;  %v15097_v38 = vld [vmem:[%s17559_s13 + $0x900] ss:$16 sps:$4 sm:$0xff]   ;;  %v15100_v39 = vld [vmem:[%s17559_s13 + $0x908] ss:$16 sps:$4 sm:$0xff]  }
 0x19e   : > { %10116 = vmatprep.subr.bf16.mxu0 %v15015_v40  ;;  %11148 = vmatprep.subr.bf16.mxu1 %v15018_v41  ;;  %v15105_v40 = vld [vmem:[%s17559_s13 + $0x924] ss:$16 sps:$4 sm:$0xff]   ;;  %v15108_v41 = vld [vmem:[%s17559_s13 + $0x92c] ss:$16 sps:$4 sm:$0xff]  }
 0x1a1   : > { %10117 = vmatpush1.bf16.msra.mxu0 %v15013_v42  ;;  %11149 = vmatpush1.bf16.msra.mxu1 %v15016_v43  ;;  %v15103_v42 = vld [vmem:[%s17559_s13 + $0x920] ss:$16 sps:$4 sm:$0xff]   ;;  %v15106_v43 = vld [vmem:[%s17559_s13 + $0x928] ss:$16 sps:$4 sm:$0xff]  }
 0x1a2   : > { %10118 = vmatprep.subr.bf16.mxu0 %v15021_v44  ;;  %11150 = vmatprep.subr.bf16.mxu1 %v15024_v45  ;;  %v15111_v44 = vld [vmem:[%s17559_s13 + $0x944] ss:$16 sps:$4 sm:$0xff]   ;;  %v15114_v45 = vld [vmem:[%s17559_s13 + $0x94c] ss:$16 sps:$4 sm:$0xff]  }
 0x1a5   : > { %10119 = vmatpush1.bf16.msra.mxu0 %v15019_v46  ;;  %11151 = vmatpush1.bf16.msra.mxu1 %v15022_v47  ;;  %v15109_v46 = vld [vmem:[%s17559_s13 + $0x940] ss:$16 sps:$4 sm:$0xff]   ;;  %v15112_v47 = vld [vmem:[%s17559_s13 + $0x948] ss:$16 sps:$4 sm:$0xff]  }
 0x1a6   : > { %10120 = vmatprep.subr.bf16.mxu0 %v15027_v48  ;;  %11152 = vmatprep.subr.bf16.mxu1 %v15030_v49  ;;  %v15117_v48 = vld [vmem:[%s17559_s13 + $0x964] ss:$16 sps:$4 sm:$0xff]   ;;  %v15120_v49 = vld [vmem:[%s17559_s13 + $0x96c] ss:$16 sps:$4 sm:$0xff]  }
 0x1a9   : > { %10121 = vmatpush1.bf16.msra.mxu0 %v15025_v50  ;;  %11153 = vmatpush1.bf16.msra.mxu1 %v15028_v51  ;;  %v15115_v50 = vld [vmem:[%s17559_s13 + $0x960] ss:$16 sps:$4 sm:$0xff]   ;;  %v15118_v51 = vld [vmem:[%s17559_s13 + $0x968] ss:$16 sps:$4 sm:$0xff]  }
 0x1aa   : > { %10122 = vmatprep.subr.bf16.mxu0 %v15033_v52  ;;  %11154 = vmatprep.subr.bf16.mxu1 %v15036_v53  ;;  %v15123_v52 = vld [vmem:[%s17559_s13 + $0x984] ss:$16 sps:$4 sm:$0xff]   ;;  %v15126_v53 = vld [vmem:[%s17559_s13 + $0x98c] ss:$16 sps:$4 sm:$0xff]  }
 0x1ad   : > { %10123 = vmatpush1.bf16.msra.mxu0 %v15031_v54  ;;  %11155 = vmatpush1.bf16.msra.mxu1 %v15034_v55  ;;  %v15121_v54 = vld [vmem:[%s17559_s13 + $0x980] ss:$16 sps:$4 sm:$0xff]   ;;  %v15124_v55 = vld [vmem:[%s17559_s13 + $0x988] ss:$16 sps:$4 sm:$0xff]  }
 0x1ae   : > { %10124 = vmatprep.subr.bf16.mxu0 %v15039_v56  ;;  %11156 = vmatprep.subr.bf16.mxu1 %v15042_v57  ;;  %v15129_v56 = vld [vmem:[%s17559_s13 + $0x9a4] ss:$16 sps:$4 sm:$0xff]   ;;  %v15132_v57 = vld [vmem:[%s17559_s13 + $0x9ac] ss:$16 sps:$4 sm:$0xff]  }
 0x1b1   : > { %10125 = vmatpush1.bf16.msra.mxu0 %v15037_v58  ;;  %11157 = vmatpush1.bf16.msra.mxu1 %v15040_v59  ;;  %v15127_v58 = vld [vmem:[%s17559_s13 + $0x9a0] ss:$16 sps:$4 sm:$0xff]   ;;  %v15130_v59 = vld [vmem:[%s17559_s13 + $0x9a8] ss:$16 sps:$4 sm:$0xff]  }
 0x1b2   : > { %10126 = vmatprep.subr.bf16.mxu0 %v15045_v60  ;;  %11158 = vmatprep.subr.bf16.mxu1 %v15048_v61  ;;  %v15135_v60 = vld [vmem:[%s17559_s13 + $0x9c4] ss:$16 sps:$4 sm:$0xff]   ;;  %v15138_v61 = vld [vmem:[%s17559_s13 + $0x9cc] ss:$16 sps:$4 sm:$0xff]  }
 0x1b5   : > { %10127 = vmatpush1.bf16.msra.mxu0 %v15043_v62  ;;  %11159 = vmatpush1.bf16.msra.mxu1 %v15046_v1  ;;  %v15133_v62 = vld [vmem:[%s17559_s13 + $0x9c0] ss:$16 sps:$4 sm:$0xff]   ;;  %v15136_v1 = vld [vmem:[%s17559_s13 + $0x9c8] ss:$16 sps:$4 sm:$0xff]  }
 0x1b6   : > { %10139 = vmatprep.subr.bf16.mxu0 %v15051_v2  ;;  %11171 = vmatprep.subr.bf16.mxu1 %v15054_v5  ;;  %v15141_v2 = vld [vmem:[%s17559_s13 + $0x9e4] ss:$16 sps:$4 sm:$0xff]   ;;  %v15144_v5 = vld [vmem:[%s17559_s13 + $0x9ec] ss:$16 sps:$4 sm:$0xff]  }
 0x1b8   : > { %10129 = vmatmul.mubr.bf16.vlgmr.msra.gmra.mrb[0].mxu0 %v12732_v7  ;;  %11161 = vmatmul.mubr.bf16.vlgmr.msra.gmra.mrb[0].mxu1 %v12732_v7  ;;  %v15139_v7 = vld [vmem:[%s17559_s13 + $0x9e0] ss:$16 sps:$4 sm:$0xff]  }
 0x1b9   : > { %10140 = vmatpush1.bf16.msra.mxu0 %v15049_v0  ;;  %11172 = vmatpush1.bf16.msra.mxu1 %v15052_v8  ;;  %v15142_v0 = vld [vmem:[%s17559_s13 + $0x9e8] ss:$16 sps:$4 sm:$0xff]   ;;  %v15147_v8 = vld [vmem:[%s17559_s13 + $0xa04] ss:$16 sps:$4 sm:$0xff]  }
 0x1ba   : > { %10141 = vmatprep.subr.bf16.mxu0 %v15057_v9  ;;  %11173 = vmatprep.subr.bf16.mxu1 %v15060_v10  ;;  %v15150_v9 = vld [vmem:[%s17559_s13 + $0xa0c] ss:$16 sps:$4 sm:$0xff]  }
 0x1bb   : > { %10171 = vmatprep.mubr.bf16.mxu0 %v12735_v11  ;;  %11203 = vmatprep.mubr.bf16.mxu1 %v12735_v11  ;;  %v17937_v10 = vld [vmem:[%s17557_s18 + $0x28] sm:$0xff] }
 0x1bc   : > { %v17940_v11 = vld [vmem:[%s17557_s18 + $0xe8] sm:$0xff] }
 0x1bd   : > { %10142 = vmatpush1.bf16.msra.mxu0 %v15055_v3  ;;  %11174 = vmatpush1.bf16.msra.mxu1 %v15058_v4  ;;  %v12734_v3 = vcombine.low %v17863_v6, %v17868_v63  ;;  %v15145_v4 = vld [vmem:[%s17559_s13 + $0xa00] ss:$16 sps:$4 sm:$0xff]   ;;  %v15154_v63 = vld [vmem:[%s17559_s13 + $0xa28] ss:$16 sps:$4 sm:$0xff]  }
 0x1be   : > { %10143 = vmatprep.subr.bf16.mxu0 %v15063_v12  ;;  %11175 = vmatprep.subr.bf16.mxu1 %v15066_v13  ;;  %v15148_v12 = vld [vmem:[%s17559_s13 + $0xa08] ss:$16 sps:$4 sm:$0xff]   ;;  %v15153_v13 = vld [vmem:[%s17559_s13 + $0xa24] ss:$16 sps:$4 sm:$0xff]   ;;  %v15151_v6 = vld [vmem:[%s17559_s13 + $0xa20] ss:$16 sps:$4 sm:$0xff]  }
 0x1c1   : > { %10144 = vmatpush1.bf16.msra.mxu0 %v15061_v14  ;;  %11176 = vmatpush1.bf16.msra.mxu1 %v15064_v15  ;;  %v15156_v14 = vld [vmem:[%s17559_s13 + $0xa2c] ss:$16 sps:$4 sm:$0xff]   ;;  %v12737_v15 = vcombine.high %v17937_v10, %v17940_v11 }
 0x1c2   : > { %10145 = vmatprep.subr.bf16.mxu0 %v15069_v16  ;;  %11177 = vmatprep.subr.bf16.mxu1 %v15072_v17  ;;  %v15159_v16 = vld [vmem:[%s17559_s13 + $0xa44] ss:$16 sps:$4 sm:$0xff]   ;;  %v15162_v17 = vld [vmem:[%s17559_s13 + $0xa4c] ss:$16 sps:$4 sm:$0xff]  }
 0x1c5   : > { %10146 = vmatpush1.bf16.msra.mxu0 %v15067_v18  ;;  %11178 = vmatpush1.bf16.msra.mxu1 %v15070_v19  ;;  %v15157_v18 = vld [vmem:[%s17559_s13 + $0xa40] ss:$16 sps:$4 sm:$0xff]   ;;  %v15160_v19 = vld [vmem:[%s17559_s13 + $0xa48] ss:$16 sps:$4 sm:$0xff]  }
 0x1c6   : > { %10147 = vmatprep.subr.bf16.mxu0 %v15075_v20  ;;  %11179 = vmatprep.subr.bf16.mxu1 %v15078_v21  ;;  %v15165_v20 = vld [vmem:[%s17559_s13 + $0xa64] ss:$16 sps:$4 sm:$0xff]   ;;  %v15168_v21 = vld [vmem:[%s17559_s13 + $0xa6c] ss:$16 sps:$4 sm:$0xff]  }
 0x1c9   : > { %10148 = vmatpush1.bf16.msra.mxu0 %v15073_v22  ;;  %11180 = vmatpush1.bf16.msra.mxu1 %v15076_v23  ;;  %v15163_v22 = vld [vmem:[%s17559_s13 + $0xa60] ss:$16 sps:$4 sm:$0xff]   ;;  %v15166_v23 = vld [vmem:[%s17559_s13 + $0xa68] ss:$16 sps:$4 sm:$0xff]  }
 0x1ca   : > { %10149 = vmatprep.subr.bf16.mxu0 %v15081_v24  ;;  %11181 = vmatprep.subr.bf16.mxu1 %v15084_v25  ;;  %v15171_v24 = vld [vmem:[%s17559_s13 + $0xa84] ss:$16 sps:$4 sm:$0xff]   ;;  %v15174_v25 = vld [vmem:[%s17559_s13 + $0xa8c] ss:$16 sps:$4 sm:$0xff]  }
 0x1cd   : > { %10150 = vmatpush1.bf16.msra.mxu0 %v15079_v26  ;;  %11182 = vmatpush1.bf16.msra.mxu1 %v15082_v27  ;;  %v15169_v26 = vld [vmem:[%s17559_s13 + $0xa80] ss:$16 sps:$4 sm:$0xff]   ;;  %v15172_v27 = vld [vmem:[%s17559_s13 + $0xa88] ss:$16 sps:$4 sm:$0xff]  }
 0x1ce   : > { %10151 = vmatprep.subr.bf16.mxu0 %v15087_v28  ;;  %11183 = vmatprep.subr.bf16.mxu1 %v15090_v29  ;;  %v15177_v28 = vld [vmem:[%s17559_s13 + $0xaa4] ss:$16 sps:$4 sm:$0xff]   ;;  %v15180_v29 = vld [vmem:[%s17559_s13 + $0xaac] ss:$16 sps:$4 sm:$0xff]  }
 0x1d1   : > { %10152 = vmatpush1.bf16.msra.mxu0 %v15085_v30  ;;  %11184 = vmatpush1.bf16.msra.mxu1 %v15088_v31  ;;  %v15175_v30 = vld [vmem:[%s17559_s13 + $0xaa0] ss:$16 sps:$4 sm:$0xff]   ;;  %v15178_v31 = vld [vmem:[%s17559_s13 + $0xaa8] ss:$16 sps:$4 sm:$0xff]  }
 0x1d2   : > { %10153 = vmatprep.subr.bf16.mxu0 %v15093_v32  ;;  %11185 = vmatprep.subr.bf16.mxu1 %v15096_v33  ;;  %v15183_v32 = vld [vmem:[%s17559_s13 + $0xac4] ss:$16 sps:$4 sm:$0xff]   ;;  %v15186_v33 = vld [vmem:[%s17559_s13 + $0xacc] ss:$16 sps:$4 sm:$0xff]  }
 0x1d5   : > { %10154 = vmatpush1.bf16.msra.mxu0 %v15091_v34  ;;  %11186 = vmatpush1.bf16.msra.mxu1 %v15094_v35  ;;  %v15181_v34 = vld [vmem:[%s17559_s13 + $0xac0] ss:$16 sps:$4 sm:$0xff]   ;;  %v15184_v35 = vld [vmem:[%s17559_s13 + $0xac8] ss:$16 sps:$4 sm:$0xff]  }
 0x1d6   : > { %10155 = vmatprep.subr.bf16.mxu0 %v15099_v36  ;;  %11187 = vmatprep.subr.bf16.mxu1 %v15102_v37  ;;  %v15189_v36 = vld [vmem:[%s17559_s13 + $0xae4] ss:$16 sps:$4 sm:$0xff]   ;;  %v15192_v37 = vld [vmem:[%s17559_s13 + $0xaec] ss:$16 sps:$4 sm:$0xff]  }
 0x1d9   : > { %10156 = vmatpush1.bf16.msra.mxu0 %v15097_v38  ;;  %11188 = vmatpush1.bf16.msra.mxu1 %v15100_v39  ;;  %v15187_v38 = vld [vmem:[%s17559_s13 + $0xae0] ss:$16 sps:$4 sm:$0xff]   ;;  %v15190_v39 = vld [vmem:[%s17559_s13 + $0xae8] ss:$16 sps:$4 sm:$0xff]  }
 0x1da   : > { %10157 = vmatprep.subr.bf16.mxu0 %v15105_v40  ;;  %11189 = vmatprep.subr.bf16.mxu1 %v15108_v41  ;;  %v15195_v40 = vld [vmem:[%s17559_s13 + $0xb04] ss:$16 sps:$4 sm:$0xff]   ;;  %v15198_v41 = vld [vmem:[%s17559_s13 + $0xb0c] ss:$16 sps:$4 sm:$0xff]  }
 0x1dd   : > { %10158 = vmatpush1.bf16.msra.mxu0 %v15103_v42  ;;  %11190 = vmatpush1.bf16.msra.mxu1 %v15106_v43  ;;  %v15193_v42 = vld [vmem:[%s17559_s13 + $0xb00] ss:$16 sps:$4 sm:$0xff]   ;;  %v15196_v43 = vld [vmem:[%s17559_s13 + $0xb08] ss:$16 sps:$4 sm:$0xff]  }
 0x1de   : > { %10159 = vmatprep.subr.bf16.mxu0 %v15111_v44  ;;  %11191 = vmatprep.subr.bf16.mxu1 %v15114_v45  ;;  %v15201_v44 = vld [vmem:[%s17559_s13 + $0xb24] ss:$16 sps:$4 sm:$0xff]   ;;  %v15204_v45 = vld [vmem:[%s17559_s13 + $0xb2c] ss:$16 sps:$4 sm:$0xff]  }
 0x1e1   : > { %10160 = vmatpush1.bf16.msra.mxu0 %v15109_v46  ;;  %11192 = vmatpush1.bf16.msra.mxu1 %v15112_v47  ;;  %v15199_v46 = vld [vmem:[%s17559_s13 + $0xb20] ss:$16 sps:$4 sm:$0xff]   ;;  %v15202_v47 = vld [vmem:[%s17559_s13 + $0xb28] ss:$16 sps:$4 sm:$0xff]  }
 0x1e2   : > { %10161 = vmatprep.subr.bf16.mxu0 %v15117_v48  ;;  %11193 = vmatprep.subr.bf16.mxu1 %v15120_v49  ;;  %v15207_v48 = vld [vmem:[%s17559_s13 + $0xb44] ss:$16 sps:$4 sm:$0xff]   ;;  %v15210_v49 = vld [vmem:[%s17559_s13 + $0xb4c] ss:$16 sps:$4 sm:$0xff]  }
 0x1e5   : > { %10162 = vmatpush1.bf16.msra.mxu0 %v15115_v50  ;;  %11194 = vmatpush1.bf16.msra.mxu1 %v15118_v51  ;;  %v15205_v50 = vld [vmem:[%s17559_s13 + $0xb40] ss:$16 sps:$4 sm:$0xff]   ;;  %v15208_v51 = vld [vmem:[%s17559_s13 + $0xb48] ss:$16 sps:$4 sm:$0xff]  }
 0x1e6   : > { %10163 = vmatprep.subr.bf16.mxu0 %v15123_v52  ;;  %11195 = vmatprep.subr.bf16.mxu1 %v15126_v53  ;;  %v15213_v52 = vld [vmem:[%s17559_s13 + $0xb64] ss:$16 sps:$4 sm:$0xff]   ;;  %v15216_v53 = vld [vmem:[%s17559_s13 + $0xb6c] ss:$16 sps:$4 sm:$0xff]  }
 0x1e9   : > { %10164 = vmatpush1.bf16.msra.mxu0 %v15121_v54  ;;  %11196 = vmatpush1.bf16.msra.mxu1 %v15124_v55  ;;  %v15211_v54 = vld [vmem:[%s17559_s13 + $0xb60] ss:$16 sps:$4 sm:$0xff]   ;;  %v15214_v55 = vld [vmem:[%s17559_s13 + $0xb68] ss:$16 sps:$4 sm:$0xff]  }
 0x1ea   : > { %10165 = vmatprep.subr.bf16.mxu0 %v15129_v56  ;;  %11197 = vmatprep.subr.bf16.mxu1 %v15132_v57  ;;  %v15219_v56 = vld [vmem:[%s17559_s13 + $0xb84] ss:$16 sps:$4 sm:$0xff]   ;;  %v15222_v57 = vld [vmem:[%s17559_s13 + $0xb8c] ss:$16 sps:$4 sm:$0xff]  }
 0x1ed   : > { %10166 = vmatpush1.bf16.msra.mxu0 %v15127_v58  ;;  %11198 = vmatpush1.bf16.msra.mxu1 %v15130_v59  ;;  %v15217_v58 = vld [vmem:[%s17559_s13 + $0xb80] ss:$16 sps:$4 sm:$0xff]   ;;  %v15220_v59 = vld [vmem:[%s17559_s13 + $0xb88] ss:$16 sps:$4 sm:$0xff]  }
 0x1ee   : > { %10167 = vmatprep.subr.bf16.mxu0 %v15135_v60  ;;  %11199 = vmatprep.subr.bf16.mxu1 %v15138_v61  ;;  %v15225_v60 = vld [vmem:[%s17559_s13 + $0xba4] ss:$16 sps:$4 sm:$0xff]   ;;  %v15228_v61 = vld [vmem:[%s17559_s13 + $0xbac] ss:$16 sps:$4 sm:$0xff]  }
 0x1f1   : > { %10168 = vmatpush1.bf16.msra.mxu0 %v15133_v62  ;;  %11200 = vmatpush1.bf16.msra.mxu1 %v15136_v1  ;;  %v15223_v62 = vld [vmem:[%s17559_s13 + $0xba0] ss:$16 sps:$4 sm:$0xff]   ;;  %v15226_v1 = vld [vmem:[%s17559_s13 + $0xba8] ss:$16 sps:$4 sm:$0xff]  }
 0x1f2   : > { %10169 = vmatprep.subr.bf16.mxu0 %v15141_v2  ;;  %11201 = vmatprep.subr.bf16.mxu1 %v15144_v5  ;;  %v15231_v2 = vld [vmem:[%s17559_s13 + $0xbc4] ss:$16 sps:$4 sm:$0xff]   ;;  %v15234_v5 = vld [vmem:[%s17559_s13 + $0xbcc] ss:$16 sps:$4 sm:$0xff]  }
 0x1f5   : > { %10170 = vmatpush1.bf16.msra.mxu0 %v15139_v7  ;;  %11202 = vmatpush1.bf16.msra.mxu1 %v15142_v0  ;;  %v15229_v7 = vld [vmem:[%s17559_s13 + $0xbc0] ss:$16 sps:$4 sm:$0xff]   ;;  %v15232_v0 = vld [vmem:[%s17559_s13 + $0xbc8] ss:$16 sps:$4 sm:$0xff]  }
 0x1f6   : > { %10182 = vmatprep.subr.bf16.mxu0 %v15147_v8  ;;  %11214 = vmatprep.subr.bf16.mxu1 %v15150_v9  ;;  %v15237_v8 = vld [vmem:[%s17559_s13 + $0xbe4] ss:$16 sps:$4 sm:$0xff]   ;;  %v15240_v9 = vld [vmem:[%s17559_s13 + $0xbec] ss:$16 sps:$4 sm:$0xff]  }
 0x1f8   : > { %10172 = vmatmul.mubr.bf16.vlgmr.msra.gmra.mrb[0].mxu0 %v12734_v3  ;;  %11204 = vmatmul.mubr.bf16.vlgmr.msra.gmra.mrb[0].mxu1 %v12734_v3  ;;  %v15235_v3 = vld [vmem:[%s17559_s13 + $0xbe0] ss:$16 sps:$4 sm:$0xff]  }
 0x1f9   : > { %10183 = vmatpush1.bf16.msra.mxu0 %v15145_v4  ;;  %11215 = vmatpush1.bf16.msra.mxu1 %v15148_v12  ;;  %v15238_v4 = vld [vmem:[%s17559_s13 + $0xbe8] ss:$16 sps:$4 sm:$0xff]   ;;  %v15243_v12 = vld [vmem:[%s17559_s13 + $0xc04] ss:$16 sps:$4 sm:$0xff]  }
 0x1fa   : > { %10184 = vmatprep.subr.bf16.mxu0 %v15153_v13  ;;  %11216 = vmatprep.subr.bf16.mxu1 %v15156_v14  ;;  %v15246_v13 = vld [vmem:[%s17559_s13 + $0xc0c] ss:$16 sps:$4 sm:$0xff]   ;;  %v18011_v14 = vld [vmem:[%s17557_s18 + $0x30] sm:$0xff] }
 0x1fb   : > { %10214 = vmatprep.mubr.bf16.mxu0 %v12737_v15  ;;  %11246 = vmatprep.mubr.bf16.mxu1 %v12737_v15  ;;  %v18014_v15 = vld [vmem:[%s17557_s18 + $0xf0] sm:$0xff] }
 0x1fd   : > { %10185 = vmatpush1.bf16.msra.mxu0 %v15151_v6  ;;  %11217 = vmatpush1.bf16.msra.mxu1 %v15154_v63  ;;  %v12736_v6 = vcombine.low %v17937_v10, %v17940_v11  ;;  %v15241_v63 = vld [vmem:[%s17559_s13 + $0xc00] ss:$16 sps:$4 sm:$0xff]   ;;  %v15250_v11 = vld [vmem:[%s17559_s13 + $0xc28] ss:$16 sps:$4 sm:$0xff]  }
 0x1fe   : > { %10186 = vmatprep.subr.bf16.mxu0 %v15159_v16  ;;  %11218 = vmatprep.subr.bf16.mxu1 %v15162_v17  ;;  %v15244_v16 = vld [vmem:[%s17559_s13 + $0xc08] ss:$16 sps:$4 sm:$0xff]   ;;  %v15249_v17 = vld [vmem:[%s17559_s13 + $0xc24] ss:$16 sps:$4 sm:$0xff]   ;;  %v15247_v10 = vld [vmem:[%s17559_s13 + $0xc20] ss:$16 sps:$4 sm:$0xff]  }
 0x201   : > { %10187 = vmatpush1.bf16.msra.mxu0 %v15157_v18  ;;  %11219 = vmatpush1.bf16.msra.mxu1 %v15160_v19  ;;  %v15252_v18 = vld [vmem:[%s17559_s13 + $0xc2c] ss:$16 sps:$4 sm:$0xff]   ;;  %v12739_v19 = vcombine.high %v18011_v14, %v18014_v15 }
 0x202   : > { %10188 = vmatprep.subr.bf16.mxu0 %v15165_v20  ;;  %11220 = vmatprep.subr.bf16.mxu1 %v15168_v21  ;;  %v15255_v20 = vld [vmem:[%s17559_s13 + $0xc44] ss:$16 sps:$4 sm:$0xff]   ;;  %v15258_v21 = vld [vmem:[%s17559_s13 + $0xc4c] ss:$16 sps:$4 sm:$0xff]  }
 0x205   : > { %10189 = vmatpush1.bf16.msra.mxu0 %v15163_v22  ;;  %11221 = vmatpush1.bf16.msra.mxu1 %v15166_v23  ;;  %v15253_v22 = vld [vmem:[%s17559_s13 + $0xc40] ss:$16 sps:$4 sm:$0xff]   ;;  %v15256_v23 = vld [vmem:[%s17559_s13 + $0xc48] ss:$16 sps:$4 sm:$0xff]  }
 0x206   : > { %10190 = vmatprep.subr.bf16.mxu0 %v15171_v24  ;;  %11222 = vmatprep.subr.bf16.mxu1 %v15174_v25  ;;  %v15261_v24 = vld [vmem:[%s17559_s13 + $0xc64] ss:$16 sps:$4 sm:$0xff]   ;;  %v15264_v25 = vld [vmem:[%s17559_s13 + $0xc6c] ss:$16 sps:$4 sm:$0xff]  }
 0x209   : > { %10191 = vmatpush1.bf16.msra.mxu0 %v15169_v26  ;;  %11223 = vmatpush1.bf16.msra.mxu1 %v15172_v27  ;;  %v15259_v26 = vld [vmem:[%s17559_s13 + $0xc60] ss:$16 sps:$4 sm:$0xff]   ;;  %v15262_v27 = vld [vmem:[%s17559_s13 + $0xc68] ss:$16 sps:$4 sm:$0xff]  }
 0x20a   : > { %10192 = vmatprep.subr.bf16.mxu0 %v15177_v28  ;;  %11224 = vmatprep.subr.bf16.mxu1 %v15180_v29  ;;  %v15267_v28 = vld [vmem:[%s17559_s13 + $0xc84] ss:$16 sps:$4 sm:$0xff]   ;;  %v15270_v29 = vld [vmem:[%s17559_s13 + $0xc8c] ss:$16 sps:$4 sm:$0xff]  }
 0x20d   : > { %10193 = vmatpush1.bf16.msra.mxu0 %v15175_v30  ;;  %11225 = vmatpush1.bf16.msra.mxu1 %v15178_v31  ;;  %v15265_v30 = vld [vmem:[%s17559_s13 + $0xc80] ss:$16 sps:$4 sm:$0xff]   ;;  %v15268_v31 = vld [vmem:[%s17559_s13 + $0xc88] ss:$16 sps:$4 sm:$0xff]  }
 0x20e   : > { %10194 = vmatprep.subr.bf16.mxu0 %v15183_v32  ;;  %11226 = vmatprep.subr.bf16.mxu1 %v15186_v33  ;;  %v15273_v32 = vld [vmem:[%s17559_s13 + $0xca4] ss:$16 sps:$4 sm:$0xff]   ;;  %v15276_v33 = vld [vmem:[%s17559_s13 + $0xcac] ss:$16 sps:$4 sm:$0xff]  }
 0x211   : > { %10195 = vmatpush1.bf16.msra.mxu0 %v15181_v34  ;;  %11227 = vmatpush1.bf16.msra.mxu1 %v15184_v35  ;;  %v15271_v34 = vld [vmem:[%s17559_s13 + $0xca0] ss:$16 sps:$4 sm:$0xff]   ;;  %v15274_v35 = vld [vmem:[%s17559_s13 + $0xca8] ss:$16 sps:$4 sm:$0xff]  }
 0x212   : > { %10196 = vmatprep.subr.bf16.mxu0 %v15189_v36  ;;  %11228 = vmatprep.subr.bf16.mxu1 %v15192_v37  ;;  %v15279_v36 = vld [vmem:[%s17559_s13 + $0xcc4] ss:$16 sps:$4 sm:$0xff]   ;;  %v15282_v37 = vld [vmem:[%s17559_s13 + $0xccc] ss:$16 sps:$4 sm:$0xff]  }
 0x215   : > { %10197 = vmatpush1.bf16.msra.mxu0 %v15187_v38  ;;  %11229 = vmatpush1.bf16.msra.mxu1 %v15190_v39  ;;  %v15277_v38 = vld [vmem:[%s17559_s13 + $0xcc0] ss:$16 sps:$4 sm:$0xff]   ;;  %v15280_v39 = vld [vmem:[%s17559_s13 + $0xcc8] ss:$16 sps:$4 sm:$0xff]  }
 0x216   : > { %10198 = vmatprep.subr.bf16.mxu0 %v15195_v40  ;;  %11230 = vmatprep.subr.bf16.mxu1 %v15198_v41  ;;  %v15285_v40 = vld [vmem:[%s17559_s13 + $0xce4] ss:$16 sps:$4 sm:$0xff]   ;;  %v15288_v41 = vld [vmem:[%s17559_s13 + $0xcec] ss:$16 sps:$4 sm:$0xff]  }
 0x219   : > { %10199 = vmatpush1.bf16.msra.mxu0 %v15193_v42  ;;  %11231 = vmatpush1.bf16.msra.mxu1 %v15196_v43  ;;  %v15283_v42 = vld [vmem:[%s17559_s13 + $0xce0] ss:$16 sps:$4 sm:$0xff]   ;;  %v15286_v43 = vld [vmem:[%s17559_s13 + $0xce8] ss:$16 sps:$4 sm:$0xff]  }
 0x21a   : > { %10200 = vmatprep.subr.bf16.mxu0 %v15201_v44  ;;  %11232 = vmatprep.subr.bf16.mxu1 %v15204_v45  ;;  %v15291_v44 = vld [vmem:[%s17559_s13 + $0xd04] ss:$16 sps:$4 sm:$0xff]   ;;  %v15294_v45 = vld [vmem:[%s17559_s13 + $0xd0c] ss:$16 sps:$4 sm:$0xff]  }
 0x21d   : > { %10201 = vmatpush1.bf16.msra.mxu0 %v15199_v46  ;;  %11233 = vmatpush1.bf16.msra.mxu1 %v15202_v47  ;;  %v15289_v46 = vld [vmem:[%s17559_s13 + $0xd00] ss:$16 sps:$4 sm:$0xff]   ;;  %v15292_v47 = vld [vmem:[%s17559_s13 + $0xd08] ss:$16 sps:$4 sm:$0xff]  }
 0x21e   : > { %10202 = vmatprep.subr.bf16.mxu0 %v15207_v48  ;;  %11234 = vmatprep.subr.bf16.mxu1 %v15210_v49  ;;  %v15297_v48 = vld [vmem:[%s17559_s13 + $0xd24] ss:$16 sps:$4 sm:$0xff]   ;;  %v15300_v49 = vld [vmem:[%s17559_s13 + $0xd2c] ss:$16 sps:$4 sm:$0xff]  }
 0x221   : > { %10203 = vmatpush1.bf16.msra.mxu0 %v15205_v50  ;;  %11235 = vmatpush1.bf16.msra.mxu1 %v15208_v51  ;;  %v15295_v50 = vld [vmem:[%s17559_s13 + $0xd20] ss:$16 sps:$4 sm:$0xff]   ;;  %v15298_v51 = vld [vmem:[%s17559_s13 + $0xd28] ss:$16 sps:$4 sm:$0xff]  }
 0x222   : > { %10204 = vmatprep.subr.bf16.mxu0 %v15213_v52  ;;  %11236 = vmatprep.subr.bf16.mxu1 %v15216_v53  ;;  %v15303_v52 = vld [vmem:[%s17559_s13 + $0xd44] ss:$16 sps:$4 sm:$0xff]   ;;  %v15306_v53 = vld [vmem:[%s17559_s13 + $0xd4c] ss:$16 sps:$4 sm:$0xff]  }
 0x225   : > { %10205 = vmatpush1.bf16.msra.mxu0 %v15211_v54  ;;  %11237 = vmatpush1.bf16.msra.mxu1 %v15214_v55  ;;  %v15301_v54 = vld [vmem:[%s17559_s13 + $0xd40] ss:$16 sps:$4 sm:$0xff]   ;;  %v15304_v55 = vld [vmem:[%s17559_s13 + $0xd48] ss:$16 sps:$4 sm:$0xff]  }
 0x226   : > { %10206 = vmatprep.subr.bf16.mxu0 %v15219_v56  ;;  %11238 = vmatprep.subr.bf16.mxu1 %v15222_v57  ;;  %v15309_v56 = vld [vmem:[%s17559_s13 + $0xd64] ss:$16 sps:$4 sm:$0xff]   ;;  %v15312_v57 = vld [vmem:[%s17559_s13 + $0xd6c] ss:$16 sps:$4 sm:$0xff]  }
 0x229   : > { %10207 = vmatpush1.bf16.msra.mxu0 %v15217_v58  ;;  %11239 = vmatpush1.bf16.msra.mxu1 %v15220_v59  ;;  %v15307_v58 = vld [vmem:[%s17559_s13 + $0xd60] ss:$16 sps:$4 sm:$0xff]   ;;  %v15310_v59 = vld [vmem:[%s17559_s13 + $0xd68] ss:$16 sps:$4 sm:$0xff]  }
 0x22a   : > { %10208 = vmatprep.subr.bf16.mxu0 %v15225_v60  ;;  %11240 = vmatprep.subr.bf16.mxu1 %v15228_v61  ;;  %v15315_v60 = vld [vmem:[%s17559_s13 + $0xd84] ss:$16 sps:$4 sm:$0xff]   ;;  %v15318_v61 = vld [vmem:[%s17559_s13 + $0xd8c] ss:$16 sps:$4 sm:$0xff]  }
 0x22d   : > { %10209 = vmatpush1.bf16.msra.mxu0 %v15223_v62  ;;  %11241 = vmatpush1.bf16.msra.mxu1 %v15226_v1  ;;  %v15313_v62 = vld [vmem:[%s17559_s13 + $0xd80] ss:$16 sps:$4 sm:$0xff]   ;;  %v15316_v1 = vld [vmem:[%s17559_s13 + $0xd88] ss:$16 sps:$4 sm:$0xff]  }
 0x22e   : > { %10210 = vmatprep.subr.bf16.mxu0 %v15231_v2  ;;  %11242 = vmatprep.subr.bf16.mxu1 %v15234_v5  ;;  %v15321_v2 = vld [vmem:[%s17559_s13 + $0xda4] ss:$16 sps:$4 sm:$0xff]   ;;  %v15324_v5 = vld [vmem:[%s17559_s13 + $0xdac] ss:$16 sps:$4 sm:$0xff]  }
 0x231   : > { %10211 = vmatpush1.bf16.msra.mxu0 %v15229_v7  ;;  %11243 = vmatpush1.bf16.msra.mxu1 %v15232_v0  ;;  %v15319_v7 = vld [vmem:[%s17559_s13 + $0xda0] ss:$16 sps:$4 sm:$0xff]   ;;  %v15322_v0 = vld [vmem:[%s17559_s13 + $0xda8] ss:$16 sps:$4 sm:$0xff]  }
 0x232   : > { %10212 = vmatprep.subr.bf16.mxu0 %v15237_v8  ;;  %11244 = vmatprep.subr.bf16.mxu1 %v15240_v9  ;;  %v15327_v8 = vld [vmem:[%s17559_s13 + $0xdc4] ss:$16 sps:$4 sm:$0xff]   ;;  %v15330_v9 = vld [vmem:[%s17559_s13 + $0xdcc] ss:$16 sps:$4 sm:$0xff]  }
 0x235   : > { %10213 = vmatpush1.bf16.msra.mxu0 %v15235_v3  ;;  %11245 = vmatpush1.bf16.msra.mxu1 %v15238_v4  ;;  %v15325_v3 = vld [vmem:[%s17559_s13 + $0xdc0] ss:$16 sps:$4 sm:$0xff]   ;;  %v15328_v4 = vld [vmem:[%s17559_s13 + $0xdc8] ss:$16 sps:$4 sm:$0xff]  }
 0x236   : > { %10225 = vmatprep.subr.bf16.mxu0 %v15243_v12  ;;  %11257 = vmatprep.subr.bf16.mxu1 %v15246_v13  ;;  %v15333_v12 = vld [vmem:[%s17559_s13 + $0xde4] ss:$16 sps:$4 sm:$0xff]   ;;  %v15336_v13 = vld [vmem:[%s17559_s13 + $0xdec] ss:$16 sps:$4 sm:$0xff]  }
 0x238   : > { %10215 = vmatmul.mubr.bf16.vlgmr.msra.gmra.mrb[0].mxu0 %v12736_v6  ;;  %11247 = vmatmul.mubr.bf16.vlgmr.msra.gmra.mrb[0].mxu1 %v12736_v6  ;;  %v15331_v6 = vld [vmem:[%s17559_s13 + $0xde0] ss:$16 sps:$4 sm:$0xff]  }
 0x239   : > { %10226 = vmatpush1.bf16.msra.mxu0 %v15241_v63  ;;  %11258 = vmatpush1.bf16.msra.mxu1 %v15244_v16  ;;  %v15334_v63 = vld [vmem:[%s17559_s13 + $0xde8] ss:$16 sps:$4 sm:$0xff]   ;;  %v15339_v16 = vld [vmem:[%s17559_s13 + $0xe04] ss:$16 sps:$4 sm:$0xff]  }
 0x23a   : > { %10227 = vmatprep.subr.bf16.mxu0 %v15249_v17  ;;  %11259 = vmatprep.subr.bf16.mxu1 %v15252_v18  ;;  %v15342_v17 = vld [vmem:[%s17559_s13 + $0xe0c] ss:$16 sps:$4 sm:$0xff]  }
 0x23b   : > { %10257 = vmatprep.mubr.bf16.mxu0 %v12739_v19  ;;  %11289 = vmatprep.mubr.bf16.mxu1 %v12739_v19  ;;  %v18085_v18 = vld [vmem:[%s17557_s18 + $0x38] sm:$0xff] }
 0x23c   : > { %v18088_v19 = vld [vmem:[%s17557_s18 + $0xf8] sm:$0xff] }
 0x23d   : > { %10228 = vmatpush1.bf16.msra.mxu0 %v15247_v10  ;;  %11260 = vmatpush1.bf16.msra.mxu1 %v15250_v11  ;;  %v12738_v10 = vcombine.low %v18011_v14, %v18014_v15  ;;  %v15337_v11 = vld [vmem:[%s17559_s13 + $0xe00] ss:$16 sps:$4 sm:$0xff]   ;;  %v15346_v15 = vld [vmem:[%s17559_s13 + $0xe28] ss:$16 sps:$4 sm:$0xff]  }
 0x23e   : > { %10229 = vmatprep.subr.bf16.mxu0 %v15255_v20  ;;  %11261 = vmatprep.subr.bf16.mxu1 %v15258_v21  ;;  %v15340_v20 = vld [vmem:[%s17559_s13 + $0xe08] ss:$16 sps:$4 sm:$0xff]   ;;  %v15345_v21 = vld [vmem:[%s17559_s13 + $0xe24] ss:$16 sps:$4 sm:$0xff]   ;;  %v15343_v14 = vld [vmem:[%s17559_s13 + $0xe20] ss:$16 sps:$4 sm:$0xff]  }
 0x241   : > { %10230 = vmatpush1.bf16.msra.mxu0 %v15253_v22  ;;  %11262 = vmatpush1.bf16.msra.mxu1 %v15256_v23  ;;  %v15348_v22 = vld [vmem:[%s17559_s13 + $0xe2c] ss:$16 sps:$4 sm:$0xff]   ;;  %v12741_v23 = vcombine.high %v18085_v18, %v18088_v19 }
 0x242   : > { %10231 = vmatprep.subr.bf16.mxu0 %v15261_v24  ;;  %11263 = vmatprep.subr.bf16.mxu1 %v15264_v25  ;;  %v15351_v24 = vld [vmem:[%s17559_s13 + $0xe44] ss:$16 sps:$4 sm:$0xff]   ;;  %v15354_v25 = vld [vmem:[%s17559_s13 + $0xe4c] ss:$16 sps:$4 sm:$0xff]  }
 0x245   : > { %10232 = vmatpush1.bf16.msra.mxu0 %v15259_v26  ;;  %11264 = vmatpush1.bf16.msra.mxu1 %v15262_v27  ;;  %v15349_v26 = vld [vmem:[%s17559_s13 + $0xe40] ss:$16 sps:$4 sm:$0xff]   ;;  %v15352_v27 = vld [vmem:[%s17559_s13 + $0xe48] ss:$16 sps:$4 sm:$0xff]  }
 0x246   : > { %10233 = vmatprep.subr.bf16.mxu0 %v15267_v28  ;;  %11265 = vmatprep.subr.bf16.mxu1 %v15270_v29  ;;  %v15357_v28 = vld [vmem:[%s17559_s13 + $0xe64] ss:$16 sps:$4 sm:$0xff]   ;;  %v15360_v29 = vld [vmem:[%s17559_s13 + $0xe6c] ss:$16 sps:$4 sm:$0xff]  }
 0x249   : > { %10234 = vmatpush1.bf16.msra.mxu0 %v15265_v30  ;;  %11266 = vmatpush1.bf16.msra.mxu1 %v15268_v31  ;;  %v15355_v30 = vld [vmem:[%s17559_s13 + $0xe60] ss:$16 sps:$4 sm:$0xff]   ;;  %v15358_v31 = vld [vmem:[%s17559_s13 + $0xe68] ss:$16 sps:$4 sm:$0xff]  }
 0x24a   : > { %10235 = vmatprep.subr.bf16.mxu0 %v15273_v32  ;;  %11267 = vmatprep.subr.bf16.mxu1 %v15276_v33  ;;  %v15363_v32 = vld [vmem:[%s17559_s13 + $0xe84] ss:$16 sps:$4 sm:$0xff]   ;;  %v15366_v33 = vld [vmem:[%s17559_s13 + $0xe8c] ss:$16 sps:$4 sm:$0xff]  }
 0x24d   : > { %10236 = vmatpush1.bf16.msra.mxu0 %v15271_v34  ;;  %11268 = vmatpush1.bf16.msra.mxu1 %v15274_v35  ;;  %v15361_v34 = vld [vmem:[%s17559_s13 + $0xe80] ss:$16 sps:$4 sm:$0xff]   ;;  %v15364_v35 = vld [vmem:[%s17559_s13 + $0xe88] ss:$16 sps:$4 sm:$0xff]  }
 0x24e   : > { %10237 = vmatprep.subr.bf16.mxu0 %v15279_v36  ;;  %11269 = vmatprep.subr.bf16.mxu1 %v15282_v37  ;;  %v15369_v36 = vld [vmem:[%s17559_s13 + $0xea4] ss:$16 sps:$4 sm:$0xff]   ;;  %v15372_v37 = vld [vmem:[%s17559_s13 + $0xeac] ss:$16 sps:$4 sm:$0xff]  }
 0x251   : > { %10238 = vmatpush1.bf16.msra.mxu0 %v15277_v38  ;;  %11270 = vmatpush1.bf16.msra.mxu1 %v15280_v39  ;;  %v15367_v38 = vld [vmem:[%s17559_s13 + $0xea0] ss:$16 sps:$4 sm:$0xff]   ;;  %v15370_v39 = vld [vmem:[%s17559_s13 + $0xea8] ss:$16 sps:$4 sm:$0xff]  }
 0x252   : > { %10239 = vmatprep.subr.bf16.mxu0 %v15285_v40  ;;  %11271 = vmatprep.subr.bf16.mxu1 %v15288_v41  ;;  %v15375_v40 = vld [vmem:[%s17559_s13 + $0xec4] ss:$16 sps:$4 sm:$0xff]   ;;  %v15378_v41 = vld [vmem:[%s17559_s13 + $0xecc] ss:$16 sps:$4 sm:$0xff]  }
 0x255   : > { %10240 = vmatpush1.bf16.msra.mxu0 %v15283_v42  ;;  %11272 = vmatpush1.bf16.msra.mxu1 %v15286_v43  ;;  %v15373_v42 = vld [vmem:[%s17559_s13 + $0xec0] ss:$16 sps:$4 sm:$0xff]   ;;  %v15376_v43 = vld [vmem:[%s17559_s13 + $0xec8] ss:$16 sps:$4 sm:$0xff]  }
 0x256   : > { %10241 = vmatprep.subr.bf16.mxu0 %v15291_v44  ;;  %11273 = vmatprep.subr.bf16.mxu1 %v15294_v45  ;;  %v15381_v44 = vld [vmem:[%s17559_s13 + $0xee4] ss:$16 sps:$4 sm:$0xff]   ;;  %v15384_v45 = vld [vmem:[%s17559_s13 + $0xeec] ss:$16 sps:$4 sm:$0xff]  }
 0x259   : > { %10242 = vmatpush1.bf16.msra.mxu0 %v15289_v46  ;;  %11274 = vmatpush1.bf16.msra.mxu1 %v15292_v47  ;;  %v15379_v46 = vld [vmem:[%s17559_s13 + $0xee0] ss:$16 sps:$4 sm:$0xff]   ;;  %v15382_v47 = vld [vmem:[%s17559_s13 + $0xee8] ss:$16 sps:$4 sm:$0xff]  }
 0x25a   : > { %10243 = vmatprep.subr.bf16.mxu0 %v15297_v48  ;;  %11275 = vmatprep.subr.bf16.mxu1 %v15300_v49  ;;  %v15387_v48 = vld [vmem:[%s17559_s13 + $0xf04] ss:$16 sps:$4 sm:$0xff]   ;;  %v15390_v49 = vld [vmem:[%s17559_s13 + $0xf0c] ss:$16 sps:$4 sm:$0xff]  }
 0x25d   : > { %10244 = vmatpush1.bf16.msra.mxu0 %v15295_v50  ;;  %11276 = vmatpush1.bf16.msra.mxu1 %v15298_v51  ;;  %v15385_v50 = vld [vmem:[%s17559_s13 + $0xf00] ss:$16 sps:$4 sm:$0xff]   ;;  %v15388_v51 = vld [vmem:[%s17559_s13 + $0xf08] ss:$16 sps:$4 sm:$0xff]  }
 0x25e   : > { %10245 = vmatprep.subr.bf16.mxu0 %v15303_v52  ;;  %11277 = vmatprep.subr.bf16.mxu1 %v15306_v53  ;;  %v15393_v52 = vld [vmem:[%s17559_s13 + $0xf24] ss:$16 sps:$4 sm:$0xff]   ;;  %v15396_v53 = vld [vmem:[%s17559_s13 + $0xf2c] ss:$16 sps:$4 sm:$0xff]  }
 0x261   : > { %10246 = vmatpush1.bf16.msra.mxu0 %v15301_v54  ;;  %11278 = vmatpush1.bf16.msra.mxu1 %v15304_v55  ;;  %v15391_v54 = vld [vmem:[%s17559_s13 + $0xf20] ss:$16 sps:$4 sm:$0xff]   ;;  %v15394_v55 = vld [vmem:[%s17559_s13 + $0xf28] ss:$16 sps:$4 sm:$0xff]  }
 0x262   : > { %10247 = vmatprep.subr.bf16.mxu0 %v15309_v56  ;;  %11279 = vmatprep.subr.bf16.mxu1 %v15312_v57  ;;  %v15399_v56 = vld [vmem:[%s17559_s13 + $0xf44] ss:$16 sps:$4 sm:$0xff]   ;;  %v15402_v57 = vld [vmem:[%s17559_s13 + $0xf4c] ss:$16 sps:$4 sm:$0xff]  }
 0x265   : > { %10248 = vmatpush1.bf16.msra.mxu0 %v15307_v58  ;;  %11280 = vmatpush1.bf16.msra.mxu1 %v15310_v59  ;;  %v15397_v58 = vld [vmem:[%s17559_s13 + $0xf40] ss:$16 sps:$4 sm:$0xff]   ;;  %v15400_v59 = vld [vmem:[%s17559_s13 + $0xf48] ss:$16 sps:$4 sm:$0xff]  }
 0x266   : > { %10249 = vmatprep.subr.bf16.mxu0 %v15315_v60  ;;  %11281 = vmatprep.subr.bf16.mxu1 %v15318_v61  ;;  %v15405_v60 = vld [vmem:[%s17559_s13 + $0xf64] ss:$16 sps:$4 sm:$0xff]   ;;  %v15408_v61 = vld [vmem:[%s17559_s13 + $0xf6c] ss:$16 sps:$4 sm:$0xff]  }
 0x269   : > { %10250 = vmatpush1.bf16.msra.mxu0 %v15313_v62  ;;  %11282 = vmatpush1.bf16.msra.mxu1 %v15316_v1  ;;  %v15403_v62 = vld [vmem:[%s17559_s13 + $0xf60] ss:$16 sps:$4 sm:$0xff]   ;;  %v15406_v1 = vld [vmem:[%s17559_s13 + $0xf68] ss:$16 sps:$4 sm:$0xff]  }
 0x26a   : > { %10251 = vmatprep.subr.bf16.mxu0 %v15321_v2  ;;  %11283 = vmatprep.subr.bf16.mxu1 %v15324_v5  ;;  %v15411_v2 = vld [vmem:[%s17559_s13 + $0xf84] ss:$16 sps:$4 sm:$0xff]   ;;  %v15414_v5 = vld [vmem:[%s17559_s13 + $0xf8c] ss:$16 sps:$4 sm:$0xff]  }
 0x26d   : > { %10252 = vmatpush1.bf16.msra.mxu0 %v15319_v7  ;;  %11284 = vmatpush1.bf16.msra.mxu1 %v15322_v0  ;;  %v15409_v7 = vld [vmem:[%s17559_s13 + $0xf80] ss:$16 sps:$4 sm:$0xff]   ;;  %v15412_v0 = vld [vmem:[%s17559_s13 + $0xf88] ss:$16 sps:$4 sm:$0xff]  }
 0x26e   : > { %10253 = vmatprep.subr.bf16.mxu0 %v15327_v8  ;;  %11285 = vmatprep.subr.bf16.mxu1 %v15330_v9  ;;  %v15417_v8 = vld [vmem:[%s17559_s13 + $0xfa4] ss:$16 sps:$4 sm:$0xff]   ;;  %v15420_v9 = vld [vmem:[%s17559_s13 + $0xfac] ss:$16 sps:$4 sm:$0xff]  }
 0x271   : > { %10254 = vmatpush1.bf16.msra.mxu0 %v15325_v3  ;;  %11286 = vmatpush1.bf16.msra.mxu1 %v15328_v4  ;;  %v15415_v3 = vld [vmem:[%s17559_s13 + $0xfa0] ss:$16 sps:$4 sm:$0xff]   ;;  %v15418_v4 = vld [vmem:[%s17559_s13 + $0xfa8] ss:$16 sps:$4 sm:$0xff]  }
 0x272   : > { %10255 = vmatprep.subr.bf16.mxu0 %v15333_v12  ;;  %11287 = vmatprep.subr.bf16.mxu1 %v15336_v13  ;;  %v15423_v12 = vld [vmem:[%s17559_s13 + $0xfc4] ss:$16 sps:$4 sm:$0xff]   ;;  %v15426_v13 = vld [vmem:[%s17559_s13 + $0xfcc] ss:$16 sps:$4 sm:$0xff]  }
 0x275   : > { %10256 = vmatpush1.bf16.msra.mxu0 %v15331_v6  ;;  %11288 = vmatpush1.bf16.msra.mxu1 %v15334_v63  ;;  %v15421_v6 = vld [vmem:[%s17559_s13 + $0xfc0] ss:$16 sps:$4 sm:$0xff]   ;;  %v15424_v63 = vld [vmem:[%s17559_s13 + $0xfc8] ss:$16 sps:$4 sm:$0xff]  }
 0x276   : > { %10268 = vmatprep.subr.bf16.mxu0 %v15339_v16  ;;  %11300 = vmatprep.subr.bf16.mxu1 %v15342_v17  ;;  %v15429_v16 = vld [vmem:[%s17559_s13 + $0xfe4] ss:$16 sps:$4 sm:$0xff]   ;;  %v15432_v17 = vld [vmem:[%s17559_s13 + $0xfec] ss:$16 sps:$4 sm:$0xff]  }
 0x278   : > { %10258 = vmatmul.mubr.bf16.vlgmr.msra.gmra.mrb[0].mxu0 %v12738_v10  ;;  %11290 = vmatmul.mubr.bf16.vlgmr.msra.gmra.mrb[0].mxu1 %v12738_v10  ;;  %v15427_v10 = vld [vmem:[%s17559_s13 + $0xfe0] ss:$16 sps:$4 sm:$0xff]  }
 0x279   : > { %10269 = vmatpush1.bf16.msra.mxu0 %v15337_v11  ;;  %11301 = vmatpush1.bf16.msra.mxu1 %v15340_v20  ;;  %v15430_v11 = vld [vmem:[%s17559_s13 + $0xfe8] ss:$16 sps:$4 sm:$0xff]   ;;  %v15435_v20 = vld [vmem:[%s17559_s13 + $0x1004] ss:$16 sps:$4 sm:$0xff]  }
 0x27a   : > { %10270 = vmatprep.subr.bf16.mxu0 %v15345_v21  ;;  %11302 = vmatprep.subr.bf16.mxu1 %v15348_v22  ;;  %v15438_v21 = vld [vmem:[%s17559_s13 + $0x100c] ss:$16 sps:$4 sm:$0xff]   ;;  %v18159_v22 = vld [vmem:[%s17557_s18 + $0x40] sm:$0xff] }
 0x27b   : > { %10300 = vmatprep.mubr.bf16.mxu0 %v12741_v23  ;;  %11332 = vmatprep.mubr.bf16.mxu1 %v12741_v23  ;;  %v18162_v23 = vld [vmem:[%s17557_s18 + $0x100] sm:$0xff] }
 0x27d   : > { %10271 = vmatpush1.bf16.msra.mxu0 %v15343_v14  ;;  %11303 = vmatpush1.bf16.msra.mxu1 %v15346_v15  ;;  %v12740_v14 = vcombine.low %v18085_v18, %v18088_v19  ;;  %v15433_v15 = vld [vmem:[%s17559_s13 + $0x1000] ss:$16 sps:$4 sm:$0xff]   ;;  %v15442_v19 = vld [vmem:[%s17559_s13 + $0x1028] ss:$16 sps:$4 sm:$0xff]  }
 0x27e   : > { %10272 = vmatprep.subr.bf16.mxu0 %v15351_v24  ;;  %11304 = vmatprep.subr.bf16.mxu1 %v15354_v25  ;;  %v15436_v24 = vld [vmem:[%s17559_s13 + $0x1008] ss:$16 sps:$4 sm:$0xff]   ;;  %v15441_v25 = vld [vmem:[%s17559_s13 + $0x1024] ss:$16 sps:$4 sm:$0xff]   ;;  %v15439_v18 = vld [vmem:[%s17559_s13 + $0x1020] ss:$16 sps:$4 sm:$0xff]  }
 0x281   : > { %10273 = vmatpush1.bf16.msra.mxu0 %v15349_v26  ;;  %11305 = vmatpush1.bf16.msra.mxu1 %v15352_v27  ;;  %v15444_v26 = vld [vmem:[%s17559_s13 + $0x102c] ss:$16 sps:$4 sm:$0xff]   ;;  %v12743_v27 = vcombine.high %v18159_v22, %v18162_v23 }
 0x282   : > { %10274 = vmatprep.subr.bf16.mxu0 %v15357_v28  ;;  %11306 = vmatprep.subr.bf16.mxu1 %v15360_v29  ;;  %v15447_v28 = vld [vmem:[%s17559_s13 + $0x1044] ss:$16 sps:$4 sm:$0xff]   ;;  %v15450_v29 = vld [vmem:[%s17559_s13 + $0x104c] ss:$16 sps:$4 sm:$0xff]  }
 0x285   : > { %10275 = vmatpush1.bf16.msra.mxu0 %v15355_v30  ;;  %11307 = vmatpush1.bf16.msra.mxu1 %v15358_v31  ;;  %v15445_v30 = vld [vmem:[%s17559_s13 + $0x1040] ss:$16 sps:$4 sm:$0xff]   ;;  %v15448_v31 = vld [vmem:[%s17559_s13 + $0x1048] ss:$16 sps:$4 sm:$0xff]  }
 0x286   : > { %10276 = vmatprep.subr.bf16.mxu0 %v15363_v32  ;;  %11308 = vmatprep.subr.bf16.mxu1 %v15366_v33  ;;  %v15453_v32 = vld [vmem:[%s17559_s13 + $0x1064] ss:$16 sps:$4 sm:$0xff]   ;;  %v15456_v33 = vld [vmem:[%s17559_s13 + $0x106c] ss:$16 sps:$4 sm:$0xff]  }
 0x289   : > { %10277 = vmatpush1.bf16.msra.mxu0 %v15361_v34  ;;  %11309 = vmatpush1.bf16.msra.mxu1 %v15364_v35  ;;  %v15451_v34 = vld [vmem:[%s17559_s13 + $0x1060] ss:$16 sps:$4 sm:$0xff]   ;;  %v15454_v35 = vld [vmem:[%s17559_s13 + $0x1068] ss:$16 sps:$4 sm:$0xff]  }
 0x28a   : > { %10278 = vmatprep.subr.bf16.mxu0 %v15369_v36  ;;  %11310 = vmatprep.subr.bf16.mxu1 %v15372_v37  ;;  %v15459_v36 = vld [vmem:[%s17559_s13 + $0x1084] ss:$16 sps:$4 sm:$0xff]   ;;  %v15462_v37 = vld [vmem:[%s17559_s13 + $0x108c] ss:$16 sps:$4 sm:$0xff]  }
 0x28d   : > { %10279 = vmatpush1.bf16.msra.mxu0 %v15367_v38  ;;  %11311 = vmatpush1.bf16.msra.mxu1 %v15370_v39  ;;  %v15457_v38 = vld [vmem:[%s17559_s13 + $0x1080] ss:$16 sps:$4 sm:$0xff]   ;;  %v15460_v39 = vld [vmem:[%s17559_s13 + $0x1088] ss:$16 sps:$4 sm:$0xff]  }
 0x28e   : > { %10280 = vmatprep.subr.bf16.mxu0 %v15375_v40  ;;  %11312 = vmatprep.subr.bf16.mxu1 %v15378_v41  ;;  %v15465_v40 = vld [vmem:[%s17559_s13 + $0x10a4] ss:$16 sps:$4 sm:$0xff]   ;;  %v15468_v41 = vld [vmem:[%s17559_s13 + $0x10ac] ss:$16 sps:$4 sm:$0xff]  }
 0x291   : > { %10281 = vmatpush1.bf16.msra.mxu0 %v15373_v42  ;;  %11313 = vmatpush1.bf16.msra.mxu1 %v15376_v43  ;;  %v15463_v42 = vld [vmem:[%s17559_s13 + $0x10a0] ss:$16 sps:$4 sm:$0xff]   ;;  %v15466_v43 = vld [vmem:[%s17559_s13 + $0x10a8] ss:$16 sps:$4 sm:$0xff]  }
 0x292   : > { %10282 = vmatprep.subr.bf16.mxu0 %v15381_v44  ;;  %11314 = vmatprep.subr.bf16.mxu1 %v15384_v45  ;;  %v15471_v44 = vld [vmem:[%s17559_s13 + $0x10c4] ss:$16 sps:$4 sm:$0xff]   ;;  %v15474_v45 = vld [vmem:[%s17559_s13 + $0x10cc] ss:$16 sps:$4 sm:$0xff]  }
 0x295   : > { %10283 = vmatpush1.bf16.msra.mxu0 %v15379_v46  ;;  %11315 = vmatpush1.bf16.msra.mxu1 %v15382_v47  ;;  %v15469_v46 = vld [vmem:[%s17559_s13 + $0x10c0] ss:$16 sps:$4 sm:$0xff]   ;;  %v15472_v47 = vld [vmem:[%s17559_s13 + $0x10c8] ss:$16 sps:$4 sm:$0xff]  }
 0x296   : > { %10284 = vmatprep.subr.bf16.mxu0 %v15387_v48  ;;  %11316 = vmatprep.subr.bf16.mxu1 %v15390_v49  ;;  %v15477_v48 = vld [vmem:[%s17559_s13 + $0x10e4] ss:$16 sps:$4 sm:$0xff]   ;;  %v15480_v49 = vld [vmem:[%s17559_s13 + $0x10ec] ss:$16 sps:$4 sm:$0xff]  }
 0x299   : > { %10285 = vmatpush1.bf16.msra.mxu0 %v15385_v50  ;;  %11317 = vmatpush1.bf16.msra.mxu1 %v15388_v51  ;;  %v15475_v50 = vld [vmem:[%s17559_s13 + $0x10e0] ss:$16 sps:$4 sm:$0xff]   ;;  %v15478_v51 = vld [vmem:[%s17559_s13 + $0x10e8] ss:$16 sps:$4 sm:$0xff]  }
 0x29a   : > { %10286 = vmatprep.subr.bf16.mxu0 %v15393_v52  ;;  %11318 = vmatprep.subr.bf16.mxu1 %v15396_v53  ;;  %v15483_v52 = vld [vmem:[%s17559_s13 + $0x1104] ss:$16 sps:$4 sm:$0xff]   ;;  %v15486_v53 = vld [vmem:[%s17559_s13 + $0x110c] ss:$16 sps:$4 sm:$0xff]  }
 0x29d   : > { %10287 = vmatpush1.bf16.msra.mxu0 %v15391_v54  ;;  %11319 = vmatpush1.bf16.msra.mxu1 %v15394_v55  ;;  %v15481_v54 = vld [vmem:[%s17559_s13 + $0x1100] ss:$16 sps:$4 sm:$0xff]   ;;  %v15484_v55 = vld [vmem:[%s17559_s13 + $0x1108] ss:$16 sps:$4 sm:$0xff]  }
 0x29e   : > { %10288 = vmatprep.subr.bf16.mxu0 %v15399_v56  ;;  %11320 = vmatprep.subr.bf16.mxu1 %v15402_v57  ;;  %v15489_v56 = vld [vmem:[%s17559_s13 + $0x1124] ss:$16 sps:$4 sm:$0xff]   ;;  %v15492_v57 = vld [vmem:[%s17559_s13 + $0x112c] ss:$16 sps:$4 sm:$0xff]  }
 0x2a1   : > { %10289 = vmatpush1.bf16.msra.mxu0 %v15397_v58  ;;  %11321 = vmatpush1.bf16.msra.mxu1 %v15400_v59  ;;  %v15487_v58 = vld [vmem:[%s17559_s13 + $0x1120] ss:$16 sps:$4 sm:$0xff]   ;;  %v15490_v59 = vld [vmem:[%s17559_s13 + $0x1128] ss:$16 sps:$4 sm:$0xff]  }
 0x2a2   : > { %10290 = vmatprep.subr.bf16.mxu0 %v15405_v60  ;;  %11322 = vmatprep.subr.bf16.mxu1 %v15408_v61  ;;  %v15495_v60 = vld [vmem:[%s17559_s13 + $0x1144] ss:$16 sps:$4 sm:$0xff]   ;;  %v15498_v61 = vld [vmem:[%s17559_s13 + $0x114c] ss:$16 sps:$4 sm:$0xff]  }
 0x2a5   : > { %10291 = vmatpush1.bf16.msra.mxu0 %v15403_v62  ;;  %11323 = vmatpush1.bf16.msra.mxu1 %v15406_v1  ;;  %v15493_v62 = vld [vmem:[%s17559_s13 + $0x1140] ss:$16 sps:$4 sm:$0xff]   ;;  %v15496_v1 = vld [vmem:[%s17559_s13 + $0x1148] ss:$16 sps:$4 sm:$0xff]  }
 0x2a6   : > { %10292 = vmatprep.subr.bf16.mxu0 %v15411_v2  ;;  %11324 = vmatprep.subr.bf16.mxu1 %v15414_v5  ;;  %v15501_v2 = vld [vmem:[%s17559_s13 + $0x1164] ss:$16 sps:$4 sm:$0xff]   ;;  %v15504_v5 = vld [vmem:[%s17559_s13 + $0x116c] ss:$16 sps:$4 sm:$0xff]  }
 0x2a9   : > { %10293 = vmatpush1.bf16.msra.mxu0 %v15409_v7  ;;  %11325 = vmatpush1.bf16.msra.mxu1 %v15412_v0  ;;  %v15499_v7 = vld [vmem:[%s17559_s13 + $0x1160] ss:$16 sps:$4 sm:$0xff]   ;;  %v15502_v0 = vld [vmem:[%s17559_s13 + $0x1168] ss:$16 sps:$4 sm:$0xff]  }
 0x2aa   : > { %10294 = vmatprep.subr.bf16.mxu0 %v15417_v8  ;;  %11326 = vmatprep.subr.bf16.mxu1 %v15420_v9  ;;  %v15507_v8 = vld [vmem:[%s17559_s13 + $0x1184] ss:$16 sps:$4 sm:$0xff]   ;;  %v15510_v9 = vld [vmem:[%s17559_s13 + $0x118c] ss:$16 sps:$4 sm:$0xff]  }
 0x2ad   : > { %10295 = vmatpush1.bf16.msra.mxu0 %v15415_v3  ;;  %11327 = vmatpush1.bf16.msra.mxu1 %v15418_v4  ;;  %v15505_v3 = vld [vmem:[%s17559_s13 + $0x1180] ss:$16 sps:$4 sm:$0xff]   ;;  %v15508_v4 = vld [vmem:[%s17559_s13 + $0x1188] ss:$16 sps:$4 sm:$0xff]  }
 0x2ae   : > { %10296 = vmatprep.subr.bf16.mxu0 %v15423_v12  ;;  %11328 = vmatprep.subr.bf16.mxu1 %v15426_v13  ;;  %v15513_v12 = vld [vmem:[%s17559_s13 + $0x11a4] ss:$16 sps:$4 sm:$0xff]   ;;  %v15516_v13 = vld [vmem:[%s17559_s13 + $0x11ac] ss:$16 sps:$4 sm:$0xff]  }
 0x2b1   : > { %10297 = vmatpush1.bf16.msra.mxu0 %v15421_v6  ;;  %11329 = vmatpush1.bf16.msra.mxu1 %v15424_v63  ;;  %v15511_v6 = vld [vmem:[%s17559_s13 + $0x11a0] ss:$16 sps:$4 sm:$0xff]   ;;  %v15514_v63 = vld [vmem:[%s17559_s13 + $0x11a8] ss:$16 sps:$4 sm:$0xff]  }
 0x2b2   : > { %10298 = vmatprep.subr.bf16.mxu0 %v15429_v16  ;;  %11330 = vmatprep.subr.bf16.mxu1 %v15432_v17  ;;  %v15519_v16 = vld [vmem:[%s17559_s13 + $0x11c4] ss:$16 sps:$4 sm:$0xff]   ;;  %v15522_v17 = vld [vmem:[%s17559_s13 + $0x11cc] ss:$16 sps:$4 sm:$0xff]  }
 0x2b5   : > { %10299 = vmatpush1.bf16.msra.mxu0 %v15427_v10  ;;  %11331 = vmatpush1.bf16.msra.mxu1 %v15430_v11  ;;  %v15517_v10 = vld [vmem:[%s17559_s13 + $0x11c0] ss:$16 sps:$4 sm:$0xff]   ;;  %v15520_v11 = vld [vmem:[%s17559_s13 + $0x11c8] ss:$16 sps:$4 sm:$0xff]  }
 0x2b6   : > { %10311 = vmatprep.subr.bf16.mxu0 %v15435_v20  ;;  %11343 = vmatprep.subr.bf16.mxu1 %v15438_v21  ;;  %v15525_v20 = vld [vmem:[%s17559_s13 + $0x11e4] ss:$16 sps:$4 sm:$0xff]   ;;  %v15528_v21 = vld [vmem:[%s17559_s13 + $0x11ec] ss:$16 sps:$4 sm:$0xff]  }
 0x2b8   : > { %10301 = vmatmul.mubr.bf16.vlgmr.msra.gmra.mrb[0].mxu0 %v12740_v14  ;;  %11333 = vmatmul.mubr.bf16.vlgmr.msra.gmra.mrb[0].mxu1 %v12740_v14  ;;  %v15523_v14 = vld [vmem:[%s17559_s13 + $0x11e0] ss:$16 sps:$4 sm:$0xff]  }
 0x2b9   : > { %10312 = vmatpush1.bf16.msra.mxu0 %v15433_v15  ;;  %11344 = vmatpush1.bf16.msra.mxu1 %v15436_v24  ;;  %v15526_v15 = vld [vmem:[%s17559_s13 + $0x11e8] ss:$16 sps:$4 sm:$0xff]   ;;  %v15531_v24 = vld [vmem:[%s17559_s13 + $0x1204] ss:$16 sps:$4 sm:$0xff]  }
 0x2ba   : > { %10313 = vmatprep.subr.bf16.mxu0 %v15441_v25  ;;  %11345 = vmatprep.subr.bf16.mxu1 %v15444_v26  ;;  %v15534_v25 = vld [vmem:[%s17559_s13 + $0x120c] ss:$16 sps:$4 sm:$0xff]  }
 0x2bb   : > { %10343 = vmatprep.mubr.bf16.mxu0 %v12743_v27  ;;  %11375 = vmatprep.mubr.bf16.mxu1 %v12743_v27  ;;  %v18233_v26 = vld [vmem:[%s17557_s18 + $0x48] sm:$0xff] }
 0x2bc   : > { %v18236_v27 = vld [vmem:[%s17557_s18 + $0x108] sm:$0xff] }
 0x2bd   : > { %10314 = vmatpush1.bf16.msra.mxu0 %v15439_v18  ;;  %11346 = vmatpush1.bf16.msra.mxu1 %v15442_v19  ;;  %v12742_v18 = vcombine.low %v18159_v22, %v18162_v23  ;;  %v15529_v19 = vld [vmem:[%s17559_s13 + $0x1200] ss:$16 sps:$4 sm:$0xff]   ;;  %v15538_v23 = vld [vmem:[%s17559_s13 + $0x1228] ss:$16 sps:$4 sm:$0xff]  }
 0x2be   : > { %10315 = vmatprep.subr.bf16.mxu0 %v15447_v28  ;;  %11347 = vmatprep.subr.bf16.mxu1 %v15450_v29  ;;  %v15532_v28 = vld [vmem:[%s17559_s13 + $0x1208] ss:$16 sps:$4 sm:$0xff]   ;;  %v15537_v29 = vld [vmem:[%s17559_s13 + $0x1224] ss:$16 sps:$4 sm:$0xff]   ;;  %v15535_v22 = vld [vmem:[%s17559_s13 + $0x1220] ss:$16 sps:$4 sm:$0xff]  }
 0x2c1   : > { %10316 = vmatpush1.bf16.msra.mxu0 %v15445_v30  ;;  %11348 = vmatpush1.bf16.msra.mxu1 %v15448_v31  ;;  %v15540_v30 = vld [vmem:[%s17559_s13 + $0x122c] ss:$16 sps:$4 sm:$0xff]   ;;  %v12745_v31 = vcombine.high %v18233_v26, %v18236_v27 }
 0x2c2   : > { %10317 = vmatprep.subr.bf16.mxu0 %v15453_v32  ;;  %11349 = vmatprep.subr.bf16.mxu1 %v15456_v33  ;;  %v15543_v32 = vld [vmem:[%s17559_s13 + $0x1244] ss:$16 sps:$4 sm:$0xff]   ;;  %v15546_v33 = vld [vmem:[%s17559_s13 + $0x124c] ss:$16 sps:$4 sm:$0xff]  }
 0x2c5   : > { %10318 = vmatpush1.bf16.msra.mxu0 %v15451_v34  ;;  %11350 = vmatpush1.bf16.msra.mxu1 %v15454_v35  ;;  %v15541_v34 = vld [vmem:[%s17559_s13 + $0x1240] ss:$16 sps:$4 sm:$0xff]   ;;  %v15544_v35 = vld [vmem:[%s17559_s13 + $0x1248] ss:$16 sps:$4 sm:$0xff]  }
 0x2c6   : > { %10319 = vmatprep.subr.bf16.mxu0 %v15459_v36  ;;  %11351 = vmatprep.subr.bf16.mxu1 %v15462_v37  ;;  %v15549_v36 = vld [vmem:[%s17559_s13 + $0x1264] ss:$16 sps:$4 sm:$0xff]   ;;  %v15552_v37 = vld [vmem:[%s17559_s13 + $0x126c] ss:$16 sps:$4 sm:$0xff]  }
 0x2c9   : > { %10320 = vmatpush1.bf16.msra.mxu0 %v15457_v38  ;;  %11352 = vmatpush1.bf16.msra.mxu1 %v15460_v39  ;;  %v15547_v38 = vld [vmem:[%s17559_s13 + $0x1260] ss:$16 sps:$4 sm:$0xff]   ;;  %v15550_v39 = vld [vmem:[%s17559_s13 + $0x1268] ss:$16 sps:$4 sm:$0xff]  }
 0x2ca   : > { %10321 = vmatprep.subr.bf16.mxu0 %v15465_v40  ;;  %11353 = vmatprep.subr.bf16.mxu1 %v15468_v41  ;;  %v15555_v40 = vld [vmem:[%s17559_s13 + $0x1284] ss:$16 sps:$4 sm:$0xff]   ;;  %v15558_v41 = vld [vmem:[%s17559_s13 + $0x128c] ss:$16 sps:$4 sm:$0xff]  }
 0x2cd   : > { %10322 = vmatpush1.bf16.msra.mxu0 %v15463_v42  ;;  %11354 = vmatpush1.bf16.msra.mxu1 %v15466_v43  ;;  %v15553_v42 = vld [vmem:[%s17559_s13 + $0x1280] ss:$16 sps:$4 sm:$0xff]   ;;  %v15556_v43 = vld [vmem:[%s17559_s13 + $0x1288] ss:$16 sps:$4 sm:$0xff]  }
 0x2ce   : > { %10323 = vmatprep.subr.bf16.mxu0 %v15471_v44  ;;  %11355 = vmatprep.subr.bf16.mxu1 %v15474_v45  ;;  %v15561_v44 = vld [vmem:[%s17559_s13 + $0x12a4] ss:$16 sps:$4 sm:$0xff]   ;;  %v15564_v45 = vld [vmem:[%s17559_s13 + $0x12ac] ss:$16 sps:$4 sm:$0xff]  }
 0x2d1   : > { %10324 = vmatpush1.bf16.msra.mxu0 %v15469_v46  ;;  %11356 = vmatpush1.bf16.msra.mxu1 %v15472_v47  ;;  %v15559_v46 = vld [vmem:[%s17559_s13 + $0x12a0] ss:$16 sps:$4 sm:$0xff]   ;;  %v15562_v47 = vld [vmem:[%s17559_s13 + $0x12a8] ss:$16 sps:$4 sm:$0xff]  }
 0x2d2   : > { %10325 = vmatprep.subr.bf16.mxu0 %v15477_v48  ;;  %11357 = vmatprep.subr.bf16.mxu1 %v15480_v49  ;;  %v15567_v48 = vld [vmem:[%s17559_s13 + $0x12c4] ss:$16 sps:$4 sm:$0xff]   ;;  %v15570_v49 = vld [vmem:[%s17559_s13 + $0x12cc] ss:$16 sps:$4 sm:$0xff]  }
 0x2d5   : > { %10326 = vmatpush1.bf16.msra.mxu0 %v15475_v50  ;;  %11358 = vmatpush1.bf16.msra.mxu1 %v15478_v51  ;;  %v15565_v50 = vld [vmem:[%s17559_s13 + $0x12c0] ss:$16 sps:$4 sm:$0xff]   ;;  %v15568_v51 = vld [vmem:[%s17559_s13 + $0x12c8] ss:$16 sps:$4 sm:$0xff]  }
 0x2d6   : > { %10327 = vmatprep.subr.bf16.mxu0 %v15483_v52  ;;  %11359 = vmatprep.subr.bf16.mxu1 %v15486_v53  ;;  %v15573_v52 = vld [vmem:[%s17559_s13 + $0x12e4] ss:$16 sps:$4 sm:$0xff]   ;;  %v15576_v53 = vld [vmem:[%s17559_s13 + $0x12ec] ss:$16 sps:$4 sm:$0xff]  }
 0x2d9   : > { %10328 = vmatpush1.bf16.msra.mxu0 %v15481_v54  ;;  %11360 = vmatpush1.bf16.msra.mxu1 %v15484_v55  ;;  %v15571_v54 = vld [vmem:[%s17559_s13 + $0x12e0] ss:$16 sps:$4 sm:$0xff]   ;;  %v15574_v55 = vld [vmem:[%s17559_s13 + $0x12e8] ss:$16 sps:$4 sm:$0xff]  }
 0x2da   : > { %10329 = vmatprep.subr.bf16.mxu0 %v15489_v56  ;;  %11361 = vmatprep.subr.bf16.mxu1 %v15492_v57  ;;  %v15579_v56 = vld [vmem:[%s17559_s13 + $0x1304] ss:$16 sps:$4 sm:$0xff]   ;;  %v15582_v57 = vld [vmem:[%s17559_s13 + $0x130c] ss:$16 sps:$4 sm:$0xff]  }
 0x2dd   : > { %10330 = vmatpush1.bf16.msra.mxu0 %v15487_v58  ;;  %11362 = vmatpush1.bf16.msra.mxu1 %v15490_v59  ;;  %v15577_v58 = vld [vmem:[%s17559_s13 + $0x1300] ss:$16 sps:$4 sm:$0xff]   ;;  %v15580_v59 = vld [vmem:[%s17559_s13 + $0x1308] ss:$16 sps:$4 sm:$0xff]  }
 0x2de   : > { %10331 = vmatprep.subr.bf16.mxu0 %v15495_v60  ;;  %11363 = vmatprep.subr.bf16.mxu1 %v15498_v61  ;;  %v15585_v60 = vld [vmem:[%s17559_s13 + $0x1324] ss:$16 sps:$4 sm:$0xff]   ;;  %v15588_v61 = vld [vmem:[%s17559_s13 + $0x132c] ss:$16 sps:$4 sm:$0xff]  }
 0x2e1   : > { %10332 = vmatpush1.bf16.msra.mxu0 %v15493_v62  ;;  %11364 = vmatpush1.bf16.msra.mxu1 %v15496_v1  ;;  %v15583_v62 = vld [vmem:[%s17559_s13 + $0x1320] ss:$16 sps:$4 sm:$0xff]   ;;  %v15586_v1 = vld [vmem:[%s17559_s13 + $0x1328] ss:$16 sps:$4 sm:$0xff]  }
 0x2e2   : > { %10333 = vmatprep.subr.bf16.mxu0 %v15501_v2  ;;  %11365 = vmatprep.subr.bf16.mxu1 %v15504_v5  ;;  %v15591_v2 = vld [vmem:[%s17559_s13 + $0x1344] ss:$16 sps:$4 sm:$0xff]   ;;  %v15594_v5 = vld [vmem:[%s17559_s13 + $0x134c] ss:$16 sps:$4 sm:$0xff]  }
 0x2e5   : > { %10334 = vmatpush1.bf16.msra.mxu0 %v15499_v7  ;;  %11366 = vmatpush1.bf16.msra.mxu1 %v15502_v0  ;;  %v15589_v7 = vld [vmem:[%s17559_s13 + $0x1340] ss:$16 sps:$4 sm:$0xff]   ;;  %v15592_v0 = vld [vmem:[%s17559_s13 + $0x1348] ss:$16 sps:$4 sm:$0xff]  }
 0x2e6   : > { %10335 = vmatprep.subr.bf16.mxu0 %v15507_v8  ;;  %11367 = vmatprep.subr.bf16.mxu1 %v15510_v9  ;;  %v15597_v8 = vld [vmem:[%s17559_s13 + $0x1364] ss:$16 sps:$4 sm:$0xff]   ;;  %v15600_v9 = vld [vmem:[%s17559_s13 + $0x136c] ss:$16 sps:$4 sm:$0xff]  }
 0x2e9   : > { %10336 = vmatpush1.bf16.msra.mxu0 %v15505_v3  ;;  %11368 = vmatpush1.bf16.msra.mxu1 %v15508_v4  ;;  %v15595_v3 = vld [vmem:[%s17559_s13 + $0x1360] ss:$16 sps:$4 sm:$0xff]   ;;  %v15598_v4 = vld [vmem:[%s17559_s13 + $0x1368] ss:$16 sps:$4 sm:$0xff]  }
 0x2ea   : > { %10337 = vmatprep.subr.bf16.mxu0 %v15513_v12  ;;  %11369 = vmatprep.subr.bf16.mxu1 %v15516_v13  ;;  %v15603_v12 = vld [vmem:[%s17559_s13 + $0x1384] ss:$16 sps:$4 sm:$0xff]   ;;  %v15606_v13 = vld [vmem:[%s17559_s13 + $0x138c] ss:$16 sps:$4 sm:$0xff]  }
 0x2ed   : > { %10338 = vmatpush1.bf16.msra.mxu0 %v15511_v6  ;;  %11370 = vmatpush1.bf16.msra.mxu1 %v15514_v63  ;;  %v15601_v6 = vld [vmem:[%s17559_s13 + $0x1380] ss:$16 sps:$4 sm:$0xff]   ;;  %v15604_v63 = vld [vmem:[%s17559_s13 + $0x1388] ss:$16 sps:$4 sm:$0xff]  }
 0x2ee   : > { %10339 = vmatprep.subr.bf16.mxu0 %v15519_v16  ;;  %11371 = vmatprep.subr.bf16.mxu1 %v15522_v17  ;;  %v15609_v16 = vld [vmem:[%s17559_s13 + $0x13a4] ss:$16 sps:$4 sm:$0xff]   ;;  %v15612_v17 = vld [vmem:[%s17559_s13 + $0x13ac] ss:$16 sps:$4 sm:$0xff]  }
 0x2f1   : > { %10340 = vmatpush1.bf16.msra.mxu0 %v15517_v10  ;;  %11372 = vmatpush1.bf16.msra.mxu1 %v15520_v11  ;;  %v15607_v10 = vld [vmem:[%s17559_s13 + $0x13a0] ss:$16 sps:$4 sm:$0xff]   ;;  %v15610_v11 = vld [vmem:[%s17559_s13 + $0x13a8] ss:$16 sps:$4 sm:$0xff]  }
 0x2f2   : > { %10341 = vmatprep.subr.bf16.mxu0 %v15525_v20  ;;  %11373 = vmatprep.subr.bf16.mxu1 %v15528_v21  ;;  %v15615_v20 = vld [vmem:[%s17559_s13 + $0x13c4] ss:$16 sps:$4 sm:$0xff]   ;;  %v15618_v21 = vld [vmem:[%s17559_s13 + $0x13cc] ss:$16 sps:$4 sm:$0xff]  }
 0x2f5   : > { %10342 = vmatpush1.bf16.msra.mxu0 %v15523_v14  ;;  %11374 = vmatpush1.bf16.msra.mxu1 %v15526_v15  ;;  %v15613_v14 = vld [vmem:[%s17559_s13 + $0x13c0] ss:$16 sps:$4 sm:$0xff]   ;;  %v15616_v15 = vld [vmem:[%s17559_s13 + $0x13c8] ss:$16 sps:$4 sm:$0xff]  }
 0x2f6   : > { %10354 = vmatprep.subr.bf16.mxu0 %v15531_v24  ;;  %11386 = vmatprep.subr.bf16.mxu1 %v15534_v25  ;;  %v15621_v24 = vld [vmem:[%s17559_s13 + $0x13e4] ss:$16 sps:$4 sm:$0xff]   ;;  %v15624_v25 = vld [vmem:[%s17559_s13 + $0x13ec] ss:$16 sps:$4 sm:$0xff]  }
 0x2f8   : > { %10344 = vmatmul.mubr.bf16.vlgmr.msra.gmra.mrb[0].mxu0 %v12742_v18  ;;  %11376 = vmatmul.mubr.bf16.vlgmr.msra.gmra.mrb[0].mxu1 %v12742_v18  ;;  %v15619_v18 = vld [vmem:[%s17559_s13 + $0x13e0] ss:$16 sps:$4 sm:$0xff]  }
 0x2f9   : > { %10355 = vmatpush1.bf16.msra.mxu0 %v15529_v19  ;;  %11387 = vmatpush1.bf16.msra.mxu1 %v15532_v28  ;;  %v15622_v19 = vld [vmem:[%s17559_s13 + $0x13e8] ss:$16 sps:$4 sm:$0xff]   ;;  %v15627_v28 = vld [vmem:[%s17559_s13 + $0x1404] ss:$16 sps:$4 sm:$0xff]  }
 0x2fa   : > { %10356 = vmatprep.subr.bf16.mxu0 %v15537_v29  ;;  %11388 = vmatprep.subr.bf16.mxu1 %v15540_v30  ;;  %v15630_v29 = vld [vmem:[%s17559_s13 + $0x140c] ss:$16 sps:$4 sm:$0xff]   ;;  %v18307_v30 = vld [vmem:[%s17557_s18 + $0x50] sm:$0xff] }
 0x2fb   : > { %10386 = vmatprep.mubr.bf16.mxu0 %v12745_v31  ;;  %11418 = vmatprep.mubr.bf16.mxu1 %v12745_v31  ;;  %v18310_v31 = vld [vmem:[%s17557_s18 + $0x110] sm:$0xff] }
 0x2fd   : > { %10357 = vmatpush1.bf16.msra.mxu0 %v15535_v22  ;;  %11389 = vmatpush1.bf16.msra.mxu1 %v15538_v23  ;;  %v12744_v22 = vcombine.low %v18233_v26, %v18236_v27  ;;  %v15625_v23 = vld [vmem:[%s17559_s13 + $0x1400] ss:$16 sps:$4 sm:$0xff]   ;;  %v15634_v27 = vld [vmem:[%s17559_s13 + $0x1428] ss:$16 sps:$4 sm:$0xff]  }
 0x2fe   : > { %10358 = vmatprep.subr.bf16.mxu0 %v15543_v32  ;;  %11390 = vmatprep.subr.bf16.mxu1 %v15546_v33  ;;  %v15628_v32 = vld [vmem:[%s17559_s13 + $0x1408] ss:$16 sps:$4 sm:$0xff]   ;;  %v15633_v33 = vld [vmem:[%s17559_s13 + $0x1424] ss:$16 sps:$4 sm:$0xff]   ;;  %v15631_v26 = vld [vmem:[%s17559_s13 + $0x1420] ss:$16 sps:$4 sm:$0xff]  }
 0x301   : > { %10359 = vmatpush1.bf16.msra.mxu0 %v15541_v34  ;;  %11391 = vmatpush1.bf16.msra.mxu1 %v15544_v35  ;;  %v15636_v34 = vld [vmem:[%s17559_s13 + $0x142c] ss:$16 sps:$4 sm:$0xff]   ;;  %v12747_v35 = vcombine.high %v18307_v30, %v18310_v31 }
 0x302   : > { %10360 = vmatprep.subr.bf16.mxu0 %v15549_v36  ;;  %11392 = vmatprep.subr.bf16.mxu1 %v15552_v37  ;;  %v15639_v36 = vld [vmem:[%s17559_s13 + $0x1444] ss:$16 sps:$4 sm:$0xff]   ;;  %v15642_v37 = vld [vmem:[%s17559_s13 + $0x144c] ss:$16 sps:$4 sm:$0xff]  }
 0x305   : > { %10361 = vmatpush1.bf16.msra.mxu0 %v15547_v38  ;;  %11393 = vmatpush1.bf16.msra.mxu1 %v15550_v39  ;;  %v15637_v38 = vld [vmem:[%s17559_s13 + $0x1440] ss:$16 sps:$4 sm:$0xff]   ;;  %v15640_v39 = vld [vmem:[%s17559_s13 + $0x1448] ss:$16 sps:$4 sm:$0xff]  }
 0x306   : > { %10362 = vmatprep.subr.bf16.mxu0 %v15555_v40  ;;  %11394 = vmatprep.subr.bf16.mxu1 %v15558_v41  ;;  %v15645_v40 = vld [vmem:[%s17559_s13 + $0x1464] ss:$16 sps:$4 sm:$0xff]   ;;  %v15648_v41 = vld [vmem:[%s17559_s13 + $0x146c] ss:$16 sps:$4 sm:$0xff]  }
 0x309   : > { %10363 = vmatpush1.bf16.msra.mxu0 %v15553_v42  ;;  %11395 = vmatpush1.bf16.msra.mxu1 %v15556_v43  ;;  %v15643_v42 = vld [vmem:[%s17559_s13 + $0x1460] ss:$16 sps:$4 sm:$0xff]   ;;  %v15646_v43 = vld [vmem:[%s17559_s13 + $0x1468] ss:$16 sps:$4 sm:$0xff]  }
 0x30a   : > { %10364 = vmatprep.subr.bf16.mxu0 %v15561_v44  ;;  %11396 = vmatprep.subr.bf16.mxu1 %v15564_v45  ;;  %v15651_v44 = vld [vmem:[%s17559_s13 + $0x1484] ss:$16 sps:$4 sm:$0xff]   ;;  %v15654_v45 = vld [vmem:[%s17559_s13 + $0x148c] ss:$16 sps:$4 sm:$0xff]  }
 0x30d   : > { %10365 = vmatpush1.bf16.msra.mxu0 %v15559_v46  ;;  %11397 = vmatpush1.bf16.msra.mxu1 %v15562_v47  ;;  %v15649_v46 = vld [vmem:[%s17559_s13 + $0x1480] ss:$16 sps:$4 sm:$0xff]   ;;  %v15652_v47 = vld [vmem:[%s17559_s13 + $0x1488] ss:$16 sps:$4 sm:$0xff]  }
 0x30e   : > { %10366 = vmatprep.subr.bf16.mxu0 %v15567_v48  ;;  %11398 = vmatprep.subr.bf16.mxu1 %v15570_v49  ;;  %v15657_v48 = vld [vmem:[%s17559_s13 + $0x14a4] ss:$16 sps:$4 sm:$0xff]   ;;  %v15660_v49 = vld [vmem:[%s17559_s13 + $0x14ac] ss:$16 sps:$4 sm:$0xff]  }
 0x311   : > { %10367 = vmatpush1.bf16.msra.mxu0 %v15565_v50  ;;  %11399 = vmatpush1.bf16.msra.mxu1 %v15568_v51  ;;  %v15655_v50 = vld [vmem:[%s17559_s13 + $0x14a0] ss:$16 sps:$4 sm:$0xff]   ;;  %v15658_v51 = vld [vmem:[%s17559_s13 + $0x14a8] ss:$16 sps:$4 sm:$0xff]  }
 0x312   : > { %10368 = vmatprep.subr.bf16.mxu0 %v15573_v52  ;;  %11400 = vmatprep.subr.bf16.mxu1 %v15576_v53  ;;  %v15663_v52 = vld [vmem:[%s17559_s13 + $0x14c4] ss:$16 sps:$4 sm:$0xff]   ;;  %v15666_v53 = vld [vmem:[%s17559_s13 + $0x14cc] ss:$16 sps:$4 sm:$0xff]  }
 0x315   : > { %10369 = vmatpush1.bf16.msra.mxu0 %v15571_v54  ;;  %11401 = vmatpush1.bf16.msra.mxu1 %v15574_v55  ;;  %v15661_v54 = vld [vmem:[%s17559_s13 + $0x14c0] ss:$16 sps:$4 sm:$0xff]   ;;  %v15664_v55 = vld [vmem:[%s17559_s13 + $0x14c8] ss:$16 sps:$4 sm:$0xff]  }
 0x316   : > { %10370 = vmatprep.subr.bf16.mxu0 %v15579_v56  ;;  %11402 = vmatprep.subr.bf16.mxu1 %v15582_v57  ;;  %v15669_v56 = vld [vmem:[%s17559_s13 + $0x14e4] ss:$16 sps:$4 sm:$0xff]   ;;  %v15672_v57 = vld [vmem:[%s17559_s13 + $0x14ec] ss:$16 sps:$4 sm:$0xff]  }
 0x319   : > { %10371 = vmatpush1.bf16.msra.mxu0 %v15577_v58  ;;  %11403 = vmatpush1.bf16.msra.mxu1 %v15580_v59  ;;  %v15667_v58 = vld [vmem:[%s17559_s13 + $0x14e0] ss:$16 sps:$4 sm:$0xff]   ;;  %v15670_v59 = vld [vmem:[%s17559_s13 + $0x14e8] ss:$16 sps:$4 sm:$0xff]  }
 0x31a   : > { %10372 = vmatprep.subr.bf16.mxu0 %v15585_v60  ;;  %11404 = vmatprep.subr.bf16.mxu1 %v15588_v61  ;;  %v15675_v60 = vld [vmem:[%s17559_s13 + $0x1504] ss:$16 sps:$4 sm:$0xff]   ;;  %v15678_v61 = vld [vmem:[%s17559_s13 + $0x150c] ss:$16 sps:$4 sm:$0xff]  }
 0x31d   : > { %10373 = vmatpush1.bf16.msra.mxu0 %v15583_v62  ;;  %11405 = vmatpush1.bf16.msra.mxu1 %v15586_v1  ;;  %v15673_v62 = vld [vmem:[%s17559_s13 + $0x1500] ss:$16 sps:$4 sm:$0xff]   ;;  %v15676_v1 = vld [vmem:[%s17559_s13 + $0x1508] ss:$16 sps:$4 sm:$0xff]  }
 0x31e   : > { %10374 = vmatprep.subr.bf16.mxu0 %v15591_v2  ;;  %11406 = vmatprep.subr.bf16.mxu1 %v15594_v5  ;;  %v15681_v2 = vld [vmem:[%s17559_s13 + $0x1524] ss:$16 sps:$4 sm:$0xff]   ;;  %v15684_v5 = vld [vmem:[%s17559_s13 + $0x152c] ss:$16 sps:$4 sm:$0xff]  }
 0x321   : > { %10375 = vmatpush1.bf16.msra.mxu0 %v15589_v7  ;;  %11407 = vmatpush1.bf16.msra.mxu1 %v15592_v0  ;;  %v15679_v7 = vld [vmem:[%s17559_s13 + $0x1520] ss:$16 sps:$4 sm:$0xff]   ;;  %v15682_v0 = vld [vmem:[%s17559_s13 + $0x1528] ss:$16 sps:$4 sm:$0xff]  }
 0x322   : > { %10376 = vmatprep.subr.bf16.mxu0 %v15597_v8  ;;  %11408 = vmatprep.subr.bf16.mxu1 %v15600_v9  ;;  %v15687_v8 = vld [vmem:[%s17559_s13 + $0x1544] ss:$16 sps:$4 sm:$0xff]   ;;  %v15690_v9 = vld [vmem:[%s17559_s13 + $0x154c] ss:$16 sps:$4 sm:$0xff]  }
 0x325   : > { %10377 = vmatpush1.bf16.msra.mxu0 %v15595_v3  ;;  %11409 = vmatpush1.bf16.msra.mxu1 %v15598_v4  ;;  %v15685_v3 = vld [vmem:[%s17559_s13 + $0x1540] ss:$16 sps:$4 sm:$0xff]   ;;  %v15688_v4 = vld [vmem:[%s17559_s13 + $0x1548] ss:$16 sps:$4 sm:$0xff]  }
 0x326   : > { %10378 = vmatprep.subr.bf16.mxu0 %v15603_v12  ;;  %11410 = vmatprep.subr.bf16.mxu1 %v15606_v13  ;;  %v15693_v12 = vld [vmem:[%s17559_s13 + $0x1564] ss:$16 sps:$4 sm:$0xff]   ;;  %v15696_v13 = vld [vmem:[%s17559_s13 + $0x156c] ss:$16 sps:$4 sm:$0xff]  }
 0x329   : > { %10379 = vmatpush1.bf16.msra.mxu0 %v15601_v6  ;;  %11411 = vmatpush1.bf16.msra.mxu1 %v15604_v63  ;;  %v15691_v6 = vld [vmem:[%s17559_s13 + $0x1560] ss:$16 sps:$4 sm:$0xff]   ;;  %v15694_v63 = vld [vmem:[%s17559_s13 + $0x1568] ss:$16 sps:$4 sm:$0xff]  }
 0x32a   : > { %10380 = vmatprep.subr.bf16.mxu0 %v15609_v16  ;;  %11412 = vmatprep.subr.bf16.mxu1 %v15612_v17  ;;  %v15699_v16 = vld [vmem:[%s17559_s13 + $0x1584] ss:$16 sps:$4 sm:$0xff]   ;;  %v15702_v17 = vld [vmem:[%s17559_s13 + $0x158c] ss:$16 sps:$4 sm:$0xff]  }
 0x32d   : > { %10381 = vmatpush1.bf16.msra.mxu0 %v15607_v10  ;;  %11413 = vmatpush1.bf16.msra.mxu1 %v15610_v11  ;;  %v15697_v10 = vld [vmem:[%s17559_s13 + $0x1580] ss:$16 sps:$4 sm:$0xff]   ;;  %v15700_v11 = vld [vmem:[%s17559_s13 + $0x1588] ss:$16 sps:$4 sm:$0xff]  }
 0x32e   : > { %10382 = vmatprep.subr.bf16.mxu0 %v15615_v20  ;;  %11414 = vmatprep.subr.bf16.mxu1 %v15618_v21  ;;  %v15705_v20 = vld [vmem:[%s17559_s13 + $0x15a4] ss:$16 sps:$4 sm:$0xff]   ;;  %v15708_v21 = vld [vmem:[%s17559_s13 + $0x15ac] ss:$16 sps:$4 sm:$0xff]  }
 0x331   : > { %10383 = vmatpush1.bf16.msra.mxu0 %v15613_v14  ;;  %11415 = vmatpush1.bf16.msra.mxu1 %v15616_v15  ;;  %v15703_v14 = vld [vmem:[%s17559_s13 + $0x15a0] ss:$16 sps:$4 sm:$0xff]   ;;  %v15706_v15 = vld [vmem:[%s17559_s13 + $0x15a8] ss:$16 sps:$4 sm:$0xff]  }
 0x332   : > { %10384 = vmatprep.subr.bf16.mxu0 %v15621_v24  ;;  %11416 = vmatprep.subr.bf16.mxu1 %v15624_v25  ;;  %v15711_v24 = vld [vmem:[%s17559_s13 + $0x15c4] ss:$16 sps:$4 sm:$0xff]   ;;  %v15714_v25 = vld [vmem:[%s17559_s13 + $0x15cc] ss:$16 sps:$4 sm:$0xff]  }
 0x335   : > { %10385 = vmatpush1.bf16.msra.mxu0 %v15619_v18  ;;  %11417 = vmatpush1.bf16.msra.mxu1 %v15622_v19  ;;  %v15709_v18 = vld [vmem:[%s17559_s13 + $0x15c0] ss:$16 sps:$4 sm:$0xff]   ;;  %v15712_v19 = vld [vmem:[%s17559_s13 + $0x15c8] ss:$16 sps:$4 sm:$0xff]  }
 0x336   : > { %10397 = vmatprep.subr.bf16.mxu0 %v15627_v28  ;;  %11429 = vmatprep.subr.bf16.mxu1 %v15630_v29  ;;  %v15717_v28 = vld [vmem:[%s17559_s13 + $0x15e4] ss:$16 sps:$4 sm:$0xff]   ;;  %v15720_v29 = vld [vmem:[%s17559_s13 + $0x15ec] ss:$16 sps:$4 sm:$0xff]  }
 0x338   : > { %10387 = vmatmul.mubr.bf16.vlgmr.msra.gmra.mrb[0].mxu0 %v12744_v22  ;;  %11419 = vmatmul.mubr.bf16.vlgmr.msra.gmra.mrb[0].mxu1 %v12744_v22  ;;  %v15715_v22 = vld [vmem:[%s17559_s13 + $0x15e0] ss:$16 sps:$4 sm:$0xff]  }
 0x339   : > { %10398 = vmatpush1.bf16.msra.mxu0 %v15625_v23  ;;  %11430 = vmatpush1.bf16.msra.mxu1 %v15628_v32  ;;  %v15718_v23 = vld [vmem:[%s17559_s13 + $0x15e8] ss:$16 sps:$4 sm:$0xff]   ;;  %v15723_v32 = vld [vmem:[%s17559_s13 + $0x1604] ss:$16 sps:$4 sm:$0xff]  }
 0x33a   : > { %10399 = vmatprep.subr.bf16.mxu0 %v15633_v33  ;;  %11431 = vmatprep.subr.bf16.mxu1 %v15636_v34  ;;  %v15726_v33 = vld [vmem:[%s17559_s13 + $0x160c] ss:$16 sps:$4 sm:$0xff]  }
 0x33b   : > { %10429 = vmatprep.mubr.bf16.mxu0 %v12747_v35  ;;  %11461 = vmatprep.mubr.bf16.mxu1 %v12747_v35  ;;  %v18381_v34 = vld [vmem:[%s17557_s18 + $0x58] sm:$0xff] }
 0x33c   : > { %v18384_v35 = vld [vmem:[%s17557_s18 + $0x118] sm:$0xff] }
 0x33d   : > { %10400 = vmatpush1.bf16.msra.mxu0 %v15631_v26  ;;  %11432 = vmatpush1.bf16.msra.mxu1 %v15634_v27  ;;  %v12746_v26 = vcombine.low %v18307_v30, %v18310_v31  ;;  %v15721_v27 = vld [vmem:[%s17559_s13 + $0x1600] ss:$16 sps:$4 sm:$0xff]   ;;  %v15730_v31 = vld [vmem:[%s17559_s13 + $0x1628] ss:$16 sps:$4 sm:$0xff]  }
 0x33e   : > { %10401 = vmatprep.subr.bf16.mxu0 %v15639_v36  ;;  %11433 = vmatprep.subr.bf16.mxu1 %v15642_v37  ;;  %v15724_v36 = vld [vmem:[%s17559_s13 + $0x1608] ss:$16 sps:$4 sm:$0xff]   ;;  %v15729_v37 = vld [vmem:[%s17559_s13 + $0x1624] ss:$16 sps:$4 sm:$0xff]   ;;  %v15727_v30 = vld [vmem:[%s17559_s13 + $0x1620] ss:$16 sps:$4 sm:$0xff]  }
 0x341   : > { %10402 = vmatpush1.bf16.msra.mxu0 %v15637_v38  ;;  %11434 = vmatpush1.bf16.msra.mxu1 %v15640_v39  ;;  %v15732_v38 = vld [vmem:[%s17559_s13 + $0x162c] ss:$16 sps:$4 sm:$0xff]   ;;  %v12749_v39 = vcombine.high %v18381_v34, %v18384_v35 }
 0x342   : > { %10403 = vmatprep.subr.bf16.mxu0 %v15645_v40  ;;  %11435 = vmatprep.subr.bf16.mxu1 %v15648_v41  ;;  %v15735_v40 = vld [vmem:[%s17559_s13 + $0x1644] ss:$16 sps:$4 sm:$0xff]   ;;  %v15738_v41 = vld [vmem:[%s17559_s13 + $0x164c] ss:$16 sps:$4 sm:$0xff]  }
 0x345   : > { %10404 = vmatpush1.bf16.msra.mxu0 %v15643_v42  ;;  %11436 = vmatpush1.bf16.msra.mxu1 %v15646_v43  ;;  %v15733_v42 = vld [vmem:[%s17559_s13 + $0x1640] ss:$16 sps:$4 sm:$0xff]   ;;  %v15736_v43 = vld [vmem:[%s17559_s13 + $0x1648] ss:$16 sps:$4 sm:$0xff]  }
 0x346   : > { %10405 = vmatprep.subr.bf16.mxu0 %v15651_v44  ;;  %11437 = vmatprep.subr.bf16.mxu1 %v15654_v45  ;;  %v15741_v44 = vld [vmem:[%s17559_s13 + $0x1664] ss:$16 sps:$4 sm:$0xff]   ;;  %v15744_v45 = vld [vmem:[%s17559_s13 + $0x166c] ss:$16 sps:$4 sm:$0xff]  }
 0x349   : > { %10406 = vmatpush1.bf16.msra.mxu0 %v15649_v46  ;;  %11438 = vmatpush1.bf16.msra.mxu1 %v15652_v47  ;;  %v15739_v46 = vld [vmem:[%s17559_s13 + $0x1660] ss:$16 sps:$4 sm:$0xff]   ;;  %v15742_v47 = vld [vmem:[%s17559_s13 + $0x1668] ss:$16 sps:$4 sm:$0xff]  }
 0x34a   : > { %10407 = vmatprep.subr.bf16.mxu0 %v15657_v48  ;;  %11439 = vmatprep.subr.bf16.mxu1 %v15660_v49  ;;  %v15747_v48 = vld [vmem:[%s17559_s13 + $0x1684] ss:$16 sps:$4 sm:$0xff]   ;;  %v15750_v49 = vld [vmem:[%s17559_s13 + $0x168c] ss:$16 sps:$4 sm:$0xff]  }
 0x34d   : > { %10408 = vmatpush1.bf16.msra.mxu0 %v15655_v50  ;;  %11440 = vmatpush1.bf16.msra.mxu1 %v15658_v51  ;;  %v15745_v50 = vld [vmem:[%s17559_s13 + $0x1680] ss:$16 sps:$4 sm:$0xff]   ;;  %v15748_v51 = vld [vmem:[%s17559_s13 + $0x1688] ss:$16 sps:$4 sm:$0xff]  }
 0x34e   : > { %10409 = vmatprep.subr.bf16.mxu0 %v15663_v52  ;;  %11441 = vmatprep.subr.bf16.mxu1 %v15666_v53  ;;  %v15753_v52 = vld [vmem:[%s17559_s13 + $0x16a4] ss:$16 sps:$4 sm:$0xff]   ;;  %v15756_v53 = vld [vmem:[%s17559_s13 + $0x16ac] ss:$16 sps:$4 sm:$0xff]  }
 0x351   : > { %10410 = vmatpush1.bf16.msra.mxu0 %v15661_v54  ;;  %11442 = vmatpush1.bf16.msra.mxu1 %v15664_v55  ;;  %v15751_v54 = vld [vmem:[%s17559_s13 + $0x16a0] ss:$16 sps:$4 sm:$0xff]   ;;  %v15754_v55 = vld [vmem:[%s17559_s13 + $0x16a8] ss:$16 sps:$4 sm:$0xff]  }
 0x352   : > { %10411 = vmatprep.subr.bf16.mxu0 %v15669_v56  ;;  %11443 = vmatprep.subr.bf16.mxu1 %v15672_v57  ;;  %v15759_v56 = vld [vmem:[%s17559_s13 + $0x16c4] ss:$16 sps:$4 sm:$0xff]   ;;  %v15762_v57 = vld [vmem:[%s17559_s13 + $0x16cc] ss:$16 sps:$4 sm:$0xff]  }
 0x355   : > { %10412 = vmatpush1.bf16.msra.mxu0 %v15667_v58  ;;  %11444 = vmatpush1.bf16.msra.mxu1 %v15670_v59  ;;  %v15757_v58 = vld [vmem:[%s17559_s13 + $0x16c0] ss:$16 sps:$4 sm:$0xff]   ;;  %v15760_v59 = vld [vmem:[%s17559_s13 + $0x16c8] ss:$16 sps:$4 sm:$0xff]  }
 0x356   : > { %10413 = vmatprep.subr.bf16.mxu0 %v15675_v60  ;;  %11445 = vmatprep.subr.bf16.mxu1 %v15678_v61  ;;  %v15765_v60 = vld [vmem:[%s17559_s13 + $0x16e4] ss:$16 sps:$4 sm:$0xff]   ;;  %v15768_v61 = vld [vmem:[%s17559_s13 + $0x16ec] ss:$16 sps:$4 sm:$0xff]  }
 0x359   : > { %10414 = vmatpush1.bf16.msra.mxu0 %v15673_v62  ;;  %11446 = vmatpush1.bf16.msra.mxu1 %v15676_v1  ;;  %v15763_v62 = vld [vmem:[%s17559_s13 + $0x16e0] ss:$16 sps:$4 sm:$0xff]   ;;  %v15766_v1 = vld [vmem:[%s17559_s13 + $0x16e8] ss:$16 sps:$4 sm:$0xff]  }
 0x35a   : > { %10415 = vmatprep.subr.bf16.mxu0 %v15681_v2  ;;  %11447 = vmatprep.subr.bf16.mxu1 %v15684_v5  ;;  %v15771_v2 = vld [vmem:[%s17559_s13 + $0x1704] ss:$16 sps:$4 sm:$0xff]   ;;  %v15774_v5 = vld [vmem:[%s17559_s13 + $0x170c] ss:$16 sps:$4 sm:$0xff]  }
 0x35d   : > { %10416 = vmatpush1.bf16.msra.mxu0 %v15679_v7  ;;  %11448 = vmatpush1.bf16.msra.mxu1 %v15682_v0  ;;  %v15769_v7 = vld [vmem:[%s17559_s13 + $0x1700] ss:$16 sps:$4 sm:$0xff]   ;;  %v15772_v0 = vld [vmem:[%s17559_s13 + $0x1708] ss:$16 sps:$4 sm:$0xff]  }
 0x35e   : > { %10417 = vmatprep.subr.bf16.mxu0 %v15687_v8  ;;  %11449 = vmatprep.subr.bf16.mxu1 %v15690_v9  ;;  %v15777_v8 = vld [vmem:[%s17559_s13 + $0x1724] ss:$16 sps:$4 sm:$0xff]   ;;  %v15780_v9 = vld [vmem:[%s17559_s13 + $0x172c] ss:$16 sps:$4 sm:$0xff]  }
 0x361   : > { %10418 = vmatpush1.bf16.msra.mxu0 %v15685_v3  ;;  %11450 = vmatpush1.bf16.msra.mxu1 %v15688_v4  ;;  %v15775_v3 = vld [vmem:[%s17559_s13 + $0x1720] ss:$16 sps:$4 sm:$0xff]   ;;  %v15778_v4 = vld [vmem:[%s17559_s13 + $0x1728] ss:$16 sps:$4 sm:$0xff]  }
 0x362   : > { %10419 = vmatprep.subr.bf16.mxu0 %v15693_v12  ;;  %11451 = vmatprep.subr.bf16.mxu1 %v15696_v13  ;;  %v15783_v12 = vld [vmem:[%s17559_s13 + $0x1744] ss:$16 sps:$4 sm:$0xff]   ;;  %v15786_v13 = vld [vmem:[%s17559_s13 + $0x174c] ss:$16 sps:$4 sm:$0xff]  }
 0x365   : > { %10420 = vmatpush1.bf16.msra.mxu0 %v15691_v6  ;;  %11452 = vmatpush1.bf16.msra.mxu1 %v15694_v63  ;;  %v15781_v6 = vld [vmem:[%s17559_s13 + $0x1740] ss:$16 sps:$4 sm:$0xff]   ;;  %v15784_v63 = vld [vmem:[%s17559_s13 + $0x1748] ss:$16 sps:$4 sm:$0xff]  }
 0x366   : > { %10421 = vmatprep.subr.bf16.mxu0 %v15699_v16  ;;  %11453 = vmatprep.subr.bf16.mxu1 %v15702_v17  ;;  %v15789_v16 = vld [vmem:[%s17559_s13 + $0x1764] ss:$16 sps:$4 sm:$0xff]   ;;  %v15792_v17 = vld [vmem:[%s17559_s13 + $0x176c] ss:$16 sps:$4 sm:$0xff]  }
 0x369   : > { %10422 = vmatpush1.bf16.msra.mxu0 %v15697_v10  ;;  %11454 = vmatpush1.bf16.msra.mxu1 %v15700_v11  ;;  %v15787_v10 = vld [vmem:[%s17559_s13 + $0x1760] ss:$16 sps:$4 sm:$0xff]   ;;  %v15790_v11 = vld [vmem:[%s17559_s13 + $0x1768] ss:$16 sps:$4 sm:$0xff]  }
 0x36a   : > { %10423 = vmatprep.subr.bf16.mxu0 %v15705_v20  ;;  %11455 = vmatprep.subr.bf16.mxu1 %v15708_v21  ;;  %v15795_v20 = vld [vmem:[%s17559_s13 + $0x1784] ss:$16 sps:$4 sm:$0xff]   ;;  %v15798_v21 = vld [vmem:[%s17559_s13 + $0x178c] ss:$16 sps:$4 sm:$0xff]  }
 0x36d   : > { %10424 = vmatpush1.bf16.msra.mxu0 %v15703_v14  ;;  %11456 = vmatpush1.bf16.msra.mxu1 %v15706_v15  ;;  %v15793_v14 = vld [vmem:[%s17559_s13 + $0x1780] ss:$16 sps:$4 sm:$0xff]   ;;  %v15796_v15 = vld [vmem:[%s17559_s13 + $0x1788] ss:$16 sps:$4 sm:$0xff]  }
 0x36e   : > { %10425 = vmatprep.subr.bf16.mxu0 %v15711_v24  ;;  %11457 = vmatprep.subr.bf16.mxu1 %v15714_v25  ;;  %v15801_v24 = vld [vmem:[%s17559_s13 + $0x17a4] ss:$16 sps:$4 sm:$0xff]   ;;  %v15804_v25 = vld [vmem:[%s17559_s13 + $0x17ac] ss:$16 sps:$4 sm:$0xff]  }
 0x371   : > { %10426 = vmatpush1.bf16.msra.mxu0 %v15709_v18  ;;  %11458 = vmatpush1.bf16.msra.mxu1 %v15712_v19  ;;  %v15799_v18 = vld [vmem:[%s17559_s13 + $0x17a0] ss:$16 sps:$4 sm:$0xff]   ;;  %v15802_v19 = vld [vmem:[%s17559_s13 + $0x17a8] ss:$16 sps:$4 sm:$0xff]  }
 0x372   : > { %10427 = vmatprep.subr.bf16.mxu0 %v15717_v28  ;;  %11459 = vmatprep.subr.bf16.mxu1 %v15720_v29  ;;  %v15807_v28 = vld [vmem:[%s17559_s13 + $0x17c4] ss:$16 sps:$4 sm:$0xff]   ;;  %v15810_v29 = vld [vmem:[%s17559_s13 + $0x17cc] ss:$16 sps:$4 sm:$0xff]  }
 0x375   : > { %10428 = vmatpush1.bf16.msra.mxu0 %v15715_v22  ;;  %11460 = vmatpush1.bf16.msra.mxu1 %v15718_v23  ;;  %v15805_v22 = vld [vmem:[%s17559_s13 + $0x17c0] ss:$16 sps:$4 sm:$0xff]   ;;  %v15808_v23 = vld [vmem:[%s17559_s13 + $0x17c8] ss:$16 sps:$4 sm:$0xff]  }
 0x376   : > { %10440 = vmatprep.subr.bf16.mxu0 %v15723_v32  ;;  %11472 = vmatprep.subr.bf16.mxu1 %v15726_v33  ;;  %v15813_v32 = vld [vmem:[%s17559_s13 + $0x17e4] ss:$16 sps:$4 sm:$0xff]   ;;  %v15816_v33 = vld [vmem:[%s17559_s13 + $0x17ec] ss:$16 sps:$4 sm:$0xff]  }
 0x378   : > { %10430 = vmatmul.mubr.bf16.vlgmr.msra.gmra.mrb[0].mxu0 %v12746_v26  ;;  %11462 = vmatmul.mubr.bf16.vlgmr.msra.gmra.mrb[0].mxu1 %v12746_v26  ;;  %v15811_v26 = vld [vmem:[%s17559_s13 + $0x17e0] ss:$16 sps:$4 sm:$0xff]  }
 0x379   : > { %10441 = vmatpush1.bf16.msra.mxu0 %v15721_v27  ;;  %11473 = vmatpush1.bf16.msra.mxu1 %v15724_v36  ;;  %v15814_v27 = vld [vmem:[%s17559_s13 + $0x17e8] ss:$16 sps:$4 sm:$0xff]   ;;  %v15819_v36 = vld [vmem:[%s17559_s13 + $0x1804] ss:$16 sps:$4 sm:$0xff]  }
 0x37a   : > { %10442 = vmatprep.subr.bf16.mxu0 %v15729_v37  ;;  %11474 = vmatprep.subr.bf16.mxu1 %v15732_v38  ;;  %v15822_v37 = vld [vmem:[%s17559_s13 + $0x180c] ss:$16 sps:$4 sm:$0xff]   ;;  %v18455_v38 = vld [vmem:[%s17557_s18 + $0x60] sm:$0xff] }
 0x37b   : > { %10472 = vmatprep.mubr.bf16.mxu0 %v12749_v39  ;;  %11504 = vmatprep.mubr.bf16.mxu1 %v12749_v39  ;;  %v18458_v39 = vld [vmem:[%s17557_s18 + $0x120] sm:$0xff] }
 0x37d   : > { %10443 = vmatpush1.bf16.msra.mxu0 %v15727_v30  ;;  %11475 = vmatpush1.bf16.msra.mxu1 %v15730_v31  ;;  %v12748_v30 = vcombine.low %v18381_v34, %v18384_v35  ;;  %v15817_v31 = vld [vmem:[%s17559_s13 + $0x1800] ss:$16 sps:$4 sm:$0xff]   ;;  %v15826_v35 = vld [vmem:[%s17559_s13 + $0x1828] ss:$16 sps:$4 sm:$0xff]  }
 0x37e   : > { %10444 = vmatprep.subr.bf16.mxu0 %v15735_v40  ;;  %11476 = vmatprep.subr.bf16.mxu1 %v15738_v41  ;;  %v15820_v40 = vld [vmem:[%s17559_s13 + $0x1808] ss:$16 sps:$4 sm:$0xff]   ;;  %v15825_v41 = vld [vmem:[%s17559_s13 + $0x1824] ss:$16 sps:$4 sm:$0xff]   ;;  %v15823_v34 = vld [vmem:[%s17559_s13 + $0x1820] ss:$16 sps:$4 sm:$0xff]  }
 0x381   : > { %10445 = vmatpush1.bf16.msra.mxu0 %v15733_v42  ;;  %11477 = vmatpush1.bf16.msra.mxu1 %v15736_v43  ;;  %v15828_v42 = vld [vmem:[%s17559_s13 + $0x182c] ss:$16 sps:$4 sm:$0xff]   ;;  %v12751_v43 = vcombine.high %v18455_v38, %v18458_v39 }
 0x382   : > { %10446 = vmatprep.subr.bf16.mxu0 %v15741_v44  ;;  %11478 = vmatprep.subr.bf16.mxu1 %v15744_v45  ;;  %v15831_v44 = vld [vmem:[%s17559_s13 + $0x1844] ss:$16 sps:$4 sm:$0xff]   ;;  %v15834_v45 = vld [vmem:[%s17559_s13 + $0x184c] ss:$16 sps:$4 sm:$0xff]  }
 0x385   : > { %10447 = vmatpush1.bf16.msra.mxu0 %v15739_v46  ;;  %11479 = vmatpush1.bf16.msra.mxu1 %v15742_v47  ;;  %v15829_v46 = vld [vmem:[%s17559_s13 + $0x1840] ss:$16 sps:$4 sm:$0xff]   ;;  %v15832_v47 = vld [vmem:[%s17559_s13 + $0x1848] ss:$16 sps:$4 sm:$0xff]  }
 0x386   : > { %10448 = vmatprep.subr.bf16.mxu0 %v15747_v48  ;;  %11480 = vmatprep.subr.bf16.mxu1 %v15750_v49  ;;  %v15837_v48 = vld [vmem:[%s17559_s13 + $0x1864] ss:$16 sps:$4 sm:$0xff]   ;;  %v15840_v49 = vld [vmem:[%s17559_s13 + $0x186c] ss:$16 sps:$4 sm:$0xff]  }
 0x389   : > { %10449 = vmatpush1.bf16.msra.mxu0 %v15745_v50  ;;  %11481 = vmatpush1.bf16.msra.mxu1 %v15748_v51  ;;  %v15835_v50 = vld [vmem:[%s17559_s13 + $0x1860] ss:$16 sps:$4 sm:$0xff]   ;;  %v15838_v51 = vld [vmem:[%s17559_s13 + $0x1868] ss:$16 sps:$4 sm:$0xff]  }
 0x38a   : > { %10450 = vmatprep.subr.bf16.mxu0 %v15753_v52  ;;  %11482 = vmatprep.subr.bf16.mxu1 %v15756_v53  ;;  %v15843_v52 = vld [vmem:[%s17559_s13 + $0x1884] ss:$16 sps:$4 sm:$0xff]   ;;  %v15846_v53 = vld [vmem:[%s17559_s13 + $0x188c] ss:$16 sps:$4 sm:$0xff]  }
 0x38d   : > { %10451 = vmatpush1.bf16.msra.mxu0 %v15751_v54  ;;  %11483 = vmatpush1.bf16.msra.mxu1 %v15754_v55  ;;  %v15841_v54 = vld [vmem:[%s17559_s13 + $0x1880] ss:$16 sps:$4 sm:$0xff]   ;;  %v15844_v55 = vld [vmem:[%s17559_s13 + $0x1888] ss:$16 sps:$4 sm:$0xff]  }
 0x38e   : > { %10452 = vmatprep.subr.bf16.mxu0 %v15759_v56  ;;  %11484 = vmatprep.subr.bf16.mxu1 %v15762_v57  ;;  %v15849_v56 = vld [vmem:[%s17559_s13 + $0x18a4] ss:$16 sps:$4 sm:$0xff]   ;;  %v15852_v57 = vld [vmem:[%s17559_s13 + $0x18ac] ss:$16 sps:$4 sm:$0xff]  }
 0x391   : > { %10453 = vmatpush1.bf16.msra.mxu0 %v15757_v58  ;;  %11485 = vmatpush1.bf16.msra.mxu1 %v15760_v59  ;;  %v15847_v58 = vld [vmem:[%s17559_s13 + $0x18a0] ss:$16 sps:$4 sm:$0xff]   ;;  %v15850_v59 = vld [vmem:[%s17559_s13 + $0x18a8] ss:$16 sps:$4 sm:$0xff]  }
 0x392   : > { %10454 = vmatprep.subr.bf16.mxu0 %v15765_v60  ;;  %11486 = vmatprep.subr.bf16.mxu1 %v15768_v61  ;;  %v15855_v60 = vld [vmem:[%s17559_s13 + $0x18c4] ss:$16 sps:$4 sm:$0xff]   ;;  %v15858_v61 = vld [vmem:[%s17559_s13 + $0x18cc] ss:$16 sps:$4 sm:$0xff]  }
 0x395   : > { %10455 = vmatpush1.bf16.msra.mxu0 %v15763_v62  ;;  %11487 = vmatpush1.bf16.msra.mxu1 %v15766_v1  ;;  %v15853_v62 = vld [vmem:[%s17559_s13 + $0x18c0] ss:$16 sps:$4 sm:$0xff]   ;;  %v15856_v1 = vld [vmem:[%s17559_s13 + $0x18c8] ss:$16 sps:$4 sm:$0xff]  }
 0x396   : > { %10456 = vmatprep.subr.bf16.mxu0 %v15771_v2  ;;  %11488 = vmatprep.subr.bf16.mxu1 %v15774_v5  ;;  %v15861_v2 = vld [vmem:[%s17559_s13 + $0x18e4] ss:$16 sps:$4 sm:$0xff]   ;;  %v15864_v5 = vld [vmem:[%s17559_s13 + $0x18ec] ss:$16 sps:$4 sm:$0xff]  }
 0x399   : > { %10457 = vmatpush1.bf16.msra.mxu0 %v15769_v7  ;;  %11489 = vmatpush1.bf16.msra.mxu1 %v15772_v0  ;;  %v15859_v7 = vld [vmem:[%s17559_s13 + $0x18e0] ss:$16 sps:$4 sm:$0xff]   ;;  %v15862_v0 = vld [vmem:[%s17559_s13 + $0x18e8] ss:$16 sps:$4 sm:$0xff]  }
 0x39a   : > { %10458 = vmatprep.subr.bf16.mxu0 %v15777_v8  ;;  %11490 = vmatprep.subr.bf16.mxu1 %v15780_v9  ;;  %v15867_v8 = vld [vmem:[%s17559_s13 + $0x1904] ss:$16 sps:$4 sm:$0xff]   ;;  %v15870_v9 = vld [vmem:[%s17559_s13 + $0x190c] ss:$16 sps:$4 sm:$0xff]  }
 0x39d   : > { %10459 = vmatpush1.bf16.msra.mxu0 %v15775_v3  ;;  %11491 = vmatpush1.bf16.msra.mxu1 %v15778_v4  ;;  %v15865_v3 = vld [vmem:[%s17559_s13 + $0x1900] ss:$16 sps:$4 sm:$0xff]   ;;  %v15868_v4 = vld [vmem:[%s17559_s13 + $0x1908] ss:$16 sps:$4 sm:$0xff]  }
 0x39e   : > { %10460 = vmatprep.subr.bf16.mxu0 %v15783_v12  ;;  %11492 = vmatprep.subr.bf16.mxu1 %v15786_v13  ;;  %v15873_v12 = vld [vmem:[%s17559_s13 + $0x1924] ss:$16 sps:$4 sm:$0xff]   ;;  %v15876_v13 = vld [vmem:[%s17559_s13 + $0x192c] ss:$16 sps:$4 sm:$0xff]  }
 0x3a1   : > { %10461 = vmatpush1.bf16.msra.mxu0 %v15781_v6  ;;  %11493 = vmatpush1.bf16.msra.mxu1 %v15784_v63  ;;  %v15871_v6 = vld [vmem:[%s17559_s13 + $0x1920] ss:$16 sps:$4 sm:$0xff]   ;;  %v15874_v63 = vld [vmem:[%s17559_s13 + $0x1928] ss:$16 sps:$4 sm:$0xff]  }
 0x3a2   : > { %10462 = vmatprep.subr.bf16.mxu0 %v15789_v16  ;;  %11494 = vmatprep.subr.bf16.mxu1 %v15792_v17  ;;  %v15879_v16 = vld [vmem:[%s17559_s13 + $0x1944] ss:$16 sps:$4 sm:$0xff]   ;;  %v15882_v17 = vld [vmem:[%s17559_s13 + $0x194c] ss:$16 sps:$4 sm:$0xff]  }
 0x3a5   : > { %10463 = vmatpush1.bf16.msra.mxu0 %v15787_v10  ;;  %11495 = vmatpush1.bf16.msra.mxu1 %v15790_v11  ;;  %v15877_v10 = vld [vmem:[%s17559_s13 + $0x1940] ss:$16 sps:$4 sm:$0xff]   ;;  %v15880_v11 = vld [vmem:[%s17559_s13 + $0x1948] ss:$16 sps:$4 sm:$0xff]  }
 0x3a6   : > { %10464 = vmatprep.subr.bf16.mxu0 %v15795_v20  ;;  %11496 = vmatprep.subr.bf16.mxu1 %v15798_v21  ;;  %v15885_v20 = vld [vmem:[%s17559_s13 + $0x1964] ss:$16 sps:$4 sm:$0xff]   ;;  %v15888_v21 = vld [vmem:[%s17559_s13 + $0x196c] ss:$16 sps:$4 sm:$0xff]  }
 0x3a9   : > { %10465 = vmatpush1.bf16.msra.mxu0 %v15793_v14  ;;  %11497 = vmatpush1.bf16.msra.mxu1 %v15796_v15  ;;  %v15883_v14 = vld [vmem:[%s17559_s13 + $0x1960] ss:$16 sps:$4 sm:$0xff]   ;;  %v15886_v15 = vld [vmem:[%s17559_s13 + $0x1968] ss:$16 sps:$4 sm:$0xff]  }
 0x3aa   : > { %10466 = vmatprep.subr.bf16.mxu0 %v15801_v24  ;;  %11498 = vmatprep.subr.bf16.mxu1 %v15804_v25  ;;  %v15891_v24 = vld [vmem:[%s17559_s13 + $0x1984] ss:$16 sps:$4 sm:$0xff]   ;;  %v15894_v25 = vld [vmem:[%s17559_s13 + $0x198c] ss:$16 sps:$4 sm:$0xff]  }
 0x3ad   : > { %10467 = vmatpush1.bf16.msra.mxu0 %v15799_v18  ;;  %11499 = vmatpush1.bf16.msra.mxu1 %v15802_v19  ;;  %v15889_v18 = vld [vmem:[%s17559_s13 + $0x1980] ss:$16 sps:$4 sm:$0xff]   ;;  %v15892_v19 = vld [vmem:[%s17559_s13 + $0x1988] ss:$16 sps:$4 sm:$0xff]  }
 0x3ae   : > { %10468 = vmatprep.subr.bf16.mxu0 %v15807_v28  ;;  %11500 = vmatprep.subr.bf16.mxu1 %v15810_v29  ;;  %v15897_v28 = vld [vmem:[%s17559_s13 + $0x19a4] ss:$16 sps:$4 sm:$0xff]   ;;  %v15900_v29 = vld [vmem:[%s17559_s13 + $0x19ac] ss:$16 sps:$4 sm:$0xff]  }
 0x3b1   : > { %10469 = vmatpush1.bf16.msra.mxu0 %v15805_v22  ;;  %11501 = vmatpush1.bf16.msra.mxu1 %v15808_v23  ;;  %v15895_v22 = vld [vmem:[%s17559_s13 + $0x19a0] ss:$16 sps:$4 sm:$0xff]   ;;  %v15898_v23 = vld [vmem:[%s17559_s13 + $0x19a8] ss:$16 sps:$4 sm:$0xff]  }
 0x3b2   : > { %10470 = vmatprep.subr.bf16.mxu0 %v15813_v32  ;;  %11502 = vmatprep.subr.bf16.mxu1 %v15816_v33  ;;  %v15903_v32 = vld [vmem:[%s17559_s13 + $0x19c4] ss:$16 sps:$4 sm:$0xff]   ;;  %v15906_v33 = vld [vmem:[%s17559_s13 + $0x19cc] ss:$16 sps:$4 sm:$0xff]  }
 0x3b5   : > { %10471 = vmatpush1.bf16.msra.mxu0 %v15811_v26  ;;  %11503 = vmatpush1.bf16.msra.mxu1 %v15814_v27  ;;  %v15901_v26 = vld [vmem:[%s17559_s13 + $0x19c0] ss:$16 sps:$4 sm:$0xff]   ;;  %v15904_v27 = vld [vmem:[%s17559_s13 + $0x19c8] ss:$16 sps:$4 sm:$0xff]  }
 0x3b6   : > { %10483 = vmatprep.subr.bf16.mxu0 %v15819_v36  ;;  %11515 = vmatprep.subr.bf16.mxu1 %v15822_v37  ;;  %v15909_v36 = vld [vmem:[%s17559_s13 + $0x19e4] ss:$16 sps:$4 sm:$0xff]   ;;  %v15912_v37 = vld [vmem:[%s17559_s13 + $0x19ec] ss:$16 sps:$4 sm:$0xff]  }
 0x3b8   : > { %10473 = vmatmul.mubr.bf16.vlgmr.msra.gmra.mrb[0].mxu0 %v12748_v30  ;;  %11505 = vmatmul.mubr.bf16.vlgmr.msra.gmra.mrb[0].mxu1 %v12748_v30  ;;  %v15907_v30 = vld [vmem:[%s17559_s13 + $0x19e0] ss:$16 sps:$4 sm:$0xff]  }
 0x3b9   : > { %10484 = vmatpush1.bf16.msra.mxu0 %v15817_v31  ;;  %11516 = vmatpush1.bf16.msra.mxu1 %v15820_v40  ;;  %v15910_v31 = vld [vmem:[%s17559_s13 + $0x19e8] ss:$16 sps:$4 sm:$0xff]   ;;  %v15915_v40 = vld [vmem:[%s17559_s13 + $0x1a04] ss:$16 sps:$4 sm:$0xff]  }
 0x3ba   : > { %10485 = vmatprep.subr.bf16.mxu0 %v15825_v41  ;;  %11517 = vmatprep.subr.bf16.mxu1 %v15828_v42  ;;  %v15918_v41 = vld [vmem:[%s17559_s13 + $0x1a0c] ss:$16 sps:$4 sm:$0xff]  }
 0x3bb   : > { %10515 = vmatprep.mubr.bf16.mxu0 %v12751_v43  ;;  %11547 = vmatprep.mubr.bf16.mxu1 %v12751_v43  ;;  %v18529_v42 = vld [vmem:[%s17557_s18 + $0x68] sm:$0xff] }
 0x3bc   : > { %v18532_v43 = vld [vmem:[%s17557_s18 + $0x128] sm:$0xff] }
 0x3bd   : > { %10486 = vmatpush1.bf16.msra.mxu0 %v15823_v34  ;;  %11518 = vmatpush1.bf16.msra.mxu1 %v15826_v35  ;;  %v12750_v34 = vcombine.low %v18455_v38, %v18458_v39  ;;  %v15913_v35 = vld [vmem:[%s17559_s13 + $0x1a00] ss:$16 sps:$4 sm:$0xff]   ;;  %v15922_v39 = vld [vmem:[%s17559_s13 + $0x1a28] ss:$16 sps:$4 sm:$0xff]  }
 0x3be   : > { %10487 = vmatprep.subr.bf16.mxu0 %v15831_v44  ;;  %11519 = vmatprep.subr.bf16.mxu1 %v15834_v45  ;;  %v15916_v44 = vld [vmem:[%s17559_s13 + $0x1a08] ss:$16 sps:$4 sm:$0xff]   ;;  %v15921_v45 = vld [vmem:[%s17559_s13 + $0x1a24] ss:$16 sps:$4 sm:$0xff]   ;;  %v15919_v38 = vld [vmem:[%s17559_s13 + $0x1a20] ss:$16 sps:$4 sm:$0xff]  }
 0x3c1   : > { %10488 = vmatpush1.bf16.msra.mxu0 %v15829_v46  ;;  %11520 = vmatpush1.bf16.msra.mxu1 %v15832_v47  ;;  %v15924_v46 = vld [vmem:[%s17559_s13 + $0x1a2c] ss:$16 sps:$4 sm:$0xff]   ;;  %v12753_v47 = vcombine.high %v18529_v42, %v18532_v43 }
 0x3c2   : > { %10489 = vmatprep.subr.bf16.mxu0 %v15837_v48  ;;  %11521 = vmatprep.subr.bf16.mxu1 %v15840_v49  ;;  %v15927_v48 = vld [vmem:[%s17559_s13 + $0x1a44] ss:$16 sps:$4 sm:$0xff]   ;;  %v15930_v49 = vld [vmem:[%s17559_s13 + $0x1a4c] ss:$16 sps:$4 sm:$0xff]  }
 0x3c5   : > { %10490 = vmatpush1.bf16.msra.mxu0 %v15835_v50  ;;  %11522 = vmatpush1.bf16.msra.mxu1 %v15838_v51  ;;  %v15925_v50 = vld [vmem:[%s17559_s13 + $0x1a40] ss:$16 sps:$4 sm:$0xff]   ;;  %v15928_v51 = vld [vmem:[%s17559_s13 + $0x1a48] ss:$16 sps:$4 sm:$0xff]  }
 0x3c6   : > { %10491 = vmatprep.subr.bf16.mxu0 %v15843_v52  ;;  %11523 = vmatprep.subr.bf16.mxu1 %v15846_v53  ;;  %v15933_v52 = vld [vmem:[%s17559_s13 + $0x1a64] ss:$16 sps:$4 sm:$0xff]   ;;  %v15936_v53 = vld [vmem:[%s17559_s13 + $0x1a6c] ss:$16 sps:$4 sm:$0xff]  }
 0x3c9   : > { %10492 = vmatpush1.bf16.msra.mxu0 %v15841_v54  ;;  %11524 = vmatpush1.bf16.msra.mxu1 %v15844_v55  ;;  %v15931_v54 = vld [vmem:[%s17559_s13 + $0x1a60] ss:$16 sps:$4 sm:$0xff]   ;;  %v15934_v55 = vld [vmem:[%s17559_s13 + $0x1a68] ss:$16 sps:$4 sm:$0xff]  }
 0x3ca   : > { %10493 = vmatprep.subr.bf16.mxu0 %v15849_v56  ;;  %11525 = vmatprep.subr.bf16.mxu1 %v15852_v57  ;;  %v15939_v56 = vld [vmem:[%s17559_s13 + $0x1a84] ss:$16 sps:$4 sm:$0xff]   ;;  %v15942_v57 = vld [vmem:[%s17559_s13 + $0x1a8c] ss:$16 sps:$4 sm:$0xff]  }
 0x3cd   : > { %10494 = vmatpush1.bf16.msra.mxu0 %v15847_v58  ;;  %11526 = vmatpush1.bf16.msra.mxu1 %v15850_v59  ;;  %v15937_v58 = vld [vmem:[%s17559_s13 + $0x1a80] ss:$16 sps:$4 sm:$0xff]   ;;  %v15940_v59 = vld [vmem:[%s17559_s13 + $0x1a88] ss:$16 sps:$4 sm:$0xff]  }
 0x3ce   : > { %10495 = vmatprep.subr.bf16.mxu0 %v15855_v60  ;;  %11527 = vmatprep.subr.bf16.mxu1 %v15858_v61  ;;  %v15945_v60 = vld [vmem:[%s17559_s13 + $0x1aa4] ss:$16 sps:$4 sm:$0xff]   ;;  %v15948_v61 = vld [vmem:[%s17559_s13 + $0x1aac] ss:$16 sps:$4 sm:$0xff]  }
 0x3d1   : > { %10496 = vmatpush1.bf16.msra.mxu0 %v15853_v62  ;;  %11528 = vmatpush1.bf16.msra.mxu1 %v15856_v1  ;;  %v15943_v62 = vld [vmem:[%s17559_s13 + $0x1aa0] ss:$16 sps:$4 sm:$0xff]   ;;  %v15946_v1 = vld [vmem:[%s17559_s13 + $0x1aa8] ss:$16 sps:$4 sm:$0xff]  }
 0x3d2   : > { %10497 = vmatprep.subr.bf16.mxu0 %v15861_v2  ;;  %11529 = vmatprep.subr.bf16.mxu1 %v15864_v5  ;;  %v15951_v2 = vld [vmem:[%s17559_s13 + $0x1ac4] ss:$16 sps:$4 sm:$0xff]   ;;  %v15954_v5 = vld [vmem:[%s17559_s13 + $0x1acc] ss:$16 sps:$4 sm:$0xff]  }
 0x3d5   : > { %10498 = vmatpush1.bf16.msra.mxu0 %v15859_v7  ;;  %11530 = vmatpush1.bf16.msra.mxu1 %v15862_v0  ;;  %v15949_v7 = vld [vmem:[%s17559_s13 + $0x1ac0] ss:$16 sps:$4 sm:$0xff]   ;;  %v15952_v0 = vld [vmem:[%s17559_s13 + $0x1ac8] ss:$16 sps:$4 sm:$0xff]  }
 0x3d6   : > { %10499 = vmatprep.subr.bf16.mxu0 %v15867_v8  ;;  %11531 = vmatprep.subr.bf16.mxu1 %v15870_v9  ;;  %v15957_v8 = vld [vmem:[%s17559_s13 + $0x1ae4] ss:$16 sps:$4 sm:$0xff]   ;;  %v15960_v9 = vld [vmem:[%s17559_s13 + $0x1aec] ss:$16 sps:$4 sm:$0xff]  }
 0x3d9   : > { %10500 = vmatpush1.bf16.msra.mxu0 %v15865_v3  ;;  %11532 = vmatpush1.bf16.msra.mxu1 %v15868_v4  ;;  %v15955_v3 = vld [vmem:[%s17559_s13 + $0x1ae0] ss:$16 sps:$4 sm:$0xff]   ;;  %v15958_v4 = vld [vmem:[%s17559_s13 + $0x1ae8] ss:$16 sps:$4 sm:$0xff]  }
 0x3da   : > { %10501 = vmatprep.subr.bf16.mxu0 %v15873_v12  ;;  %11533 = vmatprep.subr.bf16.mxu1 %v15876_v13  ;;  %v15963_v12 = vld [vmem:[%s17559_s13 + $0x1b04] ss:$16 sps:$4 sm:$0xff]   ;;  %v15966_v13 = vld [vmem:[%s17559_s13 + $0x1b0c] ss:$16 sps:$4 sm:$0xff]  }
 0x3dd   : > { %10502 = vmatpush1.bf16.msra.mxu0 %v15871_v6  ;;  %11534 = vmatpush1.bf16.msra.mxu1 %v15874_v63  ;;  %v15961_v6 = vld [vmem:[%s17559_s13 + $0x1b00] ss:$16 sps:$4 sm:$0xff]   ;;  %v15964_v63 = vld [vmem:[%s17559_s13 + $0x1b08] ss:$16 sps:$4 sm:$0xff]  }
 0x3de   : > { %10503 = vmatprep.subr.bf16.mxu0 %v15879_v16  ;;  %11535 = vmatprep.subr.bf16.mxu1 %v15882_v17  ;;  %v15969_v16 = vld [vmem:[%s17559_s13 + $0x1b24] ss:$16 sps:$4 sm:$0xff]   ;;  %v15972_v17 = vld [vmem:[%s17559_s13 + $0x1b2c] ss:$16 sps:$4 sm:$0xff]  }
 0x3e1   : > { %10504 = vmatpush1.bf16.msra.mxu0 %v15877_v10  ;;  %11536 = vmatpush1.bf16.msra.mxu1 %v15880_v11  ;;  %v15967_v10 = vld [vmem:[%s17559_s13 + $0x1b20] ss:$16 sps:$4 sm:$0xff]   ;;  %v15970_v11 = vld [vmem:[%s17559_s13 + $0x1b28] ss:$16 sps:$4 sm:$0xff]  }
 0x3e2   : > { %10505 = vmatprep.subr.bf16.mxu0 %v15885_v20  ;;  %11537 = vmatprep.subr.bf16.mxu1 %v15888_v21  ;;  %v15975_v20 = vld [vmem:[%s17559_s13 + $0x1b44] ss:$16 sps:$4 sm:$0xff]   ;;  %v15978_v21 = vld [vmem:[%s17559_s13 + $0x1b4c] ss:$16 sps:$4 sm:$0xff]  }
 0x3e5   : > { %10506 = vmatpush1.bf16.msra.mxu0 %v15883_v14  ;;  %11538 = vmatpush1.bf16.msra.mxu1 %v15886_v15  ;;  %v15973_v14 = vld [vmem:[%s17559_s13 + $0x1b40] ss:$16 sps:$4 sm:$0xff]   ;;  %v15976_v15 = vld [vmem:[%s17559_s13 + $0x1b48] ss:$16 sps:$4 sm:$0xff]  }
 0x3e6   : > { %10507 = vmatprep.subr.bf16.mxu0 %v15891_v24  ;;  %11539 = vmatprep.subr.bf16.mxu1 %v15894_v25  ;;  %v15981_v24 = vld [vmem:[%s17559_s13 + $0x1b64] ss:$16 sps:$4 sm:$0xff]   ;;  %v15984_v25 = vld [vmem:[%s17559_s13 + $0x1b6c] ss:$16 sps:$4 sm:$0xff]  }
 0x3e9   : > { %10508 = vmatpush1.bf16.msra.mxu0 %v15889_v18  ;;  %11540 = vmatpush1.bf16.msra.mxu1 %v15892_v19  ;;  %v15979_v18 = vld [vmem:[%s17559_s13 + $0x1b60] ss:$16 sps:$4 sm:$0xff]   ;;  %v15982_v19 = vld [vmem:[%s17559_s13 + $0x1b68] ss:$16 sps:$4 sm:$0xff]  }
 0x3ea   : > { %10509 = vmatprep.subr.bf16.mxu0 %v15897_v28  ;;  %11541 = vmatprep.subr.bf16.mxu1 %v15900_v29  ;;  %v15987_v28 = vld [vmem:[%s17559_s13 + $0x1b84] ss:$16 sps:$4 sm:$0xff]   ;;  %v15990_v29 = vld [vmem:[%s17559_s13 + $0x1b8c] ss:$16 sps:$4 sm:$0xff]  }
 0x3ed   : > { %10510 = vmatpush1.bf16.msra.mxu0 %v15895_v22  ;;  %11542 = vmatpush1.bf16.msra.mxu1 %v15898_v23  ;;  %v15985_v22 = vld [vmem:[%s17559_s13 + $0x1b80] ss:$16 sps:$4 sm:$0xff]   ;;  %v15988_v23 = vld [vmem:[%s17559_s13 + $0x1b88] ss:$16 sps:$4 sm:$0xff]  }
 0x3ee   : > { %10511 = vmatprep.subr.bf16.mxu0 %v15903_v32  ;;  %11543 = vmatprep.subr.bf16.mxu1 %v15906_v33  ;;  %v15993_v32 = vld [vmem:[%s17559_s13 + $0x1ba4] ss:$16 sps:$4 sm:$0xff]   ;;  %v15996_v33 = vld [vmem:[%s17559_s13 + $0x1bac] ss:$16 sps:$4 sm:$0xff]  }
 0x3f1   : > { %10512 = vmatpush1.bf16.msra.mxu0 %v15901_v26  ;;  %11544 = vmatpush1.bf16.msra.mxu1 %v15904_v27  ;;  %v15991_v26 = vld [vmem:[%s17559_s13 + $0x1ba0] ss:$16 sps:$4 sm:$0xff]   ;;  %v15994_v27 = vld [vmem:[%s17559_s13 + $0x1ba8] ss:$16 sps:$4 sm:$0xff]  }
 0x3f2   : > { %10513 = vmatprep.subr.bf16.mxu0 %v15909_v36  ;;  %11545 = vmatprep.subr.bf16.mxu1 %v15912_v37  ;;  %v15999_v36 = vld [vmem:[%s17559_s13 + $0x1bc4] ss:$16 sps:$4 sm:$0xff]   ;;  %v16002_v37 = vld [vmem:[%s17559_s13 + $0x1bcc] ss:$16 sps:$4 sm:$0xff]  }
 0x3f5   : > { %10514 = vmatpush1.bf16.msra.mxu0 %v15907_v30  ;;  %11546 = vmatpush1.bf16.msra.mxu1 %v15910_v31  ;;  %v15997_v30 = vld [vmem:[%s17559_s13 + $0x1bc0] ss:$16 sps:$4 sm:$0xff]   ;;  %v16000_v31 = vld [vmem:[%s17559_s13 + $0x1bc8] ss:$16 sps:$4 sm:$0xff]  }
 0x3f6   : > { %10526 = vmatprep.subr.bf16.mxu0 %v15915_v40  ;;  %11558 = vmatprep.subr.bf16.mxu1 %v15918_v41  ;;  %v16005_v40 = vld [vmem:[%s17559_s13 + $0x1be4] ss:$16 sps:$4 sm:$0xff]   ;;  %v16008_v41 = vld [vmem:[%s17559_s13 + $0x1bec] ss:$16 sps:$4 sm:$0xff]  }
 0x3f8   : > { %10516 = vmatmul.mubr.bf16.vlgmr.msra.gmra.mrb[0].mxu0 %v12750_v34  ;;  %11548 = vmatmul.mubr.bf16.vlgmr.msra.gmra.mrb[0].mxu1 %v12750_v34  ;;  %v16003_v34 = vld [vmem:[%s17559_s13 + $0x1be0] ss:$16 sps:$4 sm:$0xff]  }
 0x3f9   : > { %10527 = vmatpush1.bf16.msra.mxu0 %v15913_v35  ;;  %11559 = vmatpush1.bf16.msra.mxu1 %v15916_v44  ;;  %v16006_v35 = vld [vmem:[%s17559_s13 + $0x1be8] ss:$16 sps:$4 sm:$0xff]   ;;  %v16011_v44 = vld [vmem:[%s17559_s13 + $0x1c04] ss:$16 sps:$4 sm:$0xff]  }
 0x3fa   : > { %10528 = vmatprep.subr.bf16.mxu0 %v15921_v45  ;;  %11560 = vmatprep.subr.bf16.mxu1 %v15924_v46  ;;  %v16014_v45 = vld [vmem:[%s17559_s13 + $0x1c0c] ss:$16 sps:$4 sm:$0xff]   ;;  %v12752_v46 = vcombine.low %v18529_v42, %v18532_v43  ;;  %v16015_v43 = vld [vmem:[%s17559_s13 + $0x1c20] ss:$16 sps:$4 sm:$0xff]  }
 0x3fb   : > { %10558 = vmatprep.mubr.bf16.mxu0 %v12753_v47  ;;  %11590 = vmatprep.mubr.bf16.mxu1 %v12753_v47  ;;  %v18605_v47 = vld [vmem:[%s17557_s18 + $0x70] sm:$0xff] }
 0x3fd   : > { %10529 = vmatpush1.bf16.msra.mxu0 %v15919_v38  ;;  %11561 = vmatpush1.bf16.msra.mxu1 %v15922_v39  ;;  %v18608_v38 = vld [vmem:[%s17557_s18 + $0x130] sm:$0xff] }
 0x3fe   : > { %10530 = vmatprep.subr.bf16.mxu0 %v15927_v48  ;;  %11562 = vmatprep.subr.bf16.mxu1 %v15930_v49  ;;  %v16009_v39 = vld [vmem:[%s17559_s13 + $0x1c00] ss:$16 sps:$4 sm:$0xff]   ;;  %v16012_v48 = vld [vmem:[%s17559_s13 + $0x1c08] ss:$16 sps:$4 sm:$0xff]   ;;  %v16017_v49 = vld [vmem:[%s17559_s13 + $0x1c24] ss:$16 sps:$4 sm:$0xff]   ;;  %v12755_v42 = vcombine.high %v18605_v47, %v18608_v38 }
 0x401   : > { %10531 = vmatpush1.bf16.msra.mxu0 %v15925_v50  ;;  %11563 = vmatpush1.bf16.msra.mxu1 %v15928_v51  ;;  %v16020_v50 = vld [vmem:[%s17559_s13 + $0x1c2c] ss:$16 sps:$4 sm:$0xff]   ;;  %v16018_v51 = vld [vmem:[%s17559_s13 + $0x1c28] ss:$16 sps:$4 sm:$0xff]  }
 0x402   : > { %10532 = vmatprep.subr.bf16.mxu0 %v15933_v52  ;;  %11564 = vmatprep.subr.bf16.mxu1 %v15936_v53  ;;  %v16023_v52 = vld [vmem:[%s17559_s13 + $0x1c44] ss:$16 sps:$4 sm:$0xff]   ;;  %v16026_v53 = vld [vmem:[%s17559_s13 + $0x1c4c] ss:$16 sps:$4 sm:$0xff]  }
 0x405   : > { %10533 = vmatpush1.bf16.msra.mxu0 %v15931_v54  ;;  %11565 = vmatpush1.bf16.msra.mxu1 %v15934_v55  ;;  %v16021_v54 = vld [vmem:[%s17559_s13 + $0x1c40] ss:$16 sps:$4 sm:$0xff]   ;;  %v16024_v55 = vld [vmem:[%s17559_s13 + $0x1c48] ss:$16 sps:$4 sm:$0xff]  }
 0x406   : > { %10534 = vmatprep.subr.bf16.mxu0 %v15939_v56  ;;  %11566 = vmatprep.subr.bf16.mxu1 %v15942_v57  ;;  %v16029_v56 = vld [vmem:[%s17559_s13 + $0x1c64] ss:$16 sps:$4 sm:$0xff]   ;;  %v16032_v57 = vld [vmem:[%s17559_s13 + $0x1c6c] ss:$16 sps:$4 sm:$0xff]  }
 0x409   : > { %10535 = vmatpush1.bf16.msra.mxu0 %v15937_v58  ;;  %11567 = vmatpush1.bf16.msra.mxu1 %v15940_v59  ;;  %v16027_v58 = vld [vmem:[%s17559_s13 + $0x1c60] ss:$16 sps:$4 sm:$0xff]   ;;  %v16030_v59 = vld [vmem:[%s17559_s13 + $0x1c68] ss:$16 sps:$4 sm:$0xff]  }
 0x40a   : > { %10536 = vmatprep.subr.bf16.mxu0 %v15945_v60  ;;  %11568 = vmatprep.subr.bf16.mxu1 %v15948_v61  ;;  %v16035_v60 = vld [vmem:[%s17559_s13 + $0x1c84] ss:$16 sps:$4 sm:$0xff]   ;;  %v16038_v61 = vld [vmem:[%s17559_s13 + $0x1c8c] ss:$16 sps:$4 sm:$0xff]  }
 0x40d   : > { %10537 = vmatpush1.bf16.msra.mxu0 %v15943_v62  ;;  %11569 = vmatpush1.bf16.msra.mxu1 %v15946_v1  ;;  %v16033_v62 = vld [vmem:[%s17559_s13 + $0x1c80] ss:$16 sps:$4 sm:$0xff]   ;;  %v16036_v1 = vld [vmem:[%s17559_s13 + $0x1c88] ss:$16 sps:$4 sm:$0xff]  }
 0x40e   : > { %10538 = vmatprep.subr.bf16.mxu0 %v15951_v2  ;;  %11570 = vmatprep.subr.bf16.mxu1 %v15954_v5  ;;  %v16041_v2 = vld [vmem:[%s17559_s13 + $0x1ca4] ss:$16 sps:$4 sm:$0xff]   ;;  %v16044_v5 = vld [vmem:[%s17559_s13 + $0x1cac] ss:$16 sps:$4 sm:$0xff]  }
 0x411   : > { %10539 = vmatpush1.bf16.msra.mxu0 %v15949_v7  ;;  %11571 = vmatpush1.bf16.msra.mxu1 %v15952_v0  ;;  %v16039_v7 = vld [vmem:[%s17559_s13 + $0x1ca0] ss:$16 sps:$4 sm:$0xff]   ;;  %v16042_v0 = vld [vmem:[%s17559_s13 + $0x1ca8] ss:$16 sps:$4 sm:$0xff]  }
 0x412   : > { %10540 = vmatprep.subr.bf16.mxu0 %v15957_v8  ;;  %11572 = vmatprep.subr.bf16.mxu1 %v15960_v9  ;;  %v16047_v8 = vld [vmem:[%s17559_s13 + $0x1cc4] ss:$16 sps:$4 sm:$0xff]   ;;  %v16050_v9 = vld [vmem:[%s17559_s13 + $0x1ccc] ss:$16 sps:$4 sm:$0xff]  }
 0x415   : > { %10541 = vmatpush1.bf16.msra.mxu0 %v15955_v3  ;;  %11573 = vmatpush1.bf16.msra.mxu1 %v15958_v4  ;;  %v16045_v3 = vld [vmem:[%s17559_s13 + $0x1cc0] ss:$16 sps:$4 sm:$0xff]   ;;  %v16048_v4 = vld [vmem:[%s17559_s13 + $0x1cc8] ss:$16 sps:$4 sm:$0xff]  }
 0x416   : > { %10542 = vmatprep.subr.bf16.mxu0 %v15963_v12  ;;  %11574 = vmatprep.subr.bf16.mxu1 %v15966_v13  ;;  %v16053_v12 = vld [vmem:[%s17559_s13 + $0x1ce4] ss:$16 sps:$4 sm:$0xff]   ;;  %v16056_v13 = vld [vmem:[%s17559_s13 + $0x1cec] ss:$16 sps:$4 sm:$0xff]  }
 0x419   : > { %10543 = vmatpush1.bf16.msra.mxu0 %v15961_v6  ;;  %11575 = vmatpush1.bf16.msra.mxu1 %v15964_v63  ;;  %v16051_v6 = vld [vmem:[%s17559_s13 + $0x1ce0] ss:$16 sps:$4 sm:$0xff]   ;;  %v16054_v63 = vld [vmem:[%s17559_s13 + $0x1ce8] ss:$16 sps:$4 sm:$0xff]  }
 0x41a   : > { %10544 = vmatprep.subr.bf16.mxu0 %v15969_v16  ;;  %11576 = vmatprep.subr.bf16.mxu1 %v15972_v17  ;;  %v16059_v16 = vld [vmem:[%s17559_s13 + $0x1d04] ss:$16 sps:$4 sm:$0xff]   ;;  %v16062_v17 = vld [vmem:[%s17559_s13 + $0x1d0c] ss:$16 sps:$4 sm:$0xff]  }
 0x41d   : > { %10545 = vmatpush1.bf16.msra.mxu0 %v15967_v10  ;;  %11577 = vmatpush1.bf16.msra.mxu1 %v15970_v11  ;;  %v16057_v10 = vld [vmem:[%s17559_s13 + $0x1d00] ss:$16 sps:$4 sm:$0xff]   ;;  %v16060_v11 = vld [vmem:[%s17559_s13 + $0x1d08] ss:$16 sps:$4 sm:$0xff]  }
 0x41e   : > { %10546 = vmatprep.subr.bf16.mxu0 %v15975_v20  ;;  %11578 = vmatprep.subr.bf16.mxu1 %v15978_v21  ;;  %v16065_v20 = vld [vmem:[%s17559_s13 + $0x1d24] ss:$16 sps:$4 sm:$0xff]   ;;  %v16068_v21 = vld [vmem:[%s17559_s13 + $0x1d2c] ss:$16 sps:$4 sm:$0xff]  }
 0x421   : > { %10547 = vmatpush1.bf16.msra.mxu0 %v15973_v14  ;;  %11579 = vmatpush1.bf16.msra.mxu1 %v15976_v15  ;;  %v16063_v14 = vld [vmem:[%s17559_s13 + $0x1d20] ss:$16 sps:$4 sm:$0xff]   ;;  %v16066_v15 = vld [vmem:[%s17559_s13 + $0x1d28] ss:$16 sps:$4 sm:$0xff]  }
 0x422   : > { %10548 = vmatprep.subr.bf16.mxu0 %v15981_v24  ;;  %11580 = vmatprep.subr.bf16.mxu1 %v15984_v25  ;;  %v16071_v24 = vld [vmem:[%s17559_s13 + $0x1d44] ss:$16 sps:$4 sm:$0xff]   ;;  %v16074_v25 = vld [vmem:[%s17559_s13 + $0x1d4c] ss:$16 sps:$4 sm:$0xff]  }
 0x425   : > { %10549 = vmatpush1.bf16.msra.mxu0 %v15979_v18  ;;  %11581 = vmatpush1.bf16.msra.mxu1 %v15982_v19  ;;  %v16069_v18 = vld [vmem:[%s17559_s13 + $0x1d40] ss:$16 sps:$4 sm:$0xff]   ;;  %v16072_v19 = vld [vmem:[%s17559_s13 + $0x1d48] ss:$16 sps:$4 sm:$0xff]  }
 0x426   : > { %10550 = vmatprep.subr.bf16.mxu0 %v15987_v28  ;;  %11582 = vmatprep.subr.bf16.mxu1 %v15990_v29  ;;  %v16077_v28 = vld [vmem:[%s17559_s13 + $0x1d64] ss:$16 sps:$4 sm:$0xff]   ;;  %v16080_v29 = vld [vmem:[%s17559_s13 + $0x1d6c] ss:$16 sps:$4 sm:$0xff]  }
 0x429   : > { %10551 = vmatpush1.bf16.msra.mxu0 %v15985_v22  ;;  %11583 = vmatpush1.bf16.msra.mxu1 %v15988_v23  ;;  %v16075_v22 = vld [vmem:[%s17559_s13 + $0x1d60] ss:$16 sps:$4 sm:$0xff]   ;;  %v16078_v23 = vld [vmem:[%s17559_s13 + $0x1d68] ss:$16 sps:$4 sm:$0xff]  }
 0x42a   : > { %10552 = vmatprep.subr.bf16.mxu0 %v15993_v32  ;;  %11584 = vmatprep.subr.bf16.mxu1 %v15996_v33  ;;  %v16083_v32 = vld [vmem:[%s17559_s13 + $0x1d84] ss:$16 sps:$4 sm:$0xff]   ;;  %v16086_v33 = vld [vmem:[%s17559_s13 + $0x1d8c] ss:$16 sps:$4 sm:$0xff]  }
 0x42d   : > { %10553 = vmatpush1.bf16.msra.mxu0 %v15991_v26  ;;  %11585 = vmatpush1.bf16.msra.mxu1 %v15994_v27  ;;  %v16081_v26 = vld [vmem:[%s17559_s13 + $0x1d80] ss:$16 sps:$4 sm:$0xff]   ;;  %v16084_v27 = vld [vmem:[%s17559_s13 + $0x1d88] ss:$16 sps:$4 sm:$0xff]  }
 0x42e   : > { %10554 = vmatprep.subr.bf16.mxu0 %v15999_v36  ;;  %11586 = vmatprep.subr.bf16.mxu1 %v16002_v37  ;;  %v16089_v36 = vld [vmem:[%s17559_s13 + $0x1da4] ss:$16 sps:$4 sm:$0xff]   ;;  %v16092_v37 = vld [vmem:[%s17559_s13 + $0x1dac] ss:$16 sps:$4 sm:$0xff]  }
 0x431   : > { %10555 = vmatpush1.bf16.msra.mxu0 %v15997_v30  ;;  %11587 = vmatpush1.bf16.msra.mxu1 %v16000_v31  ;;  %v16087_v30 = vld [vmem:[%s17559_s13 + $0x1da0] ss:$16 sps:$4 sm:$0xff]   ;;  %v16090_v31 = vld [vmem:[%s17559_s13 + $0x1da8] ss:$16 sps:$4 sm:$0xff]  }
 0x432   : > { %10556 = vmatprep.subr.bf16.mxu0 %v16005_v40  ;;  %11588 = vmatprep.subr.bf16.mxu1 %v16008_v41  ;;  %v16095_v40 = vld [vmem:[%s17559_s13 + $0x1dc4] ss:$16 sps:$4 sm:$0xff]   ;;  %v16098_v41 = vld [vmem:[%s17559_s13 + $0x1dcc] ss:$16 sps:$4 sm:$0xff]  }
 0x435   : > { %10557 = vmatpush1.bf16.msra.mxu0 %v16003_v34  ;;  %11589 = vmatpush1.bf16.msra.mxu1 %v16006_v35  ;;  %v16093_v34 = vld [vmem:[%s17559_s13 + $0x1dc0] ss:$16 sps:$4 sm:$0xff]   ;;  %v16096_v35 = vld [vmem:[%s17559_s13 + $0x1dc8] ss:$16 sps:$4 sm:$0xff]  }
 0x436   : > { %10569 = vmatprep.subr.bf16.mxu0 %v16011_v44  ;;  %11601 = vmatprep.subr.bf16.mxu1 %v16014_v45  ;;  %v16101_v44 = vld [vmem:[%s17559_s13 + $0x1de4] ss:$16 sps:$4 sm:$0xff]   ;;  %v16104_v45 = vld [vmem:[%s17559_s13 + $0x1dec] ss:$16 sps:$4 sm:$0xff]  }
 0x438   : > { %10559 = vmatmul.mubr.bf16.vlgmr.msra.gmra.mrb[0].mxu0 %v12752_v46  ;;  %11591 = vmatmul.mubr.bf16.vlgmr.msra.gmra.mrb[0].mxu1 %v12752_v46  ;;  %v16099_v46 = vld [vmem:[%s17559_s13 + $0x1de0] ss:$16 sps:$4 sm:$0xff]  }
 0x439   : > { %10570 = vmatpush1.bf16.msra.mxu0 %v16009_v39  ;;  %11602 = vmatpush1.bf16.msra.mxu1 %v16012_v48  ;;  %v16102_v39 = vld [vmem:[%s17559_s13 + $0x1de8] ss:$16 sps:$4 sm:$0xff]   ;;  %v16107_v48 = vld [vmem:[%s17559_s13 + $0x1e04] ss:$16 sps:$4 sm:$0xff]  }
 0x43a   : > { %10571 = vmatprep.subr.bf16.mxu0 %v16017_v49  ;;  %11603 = vmatprep.subr.bf16.mxu1 %v16020_v50  ;;  %v16110_v49 = vld [vmem:[%s17559_s13 + $0x1e0c] ss:$16 sps:$4 sm:$0xff]   ;;  %v12754_v50 = vcombine.low %v18605_v47, %v18608_v38  ;;  %v16111_v38 = vld [vmem:[%s17559_s13 + $0x1e20] ss:$16 sps:$4 sm:$0xff]  }
 0x43b   : > { %10601 = vmatprep.mubr.bf16.mxu0 %v12755_v42  ;;  %11633 = vmatprep.mubr.bf16.mxu1 %v12755_v42  ;;  %v18679_v42 = vld [vmem:[%s17557_s18 + $0x78] sm:$0xff] }
 0x43d   : > { %10572 = vmatpush1.bf16.msra.mxu0 %v16015_v43  ;;  %11604 = vmatpush1.bf16.msra.mxu1 %v16018_v51  ;;  %v18682_v43 = vld [vmem:[%s17557_s18 + $0x138] sm:$0xff]  ;;  %v16105_v51 = vld [vmem:[%s17559_s13 + $0x1e00] ss:$16 sps:$4 sm:$0xff]  }
 0x43e   : > { %10573 = vmatprep.subr.bf16.mxu0 %v16023_v52  ;;  %11605 = vmatprep.subr.bf16.mxu1 %v16026_v53  ;;  %v16108_v52 = vld [vmem:[%s17559_s13 + $0x1e08] ss:$16 sps:$4 sm:$0xff]   ;;  %v16113_v53 = vld [vmem:[%s17559_s13 + $0x1e24] ss:$16 sps:$4 sm:$0xff]   ;;  %v12757_v47 = vcombine.high %v18679_v42, %v18682_v43 }
 0x441   : > { %10574 = vmatpush1.bf16.msra.mxu0 %v16021_v54  ;;  %11606 = vmatpush1.bf16.msra.mxu1 %v16024_v55  ;;  %v16116_v54 = vld [vmem:[%s17559_s13 + $0x1e2c] ss:$16 sps:$4 sm:$0xff]   ;;  %v16114_v55 = vld [vmem:[%s17559_s13 + $0x1e28] ss:$16 sps:$4 sm:$0xff]  }
 0x442   : > { %10575 = vmatprep.subr.bf16.mxu0 %v16029_v56  ;;  %11607 = vmatprep.subr.bf16.mxu1 %v16032_v57  ;;  %v16119_v56 = vld [vmem:[%s17559_s13 + $0x1e44] ss:$16 sps:$4 sm:$0xff]   ;;  %v16122_v57 = vld [vmem:[%s17559_s13 + $0x1e4c] ss:$16 sps:$4 sm:$0xff]  }
 0x445   : > { %10576 = vmatpush1.bf16.msra.mxu0 %v16027_v58  ;;  %11608 = vmatpush1.bf16.msra.mxu1 %v16030_v59  ;;  %v16117_v58 = vld [vmem:[%s17559_s13 + $0x1e40] ss:$16 sps:$4 sm:$0xff]   ;;  %v16120_v59 = vld [vmem:[%s17559_s13 + $0x1e48] ss:$16 sps:$4 sm:$0xff]  }
 0x446   : > { %10577 = vmatprep.subr.bf16.mxu0 %v16035_v60  ;;  %11609 = vmatprep.subr.bf16.mxu1 %v16038_v61  ;;  %v16125_v60 = vld [vmem:[%s17559_s13 + $0x1e64] ss:$16 sps:$4 sm:$0xff]   ;;  %v16128_v61 = vld [vmem:[%s17559_s13 + $0x1e6c] ss:$16 sps:$4 sm:$0xff]  }
 0x449   : > { %10578 = vmatpush1.bf16.msra.mxu0 %v16033_v62  ;;  %11610 = vmatpush1.bf16.msra.mxu1 %v16036_v1  ;;  %v16123_v62 = vld [vmem:[%s17559_s13 + $0x1e60] ss:$16 sps:$4 sm:$0xff]   ;;  %v16126_v1 = vld [vmem:[%s17559_s13 + $0x1e68] ss:$16 sps:$4 sm:$0xff]  }
 0x44a   : > { %10579 = vmatprep.subr.bf16.mxu0 %v16041_v2  ;;  %11611 = vmatprep.subr.bf16.mxu1 %v16044_v5  ;;  %v16131_v2 = vld [vmem:[%s17559_s13 + $0x1e84] ss:$16 sps:$4 sm:$0xff]   ;;  %v16134_v5 = vld [vmem:[%s17559_s13 + $0x1e8c] ss:$16 sps:$4 sm:$0xff]  }
 0x44d   : > { %10580 = vmatpush1.bf16.msra.mxu0 %v16039_v7  ;;  %11612 = vmatpush1.bf16.msra.mxu1 %v16042_v0  ;;  %v16129_v7 = vld [vmem:[%s17559_s13 + $0x1e80] ss:$16 sps:$4 sm:$0xff]   ;;  %v16132_v0 = vld [vmem:[%s17559_s13 + $0x1e88] ss:$16 sps:$4 sm:$0xff]  }
 0x44e   : > { %10581 = vmatprep.subr.bf16.mxu0 %v16047_v8  ;;  %11613 = vmatprep.subr.bf16.mxu1 %v16050_v9  ;;  %v16137_v8 = vld [vmem:[%s17559_s13 + $0x1ea4] ss:$16 sps:$4 sm:$0xff]   ;;  %v16140_v9 = vld [vmem:[%s17559_s13 + $0x1eac] ss:$16 sps:$4 sm:$0xff]  }
 0x451   : > { %10582 = vmatpush1.bf16.msra.mxu0 %v16045_v3  ;;  %11614 = vmatpush1.bf16.msra.mxu1 %v16048_v4  ;;  %v16135_v3 = vld [vmem:[%s17559_s13 + $0x1ea0] ss:$16 sps:$4 sm:$0xff]   ;;  %v16138_v4 = vld [vmem:[%s17559_s13 + $0x1ea8] ss:$16 sps:$4 sm:$0xff]  }
 0x452   : > { %10583 = vmatprep.subr.bf16.mxu0 %v16053_v12  ;;  %11615 = vmatprep.subr.bf16.mxu1 %v16056_v13  ;;  %v16143_v12 = vld [vmem:[%s17559_s13 + $0x1ec4] ss:$16 sps:$4 sm:$0xff]   ;;  %v16146_v13 = vld [vmem:[%s17559_s13 + $0x1ecc] ss:$16 sps:$4 sm:$0xff]  }
 0x455   : > { %10584 = vmatpush1.bf16.msra.mxu0 %v16051_v6  ;;  %11616 = vmatpush1.bf16.msra.mxu1 %v16054_v63  ;;  %v16141_v6 = vld [vmem:[%s17559_s13 + $0x1ec0] ss:$16 sps:$4 sm:$0xff]   ;;  %v16144_v63 = vld [vmem:[%s17559_s13 + $0x1ec8] ss:$16 sps:$4 sm:$0xff]  }
 0x456   : > { %10585 = vmatprep.subr.bf16.mxu0 %v16059_v16  ;;  %11617 = vmatprep.subr.bf16.mxu1 %v16062_v17  ;;  %v16149_v16 = vld [vmem:[%s17559_s13 + $0x1ee4] ss:$16 sps:$4 sm:$0xff]   ;;  %v16152_v17 = vld [vmem:[%s17559_s13 + $0x1eec] ss:$16 sps:$4 sm:$0xff]  }
 0x459   : > { %10586 = vmatpush1.bf16.msra.mxu0 %v16057_v10  ;;  %11618 = vmatpush1.bf16.msra.mxu1 %v16060_v11  ;;  %v16147_v10 = vld [vmem:[%s17559_s13 + $0x1ee0] ss:$16 sps:$4 sm:$0xff]   ;;  %v16150_v11 = vld [vmem:[%s17559_s13 + $0x1ee8] ss:$16 sps:$4 sm:$0xff]  }
 0x45a   : > { %10587 = vmatprep.subr.bf16.mxu0 %v16065_v20  ;;  %11619 = vmatprep.subr.bf16.mxu1 %v16068_v21  ;;  %v16155_v20 = vld [vmem:[%s17559_s13 + $0x1f04] ss:$16 sps:$4 sm:$0xff]   ;;  %v16158_v21 = vld [vmem:[%s17559_s13 + $0x1f0c] ss:$16 sps:$4 sm:$0xff]  }
 0x45d   : > { %10588 = vmatpush1.bf16.msra.mxu0 %v16063_v14  ;;  %11620 = vmatpush1.bf16.msra.mxu1 %v16066_v15  ;;  %v16153_v14 = vld [vmem:[%s17559_s13 + $0x1f00] ss:$16 sps:$4 sm:$0xff]   ;;  %v16156_v15 = vld [vmem:[%s17559_s13 + $0x1f08] ss:$16 sps:$4 sm:$0xff]  }
 0x45e   : > { %10589 = vmatprep.subr.bf16.mxu0 %v16071_v24  ;;  %11621 = vmatprep.subr.bf16.mxu1 %v16074_v25  ;;  %v16161_v24 = vld [vmem:[%s17559_s13 + $0x1f24] ss:$16 sps:$4 sm:$0xff]   ;;  %v16164_v25 = vld [vmem:[%s17559_s13 + $0x1f2c] ss:$16 sps:$4 sm:$0xff]  }
 0x461   : > { %10590 = vmatpush1.bf16.msra.mxu0 %v16069_v18  ;;  %11622 = vmatpush1.bf16.msra.mxu1 %v16072_v19  ;;  %v16159_v18 = vld [vmem:[%s17559_s13 + $0x1f20] ss:$16 sps:$4 sm:$0xff]   ;;  %v16162_v19 = vld [vmem:[%s17559_s13 + $0x1f28] ss:$16 sps:$4 sm:$0xff]  }
 0x462   : > { %10591 = vmatprep.subr.bf16.mxu0 %v16077_v28  ;;  %11623 = vmatprep.subr.bf16.mxu1 %v16080_v29  ;;  %v16167_v28 = vld [vmem:[%s17559_s13 + $0x1f44] ss:$16 sps:$4 sm:$0xff]   ;;  %v16170_v29 = vld [vmem:[%s17559_s13 + $0x1f4c] ss:$16 sps:$4 sm:$0xff]  }
 0x465   : > { %10592 = vmatpush1.bf16.msra.mxu0 %v16075_v22  ;;  %11624 = vmatpush1.bf16.msra.mxu1 %v16078_v23  ;;  %v16165_v22 = vld [vmem:[%s17559_s13 + $0x1f40] ss:$16 sps:$4 sm:$0xff]   ;;  %v16168_v23 = vld [vmem:[%s17559_s13 + $0x1f48] ss:$16 sps:$4 sm:$0xff]  }
 0x466   : > { %10593 = vmatprep.subr.bf16.mxu0 %v16083_v32  ;;  %11625 = vmatprep.subr.bf16.mxu1 %v16086_v33  ;;  %v16173_v32 = vld [vmem:[%s17559_s13 + $0x1f64] ss:$16 sps:$4 sm:$0xff]   ;;  %v16176_v33 = vld [vmem:[%s17559_s13 + $0x1f6c] ss:$16 sps:$4 sm:$0xff]  }
 0x469   : > { %10594 = vmatpush1.bf16.msra.mxu0 %v16081_v26  ;;  %11626 = vmatpush1.bf16.msra.mxu1 %v16084_v27  ;;  %v16171_v26 = vld [vmem:[%s17559_s13 + $0x1f60] ss:$16 sps:$4 sm:$0xff]   ;;  %v16174_v27 = vld [vmem:[%s17559_s13 + $0x1f68] ss:$16 sps:$4 sm:$0xff]  }
 0x46a   : > { %10595 = vmatprep.subr.bf16.mxu0 %v16089_v36  ;;  %11627 = vmatprep.subr.bf16.mxu1 %v16092_v37  ;;  %v16179_v36 = vld [vmem:[%s17559_s13 + $0x1f84] ss:$16 sps:$4 sm:$0xff]   ;;  %v16182_v37 = vld [vmem:[%s17559_s13 + $0x1f8c] ss:$16 sps:$4 sm:$0xff]  }
 0x46d   : > { %10596 = vmatpush1.bf16.msra.mxu0 %v16087_v30  ;;  %11628 = vmatpush1.bf16.msra.mxu1 %v16090_v31  ;;  %v16177_v30 = vld [vmem:[%s17559_s13 + $0x1f80] ss:$16 sps:$4 sm:$0xff]   ;;  %v16180_v31 = vld [vmem:[%s17559_s13 + $0x1f88] ss:$16 sps:$4 sm:$0xff]  }
 0x46e   : > { %10597 = vmatprep.subr.bf16.mxu0 %v16095_v40  ;;  %11629 = vmatprep.subr.bf16.mxu1 %v16098_v41  ;;  %v16185_v40 = vld [vmem:[%s17559_s13 + $0x1fa4] ss:$16 sps:$4 sm:$0xff]   ;;  %v16188_v41 = vld [vmem:[%s17559_s13 + $0x1fac] ss:$16 sps:$4 sm:$0xff]  }
 0x471   : > { %10598 = vmatpush1.bf16.msra.mxu0 %v16093_v34  ;;  %11630 = vmatpush1.bf16.msra.mxu1 %v16096_v35  ;;  %v16183_v34 = vld [vmem:[%s17559_s13 + $0x1fa0] ss:$16 sps:$4 sm:$0xff]   ;;  %v16186_v35 = vld [vmem:[%s17559_s13 + $0x1fa8] ss:$16 sps:$4 sm:$0xff]  }
 0x472   : > { %10599 = vmatprep.subr.bf16.mxu0 %v16101_v44  ;;  %11631 = vmatprep.subr.bf16.mxu1 %v16104_v45  ;;  %v16191_v44 = vld [vmem:[%s17559_s13 + $0x1fc4] ss:$16 sps:$4 sm:$0xff]   ;;  %v16194_v45 = vld [vmem:[%s17559_s13 + $0x1fcc] ss:$16 sps:$4 sm:$0xff]  }
 0x475   : > { %10600 = vmatpush1.bf16.msra.mxu0 %v16099_v46  ;;  %11632 = vmatpush1.bf16.msra.mxu1 %v16102_v39  ;;  %v16189_v46 = vld [vmem:[%s17559_s13 + $0x1fc0] ss:$16 sps:$4 sm:$0xff]   ;;  %v16192_v39 = vld [vmem:[%s17559_s13 + $0x1fc8] ss:$16 sps:$4 sm:$0xff]  }
 0x476   : > { %10612 = vmatprep.subr.bf16.mxu0 %v16107_v48  ;;  %11644 = vmatprep.subr.bf16.mxu1 %v16110_v49  ;;  %v16197_v48 = vld [vmem:[%s17559_s13 + $0x1fe4] ss:$16 sps:$4 sm:$0xff]   ;;  %v16200_v49 = vld [vmem:[%s17559_s13 + $0x1fec] ss:$16 sps:$4 sm:$0xff]  }
 0x478   : > { %10602 = vmatmul.mubr.bf16.vlgmr.msra.gmra.mrb[0].mxu0 %v12754_v50  ;;  %11634 = vmatmul.mubr.bf16.vlgmr.msra.gmra.mrb[0].mxu1 %v12754_v50  ;;  %v16195_v50 = vld [vmem:[%s17559_s13 + $0x1fe0] ss:$16 sps:$4 sm:$0xff]  }
 0x479   : > { %10613 = vmatpush1.bf16.msra.mxu0 %v16105_v51  ;;  %11645 = vmatpush1.bf16.msra.mxu1 %v16108_v52  ;;  %v16198_v51 = vld [vmem:[%s17559_s13 + $0x1fe8] ss:$16 sps:$4 sm:$0xff]   ;;  %v16203_v52 = vld [vmem:[%s17559_s13 + $0x2004] ss:$16 sps:$4 sm:$0xff]  }
 0x47a   : > { %10614 = vmatprep.subr.bf16.mxu0 %v16113_v53  ;;  %11646 = vmatprep.subr.bf16.mxu1 %v16116_v54  ;;  %v16206_v53 = vld [vmem:[%s17559_s13 + $0x200c] ss:$16 sps:$4 sm:$0xff]   ;;  %v12756_v54 = vcombine.low %v18679_v42, %v18682_v43  ;;  %v16207_v43 = vld [vmem:[%s17559_s13 + $0x2020] ss:$16 sps:$4 sm:$0xff]  }
 0x47b   : > { %10644 = vmatprep.mubr.bf16.mxu0 %v12757_v47  ;;  %11676 = vmatprep.mubr.bf16.mxu1 %v12757_v47  ;;  %v18753_v47 = vld [vmem:[%s17557_s18 + $0x80] sm:$0xff] }
 0x47d   : > { %10615 = vmatpush1.bf16.msra.mxu0 %v16111_v38  ;;  %11647 = vmatpush1.bf16.msra.mxu1 %v16114_v55  ;;  %v18756_v38 = vld [vmem:[%s17557_s18 + $0x140] sm:$0xff] }
 0x47e   : > { %10616 = vmatprep.subr.bf16.mxu0 %v16119_v56  ;;  %11648 = vmatprep.subr.bf16.mxu1 %v16122_v57  ;;  %v16201_v55 = vld [vmem:[%s17559_s13 + $0x2000] ss:$16 sps:$4 sm:$0xff]   ;;  %v16204_v56 = vld [vmem:[%s17559_s13 + $0x2008] ss:$16 sps:$4 sm:$0xff]   ;;  %v16209_v57 = vld [vmem:[%s17559_s13 + $0x2024] ss:$16 sps:$4 sm:$0xff]   ;;  %v12759_v42 = vcombine.high %v18753_v47, %v18756_v38 }
 0x481   : > { %10617 = vmatpush1.bf16.msra.mxu0 %v16117_v58  ;;  %11649 = vmatpush1.bf16.msra.mxu1 %v16120_v59  ;;  %v16212_v58 = vld [vmem:[%s17559_s13 + $0x202c] ss:$16 sps:$4 sm:$0xff]   ;;  %v16210_v59 = vld [vmem:[%s17559_s13 + $0x2028] ss:$16 sps:$4 sm:$0xff]  }
 0x482   : > { %10618 = vmatprep.subr.bf16.mxu0 %v16125_v60  ;;  %11650 = vmatprep.subr.bf16.mxu1 %v16128_v61  ;;  %v16215_v60 = vld [vmem:[%s17559_s13 + $0x2044] ss:$16 sps:$4 sm:$0xff]   ;;  %v16218_v61 = vld [vmem:[%s17559_s13 + $0x204c] ss:$16 sps:$4 sm:$0xff]  }
 0x485   : > { %10619 = vmatpush1.bf16.msra.mxu0 %v16123_v62  ;;  %11651 = vmatpush1.bf16.msra.mxu1 %v16126_v1  ;;  %v16213_v62 = vld [vmem:[%s17559_s13 + $0x2040] ss:$16 sps:$4 sm:$0xff]   ;;  %v16216_v1 = vld [vmem:[%s17559_s13 + $0x2048] ss:$16 sps:$4 sm:$0xff]  }
 0x486   : > { %10620 = vmatprep.subr.bf16.mxu0 %v16131_v2  ;;  %11652 = vmatprep.subr.bf16.mxu1 %v16134_v5  ;;  %v16221_v2 = vld [vmem:[%s17559_s13 + $0x2064] ss:$16 sps:$4 sm:$0xff]   ;;  %v16224_v5 = vld [vmem:[%s17559_s13 + $0x206c] ss:$16 sps:$4 sm:$0xff]  }
 0x489   : > { %10621 = vmatpush1.bf16.msra.mxu0 %v16129_v7  ;;  %11653 = vmatpush1.bf16.msra.mxu1 %v16132_v0  ;;  %v16219_v7 = vld [vmem:[%s17559_s13 + $0x2060] ss:$16 sps:$4 sm:$0xff]   ;;  %v16222_v0 = vld [vmem:[%s17559_s13 + $0x2068] ss:$16 sps:$4 sm:$0xff]  }
 0x48a   : > { %10622 = vmatprep.subr.bf16.mxu0 %v16137_v8  ;;  %11654 = vmatprep.subr.bf16.mxu1 %v16140_v9  ;;  %v16227_v8 = vld [vmem:[%s17559_s13 + $0x2084] ss:$16 sps:$4 sm:$0xff]   ;;  %v16230_v9 = vld [vmem:[%s17559_s13 + $0x208c] ss:$16 sps:$4 sm:$0xff]  }
 0x48d   : > { %10623 = vmatpush1.bf16.msra.mxu0 %v16135_v3  ;;  %11655 = vmatpush1.bf16.msra.mxu1 %v16138_v4  ;;  %v16225_v3 = vld [vmem:[%s17559_s13 + $0x2080] ss:$16 sps:$4 sm:$0xff]   ;;  %v16228_v4 = vld [vmem:[%s17559_s13 + $0x2088] ss:$16 sps:$4 sm:$0xff]  }
 0x48e   : > { %10624 = vmatprep.subr.bf16.mxu0 %v16143_v12  ;;  %11656 = vmatprep.subr.bf16.mxu1 %v16146_v13  ;;  %v16233_v12 = vld [vmem:[%s17559_s13 + $0x20a4] ss:$16 sps:$4 sm:$0xff]   ;;  %v16236_v13 = vld [vmem:[%s17559_s13 + $0x20ac] ss:$16 sps:$4 sm:$0xff]  }
 0x491   : > { %10625 = vmatpush1.bf16.msra.mxu0 %v16141_v6  ;;  %11657 = vmatpush1.bf16.msra.mxu1 %v16144_v63  ;;  %v16231_v6 = vld [vmem:[%s17559_s13 + $0x20a0] ss:$16 sps:$4 sm:$0xff]   ;;  %v16234_v63 = vld [vmem:[%s17559_s13 + $0x20a8] ss:$16 sps:$4 sm:$0xff]  }
 0x492   : > { %10626 = vmatprep.subr.bf16.mxu0 %v16149_v16  ;;  %11658 = vmatprep.subr.bf16.mxu1 %v16152_v17  ;;  %v16239_v16 = vld [vmem:[%s17559_s13 + $0x20c4] ss:$16 sps:$4 sm:$0xff]   ;;  %v16242_v17 = vld [vmem:[%s17559_s13 + $0x20cc] ss:$16 sps:$4 sm:$0xff]  }
 0x495   : > { %10627 = vmatpush1.bf16.msra.mxu0 %v16147_v10  ;;  %11659 = vmatpush1.bf16.msra.mxu1 %v16150_v11  ;;  %v16237_v10 = vld [vmem:[%s17559_s13 + $0x20c0] ss:$16 sps:$4 sm:$0xff]   ;;  %v16240_v11 = vld [vmem:[%s17559_s13 + $0x20c8] ss:$16 sps:$4 sm:$0xff]  }
 0x496   : > { %10628 = vmatprep.subr.bf16.mxu0 %v16155_v20  ;;  %11660 = vmatprep.subr.bf16.mxu1 %v16158_v21  ;;  %v16245_v20 = vld [vmem:[%s17559_s13 + $0x20e4] ss:$16 sps:$4 sm:$0xff]   ;;  %v16248_v21 = vld [vmem:[%s17559_s13 + $0x20ec] ss:$16 sps:$4 sm:$0xff]  }
 0x499   : > { %10629 = vmatpush1.bf16.msra.mxu0 %v16153_v14  ;;  %11661 = vmatpush1.bf16.msra.mxu1 %v16156_v15  ;;  %v16243_v14 = vld [vmem:[%s17559_s13 + $0x20e0] ss:$16 sps:$4 sm:$0xff]   ;;  %v16246_v15 = vld [vmem:[%s17559_s13 + $0x20e8] ss:$16 sps:$4 sm:$0xff]  }
 0x49a   : > { %10630 = vmatprep.subr.bf16.mxu0 %v16161_v24  ;;  %11662 = vmatprep.subr.bf16.mxu1 %v16164_v25  ;;  %v16251_v24 = vld [vmem:[%s17559_s13 + $0x2104] ss:$16 sps:$4 sm:$0xff]   ;;  %v16254_v25 = vld [vmem:[%s17559_s13 + $0x210c] ss:$16 sps:$4 sm:$0xff]  }
 0x49d   : > { %10631 = vmatpush1.bf16.msra.mxu0 %v16159_v18  ;;  %11663 = vmatpush1.bf16.msra.mxu1 %v16162_v19  ;;  %v16249_v18 = vld [vmem:[%s17559_s13 + $0x2100] ss:$16 sps:$4 sm:$0xff]   ;;  %v16252_v19 = vld [vmem:[%s17559_s13 + $0x2108] ss:$16 sps:$4 sm:$0xff]  }
 0x49e   : > { %10632 = vmatprep.subr.bf16.mxu0 %v16167_v28  ;;  %11664 = vmatprep.subr.bf16.mxu1 %v16170_v29  ;;  %v16257_v28 = vld [vmem:[%s17559_s13 + $0x2124] ss:$16 sps:$4 sm:$0xff]   ;;  %v16260_v29 = vld [vmem:[%s17559_s13 + $0x212c] ss:$16 sps:$4 sm:$0xff]  }
 0x4a1   : > { %10633 = vmatpush1.bf16.msra.mxu0 %v16165_v22  ;;  %11665 = vmatpush1.bf16.msra.mxu1 %v16168_v23  ;;  %v16255_v22 = vld [vmem:[%s17559_s13 + $0x2120] ss:$16 sps:$4 sm:$0xff]   ;;  %v16258_v23 = vld [vmem:[%s17559_s13 + $0x2128] ss:$16 sps:$4 sm:$0xff]  }
 0x4a2   : > { %10634 = vmatprep.subr.bf16.mxu0 %v16173_v32  ;;  %11666 = vmatprep.subr.bf16.mxu1 %v16176_v33  ;;  %v16263_v32 = vld [vmem:[%s17559_s13 + $0x2144] ss:$16 sps:$4 sm:$0xff]   ;;  %v16266_v33 = vld [vmem:[%s17559_s13 + $0x214c] ss:$16 sps:$4 sm:$0xff]  }
 0x4a5   : > { %10635 = vmatpush1.bf16.msra.mxu0 %v16171_v26  ;;  %11667 = vmatpush1.bf16.msra.mxu1 %v16174_v27  ;;  %v16261_v26 = vld [vmem:[%s17559_s13 + $0x2140] ss:$16 sps:$4 sm:$0xff]   ;;  %v16264_v27 = vld [vmem:[%s17559_s13 + $0x2148] ss:$16 sps:$4 sm:$0xff]  }
 0x4a6   : > { %10636 = vmatprep.subr.bf16.mxu0 %v16179_v36  ;;  %11668 = vmatprep.subr.bf16.mxu1 %v16182_v37  ;;  %v16269_v36 = vld [vmem:[%s17559_s13 + $0x2164] ss:$16 sps:$4 sm:$0xff]   ;;  %v16272_v37 = vld [vmem:[%s17559_s13 + $0x216c] ss:$16 sps:$4 sm:$0xff]  }
 0x4a9   : > { %10637 = vmatpush1.bf16.msra.mxu0 %v16177_v30  ;;  %11669 = vmatpush1.bf16.msra.mxu1 %v16180_v31  ;;  %v16267_v30 = vld [vmem:[%s17559_s13 + $0x2160] ss:$16 sps:$4 sm:$0xff]   ;;  %v16270_v31 = vld [vmem:[%s17559_s13 + $0x2168] ss:$16 sps:$4 sm:$0xff]  }
 0x4aa   : > { %10638 = vmatprep.subr.bf16.mxu0 %v16185_v40  ;;  %11670 = vmatprep.subr.bf16.mxu1 %v16188_v41  ;;  %v16275_v40 = vld [vmem:[%s17559_s13 + $0x2184] ss:$16 sps:$4 sm:$0xff]   ;;  %v16278_v41 = vld [vmem:[%s17559_s13 + $0x218c] ss:$16 sps:$4 sm:$0xff]  }
 0x4ad   : > { %10639 = vmatpush1.bf16.msra.mxu0 %v16183_v34  ;;  %11671 = vmatpush1.bf16.msra.mxu1 %v16186_v35  ;;  %v16273_v34 = vld [vmem:[%s17559_s13 + $0x2180] ss:$16 sps:$4 sm:$0xff]   ;;  %v16276_v35 = vld [vmem:[%s17559_s13 + $0x2188] ss:$16 sps:$4 sm:$0xff]  }
 0x4ae   : > { %10640 = vmatprep.subr.bf16.mxu0 %v16191_v44  ;;  %11672 = vmatprep.subr.bf16.mxu1 %v16194_v45  ;;  %v16281_v44 = vld [vmem:[%s17559_s13 + $0x21a4] ss:$16 sps:$4 sm:$0xff]   ;;  %v16284_v45 = vld [vmem:[%s17559_s13 + $0x21ac] ss:$16 sps:$4 sm:$0xff]  }
 0x4b1   : > { %10641 = vmatpush1.bf16.msra.mxu0 %v16189_v46  ;;  %11673 = vmatpush1.bf16.msra.mxu1 %v16192_v39  ;;  %v16279_v46 = vld [vmem:[%s17559_s13 + $0x21a0] ss:$16 sps:$4 sm:$0xff]   ;;  %v16282_v39 = vld [vmem:[%s17559_s13 + $0x21a8] ss:$16 sps:$4 sm:$0xff]  }
 0x4b2   : > { %10642 = vmatprep.subr.bf16.mxu0 %v16197_v48  ;;  %11674 = vmatprep.subr.bf16.mxu1 %v16200_v49  ;;  %v16287_v48 = vld [vmem:[%s17559_s13 + $0x21c4] ss:$16 sps:$4 sm:$0xff]   ;;  %v16290_v49 = vld [vmem:[%s17559_s13 + $0x21cc] ss:$16 sps:$4 sm:$0xff]  }
 0x4b5   : > { %10643 = vmatpush1.bf16.msra.mxu0 %v16195_v50  ;;  %11675 = vmatpush1.bf16.msra.mxu1 %v16198_v51  ;;  %v16285_v50 = vld [vmem:[%s17559_s13 + $0x21c0] ss:$16 sps:$4 sm:$0xff]   ;;  %v16288_v51 = vld [vmem:[%s17559_s13 + $0x21c8] ss:$16 sps:$4 sm:$0xff]  }
 0x4b6   : > { %10655 = vmatprep.subr.bf16.mxu0 %v16203_v52  ;;  %11687 = vmatprep.subr.bf16.mxu1 %v16206_v53  ;;  %v16293_v52 = vld [vmem:[%s17559_s13 + $0x21e4] ss:$16 sps:$4 sm:$0xff]   ;;  %v16296_v53 = vld [vmem:[%s17559_s13 + $0x21ec] ss:$16 sps:$4 sm:$0xff]  }
 0x4b8   : > { %10645 = vmatmul.mubr.bf16.vlgmr.msra.gmra.mrb[0].mxu0 %v12756_v54  ;;  %11677 = vmatmul.mubr.bf16.vlgmr.msra.gmra.mrb[0].mxu1 %v12756_v54  ;;  %v16291_v54 = vld [vmem:[%s17559_s13 + $0x21e0] ss:$16 sps:$4 sm:$0xff]  }
 0x4b9   : > { %10656 = vmatpush1.bf16.msra.mxu0 %v16201_v55  ;;  %11688 = vmatpush1.bf16.msra.mxu1 %v16204_v56  ;;  %v16294_v55 = vld [vmem:[%s17559_s13 + $0x21e8] ss:$16 sps:$4 sm:$0xff]   ;;  %v16299_v56 = vld [vmem:[%s17559_s13 + $0x2204] ss:$16 sps:$4 sm:$0xff]  }
 0x4ba   : > { %10657 = vmatprep.subr.bf16.mxu0 %v16209_v57  ;;  %11689 = vmatprep.subr.bf16.mxu1 %v16212_v58  ;;  %v16302_v57 = vld [vmem:[%s17559_s13 + $0x220c] ss:$16 sps:$4 sm:$0xff]   ;;  %v12758_v58 = vcombine.low %v18753_v47, %v18756_v38  ;;  %v16303_v38 = vld [vmem:[%s17559_s13 + $0x2220] ss:$16 sps:$4 sm:$0xff]  }
 0x4bb   : > { %10687 = vmatprep.mubr.bf16.mxu0 %v12759_v42  ;;  %11719 = vmatprep.mubr.bf16.mxu1 %v12759_v42  ;;  %v18827_v42 = vld [vmem:[%s17557_s18 + $0x88] sm:$0xff] }
 0x4bd   : > { %10658 = vmatpush1.bf16.msra.mxu0 %v16207_v43  ;;  %11690 = vmatpush1.bf16.msra.mxu1 %v16210_v59  ;;  %v18830_v43 = vld [vmem:[%s17557_s18 + $0x148] sm:$0xff]  ;;  %v16297_v59 = vld [vmem:[%s17559_s13 + $0x2200] ss:$16 sps:$4 sm:$0xff]  }
 0x4be   : > { %10659 = vmatprep.subr.bf16.mxu0 %v16215_v60  ;;  %11691 = vmatprep.subr.bf16.mxu1 %v16218_v61  ;;  %v16300_v60 = vld [vmem:[%s17559_s13 + $0x2208] ss:$16 sps:$4 sm:$0xff]   ;;  %v16305_v61 = vld [vmem:[%s17559_s13 + $0x2224] ss:$16 sps:$4 sm:$0xff]   ;;  %v12761_v47 = vcombine.high %v18827_v42, %v18830_v43 }
 0x4c1   : > { %10660 = vmatpush1.bf16.msra.mxu0 %v16213_v62  ;;  %11692 = vmatpush1.bf16.msra.mxu1 %v16216_v1  ;;  %v16308_v62 = vld [vmem:[%s17559_s13 + $0x222c] ss:$16 sps:$4 sm:$0xff]   ;;  %v16306_v1 = vld [vmem:[%s17559_s13 + $0x2228] ss:$16 sps:$4 sm:$0xff]  }
 0x4c2   : > { %10661 = vmatprep.subr.bf16.mxu0 %v16221_v2  ;;  %11693 = vmatprep.subr.bf16.mxu1 %v16224_v5  ;;  %v16311_v2 = vld [vmem:[%s17559_s13 + $0x2244] ss:$16 sps:$4 sm:$0xff]   ;;  %v16314_v5 = vld [vmem:[%s17559_s13 + $0x224c] ss:$16 sps:$4 sm:$0xff]  }
 0x4c5   : > { %10662 = vmatpush1.bf16.msra.mxu0 %v16219_v7  ;;  %11694 = vmatpush1.bf16.msra.mxu1 %v16222_v0  ;;  %v16309_v7 = vld [vmem:[%s17559_s13 + $0x2240] ss:$16 sps:$4 sm:$0xff]   ;;  %v16312_v0 = vld [vmem:[%s17559_s13 + $0x2248] ss:$16 sps:$4 sm:$0xff]  }
 0x4c6   : > { %10663 = vmatprep.subr.bf16.mxu0 %v16227_v8  ;;  %11695 = vmatprep.subr.bf16.mxu1 %v16230_v9  ;;  %v16317_v8 = vld [vmem:[%s17559_s13 + $0x2264] ss:$16 sps:$4 sm:$0xff]   ;;  %v16320_v9 = vld [vmem:[%s17559_s13 + $0x226c] ss:$16 sps:$4 sm:$0xff]  }
 0x4c9   : > { %10664 = vmatpush1.bf16.msra.mxu0 %v16225_v3  ;;  %11696 = vmatpush1.bf16.msra.mxu1 %v16228_v4  ;;  %v16315_v3 = vld [vmem:[%s17559_s13 + $0x2260] ss:$16 sps:$4 sm:$0xff]   ;;  %v16318_v4 = vld [vmem:[%s17559_s13 + $0x2268] ss:$16 sps:$4 sm:$0xff]  }
 0x4ca   : > { %10665 = vmatprep.subr.bf16.mxu0 %v16233_v12  ;;  %11697 = vmatprep.subr.bf16.mxu1 %v16236_v13  ;;  %v16323_v12 = vld [vmem:[%s17559_s13 + $0x2284] ss:$16 sps:$4 sm:$0xff]   ;;  %v16326_v13 = vld [vmem:[%s17559_s13 + $0x228c] ss:$16 sps:$4 sm:$0xff]  }
 0x4cd   : > { %10666 = vmatpush1.bf16.msra.mxu0 %v16231_v6  ;;  %11698 = vmatpush1.bf16.msra.mxu1 %v16234_v63  ;;  %v16321_v6 = vld [vmem:[%s17559_s13 + $0x2280] ss:$16 sps:$4 sm:$0xff]   ;;  %v16324_v63 = vld [vmem:[%s17559_s13 + $0x2288] ss:$16 sps:$4 sm:$0xff]  }
 0x4ce   : > { %10667 = vmatprep.subr.bf16.mxu0 %v16239_v16  ;;  %11699 = vmatprep.subr.bf16.mxu1 %v16242_v17  ;;  %v16329_v16 = vld [vmem:[%s17559_s13 + $0x22a4] ss:$16 sps:$4 sm:$0xff]   ;;  %v16332_v17 = vld [vmem:[%s17559_s13 + $0x22ac] ss:$16 sps:$4 sm:$0xff]  }
 0x4d1   : > { %10668 = vmatpush1.bf16.msra.mxu0 %v16237_v10  ;;  %11700 = vmatpush1.bf16.msra.mxu1 %v16240_v11  ;;  %v16327_v10 = vld [vmem:[%s17559_s13 + $0x22a0] ss:$16 sps:$4 sm:$0xff]   ;;  %v16330_v11 = vld [vmem:[%s17559_s13 + $0x22a8] ss:$16 sps:$4 sm:$0xff]  }
 0x4d2   : > { %10669 = vmatprep.subr.bf16.mxu0 %v16245_v20  ;;  %11701 = vmatprep.subr.bf16.mxu1 %v16248_v21  ;;  %v16335_v20 = vld [vmem:[%s17559_s13 + $0x22c4] ss:$16 sps:$4 sm:$0xff]   ;;  %v16338_v21 = vld [vmem:[%s17559_s13 + $0x22cc] ss:$16 sps:$4 sm:$0xff]  }
 0x4d5   : > { %10670 = vmatpush1.bf16.msra.mxu0 %v16243_v14  ;;  %11702 = vmatpush1.bf16.msra.mxu1 %v16246_v15  ;;  %v16333_v14 = vld [vmem:[%s17559_s13 + $0x22c0] ss:$16 sps:$4 sm:$0xff]   ;;  %v16336_v15 = vld [vmem:[%s17559_s13 + $0x22c8] ss:$16 sps:$4 sm:$0xff]  }
 0x4d6   : > { %10671 = vmatprep.subr.bf16.mxu0 %v16251_v24  ;;  %11703 = vmatprep.subr.bf16.mxu1 %v16254_v25  ;;  %v16341_v24 = vld [vmem:[%s17559_s13 + $0x22e4] ss:$16 sps:$4 sm:$0xff]   ;;  %v16344_v25 = vld [vmem:[%s17559_s13 + $0x22ec] ss:$16 sps:$4 sm:$0xff]  }
 0x4d9   : > { %10672 = vmatpush1.bf16.msra.mxu0 %v16249_v18  ;;  %11704 = vmatpush1.bf16.msra.mxu1 %v16252_v19  ;;  %v16339_v18 = vld [vmem:[%s17559_s13 + $0x22e0] ss:$16 sps:$4 sm:$0xff]   ;;  %v16342_v19 = vld [vmem:[%s17559_s13 + $0x22e8] ss:$16 sps:$4 sm:$0xff]  }
 0x4da   : > { %10673 = vmatprep.subr.bf16.mxu0 %v16257_v28  ;;  %11705 = vmatprep.subr.bf16.mxu1 %v16260_v29  ;;  %v16347_v28 = vld [vmem:[%s17559_s13 + $0x2304] ss:$16 sps:$4 sm:$0xff]   ;;  %v16350_v29 = vld [vmem:[%s17559_s13 + $0x230c] ss:$16 sps:$4 sm:$0xff]  }
 0x4dd   : > { %10674 = vmatpush1.bf16.msra.mxu0 %v16255_v22  ;;  %11706 = vmatpush1.bf16.msra.mxu1 %v16258_v23  ;;  %v16345_v22 = vld [vmem:[%s17559_s13 + $0x2300] ss:$16 sps:$4 sm:$0xff]   ;;  %v16348_v23 = vld [vmem:[%s17559_s13 + $0x2308] ss:$16 sps:$4 sm:$0xff]  }
 0x4de   : > { %10675 = vmatprep.subr.bf16.mxu0 %v16263_v32  ;;  %11707 = vmatprep.subr.bf16.mxu1 %v16266_v33  ;;  %v16353_v32 = vld [vmem:[%s17559_s13 + $0x2324] ss:$16 sps:$4 sm:$0xff]   ;;  %v16356_v33 = vld [vmem:[%s17559_s13 + $0x232c] ss:$16 sps:$4 sm:$0xff]  }
 0x4e1   : > { %10676 = vmatpush1.bf16.msra.mxu0 %v16261_v26  ;;  %11708 = vmatpush1.bf16.msra.mxu1 %v16264_v27  ;;  %v16351_v26 = vld [vmem:[%s17559_s13 + $0x2320] ss:$16 sps:$4 sm:$0xff]   ;;  %v16354_v27 = vld [vmem:[%s17559_s13 + $0x2328] ss:$16 sps:$4 sm:$0xff]  }
 0x4e2   : > { %10677 = vmatprep.subr.bf16.mxu0 %v16269_v36  ;;  %11709 = vmatprep.subr.bf16.mxu1 %v16272_v37  ;;  %v16359_v36 = vld [vmem:[%s17559_s13 + $0x2344] ss:$16 sps:$4 sm:$0xff]   ;;  %v16362_v37 = vld [vmem:[%s17559_s13 + $0x234c] ss:$16 sps:$4 sm:$0xff]  }
 0x4e5   : > { %10678 = vmatpush1.bf16.msra.mxu0 %v16267_v30  ;;  %11710 = vmatpush1.bf16.msra.mxu1 %v16270_v31  ;;  %v16357_v30 = vld [vmem:[%s17559_s13 + $0x2340] ss:$16 sps:$4 sm:$0xff]   ;;  %v16360_v31 = vld [vmem:[%s17559_s13 + $0x2348] ss:$16 sps:$4 sm:$0xff]  }
 0x4e6   : > { %10679 = vmatprep.subr.bf16.mxu0 %v16275_v40  ;;  %11711 = vmatprep.subr.bf16.mxu1 %v16278_v41  ;;  %v16365_v40 = vld [vmem:[%s17559_s13 + $0x2364] ss:$16 sps:$4 sm:$0xff]   ;;  %v16368_v41 = vld [vmem:[%s17559_s13 + $0x236c] ss:$16 sps:$4 sm:$0xff]  }
 0x4e9   : > { %10680 = vmatpush1.bf16.msra.mxu0 %v16273_v34  ;;  %11712 = vmatpush1.bf16.msra.mxu1 %v16276_v35  ;;  %v16363_v34 = vld [vmem:[%s17559_s13 + $0x2360] ss:$16 sps:$4 sm:$0xff]   ;;  %v16366_v35 = vld [vmem:[%s17559_s13 + $0x2368] ss:$16 sps:$4 sm:$0xff]  }
 0x4ea   : > { %10681 = vmatprep.subr.bf16.mxu0 %v16281_v44  ;;  %11713 = vmatprep.subr.bf16.mxu1 %v16284_v45  ;;  %v16371_v44 = vld [vmem:[%s17559_s13 + $0x2384] ss:$16 sps:$4 sm:$0xff]   ;;  %v16374_v45 = vld [vmem:[%s17559_s13 + $0x238c] ss:$16 sps:$4 sm:$0xff]  }
 0x4ed   : > { %10682 = vmatpush1.bf16.msra.mxu0 %v16279_v46  ;;  %11714 = vmatpush1.bf16.msra.mxu1 %v16282_v39  ;;  %v16369_v46 = vld [vmem:[%s17559_s13 + $0x2380] ss:$16 sps:$4 sm:$0xff]   ;;  %v16372_v39 = vld [vmem:[%s17559_s13 + $0x2388] ss:$16 sps:$4 sm:$0xff]  }
 0x4ee   : > { %10683 = vmatprep.subr.bf16.mxu0 %v16287_v48  ;;  %11715 = vmatprep.subr.bf16.mxu1 %v16290_v49  ;;  %v16377_v48 = vld [vmem:[%s17559_s13 + $0x23a4] ss:$16 sps:$4 sm:$0xff]   ;;  %v16380_v49 = vld [vmem:[%s17559_s13 + $0x23ac] ss:$16 sps:$4 sm:$0xff]  }
 0x4f1   : > { %10684 = vmatpush1.bf16.msra.mxu0 %v16285_v50  ;;  %11716 = vmatpush1.bf16.msra.mxu1 %v16288_v51  ;;  %v16375_v50 = vld [vmem:[%s17559_s13 + $0x23a0] ss:$16 sps:$4 sm:$0xff]   ;;  %v16378_v51 = vld [vmem:[%s17559_s13 + $0x23a8] ss:$16 sps:$4 sm:$0xff]  }
 0x4f2   : > { %10685 = vmatprep.subr.bf16.mxu0 %v16293_v52  ;;  %11717 = vmatprep.subr.bf16.mxu1 %v16296_v53  ;;  %v16383_v52 = vld [vmem:[%s17559_s13 + $0x23c4] ss:$16 sps:$4 sm:$0xff]   ;;  %v16386_v53 = vld [vmem:[%s17559_s13 + $0x23cc] ss:$16 sps:$4 sm:$0xff]  }
 0x4f5   : > { %10686 = vmatpush1.bf16.msra.mxu0 %v16291_v54  ;;  %11718 = vmatpush1.bf16.msra.mxu1 %v16294_v55  ;;  %v16381_v54 = vld [vmem:[%s17559_s13 + $0x23c0] ss:$16 sps:$4 sm:$0xff]   ;;  %v16384_v55 = vld [vmem:[%s17559_s13 + $0x23c8] ss:$16 sps:$4 sm:$0xff]  }
 0x4f6   : > { %10698 = vmatprep.subr.bf16.mxu0 %v16299_v56  ;;  %11730 = vmatprep.subr.bf16.mxu1 %v16302_v57  ;;  %v16389_v56 = vld [vmem:[%s17559_s13 + $0x23e4] ss:$16 sps:$4 sm:$0xff]   ;;  %v16392_v57 = vld [vmem:[%s17559_s13 + $0x23ec] ss:$16 sps:$4 sm:$0xff]  }
 0x4f8   : > { %10688 = vmatmul.mubr.bf16.vlgmr.msra.gmra.mrb[0].mxu0 %v12758_v58  ;;  %11720 = vmatmul.mubr.bf16.vlgmr.msra.gmra.mrb[0].mxu1 %v12758_v58  ;;  %v16387_v58 = vld [vmem:[%s17559_s13 + $0x23e0] ss:$16 sps:$4 sm:$0xff]  }
 0x4f9   : > { %10699 = vmatpush1.bf16.msra.mxu0 %v16297_v59  ;;  %11731 = vmatpush1.bf16.msra.mxu1 %v16300_v60  ;;  %v16390_v59 = vld [vmem:[%s17559_s13 + $0x23e8] ss:$16 sps:$4 sm:$0xff]   ;;  %v16395_v60 = vld [vmem:[%s17559_s13 + $0x2404] ss:$16 sps:$4 sm:$0xff]  }
 0x4fa   : > { %10700 = vmatprep.subr.bf16.mxu0 %v16305_v61  ;;  %11732 = vmatprep.subr.bf16.mxu1 %v16308_v62  ;;  %v16398_v61 = vld [vmem:[%s17559_s13 + $0x240c] ss:$16 sps:$4 sm:$0xff]   ;;  %v12760_v62 = vcombine.low %v18827_v42, %v18830_v43  ;;  %v16399_v43 = vld [vmem:[%s17559_s13 + $0x2420] ss:$16 sps:$4 sm:$0xff]  }
 0x4fb   : > { %10730 = vmatprep.mubr.bf16.mxu0 %v12761_v47  ;;  %11762 = vmatprep.mubr.bf16.mxu1 %v12761_v47  ;;  %v18901_v47 = vld [vmem:[%s17557_s18 + $0x90] sm:$0xff] }
 0x4fd   : > { %10701 = vmatpush1.bf16.msra.mxu0 %v16303_v38  ;;  %11733 = vmatpush1.bf16.msra.mxu1 %v16306_v1  ;;  %v18904_v38 = vld [vmem:[%s17557_s18 + $0x150] sm:$0xff] }
 0x4fe   : > { %10702 = vmatprep.subr.bf16.mxu0 %v16311_v2  ;;  %11734 = vmatprep.subr.bf16.mxu1 %v16314_v5  ;;  %v16393_v1 = vld [vmem:[%s17559_s13 + $0x2400] ss:$16 sps:$4 sm:$0xff]   ;;  %v16396_v2 = vld [vmem:[%s17559_s13 + $0x2408] ss:$16 sps:$4 sm:$0xff]   ;;  %v16401_v5 = vld [vmem:[%s17559_s13 + $0x2424] ss:$16 sps:$4 sm:$0xff]   ;;  %v12763_v42 = vcombine.high %v18901_v47, %v18904_v38 }
 0x501   : > { %10703 = vmatpush1.bf16.msra.mxu0 %v16309_v7  ;;  %11735 = vmatpush1.bf16.msra.mxu1 %v16312_v0  ;;  %v16404_v7 = vld [vmem:[%s17559_s13 + $0x242c] ss:$16 sps:$4 sm:$0xff]   ;;  %v16402_v0 = vld [vmem:[%s17559_s13 + $0x2428] ss:$16 sps:$4 sm:$0xff]  }
 0x502   : > { %10704 = vmatprep.subr.bf16.mxu0 %v16317_v8  ;;  %11736 = vmatprep.subr.bf16.mxu1 %v16320_v9  ;;  %v16407_v8 = vld [vmem:[%s17559_s13 + $0x2444] ss:$16 sps:$4 sm:$0xff]   ;;  %v16410_v9 = vld [vmem:[%s17559_s13 + $0x244c] ss:$16 sps:$4 sm:$0xff]  }
 0x505   : > { %10705 = vmatpush1.bf16.msra.mxu0 %v16315_v3  ;;  %11737 = vmatpush1.bf16.msra.mxu1 %v16318_v4  ;;  %v16405_v3 = vld [vmem:[%s17559_s13 + $0x2440] ss:$16 sps:$4 sm:$0xff]   ;;  %v16408_v4 = vld [vmem:[%s17559_s13 + $0x2448] ss:$16 sps:$4 sm:$0xff]  }
 0x506   : > { %10706 = vmatprep.subr.bf16.mxu0 %v16323_v12  ;;  %11738 = vmatprep.subr.bf16.mxu1 %v16326_v13  ;;  %v16413_v12 = vld [vmem:[%s17559_s13 + $0x2464] ss:$16 sps:$4 sm:$0xff]   ;;  %v16416_v13 = vld [vmem:[%s17559_s13 + $0x246c] ss:$16 sps:$4 sm:$0xff]  }
 0x509   : > { %10707 = vmatpush1.bf16.msra.mxu0 %v16321_v6  ;;  %11739 = vmatpush1.bf16.msra.mxu1 %v16324_v63  ;;  %v16411_v6 = vld [vmem:[%s17559_s13 + $0x2460] ss:$16 sps:$4 sm:$0xff]   ;;  %v16414_v63 = vld [vmem:[%s17559_s13 + $0x2468] ss:$16 sps:$4 sm:$0xff]  }
 0x50a   : > { %10708 = vmatprep.subr.bf16.mxu0 %v16329_v16  ;;  %11740 = vmatprep.subr.bf16.mxu1 %v16332_v17  ;;  %v16419_v16 = vld [vmem:[%s17559_s13 + $0x2484] ss:$16 sps:$4 sm:$0xff]   ;;  %v16422_v17 = vld [vmem:[%s17559_s13 + $0x248c] ss:$16 sps:$4 sm:$0xff]  }
 0x50d   : > { %10709 = vmatpush1.bf16.msra.mxu0 %v16327_v10  ;;  %11741 = vmatpush1.bf16.msra.mxu1 %v16330_v11  ;;  %v16417_v10 = vld [vmem:[%s17559_s13 + $0x2480] ss:$16 sps:$4 sm:$0xff]   ;;  %v16420_v11 = vld [vmem:[%s17559_s13 + $0x2488] ss:$16 sps:$4 sm:$0xff]  }
 0x50e   : > { %10710 = vmatprep.subr.bf16.mxu0 %v16335_v20  ;;  %11742 = vmatprep.subr.bf16.mxu1 %v16338_v21  ;;  %v16425_v20 = vld [vmem:[%s17559_s13 + $0x24a4] ss:$16 sps:$4 sm:$0xff]   ;;  %v16428_v21 = vld [vmem:[%s17559_s13 + $0x24ac] ss:$16 sps:$4 sm:$0xff]  }
 0x511   : > { %10711 = vmatpush1.bf16.msra.mxu0 %v16333_v14  ;;  %11743 = vmatpush1.bf16.msra.mxu1 %v16336_v15  ;;  %v16423_v14 = vld [vmem:[%s17559_s13 + $0x24a0] ss:$16 sps:$4 sm:$0xff]   ;;  %v16426_v15 = vld [vmem:[%s17559_s13 + $0x24a8] ss:$16 sps:$4 sm:$0xff]  }
 0x512   : > { %10712 = vmatprep.subr.bf16.mxu0 %v16341_v24  ;;  %11744 = vmatprep.subr.bf16.mxu1 %v16344_v25  ;;  %v16431_v24 = vld [vmem:[%s17559_s13 + $0x24c4] ss:$16 sps:$4 sm:$0xff]   ;;  %v16434_v25 = vld [vmem:[%s17559_s13 + $0x24cc] ss:$16 sps:$4 sm:$0xff]  }
 0x515   : > { %10713 = vmatpush1.bf16.msra.mxu0 %v16339_v18  ;;  %11745 = vmatpush1.bf16.msra.mxu1 %v16342_v19  ;;  %v16429_v18 = vld [vmem:[%s17559_s13 + $0x24c0] ss:$16 sps:$4 sm:$0xff]   ;;  %v16432_v19 = vld [vmem:[%s17559_s13 + $0x24c8] ss:$16 sps:$4 sm:$0xff]  }
 0x516   : > { %10714 = vmatprep.subr.bf16.mxu0 %v16347_v28  ;;  %11746 = vmatprep.subr.bf16.mxu1 %v16350_v29  ;;  %v16437_v28 = vld [vmem:[%s17559_s13 + $0x24e4] ss:$16 sps:$4 sm:$0xff]   ;;  %v16440_v29 = vld [vmem:[%s17559_s13 + $0x24ec] ss:$16 sps:$4 sm:$0xff]  }
 0x519   : > { %10715 = vmatpush1.bf16.msra.mxu0 %v16345_v22  ;;  %11747 = vmatpush1.bf16.msra.mxu1 %v16348_v23  ;;  %v16435_v22 = vld [vmem:[%s17559_s13 + $0x24e0] ss:$16 sps:$4 sm:$0xff]   ;;  %v16438_v23 = vld [vmem:[%s17559_s13 + $0x24e8] ss:$16 sps:$4 sm:$0xff]  }
 0x51a   : > { %10716 = vmatprep.subr.bf16.mxu0 %v16353_v32  ;;  %11748 = vmatprep.subr.bf16.mxu1 %v16356_v33  ;;  %v16443_v32 = vld [vmem:[%s17559_s13 + $0x2504] ss:$16 sps:$4 sm:$0xff]   ;;  %v16446_v33 = vld [vmem:[%s17559_s13 + $0x250c] ss:$16 sps:$4 sm:$0xff]  }
 0x51d   : > { %10717 = vmatpush1.bf16.msra.mxu0 %v16351_v26  ;;  %11749 = vmatpush1.bf16.msra.mxu1 %v16354_v27  ;;  %v16441_v26 = vld [vmem:[%s17559_s13 + $0x2500] ss:$16 sps:$4 sm:$0xff]   ;;  %v16444_v27 = vld [vmem:[%s17559_s13 + $0x2508] ss:$16 sps:$4 sm:$0xff]  }
 0x51e   : > { %10718 = vmatprep.subr.bf16.mxu0 %v16359_v36  ;;  %11750 = vmatprep.subr.bf16.mxu1 %v16362_v37  ;;  %v16449_v36 = vld [vmem:[%s17559_s13 + $0x2524] ss:$16 sps:$4 sm:$0xff]   ;;  %v16452_v37 = vld [vmem:[%s17559_s13 + $0x252c] ss:$16 sps:$4 sm:$0xff]  }
 0x521   : > { %10719 = vmatpush1.bf16.msra.mxu0 %v16357_v30  ;;  %11751 = vmatpush1.bf16.msra.mxu1 %v16360_v31  ;;  %v16447_v30 = vld [vmem:[%s17559_s13 + $0x2520] ss:$16 sps:$4 sm:$0xff]   ;;  %v16450_v31 = vld [vmem:[%s17559_s13 + $0x2528] ss:$16 sps:$4 sm:$0xff]  }
 0x522   : > { %10720 = vmatprep.subr.bf16.mxu0 %v16365_v40  ;;  %11752 = vmatprep.subr.bf16.mxu1 %v16368_v41  ;;  %v16455_v40 = vld [vmem:[%s17559_s13 + $0x2544] ss:$16 sps:$4 sm:$0xff]   ;;  %v16458_v41 = vld [vmem:[%s17559_s13 + $0x254c] ss:$16 sps:$4 sm:$0xff]  }
 0x525   : > { %10721 = vmatpush1.bf16.msra.mxu0 %v16363_v34  ;;  %11753 = vmatpush1.bf16.msra.mxu1 %v16366_v35  ;;  %v16453_v34 = vld [vmem:[%s17559_s13 + $0x2540] ss:$16 sps:$4 sm:$0xff]   ;;  %v16456_v35 = vld [vmem:[%s17559_s13 + $0x2548] ss:$16 sps:$4 sm:$0xff]  }
 0x526   : > { %10722 = vmatprep.subr.bf16.mxu0 %v16371_v44  ;;  %11754 = vmatprep.subr.bf16.mxu1 %v16374_v45  ;;  %v16461_v44 = vld [vmem:[%s17559_s13 + $0x2564] ss:$16 sps:$4 sm:$0xff]   ;;  %v16464_v45 = vld [vmem:[%s17559_s13 + $0x256c] ss:$16 sps:$4 sm:$0xff]  }
 0x529   : > { %10723 = vmatpush1.bf16.msra.mxu0 %v16369_v46  ;;  %11755 = vmatpush1.bf16.msra.mxu1 %v16372_v39  ;;  %v16459_v46 = vld [vmem:[%s17559_s13 + $0x2560] ss:$16 sps:$4 sm:$0xff]   ;;  %v16462_v39 = vld [vmem:[%s17559_s13 + $0x2568] ss:$16 sps:$4 sm:$0xff]  }
 0x52a   : > { %10724 = vmatprep.subr.bf16.mxu0 %v16377_v48  ;;  %11756 = vmatprep.subr.bf16.mxu1 %v16380_v49  ;;  %v16467_v48 = vld [vmem:[%s17559_s13 + $0x2584] ss:$16 sps:$4 sm:$0xff]   ;;  %v16470_v49 = vld [vmem:[%s17559_s13 + $0x258c] ss:$16 sps:$4 sm:$0xff]  }
 0x52d   : > { %10725 = vmatpush1.bf16.msra.mxu0 %v16375_v50  ;;  %11757 = vmatpush1.bf16.msra.mxu1 %v16378_v51  ;;  %v16465_v50 = vld [vmem:[%s17559_s13 + $0x2580] ss:$16 sps:$4 sm:$0xff]   ;;  %v16468_v51 = vld [vmem:[%s17559_s13 + $0x2588] ss:$16 sps:$4 sm:$0xff]  }
 0x52e   : > { %10726 = vmatprep.subr.bf16.mxu0 %v16383_v52  ;;  %11758 = vmatprep.subr.bf16.mxu1 %v16386_v53  ;;  %v16473_v52 = vld [vmem:[%s17559_s13 + $0x25a4] ss:$16 sps:$4 sm:$0xff]   ;;  %v16476_v53 = vld [vmem:[%s17559_s13 + $0x25ac] ss:$16 sps:$4 sm:$0xff]  }
 0x531   : > { %10727 = vmatpush1.bf16.msra.mxu0 %v16381_v54  ;;  %11759 = vmatpush1.bf16.msra.mxu1 %v16384_v55  ;;  %v16471_v54 = vld [vmem:[%s17559_s13 + $0x25a0] ss:$16 sps:$4 sm:$0xff]   ;;  %v16474_v55 = vld [vmem:[%s17559_s13 + $0x25a8] ss:$16 sps:$4 sm:$0xff]  }
 0x532   : > { %10728 = vmatprep.subr.bf16.mxu0 %v16389_v56  ;;  %11760 = vmatprep.subr.bf16.mxu1 %v16392_v57  ;;  %v16479_v56 = vld [vmem:[%s17559_s13 + $0x25c4] ss:$16 sps:$4 sm:$0xff]   ;;  %v16482_v57 = vld [vmem:[%s17559_s13 + $0x25cc] ss:$16 sps:$4 sm:$0xff]  }
 0x535   : > { %10729 = vmatpush1.bf16.msra.mxu0 %v16387_v58  ;;  %11761 = vmatpush1.bf16.msra.mxu1 %v16390_v59  ;;  %v16477_v58 = vld [vmem:[%s17559_s13 + $0x25c0] ss:$16 sps:$4 sm:$0xff]   ;;  %v16480_v59 = vld [vmem:[%s17559_s13 + $0x25c8] ss:$16 sps:$4 sm:$0xff]  }
 0x536   : > { %10741 = vmatprep.subr.bf16.mxu0 %v16395_v60  ;;  %11773 = vmatprep.subr.bf16.mxu1 %v16398_v61  ;;  %v16485_v60 = vld [vmem:[%s17559_s13 + $0x25e4] ss:$16 sps:$4 sm:$0xff]   ;;  %v16488_v61 = vld [vmem:[%s17559_s13 + $0x25ec] ss:$16 sps:$4 sm:$0xff]  }
 0x538   : > { %10731 = vmatmul.mubr.bf16.vlgmr.msra.gmra.mrb[0].mxu0 %v12760_v62  ;;  %11763 = vmatmul.mubr.bf16.vlgmr.msra.gmra.mrb[0].mxu1 %v12760_v62  ;;  %v16483_v62 = vld [vmem:[%s17559_s13 + $0x25e0] ss:$16 sps:$4 sm:$0xff]  }
 0x539   : > { %10742 = vmatpush1.bf16.msra.mxu0 %v16393_v1  ;;  %11774 = vmatpush1.bf16.msra.mxu1 %v16396_v2  ;;  %v16486_v1 = vld [vmem:[%s17559_s13 + $0x25e8] ss:$16 sps:$4 sm:$0xff]   ;;  %v16491_v2 = vld [vmem:[%s17559_s13 + $0x2604] ss:$16 sps:$4 sm:$0xff]  }
 0x53a   : > { %10743 = vmatprep.subr.bf16.mxu0 %v16401_v5  ;;  %11775 = vmatprep.subr.bf16.mxu1 %v16404_v7  ;;  %v16494_v5 = vld [vmem:[%s17559_s13 + $0x260c] ss:$16 sps:$4 sm:$0xff]   ;;  %v12762_v7 = vcombine.low %v18901_v47, %v18904_v38  ;;  %v16495_v38 = vld [vmem:[%s17559_s13 + $0x2620] ss:$16 sps:$4 sm:$0xff]  }
 0x53b   : > { %10773 = vmatprep.mubr.bf16.mxu0 %v12763_v42  ;;  %11805 = vmatprep.mubr.bf16.mxu1 %v12763_v42  ;;  %v18975_v42 = vld [vmem:[%s17557_s18 + $0x98] sm:$0xff] }
 0x53d   : > { %10744 = vmatpush1.bf16.msra.mxu0 %v16399_v43  ;;  %11776 = vmatpush1.bf16.msra.mxu1 %v16402_v0  ;;  %v18978_v43 = vld [vmem:[%s17557_s18 + $0x158] sm:$0xff]  ;;  %v16489_v0 = vld [vmem:[%s17559_s13 + $0x2600] ss:$16 sps:$4 sm:$0xff]  }
 0x53e   : > { %10745 = vmatprep.subr.bf16.mxu0 %v16407_v8  ;;  %11777 = vmatprep.subr.bf16.mxu1 %v16410_v9  ;;  %v16492_v8 = vld [vmem:[%s17559_s13 + $0x2608] ss:$16 sps:$4 sm:$0xff]   ;;  %v16497_v9 = vld [vmem:[%s17559_s13 + $0x2624] ss:$16 sps:$4 sm:$0xff]   ;;  %v12765_v47 = vcombine.high %v18975_v42, %v18978_v43 }
 0x541   : > { %10746 = vmatpush1.bf16.msra.mxu0 %v16405_v3  ;;  %11778 = vmatpush1.bf16.msra.mxu1 %v16408_v4  ;;  %v16500_v3 = vld [vmem:[%s17559_s13 + $0x262c] ss:$16 sps:$4 sm:$0xff]   ;;  %v16498_v4 = vld [vmem:[%s17559_s13 + $0x2628] ss:$16 sps:$4 sm:$0xff]  }
 0x542   : > { %10747 = vmatprep.subr.bf16.mxu0 %v16413_v12  ;;  %11779 = vmatprep.subr.bf16.mxu1 %v16416_v13  ;;  %v16503_v12 = vld [vmem:[%s17559_s13 + $0x2644] ss:$16 sps:$4 sm:$0xff]   ;;  %v16506_v13 = vld [vmem:[%s17559_s13 + $0x264c] ss:$16 sps:$4 sm:$0xff]  }
 0x545   : > { %10748 = vmatpush1.bf16.msra.mxu0 %v16411_v6  ;;  %11780 = vmatpush1.bf16.msra.mxu1 %v16414_v63  ;;  %v16501_v6 = vld [vmem:[%s17559_s13 + $0x2640] ss:$16 sps:$4 sm:$0xff]   ;;  %v16504_v63 = vld [vmem:[%s17559_s13 + $0x2648] ss:$16 sps:$4 sm:$0xff]  }
 0x546   : > { %10749 = vmatprep.subr.bf16.mxu0 %v16419_v16  ;;  %11781 = vmatprep.subr.bf16.mxu1 %v16422_v17  ;;  %v16509_v16 = vld [vmem:[%s17559_s13 + $0x2664] ss:$16 sps:$4 sm:$0xff]   ;;  %v16512_v17 = vld [vmem:[%s17559_s13 + $0x266c] ss:$16 sps:$4 sm:$0xff]  }
 0x549   : > { %10750 = vmatpush1.bf16.msra.mxu0 %v16417_v10  ;;  %11782 = vmatpush1.bf16.msra.mxu1 %v16420_v11  ;;  %v16507_v10 = vld [vmem:[%s17559_s13 + $0x2660] ss:$16 sps:$4 sm:$0xff]   ;;  %v16510_v11 = vld [vmem:[%s17559_s13 + $0x2668] ss:$16 sps:$4 sm:$0xff]  }
 0x54a   : > { %10751 = vmatprep.subr.bf16.mxu0 %v16425_v20  ;;  %11783 = vmatprep.subr.bf16.mxu1 %v16428_v21  ;;  %v16515_v20 = vld [vmem:[%s17559_s13 + $0x2684] ss:$16 sps:$4 sm:$0xff]   ;;  %v16518_v21 = vld [vmem:[%s17559_s13 + $0x268c] ss:$16 sps:$4 sm:$0xff]  }
 0x54d   : > { %10752 = vmatpush1.bf16.msra.mxu0 %v16423_v14  ;;  %11784 = vmatpush1.bf16.msra.mxu1 %v16426_v15  ;;  %v16513_v14 = vld [vmem:[%s17559_s13 + $0x2680] ss:$16 sps:$4 sm:$0xff]   ;;  %v16516_v15 = vld [vmem:[%s17559_s13 + $0x2688] ss:$16 sps:$4 sm:$0xff]  }
 0x54e   : > { %10753 = vmatprep.subr.bf16.mxu0 %v16431_v24  ;;  %11785 = vmatprep.subr.bf16.mxu1 %v16434_v25  ;;  %v16521_v24 = vld [vmem:[%s17559_s13 + $0x26a4] ss:$16 sps:$4 sm:$0xff]   ;;  %v16524_v25 = vld [vmem:[%s17559_s13 + $0x26ac] ss:$16 sps:$4 sm:$0xff]  }
 0x551   : > { %10754 = vmatpush1.bf16.msra.mxu0 %v16429_v18  ;;  %11786 = vmatpush1.bf16.msra.mxu1 %v16432_v19  ;;  %v16519_v18 = vld [vmem:[%s17559_s13 + $0x26a0] ss:$16 sps:$4 sm:$0xff]   ;;  %v16522_v19 = vld [vmem:[%s17559_s13 + $0x26a8] ss:$16 sps:$4 sm:$0xff]  }
 0x552   : > { %10755 = vmatprep.subr.bf16.mxu0 %v16437_v28  ;;  %11787 = vmatprep.subr.bf16.mxu1 %v16440_v29  ;;  %v16527_v28 = vld [vmem:[%s17559_s13 + $0x26c4] ss:$16 sps:$4 sm:$0xff]   ;;  %v16530_v29 = vld [vmem:[%s17559_s13 + $0x26cc] ss:$16 sps:$4 sm:$0xff]  }
 0x555   : > { %10756 = vmatpush1.bf16.msra.mxu0 %v16435_v22  ;;  %11788 = vmatpush1.bf16.msra.mxu1 %v16438_v23  ;;  %v16525_v22 = vld [vmem:[%s17559_s13 + $0x26c0] ss:$16 sps:$4 sm:$0xff]   ;;  %v16528_v23 = vld [vmem:[%s17559_s13 + $0x26c8] ss:$16 sps:$4 sm:$0xff]  }
 0x556   : > { %10757 = vmatprep.subr.bf16.mxu0 %v16443_v32  ;;  %11789 = vmatprep.subr.bf16.mxu1 %v16446_v33  ;;  %v16533_v32 = vld [vmem:[%s17559_s13 + $0x26e4] ss:$16 sps:$4 sm:$0xff]   ;;  %v16536_v33 = vld [vmem:[%s17559_s13 + $0x26ec] ss:$16 sps:$4 sm:$0xff]  }
 0x559   : > { %10758 = vmatpush1.bf16.msra.mxu0 %v16441_v26  ;;  %11790 = vmatpush1.bf16.msra.mxu1 %v16444_v27  ;;  %v16531_v26 = vld [vmem:[%s17559_s13 + $0x26e0] ss:$16 sps:$4 sm:$0xff]   ;;  %v16534_v27 = vld [vmem:[%s17559_s13 + $0x26e8] ss:$16 sps:$4 sm:$0xff]  }
 0x55a   : > { %10759 = vmatprep.subr.bf16.mxu0 %v16449_v36  ;;  %11791 = vmatprep.subr.bf16.mxu1 %v16452_v37  ;;  %v16539_v36 = vld [vmem:[%s17559_s13 + $0x2704] ss:$16 sps:$4 sm:$0xff]   ;;  %v16542_v37 = vld [vmem:[%s17559_s13 + $0x270c] ss:$16 sps:$4 sm:$0xff]  }
 0x55d   : > { %10760 = vmatpush1.bf16.msra.mxu0 %v16447_v30  ;;  %11792 = vmatpush1.bf16.msra.mxu1 %v16450_v31  ;;  %v16537_v30 = vld [vmem:[%s17559_s13 + $0x2700] ss:$16 sps:$4 sm:$0xff]   ;;  %v16540_v31 = vld [vmem:[%s17559_s13 + $0x2708] ss:$16 sps:$4 sm:$0xff]  }
 0x55e   : > { %10761 = vmatprep.subr.bf16.mxu0 %v16455_v40  ;;  %11793 = vmatprep.subr.bf16.mxu1 %v16458_v41  ;;  %v16545_v40 = vld [vmem:[%s17559_s13 + $0x2724] ss:$16 sps:$4 sm:$0xff]   ;;  %v16548_v41 = vld [vmem:[%s17559_s13 + $0x272c] ss:$16 sps:$4 sm:$0xff]  }
 0x561   : > { %10762 = vmatpush1.bf16.msra.mxu0 %v16453_v34  ;;  %11794 = vmatpush1.bf16.msra.mxu1 %v16456_v35  ;;  %v16543_v34 = vld [vmem:[%s17559_s13 + $0x2720] ss:$16 sps:$4 sm:$0xff]   ;;  %v16546_v35 = vld [vmem:[%s17559_s13 + $0x2728] ss:$16 sps:$4 sm:$0xff]  }
 0x562   : > { %10763 = vmatprep.subr.bf16.mxu0 %v16461_v44  ;;  %11795 = vmatprep.subr.bf16.mxu1 %v16464_v45  ;;  %v16551_v44 = vld [vmem:[%s17559_s13 + $0x2744] ss:$16 sps:$4 sm:$0xff]   ;;  %v16554_v45 = vld [vmem:[%s17559_s13 + $0x274c] ss:$16 sps:$4 sm:$0xff]  }
 0x565   : > { %10764 = vmatpush1.bf16.msra.mxu0 %v16459_v46  ;;  %11796 = vmatpush1.bf16.msra.mxu1 %v16462_v39  ;;  %v16549_v46 = vld [vmem:[%s17559_s13 + $0x2740] ss:$16 sps:$4 sm:$0xff]   ;;  %v16552_v39 = vld [vmem:[%s17559_s13 + $0x2748] ss:$16 sps:$4 sm:$0xff]  }
 0x566   : > { %10765 = vmatprep.subr.bf16.mxu0 %v16467_v48  ;;  %11797 = vmatprep.subr.bf16.mxu1 %v16470_v49  ;;  %v16557_v48 = vld [vmem:[%s17559_s13 + $0x2764] ss:$16 sps:$4 sm:$0xff]   ;;  %v16560_v49 = vld [vmem:[%s17559_s13 + $0x276c] ss:$16 sps:$4 sm:$0xff]  }
 0x569   : > { %10766 = vmatpush1.bf16.msra.mxu0 %v16465_v50  ;;  %11798 = vmatpush1.bf16.msra.mxu1 %v16468_v51  ;;  %v16555_v50 = vld [vmem:[%s17559_s13 + $0x2760] ss:$16 sps:$4 sm:$0xff]   ;;  %v16558_v51 = vld [vmem:[%s17559_s13 + $0x2768] ss:$16 sps:$4 sm:$0xff]  }
 0x56a   : > { %10767 = vmatprep.subr.bf16.mxu0 %v16473_v52  ;;  %11799 = vmatprep.subr.bf16.mxu1 %v16476_v53  ;;  %v16563_v52 = vld [vmem:[%s17559_s13 + $0x2784] ss:$16 sps:$4 sm:$0xff]   ;;  %v16566_v53 = vld [vmem:[%s17559_s13 + $0x278c] ss:$16 sps:$4 sm:$0xff]  }
 0x56d   : > { %10768 = vmatpush1.bf16.msra.mxu0 %v16471_v54  ;;  %11800 = vmatpush1.bf16.msra.mxu1 %v16474_v55  ;;  %v16561_v54 = vld [vmem:[%s17559_s13 + $0x2780] ss:$16 sps:$4 sm:$0xff]   ;;  %v16564_v55 = vld [vmem:[%s17559_s13 + $0x2788] ss:$16 sps:$4 sm:$0xff]  }
 0x56e   : > { %10769 = vmatprep.subr.bf16.mxu0 %v16479_v56  ;;  %11801 = vmatprep.subr.bf16.mxu1 %v16482_v57  ;;  %v16569_v56 = vld [vmem:[%s17559_s13 + $0x27a4] ss:$16 sps:$4 sm:$0xff]   ;;  %v16572_v57 = vld [vmem:[%s17559_s13 + $0x27ac] ss:$16 sps:$4 sm:$0xff]  }
 0x571   : > { %10770 = vmatpush1.bf16.msra.mxu0 %v16477_v58  ;;  %11802 = vmatpush1.bf16.msra.mxu1 %v16480_v59  ;;  %v16567_v58 = vld [vmem:[%s17559_s13 + $0x27a0] ss:$16 sps:$4 sm:$0xff]   ;;  %v16570_v59 = vld [vmem:[%s17559_s13 + $0x27a8] ss:$16 sps:$4 sm:$0xff]  }
 0x572   : > { %10771 = vmatprep.subr.bf16.mxu0 %v16485_v60  ;;  %11803 = vmatprep.subr.bf16.mxu1 %v16488_v61  ;;  %v16575_v60 = vld [vmem:[%s17559_s13 + $0x27c4] ss:$16 sps:$4 sm:$0xff]   ;;  %v16578_v61 = vld [vmem:[%s17559_s13 + $0x27cc] ss:$16 sps:$4 sm:$0xff]  }
 0x575   : > { %10772 = vmatpush1.bf16.msra.mxu0 %v16483_v62  ;;  %11804 = vmatpush1.bf16.msra.mxu1 %v16486_v1  ;;  %v16573_v62 = vld [vmem:[%s17559_s13 + $0x27c0] ss:$16 sps:$4 sm:$0xff]   ;;  %v16576_v1 = vld [vmem:[%s17559_s13 + $0x27c8] ss:$16 sps:$4 sm:$0xff]  }
 0x576   : > { %10784 = vmatprep.subr.bf16.mxu0 %v16491_v2  ;;  %11816 = vmatprep.subr.bf16.mxu1 %v16494_v5  ;;  %v16581_v2 = vld [vmem:[%s17559_s13 + $0x27e4] ss:$16 sps:$4 sm:$0xff]   ;;  %v16584_v5 = vld [vmem:[%s17559_s13 + $0x27ec] ss:$16 sps:$4 sm:$0xff]  }
 0x578   : > { %10774 = vmatmul.mubr.bf16.vlgmr.msra.gmra.mrb[0].mxu0 %v12762_v7  ;;  %11806 = vmatmul.mubr.bf16.vlgmr.msra.gmra.mrb[0].mxu1 %v12762_v7  ;;  %v16579_v7 = vld [vmem:[%s17559_s13 + $0x27e0] ss:$16 sps:$4 sm:$0xff]  }
 0x579   : > { %10785 = vmatpush1.bf16.msra.mxu0 %v16489_v0  ;;  %11817 = vmatpush1.bf16.msra.mxu1 %v16492_v8  ;;  %v16582_v0 = vld [vmem:[%s17559_s13 + $0x27e8] ss:$16 sps:$4 sm:$0xff]   ;;  %v16587_v8 = vld [vmem:[%s17559_s13 + $0x2804] ss:$16 sps:$4 sm:$0xff]  }
 0x57a   : > { %10786 = vmatprep.subr.bf16.mxu0 %v16497_v9  ;;  %11818 = vmatprep.subr.bf16.mxu1 %v16500_v3  ;;  %v16590_v9 = vld [vmem:[%s17559_s13 + $0x280c] ss:$16 sps:$4 sm:$0xff]   ;;  %v12764_v3 = vcombine.low %v18975_v42, %v18978_v43  ;;  %v16591_v43 = vld [vmem:[%s17559_s13 + $0x2820] ss:$16 sps:$4 sm:$0xff]  }
 0x57b   : > { %10816 = vmatprep.mubr.bf16.mxu0 %v12765_v47  ;;  %11848 = vmatprep.mubr.bf16.mxu1 %v12765_v47  ;;  %v19049_v47 = vld [vmem:[%s17557_s18 + $0xa0] sm:$0xff] }
 0x57d   : > { %10787 = vmatpush1.bf16.msra.mxu0 %v16495_v38  ;;  %11819 = vmatpush1.bf16.msra.mxu1 %v16498_v4  ;;  %v19052_v38 = vld [vmem:[%s17557_s18 + $0x160] sm:$0xff] }
 0x57e   : > { %10788 = vmatprep.subr.bf16.mxu0 %v16503_v12  ;;  %11820 = vmatprep.subr.bf16.mxu1 %v16506_v13  ;;  %v16585_v4 = vld [vmem:[%s17559_s13 + $0x2800] ss:$16 sps:$4 sm:$0xff]   ;;  %v16588_v12 = vld [vmem:[%s17559_s13 + $0x2808] ss:$16 sps:$4 sm:$0xff]   ;;  %v16593_v13 = vld [vmem:[%s17559_s13 + $0x2824] ss:$16 sps:$4 sm:$0xff]   ;;  %v12767_v42 = vcombine.high %v19049_v47, %v19052_v38 }
 0x581   : > { %10789 = vmatpush1.bf16.msra.mxu0 %v16501_v6  ;;  %11821 = vmatpush1.bf16.msra.mxu1 %v16504_v63  ;;  %v16596_v6 = vld [vmem:[%s17559_s13 + $0x282c] ss:$16 sps:$4 sm:$0xff]   ;;  %v16594_v63 = vld [vmem:[%s17559_s13 + $0x2828] ss:$16 sps:$4 sm:$0xff]  }
 0x582   : > { %10790 = vmatprep.subr.bf16.mxu0 %v16509_v16  ;;  %11822 = vmatprep.subr.bf16.mxu1 %v16512_v17  ;;  %v16599_v16 = vld [vmem:[%s17559_s13 + $0x2844] ss:$16 sps:$4 sm:$0xff]   ;;  %v16602_v17 = vld [vmem:[%s17559_s13 + $0x284c] ss:$16 sps:$4 sm:$0xff]  }
 0x585   : > { %10791 = vmatpush1.bf16.msra.mxu0 %v16507_v10  ;;  %11823 = vmatpush1.bf16.msra.mxu1 %v16510_v11  ;;  %v16597_v10 = vld [vmem:[%s17559_s13 + $0x2840] ss:$16 sps:$4 sm:$0xff]   ;;  %v16600_v11 = vld [vmem:[%s17559_s13 + $0x2848] ss:$16 sps:$4 sm:$0xff]  }
 0x586   : > { %10792 = vmatprep.subr.bf16.mxu0 %v16515_v20  ;;  %11824 = vmatprep.subr.bf16.mxu1 %v16518_v21  ;;  %v16605_v20 = vld [vmem:[%s17559_s13 + $0x2864] ss:$16 sps:$4 sm:$0xff]   ;;  %v16608_v21 = vld [vmem:[%s17559_s13 + $0x286c] ss:$16 sps:$4 sm:$0xff]  }
 0x589   : > { %10793 = vmatpush1.bf16.msra.mxu0 %v16513_v14  ;;  %11825 = vmatpush1.bf16.msra.mxu1 %v16516_v15  ;;  %v16603_v14 = vld [vmem:[%s17559_s13 + $0x2860] ss:$16 sps:$4 sm:$0xff]   ;;  %v16606_v15 = vld [vmem:[%s17559_s13 + $0x2868] ss:$16 sps:$4 sm:$0xff]  }
 0x58a   : > { %10794 = vmatprep.subr.bf16.mxu0 %v16521_v24  ;;  %11826 = vmatprep.subr.bf16.mxu1 %v16524_v25  ;;  %v16611_v24 = vld [vmem:[%s17559_s13 + $0x2884] ss:$16 sps:$4 sm:$0xff]   ;;  %v16614_v25 = vld [vmem:[%s17559_s13 + $0x288c] ss:$16 sps:$4 sm:$0xff]  }
 0x58d   : > { %10795 = vmatpush1.bf16.msra.mxu0 %v16519_v18  ;;  %11827 = vmatpush1.bf16.msra.mxu1 %v16522_v19  ;;  %v16609_v18 = vld [vmem:[%s17559_s13 + $0x2880] ss:$16 sps:$4 sm:$0xff]   ;;  %v16612_v19 = vld [vmem:[%s17559_s13 + $0x2888] ss:$16 sps:$4 sm:$0xff]  }
 0x58e   : > { %10796 = vmatprep.subr.bf16.mxu0 %v16527_v28  ;;  %11828 = vmatprep.subr.bf16.mxu1 %v16530_v29  ;;  %v16617_v28 = vld [vmem:[%s17559_s13 + $0x28a4] ss:$16 sps:$4 sm:$0xff]   ;;  %v16620_v29 = vld [vmem:[%s17559_s13 + $0x28ac] ss:$16 sps:$4 sm:$0xff]  }
 0x591   : > { %10797 = vmatpush1.bf16.msra.mxu0 %v16525_v22  ;;  %11829 = vmatpush1.bf16.msra.mxu1 %v16528_v23  ;;  %v16615_v22 = vld [vmem:[%s17559_s13 + $0x28a0] ss:$16 sps:$4 sm:$0xff]   ;;  %v16618_v23 = vld [vmem:[%s17559_s13 + $0x28a8] ss:$16 sps:$4 sm:$0xff]  }
 0x592   : > { %10798 = vmatprep.subr.bf16.mxu0 %v16533_v32  ;;  %11830 = vmatprep.subr.bf16.mxu1 %v16536_v33  ;;  %v16623_v32 = vld [vmem:[%s17559_s13 + $0x28c4] ss:$16 sps:$4 sm:$0xff]   ;;  %v16626_v33 = vld [vmem:[%s17559_s13 + $0x28cc] ss:$16 sps:$4 sm:$0xff]  }
 0x595   : > { %10799 = vmatpush1.bf16.msra.mxu0 %v16531_v26  ;;  %11831 = vmatpush1.bf16.msra.mxu1 %v16534_v27  ;;  %v16621_v26 = vld [vmem:[%s17559_s13 + $0x28c0] ss:$16 sps:$4 sm:$0xff]   ;;  %v16624_v27 = vld [vmem:[%s17559_s13 + $0x28c8] ss:$16 sps:$4 sm:$0xff]  }
 0x596   : > { %10800 = vmatprep.subr.bf16.mxu0 %v16539_v36  ;;  %11832 = vmatprep.subr.bf16.mxu1 %v16542_v37  ;;  %v16629_v36 = vld [vmem:[%s17559_s13 + $0x28e4] ss:$16 sps:$4 sm:$0xff]   ;;  %v16632_v37 = vld [vmem:[%s17559_s13 + $0x28ec] ss:$16 sps:$4 sm:$0xff]  }
 0x599   : > { %10801 = vmatpush1.bf16.msra.mxu0 %v16537_v30  ;;  %11833 = vmatpush1.bf16.msra.mxu1 %v16540_v31  ;;  %v16627_v30 = vld [vmem:[%s17559_s13 + $0x28e0] ss:$16 sps:$4 sm:$0xff]   ;;  %v16630_v31 = vld [vmem:[%s17559_s13 + $0x28e8] ss:$16 sps:$4 sm:$0xff]  }
 0x59a   : > { %10802 = vmatprep.subr.bf16.mxu0 %v16545_v40  ;;  %11834 = vmatprep.subr.bf16.mxu1 %v16548_v41  ;;  %v16635_v40 = vld [vmem:[%s17559_s13 + $0x2904] ss:$16 sps:$4 sm:$0xff]   ;;  %v16638_v41 = vld [vmem:[%s17559_s13 + $0x290c] ss:$16 sps:$4 sm:$0xff]  }
 0x59d   : > { %10803 = vmatpush1.bf16.msra.mxu0 %v16543_v34  ;;  %11835 = vmatpush1.bf16.msra.mxu1 %v16546_v35  ;;  %v16633_v34 = vld [vmem:[%s17559_s13 + $0x2900] ss:$16 sps:$4 sm:$0xff]   ;;  %v16636_v35 = vld [vmem:[%s17559_s13 + $0x2908] ss:$16 sps:$4 sm:$0xff]  }
 0x59e   : > { %10804 = vmatprep.subr.bf16.mxu0 %v16551_v44  ;;  %11836 = vmatprep.subr.bf16.mxu1 %v16554_v45  ;;  %v16641_v44 = vld [vmem:[%s17559_s13 + $0x2924] ss:$16 sps:$4 sm:$0xff]   ;;  %v16644_v45 = vld [vmem:[%s17559_s13 + $0x292c] ss:$16 sps:$4 sm:$0xff]  }
 0x5a1   : > { %10805 = vmatpush1.bf16.msra.mxu0 %v16549_v46  ;;  %11837 = vmatpush1.bf16.msra.mxu1 %v16552_v39  ;;  %v16639_v46 = vld [vmem:[%s17559_s13 + $0x2920] ss:$16 sps:$4 sm:$0xff]   ;;  %v16642_v39 = vld [vmem:[%s17559_s13 + $0x2928] ss:$16 sps:$4 sm:$0xff]  }
 0x5a2   : > { %10806 = vmatprep.subr.bf16.mxu0 %v16557_v48  ;;  %11838 = vmatprep.subr.bf16.mxu1 %v16560_v49  ;;  %v16647_v48 = vld [vmem:[%s17559_s13 + $0x2944] ss:$16 sps:$4 sm:$0xff]   ;;  %v16650_v49 = vld [vmem:[%s17559_s13 + $0x294c] ss:$16 sps:$4 sm:$0xff]  }
 0x5a5   : > { %10807 = vmatpush1.bf16.msra.mxu0 %v16555_v50  ;;  %11839 = vmatpush1.bf16.msra.mxu1 %v16558_v51  ;;  %v16645_v50 = vld [vmem:[%s17559_s13 + $0x2940] ss:$16 sps:$4 sm:$0xff]   ;;  %v16648_v51 = vld [vmem:[%s17559_s13 + $0x2948] ss:$16 sps:$4 sm:$0xff]  }
 0x5a6   : > { %10808 = vmatprep.subr.bf16.mxu0 %v16563_v52  ;;  %11840 = vmatprep.subr.bf16.mxu1 %v16566_v53  ;;  %v16653_v52 = vld [vmem:[%s17559_s13 + $0x2964] ss:$16 sps:$4 sm:$0xff]   ;;  %v16656_v53 = vld [vmem:[%s17559_s13 + $0x296c] ss:$16 sps:$4 sm:$0xff]  }
 0x5a9   : > { %10809 = vmatpush1.bf16.msra.mxu0 %v16561_v54  ;;  %11841 = vmatpush1.bf16.msra.mxu1 %v16564_v55  ;;  %v16651_v54 = vld [vmem:[%s17559_s13 + $0x2960] ss:$16 sps:$4 sm:$0xff]   ;;  %v16654_v55 = vld [vmem:[%s17559_s13 + $0x2968] ss:$16 sps:$4 sm:$0xff]  }
 0x5aa   : > { %10810 = vmatprep.subr.bf16.mxu0 %v16569_v56  ;;  %11842 = vmatprep.subr.bf16.mxu1 %v16572_v57  ;;  %v16659_v56 = vld [vmem:[%s17559_s13 + $0x2984] ss:$16 sps:$4 sm:$0xff]   ;;  %v16662_v57 = vld [vmem:[%s17559_s13 + $0x298c] ss:$16 sps:$4 sm:$0xff]  }
 0x5ad   : > { %10811 = vmatpush1.bf16.msra.mxu0 %v16567_v58  ;;  %11843 = vmatpush1.bf16.msra.mxu1 %v16570_v59  ;;  %v16657_v58 = vld [vmem:[%s17559_s13 + $0x2980] ss:$16 sps:$4 sm:$0xff]   ;;  %v16660_v59 = vld [vmem:[%s17559_s13 + $0x2988] ss:$16 sps:$4 sm:$0xff]  }
 0x5ae   : > { %10812 = vmatprep.subr.bf16.mxu0 %v16575_v60  ;;  %11844 = vmatprep.subr.bf16.mxu1 %v16578_v61  ;;  %v16665_v60 = vld [vmem:[%s17559_s13 + $0x29a4] ss:$16 sps:$4 sm:$0xff]   ;;  %v16668_v61 = vld [vmem:[%s17559_s13 + $0x29ac] ss:$16 sps:$4 sm:$0xff]  }
 0x5b1   : > { %10813 = vmatpush1.bf16.msra.mxu0 %v16573_v62  ;;  %11845 = vmatpush1.bf16.msra.mxu1 %v16576_v1  ;;  %v16663_v62 = vld [vmem:[%s17559_s13 + $0x29a0] ss:$16 sps:$4 sm:$0xff]   ;;  %v16666_v1 = vld [vmem:[%s17559_s13 + $0x29a8] ss:$16 sps:$4 sm:$0xff]  }
 0x5b2   : > { %10814 = vmatprep.subr.bf16.mxu0 %v16581_v2  ;;  %11846 = vmatprep.subr.bf16.mxu1 %v16584_v5  ;;  %v16671_v2 = vld [vmem:[%s17559_s13 + $0x29c4] ss:$16 sps:$4 sm:$0xff]   ;;  %v16674_v5 = vld [vmem:[%s17559_s13 + $0x29cc] ss:$16 sps:$4 sm:$0xff]  }
 0x5b5   : > { %10815 = vmatpush1.bf16.msra.mxu0 %v16579_v7  ;;  %11847 = vmatpush1.bf16.msra.mxu1 %v16582_v0  ;;  %v16669_v7 = vld [vmem:[%s17559_s13 + $0x29c0] ss:$16 sps:$4 sm:$0xff]   ;;  %v16672_v0 = vld [vmem:[%s17559_s13 + $0x29c8] ss:$16 sps:$4 sm:$0xff]  }
 0x5b6   : > { %10827 = vmatprep.subr.bf16.mxu0 %v16587_v8  ;;  %11859 = vmatprep.subr.bf16.mxu1 %v16590_v9  ;;  %v16677_v8 = vld [vmem:[%s17559_s13 + $0x29e4] ss:$16 sps:$4 sm:$0xff]   ;;  %v16680_v9 = vld [vmem:[%s17559_s13 + $0x29ec] ss:$16 sps:$4 sm:$0xff]  }
 0x5b8   : > { %10817 = vmatmul.mubr.bf16.vlgmr.msra.gmra.mrb[0].mxu0 %v12764_v3  ;;  %11849 = vmatmul.mubr.bf16.vlgmr.msra.gmra.mrb[0].mxu1 %v12764_v3  ;;  %v16675_v3 = vld [vmem:[%s17559_s13 + $0x29e0] ss:$16 sps:$4 sm:$0xff]  }
 0x5b9   : > { %10828 = vmatpush1.bf16.msra.mxu0 %v16585_v4  ;;  %11860 = vmatpush1.bf16.msra.mxu1 %v16588_v12  ;;  %v16678_v4 = vld [vmem:[%s17559_s13 + $0x29e8] ss:$16 sps:$4 sm:$0xff]   ;;  %v16683_v12 = vld [vmem:[%s17559_s13 + $0x2a04] ss:$16 sps:$4 sm:$0xff]  }
 0x5ba   : > { %10829 = vmatprep.subr.bf16.mxu0 %v16593_v13  ;;  %11861 = vmatprep.subr.bf16.mxu1 %v16596_v6  ;;  %v16686_v13 = vld [vmem:[%s17559_s13 + $0x2a0c] ss:$16 sps:$4 sm:$0xff]   ;;  %v12766_v6 = vcombine.low %v19049_v47, %v19052_v38  ;;  %v16687_v38 = vld [vmem:[%s17559_s13 + $0x2a20] ss:$16 sps:$4 sm:$0xff]  }
 0x5bb   : > { %10859 = vmatprep.mubr.bf16.mxu0 %v12767_v42  ;;  %11891 = vmatprep.mubr.bf16.mxu1 %v12767_v42  ;;  %v19123_v42 = vld [vmem:[%s17557_s18 + $0xa8] sm:$0xff] }
 0x5bd   : > { %10830 = vmatpush1.bf16.msra.mxu0 %v16591_v43  ;;  %11862 = vmatpush1.bf16.msra.mxu1 %v16594_v63  ;;  %v19126_v43 = vld [vmem:[%s17557_s18 + $0x168] sm:$0xff]  ;;  %v16681_v63 = vld [vmem:[%s17559_s13 + $0x2a00] ss:$16 sps:$4 sm:$0xff]  }
 0x5be   : > { %10831 = vmatprep.subr.bf16.mxu0 %v16599_v16  ;;  %11863 = vmatprep.subr.bf16.mxu1 %v16602_v17  ;;  %v16684_v16 = vld [vmem:[%s17559_s13 + $0x2a08] ss:$16 sps:$4 sm:$0xff]   ;;  %v16689_v17 = vld [vmem:[%s17559_s13 + $0x2a24] ss:$16 sps:$4 sm:$0xff]   ;;  %v12769_v47 = vcombine.high %v19123_v42, %v19126_v43 }
 0x5c1   : > { %10832 = vmatpush1.bf16.msra.mxu0 %v16597_v10  ;;  %11864 = vmatpush1.bf16.msra.mxu1 %v16600_v11  ;;  %v16692_v10 = vld [vmem:[%s17559_s13 + $0x2a2c] ss:$16 sps:$4 sm:$0xff]   ;;  %v16690_v11 = vld [vmem:[%s17559_s13 + $0x2a28] ss:$16 sps:$4 sm:$0xff]  }
 0x5c2   : > { %10833 = vmatprep.subr.bf16.mxu0 %v16605_v20  ;;  %11865 = vmatprep.subr.bf16.mxu1 %v16608_v21  ;;  %v16695_v20 = vld [vmem:[%s17559_s13 + $0x2a44] ss:$16 sps:$4 sm:$0xff]   ;;  %v16698_v21 = vld [vmem:[%s17559_s13 + $0x2a4c] ss:$16 sps:$4 sm:$0xff]  }
 0x5c5   : > { %10834 = vmatpush1.bf16.msra.mxu0 %v16603_v14  ;;  %11866 = vmatpush1.bf16.msra.mxu1 %v16606_v15  ;;  %v16693_v14 = vld [vmem:[%s17559_s13 + $0x2a40] ss:$16 sps:$4 sm:$0xff]   ;;  %v16696_v15 = vld [vmem:[%s17559_s13 + $0x2a48] ss:$16 sps:$4 sm:$0xff]  }
 0x5c6   : > { %10835 = vmatprep.subr.bf16.mxu0 %v16611_v24  ;;  %11867 = vmatprep.subr.bf16.mxu1 %v16614_v25  ;;  %v16701_v24 = vld [vmem:[%s17559_s13 + $0x2a64] ss:$16 sps:$4 sm:$0xff]   ;;  %v16704_v25 = vld [vmem:[%s17559_s13 + $0x2a6c] ss:$16 sps:$4 sm:$0xff]  }
 0x5c9   : > { %10836 = vmatpush1.bf16.msra.mxu0 %v16609_v18  ;;  %11868 = vmatpush1.bf16.msra.mxu1 %v16612_v19  ;;  %v16699_v18 = vld [vmem:[%s17559_s13 + $0x2a60] ss:$16 sps:$4 sm:$0xff]   ;;  %v16702_v19 = vld [vmem:[%s17559_s13 + $0x2a68] ss:$16 sps:$4 sm:$0xff]  }
 0x5ca   : > { %10837 = vmatprep.subr.bf16.mxu0 %v16617_v28  ;;  %11869 = vmatprep.subr.bf16.mxu1 %v16620_v29  ;;  %v16707_v28 = vld [vmem:[%s17559_s13 + $0x2a84] ss:$16 sps:$4 sm:$0xff]   ;;  %v16710_v29 = vld [vmem:[%s17559_s13 + $0x2a8c] ss:$16 sps:$4 sm:$0xff]  }
 0x5cd   : > { %10838 = vmatpush1.bf16.msra.mxu0 %v16615_v22  ;;  %11870 = vmatpush1.bf16.msra.mxu1 %v16618_v23  ;;  %v16705_v22 = vld [vmem:[%s17559_s13 + $0x2a80] ss:$16 sps:$4 sm:$0xff]   ;;  %v16708_v23 = vld [vmem:[%s17559_s13 + $0x2a88] ss:$16 sps:$4 sm:$0xff]  }
 0x5ce   : > { %10839 = vmatprep.subr.bf16.mxu0 %v16623_v32  ;;  %11871 = vmatprep.subr.bf16.mxu1 %v16626_v33  ;;  %v16713_v32 = vld [vmem:[%s17559_s13 + $0x2aa4] ss:$16 sps:$4 sm:$0xff]   ;;  %v16716_v33 = vld [vmem:[%s17559_s13 + $0x2aac] ss:$16 sps:$4 sm:$0xff]  }
 0x5d1   : > { %10840 = vmatpush1.bf16.msra.mxu0 %v16621_v26  ;;  %11872 = vmatpush1.bf16.msra.mxu1 %v16624_v27  ;;  %v16711_v26 = vld [vmem:[%s17559_s13 + $0x2aa0] ss:$16 sps:$4 sm:$0xff]   ;;  %v16714_v27 = vld [vmem:[%s17559_s13 + $0x2aa8] ss:$16 sps:$4 sm:$0xff]  }
 0x5d2   : > { %10841 = vmatprep.subr.bf16.mxu0 %v16629_v36  ;;  %11873 = vmatprep.subr.bf16.mxu1 %v16632_v37  ;;  %v16719_v36 = vld [vmem:[%s17559_s13 + $0x2ac4] ss:$16 sps:$4 sm:$0xff]   ;;  %v16722_v37 = vld [vmem:[%s17559_s13 + $0x2acc] ss:$16 sps:$4 sm:$0xff]  }
 0x5d5   : > { %10842 = vmatpush1.bf16.msra.mxu0 %v16627_v30  ;;  %11874 = vmatpush1.bf16.msra.mxu1 %v16630_v31  ;;  %v16717_v30 = vld [vmem:[%s17559_s13 + $0x2ac0] ss:$16 sps:$4 sm:$0xff]   ;;  %v16720_v31 = vld [vmem:[%s17559_s13 + $0x2ac8] ss:$16 sps:$4 sm:$0xff]  }
 0x5d6   : > { %10843 = vmatprep.subr.bf16.mxu0 %v16635_v40  ;;  %11875 = vmatprep.subr.bf16.mxu1 %v16638_v41  ;;  %v16725_v40 = vld [vmem:[%s17559_s13 + $0x2ae4] ss:$16 sps:$4 sm:$0xff]   ;;  %v16728_v41 = vld [vmem:[%s17559_s13 + $0x2aec] ss:$16 sps:$4 sm:$0xff]  }
 0x5d9   : > { %10844 = vmatpush1.bf16.msra.mxu0 %v16633_v34  ;;  %11876 = vmatpush1.bf16.msra.mxu1 %v16636_v35  ;;  %v16723_v34 = vld [vmem:[%s17559_s13 + $0x2ae0] ss:$16 sps:$4 sm:$0xff]   ;;  %v16726_v35 = vld [vmem:[%s17559_s13 + $0x2ae8] ss:$16 sps:$4 sm:$0xff]  }
 0x5da   : > { %10845 = vmatprep.subr.bf16.mxu0 %v16641_v44  ;;  %11877 = vmatprep.subr.bf16.mxu1 %v16644_v45  ;;  %v16731_v44 = vld [vmem:[%s17559_s13 + $0x2b04] ss:$16 sps:$4 sm:$0xff]   ;;  %v16734_v45 = vld [vmem:[%s17559_s13 + $0x2b0c] ss:$16 sps:$4 sm:$0xff]  }
 0x5dd   : > { %10846 = vmatpush1.bf16.msra.mxu0 %v16639_v46  ;;  %11878 = vmatpush1.bf16.msra.mxu1 %v16642_v39  ;;  %v16729_v46 = vld [vmem:[%s17559_s13 + $0x2b00] ss:$16 sps:$4 sm:$0xff]   ;;  %v16732_v39 = vld [vmem:[%s17559_s13 + $0x2b08] ss:$16 sps:$4 sm:$0xff]  }
 0x5de   : > { %10847 = vmatprep.subr.bf16.mxu0 %v16647_v48  ;;  %11879 = vmatprep.subr.bf16.mxu1 %v16650_v49  ;;  %v16737_v48 = vld [vmem:[%s17559_s13 + $0x2b24] ss:$16 sps:$4 sm:$0xff]   ;;  %v16740_v49 = vld [vmem:[%s17559_s13 + $0x2b2c] ss:$16 sps:$4 sm:$0xff]  }
 0x5e1   : > { %10848 = vmatpush1.bf16.msra.mxu0 %v16645_v50  ;;  %11880 = vmatpush1.bf16.msra.mxu1 %v16648_v51  ;;  %v16735_v50 = vld [vmem:[%s17559_s13 + $0x2b20] ss:$16 sps:$4 sm:$0xff]   ;;  %v16738_v51 = vld [vmem:[%s17559_s13 + $0x2b28] ss:$16 sps:$4 sm:$0xff]  }
 0x5e2   : > { %10849 = vmatprep.subr.bf16.mxu0 %v16653_v52  ;;  %11881 = vmatprep.subr.bf16.mxu1 %v16656_v53  ;;  %v16743_v52 = vld [vmem:[%s17559_s13 + $0x2b44] ss:$16 sps:$4 sm:$0xff]   ;;  %v16746_v53 = vld [vmem:[%s17559_s13 + $0x2b4c] ss:$16 sps:$4 sm:$0xff]  }
 0x5e5   : > { %10850 = vmatpush1.bf16.msra.mxu0 %v16651_v54  ;;  %11882 = vmatpush1.bf16.msra.mxu1 %v16654_v55  ;;  %v16741_v54 = vld [vmem:[%s17559_s13 + $0x2b40] ss:$16 sps:$4 sm:$0xff]   ;;  %v16744_v55 = vld [vmem:[%s17559_s13 + $0x2b48] ss:$16 sps:$4 sm:$0xff]  }
 0x5e6   : > { %10851 = vmatprep.subr.bf16.mxu0 %v16659_v56  ;;  %11883 = vmatprep.subr.bf16.mxu1 %v16662_v57  ;;  %v16749_v56 = vld [vmem:[%s17559_s13 + $0x2b64] ss:$16 sps:$4 sm:$0xff]   ;;  %v16752_v57 = vld [vmem:[%s17559_s13 + $0x2b6c] ss:$16 sps:$4 sm:$0xff]  }
 0x5e9   : > { %10852 = vmatpush1.bf16.msra.mxu0 %v16657_v58  ;;  %11884 = vmatpush1.bf16.msra.mxu1 %v16660_v59  ;;  %v16747_v58 = vld [vmem:[%s17559_s13 + $0x2b60] ss:$16 sps:$4 sm:$0xff]   ;;  %v16750_v59 = vld [vmem:[%s17559_s13 + $0x2b68] ss:$16 sps:$4 sm:$0xff]  }
 0x5ea   : > { %10853 = vmatprep.subr.bf16.mxu0 %v16665_v60  ;;  %11885 = vmatprep.subr.bf16.mxu1 %v16668_v61  ;;  %v16755_v60 = vld [vmem:[%s17559_s13 + $0x2b84] ss:$16 sps:$4 sm:$0xff]   ;;  %v16758_v61 = vld [vmem:[%s17559_s13 + $0x2b8c] ss:$16 sps:$4 sm:$0xff]  }
 0x5ed   : > { %10854 = vmatpush1.bf16.msra.mxu0 %v16663_v62  ;;  %11886 = vmatpush1.bf16.msra.mxu1 %v16666_v1  ;;  %v16753_v62 = vld [vmem:[%s17559_s13 + $0x2b80] ss:$16 sps:$4 sm:$0xff]   ;;  %v16756_v1 = vld [vmem:[%s17559_s13 + $0x2b88] ss:$16 sps:$4 sm:$0xff]  }
 0x5ee   : > { %10855 = vmatprep.subr.bf16.mxu0 %v16671_v2  ;;  %11887 = vmatprep.subr.bf16.mxu1 %v16674_v5  ;;  %v16761_v2 = vld [vmem:[%s17559_s13 + $0x2ba4] ss:$16 sps:$4 sm:$0xff]   ;;  %v16764_v5 = vld [vmem:[%s17559_s13 + $0x2bac] ss:$16 sps:$4 sm:$0xff]  }
 0x5f1   : > { %10856 = vmatpush1.bf16.msra.mxu0 %v16669_v7  ;;  %11888 = vmatpush1.bf16.msra.mxu1 %v16672_v0  ;;  %v16759_v7 = vld [vmem:[%s17559_s13 + $0x2ba0] ss:$16 sps:$4 sm:$0xff]   ;;  %v16762_v0 = vld [vmem:[%s17559_s13 + $0x2ba8] ss:$16 sps:$4 sm:$0xff]  }
 0x5f2   : > { %10857 = vmatprep.subr.bf16.mxu0 %v16677_v8  ;;  %11889 = vmatprep.subr.bf16.mxu1 %v16680_v9  ;;  %v16767_v8 = vld [vmem:[%s17559_s13 + $0x2bc4] ss:$16 sps:$4 sm:$0xff]   ;;  %v16770_v9 = vld [vmem:[%s17559_s13 + $0x2bcc] ss:$16 sps:$4 sm:$0xff]  }
 0x5f5   : > { %10858 = vmatpush1.bf16.msra.mxu0 %v16675_v3  ;;  %11890 = vmatpush1.bf16.msra.mxu1 %v16678_v4  ;;  %v16765_v3 = vld [vmem:[%s17559_s13 + $0x2bc0] ss:$16 sps:$4 sm:$0xff]   ;;  %v16768_v4 = vld [vmem:[%s17559_s13 + $0x2bc8] ss:$16 sps:$4 sm:$0xff]  }
 0x5f6   : > { %10870 = vmatprep.subr.bf16.mxu0 %v16683_v12  ;;  %11902 = vmatprep.subr.bf16.mxu1 %v16686_v13  ;;  %v16773_v12 = vld [vmem:[%s17559_s13 + $0x2be4] ss:$16 sps:$4 sm:$0xff]   ;;  %v16776_v13 = vld [vmem:[%s17559_s13 + $0x2bec] ss:$16 sps:$4 sm:$0xff]  }
 0x5f8   : > { %10860 = vmatmul.mubr.bf16.vlgmr.msra.gmra.mrb[0].mxu0 %v12766_v6  ;;  %11892 = vmatmul.mubr.bf16.vlgmr.msra.gmra.mrb[0].mxu1 %v12766_v6  ;;  %v16771_v6 = vld [vmem:[%s17559_s13 + $0x2be0] ss:$16 sps:$4 sm:$0xff]  }
 0x5f9   : > { %10871 = vmatpush1.bf16.msra.mxu0 %v16681_v63  ;;  %11903 = vmatpush1.bf16.msra.mxu1 %v16684_v16  ;;  %v16774_v63 = vld [vmem:[%s17559_s13 + $0x2be8] ss:$16 sps:$4 sm:$0xff]   ;;  %v16779_v16 = vld [vmem:[%s17559_s13 + $0x2c04] ss:$16 sps:$4 sm:$0xff]  }
 0x5fa   : > { %10872 = vmatprep.subr.bf16.mxu0 %v16689_v17  ;;  %11904 = vmatprep.subr.bf16.mxu1 %v16692_v10  ;;  %v16782_v17 = vld [vmem:[%s17559_s13 + $0x2c0c] ss:$16 sps:$4 sm:$0xff]   ;;  %v12768_v10 = vcombine.low %v19123_v42, %v19126_v43  ;;  %v16783_v43 = vld [vmem:[%s17559_s13 + $0x2c20] ss:$16 sps:$4 sm:$0xff]  }
 0x5fb   : > { %10902 = vmatprep.mubr.bf16.mxu0 %v12769_v47  ;;  %11934 = vmatprep.mubr.bf16.mxu1 %v12769_v47  ;;  %v19197_v47 = vld [vmem:[%s17557_s18 + $0xb0] sm:$0xff] }
 0x5fd   : > { %10873 = vmatpush1.bf16.msra.mxu0 %v16687_v38  ;;  %11905 = vmatpush1.bf16.msra.mxu1 %v16690_v11  ;;  %v19200_v38 = vld [vmem:[%s17557_s18 + $0x170] sm:$0xff] }
 0x5fe   : > { %10874 = vmatprep.subr.bf16.mxu0 %v16695_v20  ;;  %11906 = vmatprep.subr.bf16.mxu1 %v16698_v21  ;;  %v16777_v11 = vld [vmem:[%s17559_s13 + $0x2c00] ss:$16 sps:$4 sm:$0xff]   ;;  %v16780_v20 = vld [vmem:[%s17559_s13 + $0x2c08] ss:$16 sps:$4 sm:$0xff]   ;;  %v16785_v21 = vld [vmem:[%s17559_s13 + $0x2c24] ss:$16 sps:$4 sm:$0xff]   ;;  %v12771_v42 = vcombine.high %v19197_v47, %v19200_v38 }
 0x601   : > { %10875 = vmatpush1.bf16.msra.mxu0 %v16693_v14  ;;  %11907 = vmatpush1.bf16.msra.mxu1 %v16696_v15  ;;  %v16788_v14 = vld [vmem:[%s17559_s13 + $0x2c2c] ss:$16 sps:$4 sm:$0xff]   ;;  %v16786_v15 = vld [vmem:[%s17559_s13 + $0x2c28] ss:$16 sps:$4 sm:$0xff]  }
 0x602   : > { %10876 = vmatprep.subr.bf16.mxu0 %v16701_v24  ;;  %11908 = vmatprep.subr.bf16.mxu1 %v16704_v25  ;;  %v16791_v24 = vld [vmem:[%s17559_s13 + $0x2c44] ss:$16 sps:$4 sm:$0xff]   ;;  %v16794_v25 = vld [vmem:[%s17559_s13 + $0x2c4c] ss:$16 sps:$4 sm:$0xff]  }
 0x605   : > { %10877 = vmatpush1.bf16.msra.mxu0 %v16699_v18  ;;  %11909 = vmatpush1.bf16.msra.mxu1 %v16702_v19  ;;  %v16789_v18 = vld [vmem:[%s17559_s13 + $0x2c40] ss:$16 sps:$4 sm:$0xff]   ;;  %v16792_v19 = vld [vmem:[%s17559_s13 + $0x2c48] ss:$16 sps:$4 sm:$0xff]  }
 0x606   : > { %10878 = vmatprep.subr.bf16.mxu0 %v16707_v28  ;;  %11910 = vmatprep.subr.bf16.mxu1 %v16710_v29  ;;  %v16797_v28 = vld [vmem:[%s17559_s13 + $0x2c64] ss:$16 sps:$4 sm:$0xff]   ;;  %v16800_v29 = vld [vmem:[%s17559_s13 + $0x2c6c] ss:$16 sps:$4 sm:$0xff]  }
 0x609   : > { %10879 = vmatpush1.bf16.msra.mxu0 %v16705_v22  ;;  %11911 = vmatpush1.bf16.msra.mxu1 %v16708_v23  ;;  %v16795_v22 = vld [vmem:[%s17559_s13 + $0x2c60] ss:$16 sps:$4 sm:$0xff]   ;;  %v16798_v23 = vld [vmem:[%s17559_s13 + $0x2c68] ss:$16 sps:$4 sm:$0xff]  }
 0x60a   : > { %10880 = vmatprep.subr.bf16.mxu0 %v16713_v32  ;;  %11912 = vmatprep.subr.bf16.mxu1 %v16716_v33  ;;  %v16803_v32 = vld [vmem:[%s17559_s13 + $0x2c84] ss:$16 sps:$4 sm:$0xff]   ;;  %v16806_v33 = vld [vmem:[%s17559_s13 + $0x2c8c] ss:$16 sps:$4 sm:$0xff]  }
 0x60d   : > { %10881 = vmatpush1.bf16.msra.mxu0 %v16711_v26  ;;  %11913 = vmatpush1.bf16.msra.mxu1 %v16714_v27  ;;  %v16801_v26 = vld [vmem:[%s17559_s13 + $0x2c80] ss:$16 sps:$4 sm:$0xff]   ;;  %v16804_v27 = vld [vmem:[%s17559_s13 + $0x2c88] ss:$16 sps:$4 sm:$0xff]  }
 0x60e   : > { %10882 = vmatprep.subr.bf16.mxu0 %v16719_v36  ;;  %11914 = vmatprep.subr.bf16.mxu1 %v16722_v37  ;;  %v16809_v36 = vld [vmem:[%s17559_s13 + $0x2ca4] ss:$16 sps:$4 sm:$0xff]   ;;  %v16812_v37 = vld [vmem:[%s17559_s13 + $0x2cac] ss:$16 sps:$4 sm:$0xff]  }
 0x611   : > { %10883 = vmatpush1.bf16.msra.mxu0 %v16717_v30  ;;  %11915 = vmatpush1.bf16.msra.mxu1 %v16720_v31  ;;  %v16807_v30 = vld [vmem:[%s17559_s13 + $0x2ca0] ss:$16 sps:$4 sm:$0xff]   ;;  %v16810_v31 = vld [vmem:[%s17559_s13 + $0x2ca8] ss:$16 sps:$4 sm:$0xff]  }
 0x612   : > { %10884 = vmatprep.subr.bf16.mxu0 %v16725_v40  ;;  %11916 = vmatprep.subr.bf16.mxu1 %v16728_v41  ;;  %v16815_v40 = vld [vmem:[%s17559_s13 + $0x2cc4] ss:$16 sps:$4 sm:$0xff]   ;;  %v16818_v41 = vld [vmem:[%s17559_s13 + $0x2ccc] ss:$16 sps:$4 sm:$0xff]  }
 0x615   : > { %10885 = vmatpush1.bf16.msra.mxu0 %v16723_v34  ;;  %11917 = vmatpush1.bf16.msra.mxu1 %v16726_v35  ;;  %v16813_v34 = vld [vmem:[%s17559_s13 + $0x2cc0] ss:$16 sps:$4 sm:$0xff]   ;;  %v16816_v35 = vld [vmem:[%s17559_s13 + $0x2cc8] ss:$16 sps:$4 sm:$0xff]  }
 0x616   : > { %10886 = vmatprep.subr.bf16.mxu0 %v16731_v44  ;;  %11918 = vmatprep.subr.bf16.mxu1 %v16734_v45  ;;  %v16821_v44 = vld [vmem:[%s17559_s13 + $0x2ce4] ss:$16 sps:$4 sm:$0xff]   ;;  %v16824_v45 = vld [vmem:[%s17559_s13 + $0x2cec] ss:$16 sps:$4 sm:$0xff]  }
 0x619   : > { %10887 = vmatpush1.bf16.msra.mxu0 %v16729_v46  ;;  %11919 = vmatpush1.bf16.msra.mxu1 %v16732_v39  ;;  %v16819_v46 = vld [vmem:[%s17559_s13 + $0x2ce0] ss:$16 sps:$4 sm:$0xff]   ;;  %v16822_v39 = vld [vmem:[%s17559_s13 + $0x2ce8] ss:$16 sps:$4 sm:$0xff]  }
 0x61a   : > { %10888 = vmatprep.subr.bf16.mxu0 %v16737_v48  ;;  %11920 = vmatprep.subr.bf16.mxu1 %v16740_v49  ;;  %v16827_v48 = vld [vmem:[%s17559_s13 + $0x2d04] ss:$16 sps:$4 sm:$0xff]   ;;  %v16830_v49 = vld [vmem:[%s17559_s13 + $0x2d0c] ss:$16 sps:$4 sm:$0xff]  }
 0x61d   : > { %10889 = vmatpush1.bf16.msra.mxu0 %v16735_v50  ;;  %11921 = vmatpush1.bf16.msra.mxu1 %v16738_v51  ;;  %v16825_v50 = vld [vmem:[%s17559_s13 + $0x2d00] ss:$16 sps:$4 sm:$0xff]   ;;  %v16828_v51 = vld [vmem:[%s17559_s13 + $0x2d08] ss:$16 sps:$4 sm:$0xff]  }
 0x61e   : > { %10890 = vmatprep.subr.bf16.mxu0 %v16743_v52  ;;  %11922 = vmatprep.subr.bf16.mxu1 %v16746_v53  ;;  %v16833_v52 = vld [vmem:[%s17559_s13 + $0x2d24] ss:$16 sps:$4 sm:$0xff]   ;;  %v16836_v53 = vld [vmem:[%s17559_s13 + $0x2d2c] ss:$16 sps:$4 sm:$0xff]  }
 0x621   : > { %10891 = vmatpush1.bf16.msra.mxu0 %v16741_v54  ;;  %11923 = vmatpush1.bf16.msra.mxu1 %v16744_v55  ;;  %v16831_v54 = vld [vmem:[%s17559_s13 + $0x2d20] ss:$16 sps:$4 sm:$0xff]   ;;  %v16834_v55 = vld [vmem:[%s17559_s13 + $0x2d28] ss:$16 sps:$4 sm:$0xff]  }
 0x622   : > { %10892 = vmatprep.subr.bf16.mxu0 %v16749_v56  ;;  %11924 = vmatprep.subr.bf16.mxu1 %v16752_v57  ;;  %v16839_v56 = vld [vmem:[%s17559_s13 + $0x2d44] ss:$16 sps:$4 sm:$0xff]   ;;  %v16842_v57 = vld [vmem:[%s17559_s13 + $0x2d4c] ss:$16 sps:$4 sm:$0xff]  }
 0x625   : > { %10893 = vmatpush1.bf16.msra.mxu0 %v16747_v58  ;;  %11925 = vmatpush1.bf16.msra.mxu1 %v16750_v59  ;;  %v16837_v58 = vld [vmem:[%s17559_s13 + $0x2d40] ss:$16 sps:$4 sm:$0xff]   ;;  %v16840_v59 = vld [vmem:[%s17559_s13 + $0x2d48] ss:$16 sps:$4 sm:$0xff]  }
 0x626   : > { %10894 = vmatprep.subr.bf16.mxu0 %v16755_v60  ;;  %11926 = vmatprep.subr.bf16.mxu1 %v16758_v61  ;;  %v16845_v60 = vld [vmem:[%s17559_s13 + $0x2d64] ss:$16 sps:$4 sm:$0xff]   ;;  %v16848_v61 = vld [vmem:[%s17559_s13 + $0x2d6c] ss:$16 sps:$4 sm:$0xff]  }
 0x629   : > { %10895 = vmatpush1.bf16.msra.mxu0 %v16753_v62  ;;  %11927 = vmatpush1.bf16.msra.mxu1 %v16756_v1  ;;  %v16843_v62 = vld [vmem:[%s17559_s13 + $0x2d60] ss:$16 sps:$4 sm:$0xff]   ;;  %v16846_v1 = vld [vmem:[%s17559_s13 + $0x2d68] ss:$16 sps:$4 sm:$0xff]  }
 0x62a   : > { %10896 = vmatprep.subr.bf16.mxu0 %v16761_v2  ;;  %11928 = vmatprep.subr.bf16.mxu1 %v16764_v5  ;;  %v16851_v2 = vld [vmem:[%s17559_s13 + $0x2d84] ss:$16 sps:$4 sm:$0xff]   ;;  %v16854_v5 = vld [vmem:[%s17559_s13 + $0x2d8c] ss:$16 sps:$4 sm:$0xff]  }
 0x62d   : > { %10897 = vmatpush1.bf16.msra.mxu0 %v16759_v7  ;;  %11929 = vmatpush1.bf16.msra.mxu1 %v16762_v0  ;;  %v16849_v7 = vld [vmem:[%s17559_s13 + $0x2d80] ss:$16 sps:$4 sm:$0xff]   ;;  %v16852_v0 = vld [vmem:[%s17559_s13 + $0x2d88] ss:$16 sps:$4 sm:$0xff]  }
 0x62e   : > { %10898 = vmatprep.subr.bf16.mxu0 %v16767_v8  ;;  %11930 = vmatprep.subr.bf16.mxu1 %v16770_v9  ;;  %v16857_v8 = vld [vmem:[%s17559_s13 + $0x2da4] ss:$16 sps:$4 sm:$0xff]   ;;  %v16860_v9 = vld [vmem:[%s17559_s13 + $0x2dac] ss:$16 sps:$4 sm:$0xff]  }
 0x631   : > { %10899 = vmatpush1.bf16.msra.mxu0 %v16765_v3  ;;  %11931 = vmatpush1.bf16.msra.mxu1 %v16768_v4  ;;  %v16855_v3 = vld [vmem:[%s17559_s13 + $0x2da0] ss:$16 sps:$4 sm:$0xff]   ;;  %v16858_v4 = vld [vmem:[%s17559_s13 + $0x2da8] ss:$16 sps:$4 sm:$0xff]  }
 0x632   : > { %10900 = vmatprep.subr.bf16.mxu0 %v16773_v12  ;;  %11932 = vmatprep.subr.bf16.mxu1 %v16776_v13  ;;  %v16863_v12 = vld [vmem:[%s17559_s13 + $0x2dc4] ss:$16 sps:$4 sm:$0xff]   ;;  %v16866_v13 = vld [vmem:[%s17559_s13 + $0x2dcc] ss:$16 sps:$4 sm:$0xff]  }
 0x635   : > { %10901 = vmatpush1.bf16.msra.mxu0 %v16771_v6  ;;  %11933 = vmatpush1.bf16.msra.mxu1 %v16774_v63  ;;  %v16861_v6 = vld [vmem:[%s17559_s13 + $0x2dc0] ss:$16 sps:$4 sm:$0xff]   ;;  %v16864_v63 = vld [vmem:[%s17559_s13 + $0x2dc8] ss:$16 sps:$4 sm:$0xff]  }
 0x636   : > { %10913 = vmatprep.subr.bf16.mxu0 %v16779_v16  ;;  %11945 = vmatprep.subr.bf16.mxu1 %v16782_v17  ;;  %v16869_v16 = vld [vmem:[%s17559_s13 + $0x2de4] ss:$16 sps:$4 sm:$0xff]   ;;  %v16872_v17 = vld [vmem:[%s17559_s13 + $0x2dec] ss:$16 sps:$4 sm:$0xff]  }
 0x638   : > { %10903 = vmatmul.mubr.bf16.vlgmr.msra.gmra.mrb[0].mxu0 %v12768_v10  ;;  %11935 = vmatmul.mubr.bf16.vlgmr.msra.gmra.mrb[0].mxu1 %v12768_v10  ;;  %v16867_v10 = vld [vmem:[%s17559_s13 + $0x2de0] ss:$16 sps:$4 sm:$0xff]  }
 0x639   : > { %10914 = vmatpush1.bf16.msra.mxu0 %v16777_v11  ;;  %11946 = vmatpush1.bf16.msra.mxu1 %v16780_v20  ;;  %v16870_v11 = vld [vmem:[%s17559_s13 + $0x2de8] ss:$16 sps:$4 sm:$0xff]   ;;  %v16875_v20 = vld [vmem:[%s17559_s13 + $0x2e04] ss:$16 sps:$4 sm:$0xff]  }
 0x63a   : > { %10915 = vmatprep.subr.bf16.mxu0 %v16785_v21  ;;  %11947 = vmatprep.subr.bf16.mxu1 %v16788_v14  ;;  %v16878_v21 = vld [vmem:[%s17559_s13 + $0x2e0c] ss:$16 sps:$4 sm:$0xff]   ;;  %v12770_v14 = vcombine.low %v19197_v47, %v19200_v38  ;;  %v16879_v38 = vld [vmem:[%s17559_s13 + $0x2e20] ss:$16 sps:$4 sm:$0xff]  }
 0x63b   : > { %10945 = vmatprep.mubr.bf16.mxu0 %v12771_v42  ;;  %11977 = vmatprep.mubr.bf16.mxu1 %v12771_v42  ;;  %v19271_v42 = vld [vmem:[%s17557_s18 + $0xb8] sm:$0xff] }
 0x63d   : > { %10916 = vmatpush1.bf16.msra.mxu0 %v16783_v43  ;;  %11948 = vmatpush1.bf16.msra.mxu1 %v16786_v15  ;;  %v19274_v43 = vld [vmem:[%s17557_s18 + $0x178] sm:$0xff]  ;;  %v16873_v15 = vld [vmem:[%s17559_s13 + $0x2e00] ss:$16 sps:$4 sm:$0xff]  }
 0x63e   : > { %10917 = vmatprep.subr.bf16.mxu0 %v16791_v24  ;;  %11949 = vmatprep.subr.bf16.mxu1 %v16794_v25  ;;  %v16876_v24 = vld [vmem:[%s17559_s13 + $0x2e08] ss:$16 sps:$4 sm:$0xff]   ;;  %v16881_v25 = vld [vmem:[%s17559_s13 + $0x2e24] ss:$16 sps:$4 sm:$0xff]   ;;  %v12773_v47 = vcombine.high %v19271_v42, %v19274_v43 }
 0x641   : > { %10918 = vmatpush1.bf16.msra.mxu0 %v16789_v18  ;;  %11950 = vmatpush1.bf16.msra.mxu1 %v16792_v19  ;;  %v16884_v18 = vld [vmem:[%s17559_s13 + $0x2e2c] ss:$16 sps:$4 sm:$0xff]   ;;  %v16882_v19 = vld [vmem:[%s17559_s13 + $0x2e28] ss:$16 sps:$4 sm:$0xff]  }
 0x642   : > { %10919 = vmatprep.subr.bf16.mxu0 %v16797_v28  ;;  %11951 = vmatprep.subr.bf16.mxu1 %v16800_v29  ;;  %v16887_v28 = vld [vmem:[%s17559_s13 + $0x2e44] ss:$16 sps:$4 sm:$0xff]   ;;  %v16890_v29 = vld [vmem:[%s17559_s13 + $0x2e4c] ss:$16 sps:$4 sm:$0xff]  }
 0x645   : > { %10920 = vmatpush1.bf16.msra.mxu0 %v16795_v22  ;;  %11952 = vmatpush1.bf16.msra.mxu1 %v16798_v23  ;;  %v16885_v22 = vld [vmem:[%s17559_s13 + $0x2e40] ss:$16 sps:$4 sm:$0xff]   ;;  %v16888_v23 = vld [vmem:[%s17559_s13 + $0x2e48] ss:$16 sps:$4 sm:$0xff]  }
 0x646   : > { %10921 = vmatprep.subr.bf16.mxu0 %v16803_v32  ;;  %11953 = vmatprep.subr.bf16.mxu1 %v16806_v33  ;;  %v16893_v32 = vld [vmem:[%s17559_s13 + $0x2e64] ss:$16 sps:$4 sm:$0xff]   ;;  %v16896_v33 = vld [vmem:[%s17559_s13 + $0x2e6c] ss:$16 sps:$4 sm:$0xff]  }
 0x649   : > { %10922 = vmatpush1.bf16.msra.mxu0 %v16801_v26  ;;  %11954 = vmatpush1.bf16.msra.mxu1 %v16804_v27  ;;  %v16891_v26 = vld [vmem:[%s17559_s13 + $0x2e60] ss:$16 sps:$4 sm:$0xff]   ;;  %v16894_v27 = vld [vmem:[%s17559_s13 + $0x2e68] ss:$16 sps:$4 sm:$0xff]  }
 0x64a   : > { %10923 = vmatprep.subr.bf16.mxu0 %v16809_v36  ;;  %11955 = vmatprep.subr.bf16.mxu1 %v16812_v37  ;;  %v16899_v36 = vld [vmem:[%s17559_s13 + $0x2e84] ss:$16 sps:$4 sm:$0xff]   ;;  %v16902_v37 = vld [vmem:[%s17559_s13 + $0x2e8c] ss:$16 sps:$4 sm:$0xff]  }
 0x64d   : > { %10924 = vmatpush1.bf16.msra.mxu0 %v16807_v30  ;;  %11956 = vmatpush1.bf16.msra.mxu1 %v16810_v31  ;;  %v16897_v30 = vld [vmem:[%s17559_s13 + $0x2e80] ss:$16 sps:$4 sm:$0xff]   ;;  %v16900_v31 = vld [vmem:[%s17559_s13 + $0x2e88] ss:$16 sps:$4 sm:$0xff]  }
 0x64e   : > { %10925 = vmatprep.subr.bf16.mxu0 %v16815_v40  ;;  %11957 = vmatprep.subr.bf16.mxu1 %v16818_v41  ;;  %v16905_v40 = vld [vmem:[%s17559_s13 + $0x2ea4] ss:$16 sps:$4 sm:$0xff]   ;;  %v16908_v41 = vld [vmem:[%s17559_s13 + $0x2eac] ss:$16 sps:$4 sm:$0xff]  }
 0x651   : > { %10926 = vmatpush1.bf16.msra.mxu0 %v16813_v34  ;;  %11958 = vmatpush1.bf16.msra.mxu1 %v16816_v35  ;;  %v16903_v34 = vld [vmem:[%s17559_s13 + $0x2ea0] ss:$16 sps:$4 sm:$0xff]   ;;  %v16906_v35 = vld [vmem:[%s17559_s13 + $0x2ea8] ss:$16 sps:$4 sm:$0xff]  }
 0x652   : > { %10927 = vmatprep.subr.bf16.mxu0 %v16821_v44  ;;  %11959 = vmatprep.subr.bf16.mxu1 %v16824_v45  ;;  %v16911_v44 = vld [vmem:[%s17559_s13 + $0x2ec4] ss:$16 sps:$4 sm:$0xff]   ;;  %v16914_v45 = vld [vmem:[%s17559_s13 + $0x2ecc] ss:$16 sps:$4 sm:$0xff]  }
 0x655   : > { %10928 = vmatpush1.bf16.msra.mxu0 %v16819_v46  ;;  %11960 = vmatpush1.bf16.msra.mxu1 %v16822_v39  ;;  %v16909_v46 = vld [vmem:[%s17559_s13 + $0x2ec0] ss:$16 sps:$4 sm:$0xff]   ;;  %v16912_v39 = vld [vmem:[%s17559_s13 + $0x2ec8] ss:$16 sps:$4 sm:$0xff]  }
 0x656   : > { %10929 = vmatprep.subr.bf16.mxu0 %v16827_v48  ;;  %11961 = vmatprep.subr.bf16.mxu1 %v16830_v49  ;;  %v16917_v48 = vld [vmem:[%s17559_s13 + $0x2ee4] ss:$16 sps:$4 sm:$0xff]   ;;  %v16920_v49 = vld [vmem:[%s17559_s13 + $0x2eec] ss:$16 sps:$4 sm:$0xff]  }
 0x659   : > { %10930 = vmatpush1.bf16.msra.mxu0 %v16825_v50  ;;  %11962 = vmatpush1.bf16.msra.mxu1 %v16828_v51  ;;  %v16915_v50 = vld [vmem:[%s17559_s13 + $0x2ee0] ss:$16 sps:$4 sm:$0xff]   ;;  %v16918_v51 = vld [vmem:[%s17559_s13 + $0x2ee8] ss:$16 sps:$4 sm:$0xff]  }
 0x65a   : > { %10931 = vmatprep.subr.bf16.mxu0 %v16833_v52  ;;  %11963 = vmatprep.subr.bf16.mxu1 %v16836_v53  ;;  %v16923_v52 = vld [vmem:[%s17559_s13 + $0x2f04] ss:$16 sps:$4 sm:$0xff]   ;;  %v16926_v53 = vld [vmem:[%s17559_s13 + $0x2f0c] ss:$16 sps:$4 sm:$0xff]  }
 0x65d   : > { %10932 = vmatpush1.bf16.msra.mxu0 %v16831_v54  ;;  %11964 = vmatpush1.bf16.msra.mxu1 %v16834_v55  ;;  %v16921_v54 = vld [vmem:[%s17559_s13 + $0x2f00] ss:$16 sps:$4 sm:$0xff]   ;;  %v16924_v55 = vld [vmem:[%s17559_s13 + $0x2f08] ss:$16 sps:$4 sm:$0xff]  }
 0x65e   : > { %10933 = vmatprep.subr.bf16.mxu0 %v16839_v56  ;;  %11965 = vmatprep.subr.bf16.mxu1 %v16842_v57  ;;  %v16929_v56 = vld [vmem:[%s17559_s13 + $0x2f24] ss:$16 sps:$4 sm:$0xff]   ;;  %v16932_v57 = vld [vmem:[%s17559_s13 + $0x2f2c] ss:$16 sps:$4 sm:$0xff]  }
 0x661   : > { %10934 = vmatpush1.bf16.msra.mxu0 %v16837_v58  ;;  %11966 = vmatpush1.bf16.msra.mxu1 %v16840_v59  ;;  %v16927_v58 = vld [vmem:[%s17559_s13 + $0x2f20] ss:$16 sps:$4 sm:$0xff]   ;;  %v16930_v59 = vld [vmem:[%s17559_s13 + $0x2f28] ss:$16 sps:$4 sm:$0xff]  }
 0x662   : > { %10935 = vmatprep.subr.bf16.mxu0 %v16845_v60  ;;  %11967 = vmatprep.subr.bf16.mxu1 %v16848_v61  ;;  %v16935_v60 = vld [vmem:[%s17559_s13 + $0x2f44] ss:$16 sps:$4 sm:$0xff]   ;;  %v16938_v61 = vld [vmem:[%s17559_s13 + $0x2f4c] ss:$16 sps:$4 sm:$0xff]  }
 0x665   : > { %10936 = vmatpush1.bf16.msra.mxu0 %v16843_v62  ;;  %11968 = vmatpush1.bf16.msra.mxu1 %v16846_v1  ;;  %v16933_v62 = vld [vmem:[%s17559_s13 + $0x2f40] ss:$16 sps:$4 sm:$0xff]   ;;  %v16936_v1 = vld [vmem:[%s17559_s13 + $0x2f48] ss:$16 sps:$4 sm:$0xff]  }
 0x666   : > { %10937 = vmatprep.subr.bf16.mxu0 %v16851_v2  ;;  %11969 = vmatprep.subr.bf16.mxu1 %v16854_v5  ;;  %v16941_v2 = vld [vmem:[%s17559_s13 + $0x2f64] ss:$16 sps:$4 sm:$0xff]   ;;  %v16944_v5 = vld [vmem:[%s17559_s13 + $0x2f6c] ss:$16 sps:$4 sm:$0xff]  }
 0x669   : > { %10938 = vmatpush1.bf16.msra.mxu0 %v16849_v7  ;;  %11970 = vmatpush1.bf16.msra.mxu1 %v16852_v0  ;;  %v16939_v7 = vld [vmem:[%s17559_s13 + $0x2f60] ss:$16 sps:$4 sm:$0xff]   ;;  %v16942_v0 = vld [vmem:[%s17559_s13 + $0x2f68] ss:$16 sps:$4 sm:$0xff]  }
 0x66a   : > { %10939 = vmatprep.subr.bf16.mxu0 %v16857_v8  ;;  %11971 = vmatprep.subr.bf16.mxu1 %v16860_v9  ;;  %v16947_v8 = vld [vmem:[%s17559_s13 + $0x2f84] ss:$16 sps:$4 sm:$0xff]   ;;  %v16950_v9 = vld [vmem:[%s17559_s13 + $0x2f8c] ss:$16 sps:$4 sm:$0xff]  }
 0x66d   : > { %10940 = vmatpush1.bf16.msra.mxu0 %v16855_v3  ;;  %11972 = vmatpush1.bf16.msra.mxu1 %v16858_v4  ;;  %v16945_v3 = vld [vmem:[%s17559_s13 + $0x2f80] ss:$16 sps:$4 sm:$0xff]   ;;  %v16948_v4 = vld [vmem:[%s17559_s13 + $0x2f88] ss:$16 sps:$4 sm:$0xff]  }
 0x66e   : > { %10941 = vmatprep.subr.bf16.mxu0 %v16863_v12  ;;  %11973 = vmatprep.subr.bf16.mxu1 %v16866_v13  ;;  %v16953_v12 = vld [vmem:[%s17559_s13 + $0x2fa4] ss:$16 sps:$4 sm:$0xff]   ;;  %v16956_v13 = vld [vmem:[%s17559_s13 + $0x2fac] ss:$16 sps:$4 sm:$0xff]  }
 0x671   : > { %10942 = vmatpush1.bf16.msra.mxu0 %v16861_v6  ;;  %11974 = vmatpush1.bf16.msra.mxu1 %v16864_v63  ;;  %v16951_v6 = vld [vmem:[%s17559_s13 + $0x2fa0] ss:$16 sps:$4 sm:$0xff]   ;;  %v16954_v63 = vld [vmem:[%s17559_s13 + $0x2fa8] ss:$16 sps:$4 sm:$0xff]  }
 0x672   : > { %10943 = vmatprep.subr.bf16.mxu0 %v16869_v16  ;;  %11975 = vmatprep.subr.bf16.mxu1 %v16872_v17  ;;  %v16959_v16 = vld [vmem:[%s17559_s13 + $0x2fc4] ss:$16 sps:$4 sm:$0xff]   ;;  %v16962_v17 = vld [vmem:[%s17559_s13 + $0x2fcc] ss:$16 sps:$4 sm:$0xff]  }
 0x675   : > { %10944 = vmatpush1.bf16.msra.mxu0 %v16867_v10  ;;  %11976 = vmatpush1.bf16.msra.mxu1 %v16870_v11  ;;  %v16957_v10 = vld [vmem:[%s17559_s13 + $0x2fc0] ss:$16 sps:$4 sm:$0xff]   ;;  %v16960_v11 = vld [vmem:[%s17559_s13 + $0x2fc8] ss:$16 sps:$4 sm:$0xff]  }
 0x676   : > { %10956 = vmatprep.subr.bf16.mxu0 %v16875_v20  ;;  %11988 = vmatprep.subr.bf16.mxu1 %v16878_v21  ;;  %v16965_v20 = vld [vmem:[%s17559_s13 + $0x2fe4] ss:$16 sps:$4 sm:$0xff]   ;;  %v16968_v21 = vld [vmem:[%s17559_s13 + $0x2fec] ss:$16 sps:$4 sm:$0xff]  }
 0x678   : > { %10946 = vmatmul.mubr.bf16.vlgmr.msra.gmra.mrb[0].mxu0 %v12770_v14  ;;  %11978 = vmatmul.mubr.bf16.vlgmr.msra.gmra.mrb[0].mxu1 %v12770_v14  ;;  %v16963_v14 = vld [vmem:[%s17559_s13 + $0x2fe0] ss:$16 sps:$4 sm:$0xff]  }
 0x679   : > { %10957 = vmatpush1.bf16.msra.mxu0 %v16873_v15  ;;  %11989 = vmatpush1.bf16.msra.mxu1 %v16876_v24  ;;  %v16966_v15 = vld [vmem:[%s17559_s13 + $0x2fe8] ss:$16 sps:$4 sm:$0xff]   ;;  %v12772_v24 = vcombine.low %v19271_v42, %v19274_v43 }
 0x67a   : > { %10958 = vmatprep.subr.bf16.mxu0 %v16881_v25  ;;  %11990 = vmatprep.subr.bf16.mxu1 %v16884_v18  ;;  %v455_v25 = vld [vmem:[#allocation2] sm:$0xff]  ;;  %v457_v18 = vld [vmem:[#allocation2 + $0x10] sm:$0xff] }
 0x67b   : > { %10988 = vmatprep.mubr.bf16.mxu0 %v12773_v47  ;;  %12020 = vmatprep.mubr.bf16.mxu1 %v12773_v47  ;;  %v456_v47 = vld [vmem:[#allocation2 + $0x8] sm:$0xff] }
 0x67d   : > { %10959 = vmatpush1.bf16.msra.mxu0 %v16879_v38  ;;  %11991 = vmatpush1.bf16.msra.mxu1 %v16882_v19  ;;  %v458_v38 = vld [vmem:[#allocation2 + $0x18] sm:$0xff] }
 0x67e   : > { %10960 = vmatprep.subr.bf16.mxu0 %v16887_v28  ;;  %11992 = vmatprep.subr.bf16.mxu1 %v16890_v29  ;;  %v459_v29 = vld [vmem:[#allocation2 + $0x20] sm:$0xff] }
 0x681   : > { %10961 = vmatpush1.bf16.msra.mxu0 %v16885_v22  ;;  %11993 = vmatpush1.bf16.msra.mxu1 %v16888_v23  ;;  %v461_v22 = vld [vmem:[#allocation2 + $0x30] sm:$0xff] }
 0x682   : > { %10962 = vmatprep.subr.bf16.mxu0 %v16893_v32  ;;  %11994 = vmatprep.subr.bf16.mxu1 %v16896_v33 }
 0x685   : > { %10963 = vmatpush1.bf16.msra.mxu0 %v16891_v26  ;;  %11995 = vmatpush1.bf16.msra.mxu1 %v16894_v27  ;;  %v460_v27 = vld [vmem:[#allocation2 + $0x28] sm:$0xff] }
 0x686   : > { %10964 = vmatprep.subr.bf16.mxu0 %v16899_v36  ;;  %11996 = vmatprep.subr.bf16.mxu1 %v16902_v37  ;;  %v462_v36 = vld [vmem:[#allocation2 + $0x38] sm:$0xff] }
 0x689   : > { %10965 = vmatpush1.bf16.msra.mxu0 %v16897_v30  ;;  %11997 = vmatpush1.bf16.msra.mxu1 %v16900_v31 }
 0x68a   : > { %10966 = vmatprep.subr.bf16.mxu0 %v16905_v40  ;;  %11998 = vmatprep.subr.bf16.mxu1 %v16908_v41 }
 0x68d   : > { %10967 = vmatpush1.bf16.msra.mxu0 %v16903_v34  ;;  %11999 = vmatpush1.bf16.msra.mxu1 %v16906_v35 }
 0x68e   : > { %10968 = vmatprep.subr.bf16.mxu0 %v16911_v44  ;;  %12000 = vmatprep.subr.bf16.mxu1 %v16914_v45  ;;  %v16969_v45 = vld [vmem:[#allocation8 + $0x4] ss:$8 sps:$4 sm:$0xff] (!%p14310_p4)  }
 0x691   : > { %10969 = vmatpush1.bf16.msra.mxu0 %v16909_v46  ;;  %12001 = vmatpush1.bf16.msra.mxu1 %v16912_v39  ;;  %v16971_v46 = vld [vmem:[#allocation8 + $0x104] ss:$8 sps:$4 sm:$0xff] (!%p14310_p4)   ;;  %v16973_v39 = vld [vmem:[#allocation8] ss:$8 sps:$4 sm:$0xff] (!%p14310_p4)  }
 0x692   : > { %10970 = vmatprep.subr.bf16.mxu0 %v16917_v48  ;;  %12002 = vmatprep.subr.bf16.mxu1 %v16920_v49  ;;  %v16974_v48 = vld [vmem:[#allocation8 + $0x100] ss:$8 sps:$4 sm:$0xff] (!%p14310_p4)   ;;  %v16975_v49 = vld [vmem:[#allocation8 + $0x14] ss:$8 sps:$4 sm:$0xff] (!%p14310_p4)  }
 0x695   : > { %10971 = vmatpush1.bf16.msra.mxu0 %v16915_v50  ;;  %12003 = vmatpush1.bf16.msra.mxu1 %v16918_v51  ;;  %v16977_v50 = vld [vmem:[#allocation8 + $0x114] ss:$8 sps:$4 sm:$0xff] (!%p14310_p4)   ;;  %v16979_v51 = vld [vmem:[#allocation8 + $0x10] ss:$8 sps:$4 sm:$0xff] (!%p14310_p4)  }
 0x696   : > { %10972 = vmatprep.subr.bf16.mxu0 %v16923_v52  ;;  %12004 = vmatprep.subr.bf16.mxu1 %v16926_v53  ;;  %v16980_v52 = vld [vmem:[#allocation8 + $0x110] ss:$8 sps:$4 sm:$0xff] (!%p14310_p4)   ;;  %v16981_v53 = vld [vmem:[#allocation8 + $0x24] ss:$8 sps:$4 sm:$0xff] (!%p14310_p4)  }
 0x699   : > { %10973 = vmatpush1.bf16.msra.mxu0 %v16921_v54  ;;  %12005 = vmatpush1.bf16.msra.mxu1 %v16924_v55  ;;  %v16983_v54 = vld [vmem:[#allocation8 + $0x124] ss:$8 sps:$4 sm:$0xff] (!%p14310_p4)   ;;  %v16985_v55 = vld [vmem:[#allocation8 + $0x20] ss:$8 sps:$4 sm:$0xff] (!%p14310_p4)  }
 0x69a   : > { %10974 = vmatprep.subr.bf16.mxu0 %v16929_v56  ;;  %12006 = vmatprep.subr.bf16.mxu1 %v16932_v57  ;;  %v16986_v56 = vld [vmem:[#allocation8 + $0x120] ss:$8 sps:$4 sm:$0xff] (!%p14310_p4)   ;;  %v16987_v57 = vld [vmem:[#allocation8 + $0x34] ss:$8 sps:$4 sm:$0xff] (!%p14310_p4)  }
 0x69d   : > { %10975 = vmatpush1.bf16.msra.mxu0 %v16927_v58  ;;  %12007 = vmatpush1.bf16.msra.mxu1 %v16930_v59  ;;  %v16989_v58 = vld [vmem:[#allocation8 + $0x134] ss:$8 sps:$4 sm:$0xff] (!%p14310_p4)   ;;  %v16991_v59 = vld [vmem:[#allocation8 + $0x30] ss:$8 sps:$4 sm:$0xff] (!%p14310_p4)  }
 0x69e   : > { %10976 = vmatprep.subr.bf16.mxu0 %v16935_v60  ;;  %12008 = vmatprep.subr.bf16.mxu1 %v16938_v61  ;;  %v16992_v60 = vld [vmem:[#allocation8 + $0x130] ss:$8 sps:$4 sm:$0xff] (!%p14310_p4)   ;;  %v16993_v61 = vld [vmem:[#allocation8 + $0x44] ss:$8 sps:$4 sm:$0xff] (!%p14310_p4)  }
 0x6a1   : > { %10977 = vmatpush1.bf16.msra.mxu0 %v16933_v62  ;;  %12009 = vmatpush1.bf16.msra.mxu1 %v16936_v1  ;;  %v16995_v62 = vld [vmem:[#allocation8 + $0x144] ss:$8 sps:$4 sm:$0xff] (!%p14310_p4)   ;;  %v16997_v1 = vld [vmem:[#allocation8 + $0x40] ss:$8 sps:$4 sm:$0xff] (!%p14310_p4)  }
 0x6a2   : > { %10978 = vmatprep.subr.bf16.mxu0 %v16941_v2  ;;  %12010 = vmatprep.subr.bf16.mxu1 %v16944_v5  ;;  %v16998_v2 = vld [vmem:[#allocation8 + $0x140] ss:$8 sps:$4 sm:$0xff] (!%p14310_p4)   ;;  %v16999_v5 = vld [vmem:[#allocation8 + $0x54] ss:$8 sps:$4 sm:$0xff] (!%p14310_p4)  }
 0x6a5   : > { %10979 = vmatpush1.bf16.msra.mxu0 %v16939_v7  ;;  %12011 = vmatpush1.bf16.msra.mxu1 %v16942_v0  ;;  %v17001_v7 = vld [vmem:[#allocation8 + $0x154] ss:$8 sps:$4 sm:$0xff] (!%p14310_p4)   ;;  %v17003_v0 = vld [vmem:[#allocation8 + $0x50] ss:$8 sps:$4 sm:$0xff] (!%p14310_p4)  }
 0x6a6   : > { %10980 = vmatprep.subr.bf16.mxu0 %v16947_v8  ;;  %12012 = vmatprep.subr.bf16.mxu1 %v16950_v9  ;;  %v17004_v8 = vld [vmem:[#allocation8 + $0x150] ss:$8 sps:$4 sm:$0xff] (!%p14310_p4)   ;;  %v17005_v9 = vld [vmem:[#allocation8 + $0x64] ss:$8 sps:$4 sm:$0xff] (!%p14310_p4)  }
 0x6a9   : > { %10981 = vmatpush1.bf16.msra.mxu0 %v16945_v3  ;;  %12013 = vmatpush1.bf16.msra.mxu1 %v16948_v4  ;;  %v17007_v3 = vld [vmem:[#allocation8 + $0x164] ss:$8 sps:$4 sm:$0xff] (!%p14310_p4)   ;;  %v17009_v4 = vld [vmem:[#allocation8 + $0x60] ss:$8 sps:$4 sm:$0xff] (!%p14310_p4)  }
 0x6aa   : > { %10982 = vmatprep.subr.bf16.mxu0 %v16953_v12  ;;  %12014 = vmatprep.subr.bf16.mxu1 %v16956_v13  ;;  %v17010_v12 = vld [vmem:[#allocation8 + $0x160] ss:$8 sps:$4 sm:$0xff] (!%p14310_p4)   ;;  %v17011_v13 = vld [vmem:[#allocation8 + $0x74] ss:$8 sps:$4 sm:$0xff] (!%p14310_p4)  }
 0x6ad   : > { %10983 = vmatpush1.bf16.msra.mxu0 %v16951_v6  ;;  %12015 = vmatpush1.bf16.msra.mxu1 %v16954_v63  ;;  %v17013_v6 = vld [vmem:[#allocation8 + $0x174] ss:$8 sps:$4 sm:$0xff] (!%p14310_p4)   ;;  %v17015_v63 = vld [vmem:[#allocation8 + $0x70] ss:$8 sps:$4 sm:$0xff] (!%p14310_p4)  }
 0x6ae   : > { %10984 = vmatprep.subr.bf16.mxu0 %v16959_v16  ;;  %12016 = vmatprep.subr.bf16.mxu1 %v16962_v17  ;;  %v17016_v16 = vld [vmem:[#allocation8 + $0x170] ss:$8 sps:$4 sm:$0xff] (!%p14310_p4)   ;;  %v17017_v17 = vld [vmem:[#allocation8 + $0x84] ss:$8 sps:$4 sm:$0xff] (!%p14310_p4)  }
 0x6b1   : > { %10985 = vmatpush1.bf16.msra.mxu0 %v16957_v10  ;;  %12017 = vmatpush1.bf16.msra.mxu1 %v16960_v11  ;;  %v17019_v10 = vld [vmem:[#allocation8 + $0x184] ss:$8 sps:$4 sm:$0xff] (!%p14310_p4)   ;;  %v17021_v11 = vld [vmem:[#allocation8 + $0x80] ss:$8 sps:$4 sm:$0xff] (!%p14310_p4)  }
 0x6b2   : > { %10986 = vmatprep.subr.bf16.mxu0 %v16965_v20  ;;  %12018 = vmatprep.subr.bf16.mxu1 %v16968_v21  ;;  %v17022_v20 = vld [vmem:[#allocation8 + $0x180] ss:$8 sps:$4 sm:$0xff] (!%p14310_p4)   ;;  %v17023_v21 = vld [vmem:[#allocation8 + $0x94] ss:$8 sps:$4 sm:$0xff] (!%p14310_p4)  }
 0x6b5   : > { %10987 = vmatpush1.bf16.msra.mxu0 %v16963_v14  ;;  %12019 = vmatpush1.bf16.msra.mxu1 %v16966_v15  ;;  %v12061_v14 = vlaneseq (!%p14310_p4)  ;;  %v17025_v15 = vld [vmem:[#allocation8 + $0x194] ss:$8 sps:$4 sm:$0xff] (!%p14310_p4)  }
 0x6b6   : > { %12497 = vmatprep.subr.bf16.mxu1 (!%p14310_p4), %v16969_v45  ;;  %12540 = vmatprep.subr.bf16.mxu0 (!%p14310_p4), %v16971_v46  ;;  %v17045_v46 = vld [vmem:[#allocation8 + $0xc0] ss:$8 sps:$4 sm:$0xff] (!%p14310_p4)  }
 0x6b8   : > { %10989 = vmatmul.mubr.bf16.vlgmr.msra.gmra.mrb[0].mxu0 %v12772_v24  ;;  %12021 = vmatmul.mubr.bf16.vlgmr.msra.gmra.mrb[0].mxu1 %v12772_v24  ;;  %v17027_v24 = vld [vmem:[#allocation8 + $0x90] ss:$8 sps:$4 sm:$0xff] (!%p14310_p4)  }
 0x6b9   : > { %12498 = vmatpush1.bf16.msra.mxu1 (!%p14310_p4), %v16973_v39  ;;  %12541 = vmatpush1.bf16.msra.mxu0 (!%p14310_p4), %v16974_v48 }
 0x6ba   : > { %12499 = vmatprep.subr.bf16.mxu1 (!%p14310_p4), %v16975_v49  ;;  %12542 = vmatprep.subr.bf16.mxu0 (!%p14310_p4), %v16977_v50  ;;  %v17046_v49 = vld [vmem:[#allocation8 + $0x1c0] ss:$8 sps:$4 sm:$0xff] (!%p14310_p4)  }
 0x6bd   : > { %12500 = vmatpush1.bf16.msra.mxu1 (!%p14310_p4), %v16979_v51  ;;  %12543 = vmatpush1.bf16.msra.mxu0 (!%p14310_p4), %v16980_v52 }
 0x6be   : > { %12501 = vmatprep.subr.bf16.mxu1 (!%p14310_p4), %v16981_v53  ;;  %12544 = vmatprep.subr.bf16.mxu0 (!%p14310_p4), %v16983_v54  ;;  %v17047_v54 = vld [vmem:[#allocation8 + $0xd4] ss:$8 sps:$4 sm:$0xff] (!%p14310_p4)  }
 0x6c1   : > { %12502 = vmatpush1.bf16.msra.mxu1 (!%p14310_p4), %v16985_v55  ;;  %12545 = vmatpush1.bf16.msra.mxu0 (!%p14310_p4), %v16986_v56  ;;  %v17049_v55 = vld [vmem:[#allocation8 + $0x1d4] ss:$8 sps:$4 sm:$0xff] (!%p14310_p4)  }
 0x6c2   : > { %12503 = vmatprep.subr.bf16.mxu1 (!%p14310_p4), %v16987_v57  ;;  %12546 = vmatprep.subr.bf16.mxu0 (!%p14310_p4), %v16989_v58  ;;  %v17051_v58 = vld [vmem:[#allocation8 + $0xd0] ss:$8 sps:$4 sm:$0xff] (!%p14310_p4)  }
 0x6c5   : > { %12504 = vmatpush1.bf16.msra.mxu1 (!%p14310_p4), %v16991_v59  ;;  %12547 = vmatpush1.bf16.msra.mxu0 (!%p14310_p4), %v16992_v60  ;;  %v17052_v59 = vld [vmem:[#allocation8 + $0x1d0] ss:$8 sps:$4 sm:$0xff] (!%p14310_p4)  }
 0x6c6   : > { %12505 = vmatprep.subr.bf16.mxu1 (!%p14310_p4), %v16993_v61  ;;  %12548 = vmatprep.subr.bf16.mxu0 (!%p14310_p4), %v16995_v62 }
 0x6c9   : > { %12506 = vmatpush1.bf16.msra.mxu1 (!%p14310_p4), %v16997_v1  ;;  %12549 = vmatpush1.bf16.msra.mxu0 (!%p14310_p4), %v16998_v2 }
 0x6ca   : > { %12507 = vmatprep.subr.bf16.mxu1 (!%p14310_p4), %v16999_v5  ;;  %12550 = vmatprep.subr.bf16.mxu0 (!%p14310_p4), %v17001_v7  ;;  %v17053_v7 = vld [vmem:[#allocation8 + $0xe4] ss:$8 sps:$4 sm:$0xff] (!%p14310_p4)  }
 0x6cd   : > { %12508 = vmatpush1.bf16.msra.mxu1 (!%p14310_p4), %v17003_v0  ;;  %12551 = vmatpush1.bf16.msra.mxu0 (!%p14310_p4), %v17004_v8  ;;  %v17055_v0 = vld [vmem:[#allocation8 + $0x1e4] ss:$8 sps:$4 sm:$0xff] (!%p14310_p4)  }
 0x6ce   : > { %12509 = vmatprep.subr.bf16.mxu1 (!%p14310_p4), %v17005_v9  ;;  %12552 = vmatprep.subr.bf16.mxu0 (!%p14310_p4), %v17007_v3 }
 0x6d1   : > { %12510 = vmatpush1.bf16.msra.mxu1 (!%p14310_p4), %v17009_v4  ;;  %12553 = vmatpush1.bf16.msra.mxu0 (!%p14310_p4), %v17010_v12  ;;  %v17057_v12 = vld [vmem:[#allocation8 + $0xe0] ss:$8 sps:$4 sm:$0xff] (!%p14310_p4)  }
 0x6d2   : > { %12511 = vmatprep.subr.bf16.mxu1 (!%p14310_p4), %v17011_v13  ;;  %12554 = vmatprep.subr.bf16.mxu0 (!%p14310_p4), %v17013_v6  ;;  %v17058_v13 = vld [vmem:[#allocation8 + $0x1e0] ss:$8 sps:$4 sm:$0xff] (!%p14310_p4)   ;;  %v17059_v6 = vld [vmem:[#allocation8 + $0xf4] ss:$8 sps:$4 sm:$0xff] (!%p14310_p4)  }
 0x6d5   : > { %12512 = vmatpush1.bf16.msra.mxu1 (!%p14310_p4), %v17015_v63  ;;  %12555 = vmatpush1.bf16.msra.mxu0 (!%p14310_p4), %v17016_v16  ;;  %v17061_v63 = vld [vmem:[#allocation8 + $0x1f4] ss:$8 sps:$4 sm:$0xff] (!%p14310_p4)  }
 0x6d6   : > { %12513 = vmatprep.subr.bf16.mxu1 (!%p14310_p4), %v17017_v17  ;;  %12556 = vmatprep.subr.bf16.mxu0 (!%p14310_p4), %v17019_v10 }
 0x6d9   : > { %12514 = vmatpush1.bf16.msra.mxu1 (!%p14310_p4), %v17021_v11  ;;  %12557 = vmatpush1.bf16.msra.mxu0 (!%p14310_p4), %v17022_v20  ;;  %v17063_v20 = vld [vmem:[#allocation8 + $0xf0] ss:$8 sps:$4 sm:$0xff] (!%p14310_p4)  }
 0x6da   : > { %12515 = vmatprep.subr.bf16.mxu1 (!%p14310_p4), %v17023_v21  ;;  %12558 = vmatprep.subr.bf16.mxu0 (!%p14310_p4), %v17025_v15  ;;  %v17064_v21 = vld [vmem:[#allocation8 + $0x1f0] ss:$8 sps:$4 sm:$0xff] (!%p14310_p4)  }
 0x6dd   : > { %12516 = vmatpush1.bf16.msra.mxu1 (!%p14310_p4), %v17027_v24  ;;  %v12165_v24 = vld [vmem:[#allocation9] sm:$0x3] (!%p14310_p4) }
 0x78b   : > { %v10990_v19 = vpop.f32.mrb[0].mxu0  ;;  %v12022_v28 = vpop.f32.mrb[0].mxu1  ;;  %12050 = sbr.rel (%p14310_p4) target bundleno = 2179 (0x883), region = 87 }
 0x78c   : > { %v12031_v23 = vadd.f32 %v10990_v19, %v455_v25  ;;  %v12033_v32 = vadd.f32 %v12022_v28, %v457_v18  ;;  %v10992_v33 = vpop.f32.mrb[1].mxu0  ;;  %v12024_v26 = vpop.f32.mrb[1].mxu1  ;;  %v17028_v25 = vld [vmem:[#allocation8 + $0x190] ss:$8 sps:$4 sm:$0xff] (!%p14310_p4)   ;;  %v17029_v18 = vld [vmem:[#allocation8 + $0xa4] ss:$8 sps:$4 sm:$0xff] (!%p14310_p4)  }
 0x78d   : > { %v12032_v37 = vadd.f32 %v10992_v33, %v456_v47  ;;  %v12034_v42 = vadd.f32 %v12024_v26, %v458_v38  ;;  %v10994_v43 = vpop.f32.mrb[2].mxu0  ;;  %v12026_v30 = vpop.f32.mrb[2].mxu1  ;;  %v19343_v47 = vshrl.u32 (!%p14310_p4), %v12061_v14, 7  ;;  %v17031_v38 = vld [vmem:[#allocation8 + $0x1a4] ss:$8 sps:$4 sm:$0xff] (!%p14310_p4)   ;;  %12559 = vmatpush1.bf16.msra.mxu0 (!%p14310_p4), %v17028_v25  ;;  %12517 = vmatprep.subr.bf16.mxu1 (!%p14310_p4), %v17029_v18 }
 0x78e   : > { %12039 = vst [vmem:[#allocation2] sm:$0xff] %v12031_v23  ;;  %12041 = vst [vmem:[#allocation2 + $0x10] sm:$0xff] %v12033_v32  ;;  %v12035_v31 = vadd.f32 %v10994_v43, %v459_v29  ;;  %v12037_v40 = vadd.f32 %v12026_v30, %v461_v22  ;;  %v10996_v41 = vpop.f32.mrb[3].mxu0  ;;  %v12028_v34 = vpop.f32.mrb[3].mxu1  ;;  %v17033_v19 = vld [vmem:[#allocation8 + $0xa0] ss:$8 sps:$4 sm:$0xff] (!%p14310_p4)   ;;  %12560 = vmatprep.subr.bf16.mxu0 (!%p14310_p4), %v17031_v38 }
 0x78f   : > { %12040 = vst [vmem:[#allocation2 + $0x8] sm:$0xff] %v12032_v37  ;;  %12042 = vst [vmem:[#allocation2 + $0x18] sm:$0xff] %v12034_v42  ;;  %v12036_v35 = vadd.f32 %v10996_v41, %v460_v27  ;;  %v12038_v44 = vadd.f32 %v12028_v34, %v462_v36  ;;  %v17034_v28 = vld [vmem:[#allocation8 + $0x1a0] ss:$8 sps:$4 sm:$0xff] (!%p14310_p4)   ;;  %v17035_v29 = vld [vmem:[#allocation8 + $0xb4] ss:$8 sps:$4 sm:$0xff] (!%p14310_p4)   ;;  %12518 = vmatpush1.bf16.msra.mxu1 (!%p14310_p4), %v17033_v19 }
 0x790   : > { %12043 = vst [vmem:[#allocation2 + $0x20] sm:$0xff] %v12035_v31  ;;  %12045 = vst [vmem:[#allocation2 + $0x30] sm:$0xff] %v12037_v40  ;;  %v12067_v22 = vsub.s32 (!%p14310_p4), 1, %v19343_v47  ;;  %v12075_v23 = vsub.s32 (!%p14310_p4), 3, %v19343_v47  ;;  %v17037_v32 = vld [vmem:[#allocation8 + $0x1b4] ss:$8 sps:$4 sm:$0xff] (!%p14310_p4)   ;;  %12519 = vmatprep.subr.bf16.mxu1 (!%p14310_p4), %v17035_v29 }
 0x791   : > { %12044 = vst [vmem:[#allocation2 + $0x28] sm:$0xff] %v12036_v35  ;;  %12046 = vst [vmem:[#allocation2 + $0x38] sm:$0xff] %v12038_v44  ;;  %v12059_v27 = vld [vmem:[#allocation6] sm:$0xf] (!%p14310_p4)  ;;  %12561 = vmatpush1.bf16.msra.mxu0 (!%p14310_p4), %v17034_v28  ;;  %v17039_v37 = vld [vmem:[#allocation8 + $0xb0] ss:$8 sps:$4 sm:$0xff] (!%p14310_p4)  }
 0x792   : > { %v17040_v42 = vld [vmem:[#allocation8 + $0x1b0] ss:$8 sps:$4 sm:$0xff]   ;;  %v12068_v43 = vrot.slane %v12059_v27, %v12067_v22  ;;  %v12076_v31 = vrot.slane %v12059_v27, %v12075_v23  ;;  %12562 = vmatprep.subr.bf16.mxu0 %v17037_v32  ;;  %v17041_v40 = vld [vmem:[#allocation8 + $0xc4] ss:$8 sps:$4 sm:$0xff]   ;;  %v12063_v39 = vsub.s32 0, %v19343_v47  ;;  %v12071_v48 = vsub.s32 2, %v19343_v47 }
 0x793   : > { %v17043_v41 = vld [vmem:[#allocation8 + $0x1c4] ss:$8 sps:$4 sm:$0xff]   ;;  %12520 = vmatpush1.bf16.msra.mxu1 %v17039_v37  ;;  %v12174_v18 = vrot.slane %v12165_v24, %v12067_v22 }
 0x794   : > { %12521 = vmatprep.subr.bf16.mxu1 %v17041_v40  ;;  %v12064_v61 = vrot.slane %v12059_v27, %v12063_v39  ;;  %v12072_v62 = vrot.slane %v12059_v27, %v12071_v48  ;;  %v12170_v25 = vrot.slane %v12165_v24, %v12063_v39 }
 0x795   : > { %12563 = vmatpush1.bf16.msra.mxu0 %v17040_v42  ;;  %v12051_v60 = vld [vmem:[#allocation2] sm:$0xff]  ;;  %v12053_v2 = vld [vmem:[#allocation2 + $0x10] sm:$0xff] }
 0x796   : > { %v12052_v33 = vld [vmem:[#allocation2 + $0x8] sm:$0xff]  ;;  %v12054_v36 = vld [vmem:[#allocation2 + $0x18] sm:$0xff]  ;;  %12564 = vmatprep.subr.bf16.mxu0 %v17043_v41  ;;  %v12081_v8 = vadd.f32 %v12064_v61, %v12051_v60  ;;  %v12083_v3 = vadd.f32 %v12072_v62, %v12053_v2 }
 0x797   : > { %v12082_v34 = vadd.f32 %v12068_v43, %v12052_v33  ;;  %v12084_v44 = vadd.f32 %v12076_v31, %v12054_v36  ;;  %12522 = vmatpush1.bf16.msra.mxu1 %v17045_v46  ;;  %v12055_v1 = vld [vmem:[#allocation2 + $0x20] sm:$0xff]  ;;  %v12057_v5 = vld [vmem:[#allocation2 + $0x30] sm:$0xff] }
 0x798   : > { %v12056_v26 = vld [vmem:[#allocation2 + $0x28] sm:$0xff]  ;;  %v12058_v30 = vld [vmem:[#allocation2 + $0x38] sm:$0xff]  ;;  %12523 = vmatprep.subr.bf16.mxu1 %v17047_v54  ;;  %v12085_v9 = vadd.f32 %v12064_v61, %v12055_v1  ;;  %v12087_v4 = vadd.f32 %v12072_v62, %v12057_v5  ;;  %v12089_v16 = vmax.f32 %v12081_v8, 0.0  ;;  %v12091_v10 = vmax.f32 %v12083_v3, 0.0 }
 0x799   : > { %v12086_v35 = vadd.f32 %v12068_v43, %v12056_v26  ;;  %v12088_v45 = vadd.f32 %v12076_v31, %v12058_v30  ;;  %v12090_v50 = vmax.f32 %v12082_v34, 0.0  ;;  %v12092_v52 = vmax.f32 %v12084_v44, 0.0  ;;  %12565 = vmatpush1.bf16.msra.mxu0 %v17046_v49 }
 0x79a   : > { %12566 = vmatprep.subr.bf16.mxu0 %v17049_v55  ;;  %v12093_v17 = vmax.f32 %v12085_v9, 0.0  ;;  %v12095_v11 = vmax.f32 %v12087_v4, 0.0 }
 0x79b   : > { %v12094_v51 = vmax.f32 %v12086_v35, 0.0  ;;  %v12096_v53 = vmax.f32 %v12088_v45, 0.0  ;;  %12524 = vmatpush1.bf16.msra.mxu1 %v17051_v58 }
 0x79c   : > { %12525 = vmatprep.subr.bf16.mxu1 %v17053_v7  ;;  %v12097_v14 = vpack.c.bf16 %v12093_v17, %v12089_v16  ;;  %v12099_v15 = vpack.c.bf16 %v12095_v11, %v12091_v10 }
 0x79d   : > { %v12098_v56 = vpack.c.bf16 %v12094_v51, %v12090_v50  ;;  %v12100_v57 = vpack.c.bf16 %v12096_v53, %v12092_v52  ;;  %12567 = vmatpush1.bf16.msra.mxu0 %v17052_v59 }
 0x79e   : > { %12568 = vmatprep.subr.bf16.mxu0 %v17055_v0 }
 0x79f   : > { %12529 = vmatprep.mubr.bf16.mxu1 %v12098_v56  ;;  %12572 = vmatprep.mubr.bf16.mxu0 %v12100_v57 }
 0x7a0   : > { %12526 = vmatpush1.bf16.msra.mxu1 %v17057_v12 }
 0x7a1   : > { %12569 = vmatpush1.bf16.msra.mxu0 %v17058_v13  ;;  %12527 = vmatprep.subr.bf16.mxu1 %v17059_v6 }
 0x7a2   : > { %12570 = vmatprep.subr.bf16.mxu0 %v17061_v63 }
 0x7a4   : > { %12528 = vmatpush1.bf16.msra.mxu1 %v17063_v20 }
 0x7a5   : > { %12571 = vmatpush1.bf16.msra.mxu0 %v17064_v21 }
 0x7a7   : > { %12530 = vmatmul.mubr.bf16.vlgmr.msra.gmra.mrb[0].mxu1 %v12097_v14 }
 0x7a8   : > { %12573 = vmatmul.mubr.bf16.vlgmr.msra.gmra.mrb[0].mxu0 %v12099_v15 }
 0x87a   : > { %v12531_v38 = vpop.f32.mrb[0].mxu1 }
 0x87b   : > { %v12574_v19 = vpop.f32.mrb[0].mxu0  ;;  %v12532_v28 = vadd.f32 %v12531_v38, %v12170_v25  ;;  %v12533_v29 = vpop.f32.mrb[1].mxu1 }
 0x87c   : > { %v12576_v23 = vpop.f32.mrb[1].mxu0  ;;  %v12534_v32 = vadd.f32 %v12533_v29, %v12174_v18  ;;  %v12535_v33 = vpop.f32.mrb[2].mxu1 }
 0x87d   : > { %v12578_v26 = vpop.f32.mrb[2].mxu0  ;;  %v12575_v27 = vadd.f32 %v12574_v19, %v12532_v28  ;;  %v12536_v36 = vadd.f32 %v12535_v33, %v12170_v25  ;;  %v12537_v37 = vpop.f32.mrb[3].mxu1 }
 0x87e   : > { %v12580_v42 = vpop.f32.mrb[3].mxu0  ;;  %v12577_v43 = vadd.f32 %v12576_v23, %v12534_v32  ;;  %v12538_v30 = vadd.f32 %v12537_v37, %v12174_v18 }
 0x87f   : > { %12583 = vst [vmem:[%s19388_s5] sm:$0xff] %v12575_v27  ;;  %v12579_v47 = vadd.f32 %v12578_v26, %v12536_v36 }
 0x880   : > { %12584 = vst [vmem:[%s19388_s5 + $0x8] sm:$0xff] %v12577_v43  ;;  %v12581_v22 = vadd.f32 %v12580_v42, %v12538_v30 }
 0x881   : > { %12585 = vst [vmem:[%s19388_s5 + $0x10] sm:$0xff] %v12579_v47 }
 0x882   : > { %12586 = vst [vmem:[%s19388_s5 + $0x18] sm:$0xff] %v12581_v22 }
 0x883 PF: > { %s20_s23 = sadd.s32 1, %s17235_s23   ;;  %s19409_s14 = sld [smem:[#allocation14_spill]] }
 0x884   : > { %p17_p6 = scmp.ge.s32.totalorder %s20_s23, 4   ;;  %s19410_s18 = smov %s17219_s19 }
 0x885   : > { %s19411_s19 = smov %s17223_s20  ;;  %s19412_s20 = smov %s17332_s6 }
 0x886   : > { %s19413_s21 = smov %s17231_s22  ;;  %19 = sbr.rel (!%p17_p6) target bundleno = 8 (0x8), region = 131 }
 0x889   : > { %s19414_s22 = smov %s19409_s14 }
 0x88d   :  { %12611 = vsyncpa [#allocation5], 1 }
 0x88e   :  { %12613 = vsyncpa [#allocation5 + $0x1], 1 }
 0x88f   :  { %12614 = vsyncpa [#allocation7], 1 }
 0x890   :  { %12615 = vsyncpa [#allocation10], 1 }

</bundles_post_ra>
